<compile_context>
chip_gen: v5e
topology: v5e:2x2
jax: 0.10.0
libtpu: 0.0.40
codegen_flags: <defaults>
</compile_context>

<pallas_src>
import functools

import numpy as np
import jax
import jax.numpy as jnp
from jax import lax
from jax.experimental import pallas as pl
from jax.experimental.pallas import tpu as pltpu

_EPS = 1e-5  # PyTorch GroupNorm default


# ----------------------------------------------------------------------------
# In-kernel building blocks (operate on a per-image (C, N=H*W) tile in VMEM)
# ----------------------------------------------------------------------------
def _silu(x):
    return x * jax.nn.sigmoid(x)


def _group_norm(x, gamma, beta, groups, eps=_EPS):
    """GroupNorm on a (C, N) tile; gamma/beta are (C, 1) f32."""
    C, N = x.shape
    if groups == 1:
        mean = jnp.mean(x)
        xc = x - mean
        var = jnp.mean(xc * xc)
        xn = xc * lax.rsqrt(var + eps)
    elif groups == C:
        mean = jnp.mean(x, axis=1, keepdims=True)
        xc = x - mean
        var = jnp.mean(xc * xc, axis=1, keepdims=True)
        xn = xc * lax.rsqrt(var + eps)
    else:
        cg = C // groups
        xg = x.reshape(groups, cg, N)            # keeps the lane (N) axis intact
        mean = jnp.mean(xg, axis=(1, 2), keepdims=True)
        xc = xg - mean
        var = jnp.mean(xc * xc, axis=(1, 2), keepdims=True)
        xn = (xc * lax.rsqrt(var + eps)).reshape(C, N)
    return xn * gamma + beta


def _conv3x3(x_f32, w9, not_left, not_right, H, W):
    """3x3 'same' conv (padding=1, no bias) on a flat (Cin, N=H*W) tile.

    w9: (9, Cout, Cin) bf16, tap-major (ky*3+kx).  The halo is built in VMEM by
    concatenating (W+1) zero columns on each side; each of the 9 shifted length-N
    slices feeds its own small bf16 MXU matmul accumulated in f32.
    """
    Cin, N = x_f32.shape
    xb = x_f32.astype(jnp.bfloat16)
    zpad = jnp.zeros((Cin, W + 1), jnp.bfloat16)
    xp = jnp.concatenate([zpad, xb, zpad], axis=1)       # (Cin, N + 2W + 2)
    base = W + 1
    acc = None
    t = 0
    for ky in range(3):
        for kx in range(3):
            dy, dx = ky - 1, kx - 1
            start = base + dy * W + dx
            sl = xp[:, start:start + N]
            if dx == -1:                                  # reading x-1 invalid at col 0
                sl = jnp.where(not_left, sl, jnp.zeros_like(sl))
            elif dx == 1:                                 # reading x+1 invalid at col W-1
                sl = jnp.where(not_right, sl, jnp.zeros_like(sl))
            part = jnp.dot(w9[t], sl, preferred_element_type=jnp.float32)
            acc = part if acc is None else acc + part
            t += 1
    return acc                                            # (Cout, N) f32


def _res_block(x, w9a, w9b, b1, g1, be1, b2, g2, be2, tcol, groups,
               not_left, not_right, H, W):
    """PyTorch ResidualBlock: silu(GN(conv2(silu(GN(conv1(x))) + t_proj)) + x)."""
    h = _conv3x3(x, w9a, not_left, not_right, H, W) + b1
    h = _silu(_group_norm(h, g1, be1, groups)) + tcol     # tcol already includes time bias
    h = _conv3x3(h, w9b, not_left, not_right, H, W) + b2
    h = _group_norm(h, g2, be2, groups) + x
    return _silu(h)


def _linear_attention(x, ng, nb, qkv_w, out_w, out_b, og, ob,
                      heads, dim_head, pre_groups):
    """LinearAttention(dim) + the DownBlock residual add, on a (C, N) tile."""
    hidden = heads * dim_head
    scale = dim_head ** (-0.5)
    xn = _group_norm(x, ng, nb, pre_groups)
    qkv = jnp.dot(qkv_w, xn.astype(jnp.bfloat16),
                  preferred_element_type=jnp.float32)      # (3*hidden, N) f32
    head_outs = []
    for h in range(heads):
        lo = h * dim_head
        q = qkv[lo:lo + dim_head]                          # (d, N)
        k = qkv[hidden + lo:hidden + lo + dim_head]
        v = qkv[2 * hidden + lo:2 * hidden + lo + dim_head]
        # q: softmax over the feature axis (then * scale); k: softmax over space
        q = jnp.exp(q - jnp.max(q, axis=0, keepdims=True))
        q = q / jnp.sum(q, axis=0, keepdims=True) * scale
        k = jnp.exp(k - jnp.max(k, axis=1, keepdims=True))
        k = k / jnp.sum(k, axis=1, keepdims=True)
        qb, kb, vb = (a.astype(jnp.bfloat16) for a in (q, k, v))
        # context[d, e] = sum_n k[d, n] v[e, n]
        ctx = lax.dot_general(kb, vb, (((1,), (1,)), ((), ())),
                              preferred_element_type=jnp.float32)        # (d, e)
        # out[e, n] = sum_d ctx[d, e] q[d, n]
        head_outs.append(
            lax.dot_general(ctx.astype(jnp.bfloat16), qb,
                            (((0,), (0,)), ((), ())),
                            preferred_element_type=jnp.float32))         # (e, N)
    attn = jnp.concatenate(head_outs, axis=0)              # (hidden, N)
    proj = jnp.dot(out_w, attn.astype(jnp.bfloat16),
                   preferred_element_type=jnp.float32) + out_b           # (C, N)
    return x + _group_norm(proj, og, ob, 1)                # DownBlock residual add


# ----------------------------------------------------------------------------
# Fused DownBlock kernel (one grid step = one image)
# ----------------------------------------------------------------------------
def _make_downblock_kernel(H, W, C_in, heads, dim_head, groups):
    N = H * W
    No = (H // 2) * (W // 2)

    def kernel(x_ref, t_ref, pv_ref, tw_ref, wres_ref, qkvw_ref, outw_ref,
               convw_ref, g_ref, dw_ref, pvo_ref, o_ref):
        x = x_ref[0]                                       # (C_in, N) f32
        pv = pv_ref[...]                                   # (C_in, 19) merged params
        col = lambda i: pv[:, i:i + 1]

        # spatial masks for the 3x3 halo (hoisted: shared by all five convs)
        cidx = lax.broadcasted_iota(jnp.int32, (1, N), 1) % W
        not_left = cidx != 0
        not_right = cidx != (W - 1)

        # time projections (Linear(SiLU(t_emb)) + bias) for both residual blocks
        st = _silu(t_ref[0])                               # (1, t_dim) f32
        tw = tw_ref[...]                                   # (2*C_in, t_dim) f32
        tp1 = jnp.sum(tw[0:C_in] * st, axis=1, keepdims=True) + col(3)
        tp2 = jnp.sum(tw[C_in:2 * C_in] * st, axis=1, keepdims=True) + col(10)

        # ResidualBlock 1
        h = _res_block(x, wres_ref[0], wres_ref[1], col(0), col(1), col(2),
                       col(4), col(5), col(6), tp1, groups,
                       not_left, not_right, H, W)
        # LinearAttention (pre-GN uses numgroups=8, same as the res blocks here)
        h = _linear_attention(h, col(14), col(15), qkvw_ref[...], outw_ref[...],
                              col(16), col(17), col(18), heads, dim_head, groups)
        # ResidualBlock 2
        h = _res_block(h, wres_ref[2], wres_ref[3], col(7), col(8), col(9),
                       col(11), col(12), col(13), tp2, groups,
                       not_left, not_right, H, W)

        # 3x3 conv C_in -> C_out (bias only)
        pvo = pvo_ref[...]                                 # (C_out, 2)
        hc = _conv3x3(h, convw_ref[...], not_left, not_right, H, W) + pvo[:, 0:1]

        # 4x4 / stride-2 / pad-1 downsample: the de-interleave + shift + zero-pad is a
        # precomputed 0/1 gather matrix; the conv itself is 16 per-tap bf16 matmuls.
        taps = jnp.dot(hc.astype(jnp.bfloat16), g_ref[...],
                       preferred_element_type=jnp.float32)  # (C_out, 16*No)
        wd = dw_ref[...]                                    # (16, C_out, C_out) bf16
        acc = None
        for k in range(16):
            sl = taps[:, k * No:(k + 1) * No].astype(jnp.bfloat16)
            part = jnp.dot(wd[k], sl, preferred_element_type=jnp.float32)
            acc = part if acc is None else acc + part
        o_ref[0] = acc + pvo[:, 1:2]

    return kernel


# ----------------------------------------------------------------------------
# One-time weight packing (outside the jitted step)
# ----------------------------------------------------------------------------
def _pack_conv_taps(w):
    """(Cout, Cin, kh, kw) -> (kh*kw, Cout, Cin) bf16, tap-major."""
    co, ci, kh, kw = w.shape
    return jnp.transpose(w, (2, 3, 0, 1)).reshape(kh * kw, co, ci).astype(jnp.bfloat16)


def _build_downsample_gather(H, W):
    """0/1 matrix G (N, 16*No): column k*No+no selects the source pixel of tap k for
    output position no of a 4x4/stride-2/pad-1 conv (all-zero column if out of bounds)."""
    Ho, Wo = H // 2, W // 2
    N, No = H * W, Ho * Wo
    g = np.zeros((N, 16 * No), np.float32)
    for ky in range(4):
        for kx in range(4):
            k = ky * 4 + kx
            for yo in range(Ho):
                yi = 2 * yo - 1 + ky
                if yi < 0 or yi >= H:
                    continue
                for xo in range(Wo):
                    xi = 2 * xo - 1 + kx
                    if xi < 0 or xi >= W:
                        continue
                    g[yi * W + xi, k * No + yo * Wo + xo] = 1.0
    return jnp.asarray(g, jnp.bfloat16)


def pack_params(params, H, W):
    r1, r2, at = params["res1"], params["res2"], params["attn"]
    C_in = r1["conv1_b"].shape[0]
    hidden = at["out_w"].shape[1]
    pv_cols = [r1["conv1_b"], r1["gn1_g"], r1["gn1_b"], r1["time_b"],
               r1["conv2_b"], r1["gn2_g"], r1["gn2_b"],
               r2["conv1_b"], r2["gn1_g"], r2["gn1_b"], r2["time_b"],
               r2["conv2_b"], r2["gn2_g"], r2["gn2_b"],
               at["norm_g"], at["norm_b"], at["out_b"], at["out_gn_g"], at["out_gn_b"]]
    return dict(
        pvec_in=jnp.stack(pv_cols, axis=1).astype(jnp.float32),           # (C_in, 19)
        pvec_out=jnp.stack([params["conv_b"], params["down_b"]],
                           axis=1).astype(jnp.float32),                   # (C_out, 2)
        tw=jnp.concatenate([r1["time_w"], r2["time_w"]], axis=0).astype(jnp.float32),
        wres=jnp.stack([_pack_conv_taps(r1["conv1_w"]), _pack_conv_taps(r1["conv2_w"]),
                        _pack_conv_taps(r2["conv1_w"]), _pack_conv_taps(r2["conv2_w"])]),
        qkv_w=at["qkv_w"].reshape(3 * hidden, C_in).astype(jnp.bfloat16),
        out_w=at["out_w"].reshape(C_in, hidden).astype(jnp.bfloat16),
        conv_w=_pack_conv_taps(params["conv_w"]),
        down_w=_pack_conv_taps(params["down_w"]),
        gather=_build_downsample_gather(H, W),
    )


# ----------------------------------------------------------------------------
# Forward pass: one pallas_call per DownBlock
# ----------------------------------------------------------------------------
@functools.partial(jax.jit, static_argnames=("H", "W", "heads", "dim_head", "groups"))
def down_block(x, t_emb, packed, *, H, W, heads=4, dim_head=32, groups=8):
    B, C_in = x.shape[0], x.shape[1]
    N, Ho, Wo = H * W, H // 2, W // 2
    No = Ho * Wo
    C_out = packed["pvec_out"].shape[0]
    n_pv = packed["pvec_in"].shape[1]
    t_dim = t_emb.shape[1]
    hidden = heads * dim_head

    x_bcn = x.reshape(B, C_in, N).astype(jnp.float32)
    t3 = t_emb.reshape(B, 1, t_dim).astype(jnp.float32)

    kernel = _make_downblock_kernel(H, W, C_in, heads, dim_head, groups)
    out = pl.pallas_call(
        kernel,
        grid=(B,),
        in_specs=[
            pl.BlockSpec((1, C_in, N), lambda i: (i, 0, 0)),            # activation
            pl.BlockSpec((1, 1, t_dim), lambda i: (i, 0, 0)),           # time embedding
            pl.BlockSpec((C_in, n_pv), lambda i: (0, 0)),               # merged per-ch params
            pl.BlockSpec((2 * C_in, t_dim), lambda i: (0, 0)),          # time weights (x2)
            pl.BlockSpec((4, 9, C_in, C_in), lambda i: (0, 0, 0, 0)),   # res conv weights
            pl.BlockSpec((3 * hidden, C_in), lambda i: (0, 0)),         # qkv 1x1
            pl.BlockSpec((C_in, hidden), lambda i: (0, 0)),             # out 1x1
            pl.BlockSpec((9, C_out, C_in), lambda i: (0, 0, 0)),        # conv C_in->C_out
            pl.BlockSpec((N, 16 * No), lambda i: (0, 0)),               # downsample gather
            pl.BlockSpec((16, C_out, C_out), lambda i: (0, 0, 0)),      # downsample weights
            pl.BlockSpec((C_out, 2), lambda i: (0, 0)),                 # conv/down biases
        ],
        out_specs=pl.BlockSpec((1, C_out, No), lambda i: (i, 0, 0)),
        out_shape=jax.ShapeDtypeStruct((B, C_out, No), jnp.float32),
        compiler_params=pltpu.CompilerParams(
            dimension_semantics=("parallel",),
            vmem_limit_bytes=32 * 1024 * 1024),
    )(x_bcn, t3, packed["pvec_in"], packed["tw"], packed["wres"],
      packed["qkv_w"], packed["out_w"], packed["conv_w"], packed["gather"],
      packed["down_w"], packed["pvec_out"])
    return out.reshape(B, C_out, Ho, Wo)


# ----------------------------------------------------------------------------
# Plain-JAX reference of the same DownBlock (for an in-script correctness check)
# ----------------------------------------------------------------------------
def _ref_conv2d(x, w, b=None, stride=1, padding=1):
    out = lax.conv_general_dilated(
        x, w, (stride, stride), [(padding, padding), (padding, padding)],
        dimension_numbers=("NCHW", "OIHW", "NCHW"), precision=lax.Precision.HIGHEST)
    if b is not None:
        out = out + b.reshape(1, -1, 1, 1)
    return out


def _ref_group_norm(x, g, b, groups, eps=_EPS):
    B, C, H, W = x.shape
    xg = x.reshape(B, groups, C // groups, H, W)
    mean = jnp.mean(xg, axis=(2, 3, 4), keepdims=True)
    var = jnp.mean((xg - mean) ** 2, axis=(2, 3, 4), keepdims=True)
    xn = ((xg - mean) / jnp.sqrt(var + eps)).reshape(B, C, H, W)
    return xn * g.reshape(1, -1, 1, 1) + b.reshape(1, -1, 1, 1)


def _ref_res_block(x, t_emb, p, groups=8):
    h = _ref_conv2d(x, p["conv1_w"], p["conv1_b"])
    h = _silu(_ref_group_norm(h, p["gn1_g"], p["gn1_b"], groups))
    t = _silu(t_emb) @ p["time_w"].T + p["time_b"]
    h = h + t[:, :, None, None]
    h = _ref_conv2d(h, p["conv2_w"], p["conv2_b"])
    h = _ref_group_norm(h, p["gn2_g"], p["gn2_b"], groups)
    return _silu(h + x)


def _ref_linear_attention(x, p, heads, dim_head):
    B, C, H, W = x.shape
    hidden = heads * dim_head
    xn = _ref_group_norm(x, p["norm_g"], p["norm_b"], 8)
    qkv = _ref_conv2d(xn, p["qkv_w"], None, padding=0)
    qkv = qkv.reshape(B, 3, heads, dim_head, H * W)
    q, k, v = qkv[:, 0], qkv[:, 1], qkv[:, 2]
    q = jax.nn.softmax(q, axis=-2) * dim_head ** (-0.5)
    k = jax.nn.softmax(k, axis=-1)
    ctx = jnp.einsum("bhdn,bhen->bhde", k, v, precision=lax.Precision.HIGHEST)
    out = jnp.einsum("bhde,bhdn->bhen", ctx, q, precision=lax.Precision.HIGHEST)
    out = out.reshape(B, hidden, H, W)
    out = _ref_conv2d(out, p["out_w"], p["out_b"], padding=0)
    return _ref_group_norm(out, p["out_gn_g"], p["out_gn_b"], 1)


@functools.partial(jax.jit, static_argnames=("heads", "dim_head"))
def ref_down_block(x, t_emb, params, heads=4, dim_head=32):
    out = _ref_res_block(x, t_emb, params["res1"])
    out = out + _ref_linear_attention(out, params["attn"], heads, dim_head)
    out = _ref_res_block(out, t_emb, params["res2"])
    out = _ref_conv2d(out, params["conv_w"], params["conv_b"])
    return _ref_conv2d(out, params["down_w"], params["down_b"], stride=2, padding=1)


# ----------------------------------------------------------------------------
# Deterministic parameter init (PyTorch-shaped weights)
# ----------------------------------------------------------------------------
def init_params(key, in_ch, out_ch, t_dim, heads=4, dim_head=32):
    keys = iter(jax.random.split(key, 64))

    def nrm(shape, scale=0.1):
        return scale * jax.random.normal(next(keys), shape, jnp.float32)

    def res_params(C):
        return dict(
            conv1_w=nrm((C, C, 3, 3)), conv1_b=nrm((C,)),
            gn1_g=1.0 + nrm((C,)), gn1_b=nrm((C,)),
            time_w=nrm((C, t_dim)), time_b=nrm((C,)),
            conv2_w=nrm((C, C, 3, 3)), conv2_b=nrm((C,)),
            gn2_g=1.0 + nrm((C,)), gn2_b=nrm((C,)),
        )

    hidden = heads * dim_head
    attn = dict(
        norm_g=1.0 + nrm((in_ch,)), norm_b=nrm((in_ch,)),
        qkv_w=nrm((hidden * 3, in_ch, 1, 1)),
        out_w=nrm((in_ch, hidden, 1, 1)), out_b=nrm((in_ch,)),
        out_gn_g=1.0 + nrm((in_ch,)), out_gn_b=nrm((in_ch,)),
    )
    return dict(
        res1=res_params(in_ch), res2=res_params(in_ch), attn=attn,
        conv_w=nrm((out_ch, in_ch, 3, 3)), conv_b=nrm((out_ch,)),
        down_w=nrm((out_ch, out_ch, 4, 4)), down_b=nrm((out_ch,)),
    )


if __name__ == "__main__":
    B, C_IN, C_OUT, H, W, T_DIM = 2, 8, 16, 16, 16, 32
    HEADS, DIM_HEAD = 4, 32

    key = jax.random.PRNGKey(0)
    kx, kt, kp = jax.random.split(key, 3)
    x = jax.random.normal(kx, (B, C_IN, H, W), jnp.float32)
    t_emb = jax.random.normal(kt, (B, T_DIM), jnp.float32)
    params = init_params(kp, C_IN, C_OUT, T_DIM, HEADS, DIM_HEAD)
    packed = pack_params(params, H, W)   # one-time weight re-layout / bf16 cast

    out = down_block(x, t_emb, packed, H=H, W=W, heads=HEADS, dim_head=DIM_HEAD)
    out = jax.block_until_ready(out)
    assert out.shape == (B, C_OUT, H // 2, W // 2), out.shape
    assert bool(jnp.all(jnp.isfinite(out)))

    # Self-check vs. a plain-JAX f32 reference (tolerance covers in-kernel bf16 matmuls).
    ref = jax.block_until_ready(ref_down_block(x, t_emb, params,
                                               heads=HEADS, dim_head=DIM_HEAD))
    max_err = float(jnp.max(jnp.abs(out - ref)))
    tol = 1e-1 + 3e-2 * float(jnp.max(jnp.abs(ref)))
    assert max_err < tol, f"kernel/reference mismatch: max_err={max_err:.4f} tol={tol:.4f}"
    print("KERNEL_OK")
</pallas_src>

<mosaic_0001>
module attributes {stable_mosaic.version = 11 : i64} {
  func.func @kernel(%arg0: i32, %arg1: memref<1x8x256xf32, #tpu.memory_space<vmem>>, %arg2: memref<1x1x32xf32, #tpu.memory_space<vmem>>, %arg3: memref<8x19xf32, #tpu.memory_space<vmem>>, %arg4: memref<16x32xf32, #tpu.memory_space<vmem>>, %arg5: memref<4x9x8x8xbf16, #tpu.memory_space<vmem>>, %arg6: memref<384x8xbf16, #tpu.memory_space<vmem>>, %arg7: memref<8x128xbf16, #tpu.memory_space<vmem>>, %arg8: memref<9x16x8xbf16, #tpu.memory_space<vmem>>, %arg9: memref<256x1024xbf16, #tpu.memory_space<vmem>>, %arg10: memref<16x16x16xbf16, #tpu.memory_space<vmem>>, %arg11: memref<16x2xf32, #tpu.memory_space<vmem>>, %arg12: memref<1x16x64xf32, #tpu.memory_space<vmem>>) attributes {dimension_semantics = [#tpu.dimension_semantics<parallel>], iteration_bounds = array<i64: 2>, scalar_prefetch = 0 : i64, scratch_operands = 0 : i64, tpu.core_type = #tpu.core_type<tc>, window_params = [{transform_indices = @transform_0, window_bounds = array<i64: 1, 8, 256>}, {transform_indices = @transform_1, window_bounds = array<i64: 1, 1, 32>}, {pipeline_mode = #tpu.pipeline_mode<synchronous>, transform_indices = @transform_2, window_bounds = array<i64: 8, 19>}, {pipeline_mode = #tpu.pipeline_mode<synchronous>, transform_indices = @transform_3, window_bounds = array<i64: 16, 32>}, {pipeline_mode = #tpu.pipeline_mode<synchronous>, transform_indices = @transform_4, window_bounds = array<i64: 4, 9, 8, 8>}, {pipeline_mode = #tpu.pipeline_mode<synchronous>, transform_indices = @transform_5, window_bounds = array<i64: 384, 8>}, {pipeline_mode = #tpu.pipeline_mode<synchronous>, transform_indices = @transform_6, window_bounds = array<i64: 8, 128>}, {pipeline_mode = #tpu.pipeline_mode<synchronous>, transform_indices = @transform_7, window_bounds = array<i64: 9, 16, 8>}, {pipeline_mode = #tpu.pipeline_mode<synchronous>, transform_indices = @transform_8, window_bounds = array<i64: 256, 1024>}, {pipeline_mode = #tpu.pipeline_mode<synchronous>, transform_indices = @transform_9, window_bounds = array<i64: 16, 16, 16>}, {pipeline_mode = #tpu.pipeline_mode<synchronous>, transform_indices = @transform_10, window_bounds = array<i64: 16, 2>}, {transform_indices = @transform_11, window_bounds = array<i64: 1, 16, 64>}]} {
    %c0 = arith.constant 0 : index
    %c0_0 = arith.constant 0 : index
    %c0_1 = arith.constant 0 : index
    %0 = vector.load %arg1[%c0, %c0_0, %c0_1] : memref<1x8x256xf32, #tpu.memory_space<vmem>>, vector<1x8x256xf32>
    %1 = vector.shape_cast %0 : vector<1x8x256xf32> to vector<8x256xf32>
    %c0_2 = arith.constant 0 : index
    %c0_3 = arith.constant 0 : index
    %2 = vector.load %arg3[%c0_2, %c0_3] : memref<8x19xf32, #tpu.memory_space<vmem>>, vector<8x19xf32>
    %3 = tpu.iota {dimensions = array<i32: 1>} : vector<1x256xi32>
    %c16_i32 = arith.constant 16 : i32
    %c0_i32 = arith.constant 0 : i32
    %4 = arith.cmpi eq, %c16_i32, %c0_i32 : i32
    %c1_i32 = arith.constant 1 : i32
    %5 = arith.select %4, %c1_i32, %c16_i32 : i32
    %6 = vector.broadcast %5 : i32 to vector<1x256xi32>
    %7 = arith.remsi %3, %6 : vector<1x256xi32>
    %c0_i32_4 = arith.constant 0 : i32
    %8 = vector.broadcast %c0_i32_4 : i32 to vector<1x256xi32>
    %9 = arith.cmpi ne, %7, %8 : vector<1x256xi32>
    %c0_i32_5 = arith.constant 0 : i32
    %10 = vector.broadcast %c0_i32_5 : i32 to vector<1x256xi32>
    %11 = arith.cmpi slt, %7, %10 : vector<1x256xi32>
    %c0_i32_6 = arith.constant 0 : i32
    %12 = arith.cmpi slt, %5, %c0_i32_6 : i32
    %13 = vector.broadcast %12 : i1 to vector<1x256xi1>
    %14 = vector.broadcast %13 : vector<1x256xi1> to vector<1x256xi1>
    %15 = arith.xori %11, %14 : vector<1x256xi1>
    %16 = arith.andi %15, %9 : vector<1x256xi1>
    %17 = vector.broadcast %5 : i32 to vector<1x256xi32>
    %18 = arith.addi %7, %17 : vector<1x256xi32>
    %19 = arith.select %16, %18, %7 : vector<1x256xi1>, vector<1x256xi32>
    %c0_i32_7 = arith.constant 0 : i32
    %20 = vector.broadcast %c0_i32_7 : i32 to vector<1x256xi32>
    %21 = arith.cmpi ne, %19, %20 : vector<1x256xi32>
    %c15_i32 = arith.constant 15 : i32
    %22 = vector.broadcast %c15_i32 : i32 to vector<1x256xi32>
    %23 = arith.cmpi ne, %19, %22 : vector<1x256xi32>
    %c0_8 = arith.constant 0 : index
    %c0_9 = arith.constant 0 : index
    %c0_10 = arith.constant 0 : index
    %24 = vector.load %arg2[%c0_8, %c0_9, %c0_10] : memref<1x1x32xf32, #tpu.memory_space<vmem>>, vector<1x1x32xf32>
    %25 = vector.shape_cast %24 : vector<1x1x32xf32> to vector<1x32xf32>
    %26 = arith.negf %25 : vector<1x32xf32>
    %27 = math.exp %26 : vector<1x32xf32>
    %cst = arith.constant 1.000000e+00 : f32
    %28 = vector.broadcast %cst : f32 to vector<1x32xf32>
    %29 = arith.addf %28, %27 : vector<1x32xf32>
    %30 = arith.divf %28, %29 : vector<1x32xf32>
    %31 = arith.mulf %25, %30 : vector<1x32xf32>
    %c0_11 = arith.constant 0 : index
    %c0_12 = arith.constant 0 : index
    %32 = vector.load %arg4[%c0_11, %c0_12] : memref<16x32xf32, #tpu.memory_space<vmem>>, vector<16x32xf32>
    %33 = vector.extract_strided_slice %32 {offsets = [0, 0], sizes = [8, 32], strides = [1, 1]} : vector<16x32xf32> to vector<8x32xf32>
    %34 = vector.broadcast %31 : vector<1x32xf32> to vector<8x32xf32>
    %35 = arith.mulf %33, %34 : vector<8x32xf32>
    %cst_13 = arith.constant dense<0.000000e+00> : vector<8xf32>
    %36 = vector.multi_reduction <add>, %35, %cst_13 [1] : vector<8x32xf32> to vector<8xf32>
    %37 = vector.shape_cast %36 : vector<8xf32> to vector<8x1xf32>
    %38 = vector.extract_strided_slice %2 {offsets = [0, 3], sizes = [8, 1], strides = [1, 1]} : vector<8x19xf32> to vector<8x1xf32>
    %39 = arith.addf %37, %38 : vector<8x1xf32>
    %40 = vector.extract_strided_slice %32 {offsets = [8, 0], sizes = [8, 32], strides = [1, 1]} : vector<16x32xf32> to vector<8x32xf32>
    %41 = vector.broadcast %31 : vector<1x32xf32> to vector<8x32xf32>
    %42 = arith.mulf %40, %41 : vector<8x32xf32>
    %cst_14 = arith.constant dense<0.000000e+00> : vector<8xf32>
    %43 = vector.multi_reduction <add>, %42, %cst_14 [1] : vector<8x32xf32> to vector<8xf32>
    %44 = vector.shape_cast %43 : vector<8xf32> to vector<8x1xf32>
    %45 = vector.extract_strided_slice %2 {offsets = [0, 10], sizes = [8, 1], strides = [1, 1]} : vector<8x19xf32> to vector<8x1xf32>
    %46 = arith.addf %44, %45 : vector<8x1xf32>
    %c0_15 = arith.constant 0 : index
    %c0_16 = arith.constant 0 : index
    %c0_17 = arith.constant 0 : index
    %c0_18 = arith.constant 0 : index
    %47 = vector.load %arg5[%c0_15, %c0_16, %c0_17, %c0_18] : memref<4x9x8x8xbf16, #tpu.memory_space<vmem>>, vector<1x9x8x8xbf16>
    %48 = vector.shape_cast %47 : vector<1x9x8x8xbf16> to vector<9x8x8xbf16>
    %c1 = arith.constant 1 : index
    %c0_19 = arith.constant 0 : index
    %c0_20 = arith.constant 0 : index
    %c0_21 = arith.constant 0 : index
    %49 = vector.load %arg5[%c1, %c0_19, %c0_20, %c0_21] : memref<4x9x8x8xbf16, #tpu.memory_space<vmem>>, vector<1x9x8x8xbf16>
    %50 = vector.shape_cast %49 : vector<1x9x8x8xbf16> to vector<9x8x8xbf16>
    %51 = vector.extract_strided_slice %2 {offsets = [0, 0], sizes = [8, 1], strides = [1, 1]} : vector<8x19xf32> to vector<8x1xf32>
    %52 = vector.extract_strided_slice %2 {offsets = [0, 1], sizes = [8, 1], strides = [1, 1]} : vector<8x19xf32> to vector<8x1xf32>
    %53 = vector.extract_strided_slice %2 {offsets = [0, 2], sizes = [8, 1], strides = [1, 1]} : vector<8x19xf32> to vector<8x1xf32>
    %54 = vector.extract_strided_slice %2 {offsets = [0, 4], sizes = [8, 1], strides = [1, 1]} : vector<8x19xf32> to vector<8x1xf32>
    %55 = vector.extract_strided_slice %2 {offsets = [0, 5], sizes = [8, 1], strides = [1, 1]} : vector<8x19xf32> to vector<8x1xf32>
    %56 = vector.extract_strided_slice %2 {offsets = [0, 6], sizes = [8, 1], strides = [1, 1]} : vector<8x19xf32> to vector<8x1xf32>
    %57 = arith.truncf %1 : vector<8x256xf32> to vector<8x256xbf16>
    %cst_22 = arith.constant 0.000000e+00 : bf16
    %58 = vector.broadcast %cst_22 : bf16 to vector<8x17xbf16>
    %59 = tpu.concatenate %58, %57, %58 in 1 : vector<8x17xbf16>, vector<8x256xbf16>, vector<8x17xbf16> -> vector<8x290xbf16>
    %60 = vector.extract_strided_slice %59 {offsets = [0, 0], sizes = [8, 256], strides = [1, 1]} : vector<8x290xbf16> to vector<8x256xbf16>
    %cst_23 = arith.constant 0.000000e+00 : bf16
    %61 = vector.broadcast %cst_23 : bf16 to vector<8x256xbf16>
    %62 = vector.shape_cast %21 : vector<1x256xi1> to vector<1x256xi1>
    %63 = vector.broadcast %62 : vector<1x256xi1> to vector<8x256xi1>
    %64 = arith.select %63, %60, %61 : vector<8x256xi1>, vector<8x256xbf16>
    %65 = vector.extract_strided_slice %48 {offsets = [0, 0, 0], sizes = [1, 8, 8], strides = [1, 1, 1]} : vector<9x8x8xbf16> to vector<1x8x8xbf16>
    %66 = vector.shape_cast %65 : vector<1x8x8xbf16> to vector<8x8xbf16>
    %cst_24 = arith.constant dense<0.000000e+00> : vector<8x256xf32>
    %67 = tpu.matmul %66, %64, %cst_24 {dimension_numbers = #tpu.dot_dimension_numbers<[1], [0], [0], [1], [0, 0, 1, 1], [], []>} : vector<8x8xbf16>, vector<8x256xbf16>, vector<8x256xf32> -> vector<8x256xf32>
    %68 = vector.extract_strided_slice %59 {offsets = [0, 1], sizes = [8, 256], strides = [1, 1]} : vector<8x290xbf16> to vector<8x256xbf16>
    %69 = vector.extract_strided_slice %48 {offsets = [1, 0, 0], sizes = [1, 8, 8], strides = [1, 1, 1]} : vector<9x8x8xbf16> to vector<1x8x8xbf16>
    %70 = vector.shape_cast %69 : vector<1x8x8xbf16> to vector<8x8xbf16>
    %cst_25 = arith.constant dense<0.000000e+00> : vector<8x256xf32>
    %71 = tpu.matmul %70, %68, %cst_25 {dimension_numbers = #tpu.dot_dimension_numbers<[1], [0], [0], [1], [0, 0, 1, 1], [], []>} : vector<8x8xbf16>, vector<8x256xbf16>, vector<8x256xf32> -> vector<8x256xf32>
    %72 = arith.addf %67, %71 : vector<8x256xf32>
    %73 = vector.extract_strided_slice %59 {offsets = [0, 2], sizes = [8, 256], strides = [1, 1]} : vector<8x290xbf16> to vector<8x256xbf16>
    %cst_26 = arith.constant 0.000000e+00 : bf16
    %74 = vector.broadcast %cst_26 : bf16 to vector<8x256xbf16>
    %75 = vector.shape_cast %23 : vector<1x256xi1> to vector<1x256xi1>
    %76 = vector.broadcast %75 : vector<1x256xi1> to vector<8x256xi1>
    %77 = arith.select %76, %73, %74 : vector<8x256xi1>, vector<8x256xbf16>
    %78 = vector.extract_strided_slice %48 {offsets = [2, 0, 0], sizes = [1, 8, 8], strides = [1, 1, 1]} : vector<9x8x8xbf16> to vector<1x8x8xbf16>
    %79 = vector.shape_cast %78 : vector<1x8x8xbf16> to vector<8x8xbf16>
    %cst_27 = arith.constant dense<0.000000e+00> : vector<8x256xf32>
    %80 = tpu.matmul %79, %77, %cst_27 {dimension_numbers = #tpu.dot_dimension_numbers<[1], [0], [0], [1], [0, 0, 1, 1], [], []>} : vector<8x8xbf16>, vector<8x256xbf16>, vector<8x256xf32> -> vector<8x256xf32>
    %81 = arith.addf %72, %80 : vector<8x256xf32>
    %82 = vector.extract_strided_slice %59 {offsets = [0, 16], sizes = [8, 256], strides = [1, 1]} : vector<8x290xbf16> to vector<8x256xbf16>
    %cst_28 = arith.constant 0.000000e+00 : bf16
    %83 = vector.broadcast %cst_28 : bf16 to vector<8x256xbf16>
    %84 = vector.shape_cast %21 : vector<1x256xi1> to vector<1x256xi1>
    %85 = vector.broadcast %84 : vector<1x256xi1> to vector<8x256xi1>
    %86 = arith.select %85, %82, %83 : vector<8x256xi1>, vector<8x256xbf16>
    %87 = vector.extract_strided_slice %48 {offsets = [3, 0, 0], sizes = [1, 8, 8], strides = [1, 1, 1]} : vector<9x8x8xbf16> to vector<1x8x8xbf16>
    %88 = vector.shape_cast %87 : vector<1x8x8xbf16> to vector<8x8xbf16>
    %cst_29 = arith.constant dense<0.000000e+00> : vector<8x256xf32>
    %89 = tpu.matmul %88, %86, %cst_29 {dimension_numbers = #tpu.dot_dimension_numbers<[1], [0], [0], [1], [0, 0, 1, 1], [], []>} : vector<8x8xbf16>, vector<8x256xbf16>, vector<8x256xf32> -> vector<8x256xf32>
    %90 = arith.addf %81, %89 : vector<8x256xf32>
    %91 = vector.extract_strided_slice %59 {offsets = [0, 17], sizes = [8, 256], strides = [1, 1]} : vector<8x290xbf16> to vector<8x256xbf16>
    %92 = vector.extract_strided_slice %48 {offsets = [4, 0, 0], sizes = [1, 8, 8], strides = [1, 1, 1]} : vector<9x8x8xbf16> to vector<1x8x8xbf16>
    %93 = vector.shape_cast %92 : vector<1x8x8xbf16> to vector<8x8xbf16>
    %cst_30 = arith.constant dense<0.000000e+00> : vector<8x256xf32>
    %94 = tpu.matmul %93, %91, %cst_30 {dimension_numbers = #tpu.dot_dimension_numbers<[1], [0], [0], [1], [0, 0, 1, 1], [], []>} : vector<8x8xbf16>, vector<8x256xbf16>, vector<8x256xf32> -> vector<8x256xf32>
    %95 = arith.addf %90, %94 : vector<8x256xf32>
    %96 = vector.extract_strided_slice %59 {offsets = [0, 18], sizes = [8, 256], strides = [1, 1]} : vector<8x290xbf16> to vector<8x256xbf16>
    %cst_31 = arith.constant 0.000000e+00 : bf16
    %97 = vector.broadcast %cst_31 : bf16 to vector<8x256xbf16>
    %98 = vector.shape_cast %23 : vector<1x256xi1> to vector<1x256xi1>
    %99 = vector.broadcast %98 : vector<1x256xi1> to vector<8x256xi1>
    %100 = arith.select %99, %96, %97 : vector<8x256xi1>, vector<8x256xbf16>
    %101 = vector.extract_strided_slice %48 {offsets = [5, 0, 0], sizes = [1, 8, 8], strides = [1, 1, 1]} : vector<9x8x8xbf16> to vector<1x8x8xbf16>
    %102 = vector.shape_cast %101 : vector<1x8x8xbf16> to vector<8x8xbf16>
    %cst_32 = arith.constant dense<0.000000e+00> : vector<8x256xf32>
    %103 = tpu.matmul %102, %100, %cst_32 {dimension_numbers = #tpu.dot_dimension_numbers<[1], [0], [0], [1], [0, 0, 1, 1], [], []>} : vector<8x8xbf16>, vector<8x256xbf16>, vector<8x256xf32> -> vector<8x256xf32>
    %104 = arith.addf %95, %103 : vector<8x256xf32>
    %105 = vector.extract_strided_slice %59 {offsets = [0, 32], sizes = [8, 256], strides = [1, 1]} : vector<8x290xbf16> to vector<8x256xbf16>
    %cst_33 = arith.constant 0.000000e+00 : bf16
    %106 = vector.broadcast %cst_33 : bf16 to vector<8x256xbf16>
    %107 = vector.shape_cast %21 : vector<1x256xi1> to vector<1x256xi1>
    %108 = vector.broadcast %107 : vector<1x256xi1> to vector<8x256xi1>
    %109 = arith.select %108, %105, %106 : vector<8x256xi1>, vector<8x256xbf16>
    %110 = vector.extract_strided_slice %48 {offsets = [6, 0, 0], sizes = [1, 8, 8], strides = [1, 1, 1]} : vector<9x8x8xbf16> to vector<1x8x8xbf16>
    %111 = vector.shape_cast %110 : vector<1x8x8xbf16> to vector<8x8xbf16>
    %cst_34 = arith.constant dense<0.000000e+00> : vector<8x256xf32>
    %112 = tpu.matmul %111, %109, %cst_34 {dimension_numbers = #tpu.dot_dimension_numbers<[1], [0], [0], [1], [0, 0, 1, 1], [], []>} : vector<8x8xbf16>, vector<8x256xbf16>, vector<8x256xf32> -> vector<8x256xf32>
    %113 = arith.addf %104, %112 : vector<8x256xf32>
    %114 = vector.extract_strided_slice %59 {offsets = [0, 33], sizes = [8, 256], strides = [1, 1]} : vector<8x290xbf16> to vector<8x256xbf16>
    %115 = vector.extract_strided_slice %48 {offsets = [7, 0, 0], sizes = [1, 8, 8], strides = [1, 1, 1]} : vector<9x8x8xbf16> to vector<1x8x8xbf16>
    %116 = vector.shape_cast %115 : vector<1x8x8xbf16> to vector<8x8xbf16>
    %cst_35 = arith.constant dense<0.000000e+00> : vector<8x256xf32>
    %117 = tpu.matmul %116, %114, %cst_35 {dimension_numbers = #tpu.dot_dimension_numbers<[1], [0], [0], [1], [0, 0, 1, 1], [], []>} : vector<8x8xbf16>, vector<8x256xbf16>, vector<8x256xf32> -> vector<8x256xf32>
    %118 = arith.addf %113, %117 : vector<8x256xf32>
    %119 = vector.extract_strided_slice %59 {offsets = [0, 34], sizes = [8, 256], strides = [1, 1]} : vector<8x290xbf16> to vector<8x256xbf16>
    %cst_36 = arith.constant 0.000000e+00 : bf16
    %120 = vector.broadcast %cst_36 : bf16 to vector<8x256xbf16>
    %121 = vector.shape_cast %23 : vector<1x256xi1> to vector<1x256xi1>
    %122 = vector.broadcast %121 : vector<1x256xi1> to vector<8x256xi1>
    %123 = arith.select %122, %119, %120 : vector<8x256xi1>, vector<8x256xbf16>
    %124 = vector.extract_strided_slice %48 {offsets = [8, 0, 0], sizes = [1, 8, 8], strides = [1, 1, 1]} : vector<9x8x8xbf16> to vector<1x8x8xbf16>
    %125 = vector.shape_cast %124 : vector<1x8x8xbf16> to vector<8x8xbf16>
    %cst_37 = arith.constant dense<0.000000e+00> : vector<8x256xf32>
    %126 = tpu.matmul %125, %123, %cst_37 {dimension_numbers = #tpu.dot_dimension_numbers<[1], [0], [0], [1], [0, 0, 1, 1], [], []>} : vector<8x8xbf16>, vector<8x256xbf16>, vector<8x256xf32> -> vector<8x256xf32>
    %127 = arith.addf %118, %126 : vector<8x256xf32>
    %128 = vector.broadcast %51 : vector<8x1xf32> to vector<8x256xf32>
    %129 = arith.addf %127, %128 : vector<8x256xf32>
    %cst_38 = arith.constant dense<0.000000e+00> : vector<8xf32>
    %130 = vector.multi_reduction <add>, %129, %cst_38 [1] : vector<8x256xf32> to vector<8xf32>
    %131 = vector.shape_cast %130 : vector<8xf32> to vector<8x1xf32>
    %cst_39 = arith.constant 2.560000e+02 : f32
    %132 = vector.broadcast %cst_39 : f32 to vector<8x1xf32>
    %133 = arith.divf %131, %132 : vector<8x1xf32>
    %134 = vector.broadcast %133 : vector<8x1xf32> to vector<8x256xf32>
    %135 = arith.subf %129, %134 : vector<8x256xf32>
    %136 = arith.mulf %135, %135 : vector<8x256xf32>
    %cst_40 = arith.constant dense<0.000000e+00> : vector<8xf32>
    %137 = vector.multi_reduction <add>, %136, %cst_40 [1] : vector<8x256xf32> to vector<8xf32>
    %138 = vector.shape_cast %137 : vector<8xf32> to vector<8x1xf32>
    %cst_41 = arith.constant 2.560000e+02 : f32
    %139 = vector.broadcast %cst_41 : f32 to vector<8x1xf32>
    %140 = arith.divf %138, %139 : vector<8x1xf32>
    %cst_42 = arith.constant 9.99999974E-6 : f32
    %141 = vector.broadcast %cst_42 : f32 to vector<8x1xf32>
    %142 = arith.addf %140, %141 : vector<8x1xf32>
    %143 = math.rsqrt %142 : vector<8x1xf32>
    %144 = vector.broadcast %143 : vector<8x1xf32> to vector<8x256xf32>
    %145 = arith.mulf %135, %144 : vector<8x256xf32>
    %146 = vector.broadcast %52 : vector<8x1xf32> to vector<8x256xf32>
    %147 = arith.mulf %145, %146 : vector<8x256xf32>
    %148 = vector.broadcast %53 : vector<8x1xf32> to vector<8x256xf32>
    %149 = arith.addf %147, %148 : vector<8x256xf32>
    %150 = arith.negf %149 : vector<8x256xf32>
    %151 = math.exp %150 : vector<8x256xf32>
    %cst_43 = arith.constant 1.000000e+00 : f32
    %152 = vector.broadcast %cst_43 : f32 to vector<8x256xf32>
    %153 = arith.addf %152, %151 : vector<8x256xf32>
    %154 = arith.divf %152, %153 : vector<8x256xf32>
    %155 = arith.mulf %149, %154 : vector<8x256xf32>
    %156 = vector.broadcast %39 : vector<8x1xf32> to vector<8x256xf32>
    %157 = arith.addf %155, %156 : vector<8x256xf32>
    %158 = arith.truncf %157 : vector<8x256xf32> to vector<8x256xbf16>
    %cst_44 = arith.constant 0.000000e+00 : bf16
    %159 = vector.broadcast %cst_44 : bf16 to vector<8x17xbf16>
    %160 = tpu.concatenate %159, %158, %159 in 1 : vector<8x17xbf16>, vector<8x256xbf16>, vector<8x17xbf16> -> vector<8x290xbf16>
    %161 = vector.extract_strided_slice %160 {offsets = [0, 0], sizes = [8, 256], strides = [1, 1]} : vector<8x290xbf16> to vector<8x256xbf16>
    %cst_45 = arith.constant 0.000000e+00 : bf16
    %162 = vector.broadcast %cst_45 : bf16 to vector<8x256xbf16>
    %163 = vector.shape_cast %21 : vector<1x256xi1> to vector<1x256xi1>
    %164 = vector.broadcast %163 : vector<1x256xi1> to vector<8x256xi1>
    %165 = arith.select %164, %161, %162 : vector<8x256xi1>, vector<8x256xbf16>
    %166 = vector.extract_strided_slice %50 {offsets = [0, 0, 0], sizes = [1, 8, 8], strides = [1, 1, 1]} : vector<9x8x8xbf16> to vector<1x8x8xbf16>
    %167 = vector.shape_cast %166 : vector<1x8x8xbf16> to vector<8x8xbf16>
    %cst_46 = arith.constant dense<0.000000e+00> : vector<8x256xf32>
    %168 = tpu.matmul %167, %165, %cst_46 {dimension_numbers = #tpu.dot_dimension_numbers<[1], [0], [0], [1], [0, 0, 1, 1], [], []>} : vector<8x8xbf16>, vector<8x256xbf16>, vector<8x256xf32> -> vector<8x256xf32>
    %169 = vector.extract_strided_slice %160 {offsets = [0, 1], sizes = [8, 256], strides = [1, 1]} : vector<8x290xbf16> to vector<8x256xbf16>
    %170 = vector.extract_strided_slice %50 {offsets = [1, 0, 0], sizes = [1, 8, 8], strides = [1, 1, 1]} : vector<9x8x8xbf16> to vector<1x8x8xbf16>
    %171 = vector.shape_cast %170 : vector<1x8x8xbf16> to vector<8x8xbf16>
    %cst_47 = arith.constant dense<0.000000e+00> : vector<8x256xf32>
    %172 = tpu.matmul %171, %169, %cst_47 {dimension_numbers = #tpu.dot_dimension_numbers<[1], [0], [0], [1], [0, 0, 1, 1], [], []>} : vector<8x8xbf16>, vector<8x256xbf16>, vector<8x256xf32> -> vector<8x256xf32>
    %173 = arith.addf %168, %172 : vector<8x256xf32>
    %174 = vector.extract_strided_slice %160 {offsets = [0, 2], sizes = [8, 256], strides = [1, 1]} : vector<8x290xbf16> to vector<8x256xbf16>
    %cst_48 = arith.constant 0.000000e+00 : bf16
    %175 = vector.broadcast %cst_48 : bf16 to vector<8x256xbf16>
    %176 = vector.shape_cast %23 : vector<1x256xi1> to vector<1x256xi1>
    %177 = vector.broadcast %176 : vector<1x256xi1> to vector<8x256xi1>
    %178 = arith.select %177, %174, %175 : vector<8x256xi1>, vector<8x256xbf16>
    %179 = vector.extract_strided_slice %50 {offsets = [2, 0, 0], sizes = [1, 8, 8], strides = [1, 1, 1]} : vector<9x8x8xbf16> to vector<1x8x8xbf16>
    %180 = vector.shape_cast %179 : vector<1x8x8xbf16> to vector<8x8xbf16>
    %cst_49 = arith.constant dense<0.000000e+00> : vector<8x256xf32>
    %181 = tpu.matmul %180, %178, %cst_49 {dimension_numbers = #tpu.dot_dimension_numbers<[1], [0], [0], [1], [0, 0, 1, 1], [], []>} : vector<8x8xbf16>, vector<8x256xbf16>, vector<8x256xf32> -> vector<8x256xf32>
    %182 = arith.addf %173, %181 : vector<8x256xf32>
    %183 = vector.extract_strided_slice %160 {offsets = [0, 16], sizes = [8, 256], strides = [1, 1]} : vector<8x290xbf16> to vector<8x256xbf16>
    %cst_50 = arith.constant 0.000000e+00 : bf16
    %184 = vector.broadcast %cst_50 : bf16 to vector<8x256xbf16>
    %185 = vector.shape_cast %21 : vector<1x256xi1> to vector<1x256xi1>
    %186 = vector.broadcast %185 : vector<1x256xi1> to vector<8x256xi1>
    %187 = arith.select %186, %183, %184 : vector<8x256xi1>, vector<8x256xbf16>
    %188 = vector.extract_strided_slice %50 {offsets = [3, 0, 0], sizes = [1, 8, 8], strides = [1, 1, 1]} : vector<9x8x8xbf16> to vector<1x8x8xbf16>
    %189 = vector.shape_cast %188 : vector<1x8x8xbf16> to vector<8x8xbf16>
    %cst_51 = arith.constant dense<0.000000e+00> : vector<8x256xf32>
    %190 = tpu.matmul %189, %187, %cst_51 {dimension_numbers = #tpu.dot_dimension_numbers<[1], [0], [0], [1], [0, 0, 1, 1], [], []>} : vector<8x8xbf16>, vector<8x256xbf16>, vector<8x256xf32> -> vector<8x256xf32>
    %191 = arith.addf %182, %190 : vector<8x256xf32>
    %192 = vector.extract_strided_slice %160 {offsets = [0, 17], sizes = [8, 256], strides = [1, 1]} : vector<8x290xbf16> to vector<8x256xbf16>
    %193 = vector.extract_strided_slice %50 {offsets = [4, 0, 0], sizes = [1, 8, 8], strides = [1, 1, 1]} : vector<9x8x8xbf16> to vector<1x8x8xbf16>
    %194 = vector.shape_cast %193 : vector<1x8x8xbf16> to vector<8x8xbf16>
    %cst_52 = arith.constant dense<0.000000e+00> : vector<8x256xf32>
    %195 = tpu.matmul %194, %192, %cst_52 {dimension_numbers = #tpu.dot_dimension_numbers<[1], [0], [0], [1], [0, 0, 1, 1], [], []>} : vector<8x8xbf16>, vector<8x256xbf16>, vector<8x256xf32> -> vector<8x256xf32>
    %196 = arith.addf %191, %195 : vector<8x256xf32>
    %197 = vector.extract_strided_slice %160 {offsets = [0, 18], sizes = [8, 256], strides = [1, 1]} : vector<8x290xbf16> to vector<8x256xbf16>
    %cst_53 = arith.constant 0.000000e+00 : bf16
    %198 = vector.broadcast %cst_53 : bf16 to vector<8x256xbf16>
    %199 = vector.shape_cast %23 : vector<1x256xi1> to vector<1x256xi1>
    %200 = vector.broadcast %199 : vector<1x256xi1> to vector<8x256xi1>
    %201 = arith.select %200, %197, %198 : vector<8x256xi1>, vector<8x256xbf16>
    %202 = vector.extract_strided_slice %50 {offsets = [5, 0, 0], sizes = [1, 8, 8], strides = [1, 1, 1]} : vector<9x8x8xbf16> to vector<1x8x8xbf16>
    %203 = vector.shape_cast %202 : vector<1x8x8xbf16> to vector<8x8xbf16>
    %cst_54 = arith.constant dense<0.000000e+00> : vector<8x256xf32>
    %204 = tpu.matmul %203, %201, %cst_54 {dimension_numbers = #tpu.dot_dimension_numbers<[1], [0], [0], [1], [0, 0, 1, 1], [], []>} : vector<8x8xbf16>, vector<8x256xbf16>, vector<8x256xf32> -> vector<8x256xf32>
    %205 = arith.addf %196, %204 : vector<8x256xf32>
    %206 = vector.extract_strided_slice %160 {offsets = [0, 32], sizes = [8, 256], strides = [1, 1]} : vector<8x290xbf16> to vector<8x256xbf16>
    %cst_55 = arith.constant 0.000000e+00 : bf16
    %207 = vector.broadcast %cst_55 : bf16 to vector<8x256xbf16>
    %208 = vector.shape_cast %21 : vector<1x256xi1> to vector<1x256xi1>
    %209 = vector.broadcast %208 : vector<1x256xi1> to vector<8x256xi1>
    %210 = arith.select %209, %206, %207 : vector<8x256xi1>, vector<8x256xbf16>
    %211 = vector.extract_strided_slice %50 {offsets = [6, 0, 0], sizes = [1, 8, 8], strides = [1, 1, 1]} : vector<9x8x8xbf16> to vector<1x8x8xbf16>
    %212 = vector.shape_cast %211 : vector<1x8x8xbf16> to vector<8x8xbf16>
    %cst_56 = arith.constant dense<0.000000e+00> : vector<8x256xf32>
    %213 = tpu.matmul %212, %210, %cst_56 {dimension_numbers = #tpu.dot_dimension_numbers<[1], [0], [0], [1], [0, 0, 1, 1], [], []>} : vector<8x8xbf16>, vector<8x256xbf16>, vector<8x256xf32> -> vector<8x256xf32>
    %214 = arith.addf %205, %213 : vector<8x256xf32>
    %215 = vector.extract_strided_slice %160 {offsets = [0, 33], sizes = [8, 256], strides = [1, 1]} : vector<8x290xbf16> to vector<8x256xbf16>
    %216 = vector.extract_strided_slice %50 {offsets = [7, 0, 0], sizes = [1, 8, 8], strides = [1, 1, 1]} : vector<9x8x8xbf16> to vector<1x8x8xbf16>
    %217 = vector.shape_cast %216 : vector<1x8x8xbf16> to vector<8x8xbf16>
    %cst_57 = arith.constant dense<0.000000e+00> : vector<8x256xf32>
    %218 = tpu.matmul %217, %215, %cst_57 {dimension_numbers = #tpu.dot_dimension_numbers<[1], [0], [0], [1], [0, 0, 1, 1], [], []>} : vector<8x8xbf16>, vector<8x256xbf16>, vector<8x256xf32> -> vector<8x256xf32>
    %219 = arith.addf %214, %218 : vector<8x256xf32>
    %220 = vector.extract_strided_slice %160 {offsets = [0, 34], sizes = [8, 256], strides = [1, 1]} : vector<8x290xbf16> to vector<8x256xbf16>
    %cst_58 = arith.constant 0.000000e+00 : bf16
    %221 = vector.broadcast %cst_58 : bf16 to vector<8x256xbf16>
    %222 = vector.shape_cast %23 : vector<1x256xi1> to vector<1x256xi1>
    %223 = vector.broadcast %222 : vector<1x256xi1> to vector<8x256xi1>
    %224 = arith.select %223, %220, %221 : vector<8x256xi1>, vector<8x256xbf16>
    %225 = vector.extract_strided_slice %50 {offsets = [8, 0, 0], sizes = [1, 8, 8], strides = [1, 1, 1]} : vector<9x8x8xbf16> to vector<1x8x8xbf16>
    %226 = vector.shape_cast %225 : vector<1x8x8xbf16> to vector<8x8xbf16>
    %cst_59 = arith.constant dense<0.000000e+00> : vector<8x256xf32>
    %227 = tpu.matmul %226, %224, %cst_59 {dimension_numbers = #tpu.dot_dimension_numbers<[1], [0], [0], [1], [0, 0, 1, 1], [], []>} : vector<8x8xbf16>, vector<8x256xbf16>, vector<8x256xf32> -> vector<8x256xf32>
    %228 = arith.addf %219, %227 : vector<8x256xf32>
    %229 = vector.broadcast %54 : vector<8x1xf32> to vector<8x256xf32>
    %230 = arith.addf %228, %229 : vector<8x256xf32>
    %cst_60 = arith.constant dense<0.000000e+00> : vector<8xf32>
    %231 = vector.multi_reduction <add>, %230, %cst_60 [1] : vector<8x256xf32> to vector<8xf32>
    %232 = vector.shape_cast %231 : vector<8xf32> to vector<8x1xf32>
    %cst_61 = arith.constant 2.560000e+02 : f32
    %233 = vector.broadcast %cst_61 : f32 to vector<8x1xf32>
    %234 = arith.divf %232, %233 : vector<8x1xf32>
    %235 = vector.broadcast %234 : vector<8x1xf32> to vector<8x256xf32>
    %236 = arith.subf %230, %235 : vector<8x256xf32>
    %237 = arith.mulf %236, %236 : vector<8x256xf32>
    %cst_62 = arith.constant dense<0.000000e+00> : vector<8xf32>
    %238 = vector.multi_reduction <add>, %237, %cst_62 [1] : vector<8x256xf32> to vector<8xf32>
    %239 = vector.shape_cast %238 : vector<8xf32> to vector<8x1xf32>
    %cst_63 = arith.constant 2.560000e+02 : f32
    %240 = vector.broadcast %cst_63 : f32 to vector<8x1xf32>
    %241 = arith.divf %239, %240 : vector<8x1xf32>
    %cst_64 = arith.constant 9.99999974E-6 : f32
    %242 = vector.broadcast %cst_64 : f32 to vector<8x1xf32>
    %243 = arith.addf %241, %242 : vector<8x1xf32>
    %244 = math.rsqrt %243 : vector<8x1xf32>
    %245 = vector.broadcast %244 : vector<8x1xf32> to vector<8x256xf32>
    %246 = arith.mulf %236, %245 : vector<8x256xf32>
    %247 = vector.broadcast %55 : vector<8x1xf32> to vector<8x256xf32>
    %248 = arith.mulf %246, %247 : vector<8x256xf32>
    %249 = vector.broadcast %56 : vector<8x1xf32> to vector<8x256xf32>
    %250 = arith.addf %248, %249 : vector<8x256xf32>
    %251 = arith.addf %250, %1 : vector<8x256xf32>
    %252 = arith.negf %251 : vector<8x256xf32>
    %253 = math.exp %252 : vector<8x256xf32>
    %cst_65 = arith.constant 1.000000e+00 : f32
    %254 = vector.broadcast %cst_65 : f32 to vector<8x256xf32>
    %255 = arith.addf %254, %253 : vector<8x256xf32>
    %256 = arith.divf %254, %255 : vector<8x256xf32>
    %257 = arith.mulf %251, %256 : vector<8x256xf32>
    %258 = vector.extract_strided_slice %2 {offsets = [0, 14], sizes = [8, 1], strides = [1, 1]} : vector<8x19xf32> to vector<8x1xf32>
    %259 = vector.extract_strided_slice %2 {offsets = [0, 15], sizes = [8, 1], strides = [1, 1]} : vector<8x19xf32> to vector<8x1xf32>
    %c0_66 = arith.constant 0 : index
    %c0_67 = arith.constant 0 : index
    %260 = vector.load %arg6[%c0_66, %c0_67] : memref<384x8xbf16, #tpu.memory_space<vmem>>, vector<384x8xbf16>
    %c0_68 = arith.constant 0 : index
    %c0_69 = arith.constant 0 : index
    %261 = vector.load %arg7[%c0_68, %c0_69] : memref<8x128xbf16, #tpu.memory_space<vmem>>, vector<8x128xbf16>
    %262 = vector.extract_strided_slice %2 {offsets = [0, 16], sizes = [8, 1], strides = [1, 1]} : vector<8x19xf32> to vector<8x1xf32>
    %263 = vector.extract_strided_slice %2 {offsets = [0, 17], sizes = [8, 1], strides = [1, 1]} : vector<8x19xf32> to vector<8x1xf32>
    %264 = vector.extract_strided_slice %2 {offsets = [0, 18], sizes = [8, 1], strides = [1, 1]} : vector<8x19xf32> to vector<8x1xf32>
    %cst_70 = arith.constant dense<0.000000e+00> : vector<8xf32>
    %265 = vector.multi_reduction <add>, %257, %cst_70 [1] : vector<8x256xf32> to vector<8xf32>
    %266 = vector.shape_cast %265 : vector<8xf32> to vector<8x1xf32>
    %cst_71 = arith.constant 2.560000e+02 : f32
    %267 = vector.broadcast %cst_71 : f32 to vector<8x1xf32>
    %268 = arith.divf %266, %267 : vector<8x1xf32>
    %269 = vector.broadcast %268 : vector<8x1xf32> to vector<8x256xf32>
    %270 = arith.subf %257, %269 : vector<8x256xf32>
    %271 = arith.mulf %270, %270 : vector<8x256xf32>
    %cst_72 = arith.constant dense<0.000000e+00> : vector<8xf32>
    %272 = vector.multi_reduction <add>, %271, %cst_72 [1] : vector<8x256xf32> to vector<8xf32>
    %273 = vector.shape_cast %272 : vector<8xf32> to vector<8x1xf32>
    %cst_73 = arith.constant 2.560000e+02 : f32
    %274 = vector.broadcast %cst_73 : f32 to vector<8x1xf32>
    %275 = arith.divf %273, %274 : vector<8x1xf32>
    %cst_74 = arith.constant 9.99999974E-6 : f32
    %276 = vector.broadcast %cst_74 : f32 to vector<8x1xf32>
    %277 = arith.addf %275, %276 : vector<8x1xf32>
    %278 = math.rsqrt %277 : vector<8x1xf32>
    %279 = vector.broadcast %278 : vector<8x1xf32> to vector<8x256xf32>
    %280 = arith.mulf %270, %279 : vector<8x256xf32>
    %281 = vector.broadcast %258 : vector<8x1xf32> to vector<8x256xf32>
    %282 = arith.mulf %280, %281 : vector<8x256xf32>
    %283 = vector.broadcast %259 : vector<8x1xf32> to vector<8x256xf32>
    %284 = arith.addf %282, %283 : vector<8x256xf32>
    %285 = arith.truncf %284 : vector<8x256xf32> to vector<8x256xbf16>
    %cst_75 = arith.constant dense<0.000000e+00> : vector<384x256xf32>
    %286 = tpu.matmul %260, %285, %cst_75 {dimension_numbers = #tpu.dot_dimension_numbers<[1], [0], [0], [1], [0, 0, 1, 1], [], []>} : vector<384x8xbf16>, vector<8x256xbf16>, vector<384x256xf32> -> vector<384x256xf32>
    %287 = vector.extract_strided_slice %286 {offsets = [0, 0], sizes = [32, 256], strides = [1, 1]} : vector<384x256xf32> to vector<32x256xf32>
    %288 = vector.extract_strided_slice %286 {offsets = [128, 0], sizes = [32, 256], strides = [1, 1]} : vector<384x256xf32> to vector<32x256xf32>
    %289 = vector.extract_strided_slice %286 {offsets = [256, 0], sizes = [32, 256], strides = [1, 1]} : vector<384x256xf32> to vector<32x256xf32>
    %cst_76 = arith.constant dense<0xFF800000> : vector<256xf32>
    %290 = vector.multi_reduction <maximumf>, %287, %cst_76 [0] : vector<32x256xf32> to vector<256xf32>
    %291 = vector.shape_cast %290 : vector<256xf32> to vector<1x256xf32>
    %292 = vector.broadcast %291 : vector<1x256xf32> to vector<32x256xf32>
    %293 = arith.subf %287, %292 : vector<32x256xf32>
    %294 = math.exp %293 : vector<32x256xf32>
    %cst_77 = arith.constant dense<0.000000e+00> : vector<256xf32>
    %295 = vector.multi_reduction <add>, %294, %cst_77 [0] : vector<32x256xf32> to vector<256xf32>
    %296 = vector.shape_cast %295 : vector<256xf32> to vector<1x256xf32>
    %297 = vector.broadcast %296 : vector<1x256xf32> to vector<32x256xf32>
    %298 = arith.divf %294, %297 : vector<32x256xf32>
    %cst_78 = arith.constant 0.176776692 : f32
    %299 = vector.broadcast %cst_78 : f32 to vector<32x256xf32>
    %300 = arith.mulf %298, %299 : vector<32x256xf32>
    %cst_79 = arith.constant dense<0xFF800000> : vector<32xf32>
    %301 = vector.multi_reduction <maximumf>, %288, %cst_79 [1] : vector<32x256xf32> to vector<32xf32>
    %302 = vector.shape_cast %301 : vector<32xf32> to vector<32x1xf32>
    %303 = vector.broadcast %302 : vector<32x1xf32> to vector<32x256xf32>
    %304 = arith.subf %288, %303 : vector<32x256xf32>
    %305 = math.exp %304 : vector<32x256xf32>
    %cst_80 = arith.constant dense<0.000000e+00> : vector<32xf32>
    %306 = vector.multi_reduction <add>, %305, %cst_80 [1] : vector<32x256xf32> to vector<32xf32>
    %307 = vector.shape_cast %306 : vector<32xf32> to vector<32x1xf32>
    %308 = vector.broadcast %307 : vector<32x1xf32> to vector<32x256xf32>
    %309 = arith.divf %305, %308 : vector<32x256xf32>
    %310 = arith.truncf %300 : vector<32x256xf32> to vector<32x256xbf16>
    %311 = arith.truncf %309 : vector<32x256xf32> to vector<32x256xbf16>
    %312 = arith.truncf %289 : vector<32x256xf32> to vector<32x256xbf16>
    %cst_81 = arith.constant dense<0.000000e+00> : vector<32x32xf32>
    %313 = tpu.matmul %311, %312, %cst_81 {dimension_numbers = #tpu.dot_dimension_numbers<[1], [1], [0], [0], [0, 0, 1, 0], [], []>} : vector<32x256xbf16>, vector<32x256xbf16>, vector<32x32xf32> -> vector<32x32xf32>
    %314 = arith.truncf %313 : vector<32x32xf32> to vector<32x32xbf16>
    %cst_82 = arith.constant dense<0.000000e+00> : vector<32x256xf32>
    %315 = tpu.matmul %314, %310, %cst_82 {dimension_numbers = #tpu.dot_dimension_numbers<[0], [0], [1], [1], [0, 1, 1, 1], [], []>} : vector<32x32xbf16>, vector<32x256xbf16>, vector<32x256xf32> -> vector<32x256xf32>
    %316 = vector.extract_strided_slice %286 {offsets = [32, 0], sizes = [32, 256], strides = [1, 1]} : vector<384x256xf32> to vector<32x256xf32>
    %317 = vector.extract_strided_slice %286 {offsets = [160, 0], sizes = [32, 256], strides = [1, 1]} : vector<384x256xf32> to vector<32x256xf32>
    %318 = vector.extract_strided_slice %286 {offsets = [288, 0], sizes = [32, 256], strides = [1, 1]} : vector<384x256xf32> to vector<32x256xf32>
    %cst_83 = arith.constant dense<0xFF800000> : vector<256xf32>
    %319 = vector.multi_reduction <maximumf>, %316, %cst_83 [0] : vector<32x256xf32> to vector<256xf32>
    %320 = vector.shape_cast %319 : vector<256xf32> to vector<1x256xf32>
    %321 = vector.broadcast %320 : vector<1x256xf32> to vector<32x256xf32>
    %322 = arith.subf %316, %321 : vector<32x256xf32>
    %323 = math.exp %322 : vector<32x256xf32>
    %cst_84 = arith.constant dense<0.000000e+00> : vector<256xf32>
    %324 = vector.multi_reduction <add>, %323, %cst_84 [0] : vector<32x256xf32> to vector<256xf32>
    %325 = vector.shape_cast %324 : vector<256xf32> to vector<1x256xf32>
    %326 = vector.broadcast %325 : vector<1x256xf32> to vector<32x256xf32>
    %327 = arith.divf %323, %326 : vector<32x256xf32>
    %cst_85 = arith.constant 0.176776692 : f32
    %328 = vector.broadcast %cst_85 : f32 to vector<32x256xf32>
    %329 = arith.mulf %327, %328 : vector<32x256xf32>
    %cst_86 = arith.constant dense<0xFF800000> : vector<32xf32>
    %330 = vector.multi_reduction <maximumf>, %317, %cst_86 [1] : vector<32x256xf32> to vector<32xf32>
    %331 = vector.shape_cast %330 : vector<32xf32> to vector<32x1xf32>
    %332 = vector.broadcast %331 : vector<32x1xf32> to vector<32x256xf32>
    %333 = arith.subf %317, %332 : vector<32x256xf32>
    %334 = math.exp %333 : vector<32x256xf32>
    %cst_87 = arith.constant dense<0.000000e+00> : vector<32xf32>
    %335 = vector.multi_reduction <add>, %334, %cst_87 [1] : vector<32x256xf32> to vector<32xf32>
    %336 = vector.shape_cast %335 : vector<32xf32> to vector<32x1xf32>
    %337 = vector.broadcast %336 : vector<32x1xf32> to vector<32x256xf32>
    %338 = arith.divf %334, %337 : vector<32x256xf32>
    %339 = arith.truncf %329 : vector<32x256xf32> to vector<32x256xbf16>
    %340 = arith.truncf %338 : vector<32x256xf32> to vector<32x256xbf16>
    %341 = arith.truncf %318 : vector<32x256xf32> to vector<32x256xbf16>
    %cst_88 = arith.constant dense<0.000000e+00> : vector<32x32xf32>
    %342 = tpu.matmul %340, %341, %cst_88 {dimension_numbers = #tpu.dot_dimension_numbers<[1], [1], [0], [0], [0, 0, 1, 0], [], []>} : vector<32x256xbf16>, vector<32x256xbf16>, vector<32x32xf32> -> vector<32x32xf32>
    %343 = arith.truncf %342 : vector<32x32xf32> to vector<32x32xbf16>
    %cst_89 = arith.constant dense<0.000000e+00> : vector<32x256xf32>
    %344 = tpu.matmul %343, %339, %cst_89 {dimension_numbers = #tpu.dot_dimension_numbers<[0], [0], [1], [1], [0, 1, 1, 1], [], []>} : vector<32x32xbf16>, vector<32x256xbf16>, vector<32x256xf32> -> vector<32x256xf32>
    %345 = vector.extract_strided_slice %286 {offsets = [64, 0], sizes = [32, 256], strides = [1, 1]} : vector<384x256xf32> to vector<32x256xf32>
    %346 = vector.extract_strided_slice %286 {offsets = [192, 0], sizes = [32, 256], strides = [1, 1]} : vector<384x256xf32> to vector<32x256xf32>
    %347 = vector.extract_strided_slice %286 {offsets = [320, 0], sizes = [32, 256], strides = [1, 1]} : vector<384x256xf32> to vector<32x256xf32>
    %cst_90 = arith.constant dense<0xFF800000> : vector<256xf32>
    %348 = vector.multi_reduction <maximumf>, %345, %cst_90 [0] : vector<32x256xf32> to vector<256xf32>
    %349 = vector.shape_cast %348 : vector<256xf32> to vector<1x256xf32>
    %350 = vector.broadcast %349 : vector<1x256xf32> to vector<32x256xf32>
    %351 = arith.subf %345, %350 : vector<32x256xf32>
    %352 = math.exp %351 : vector<32x256xf32>
    %cst_91 = arith.constant dense<0.000000e+00> : vector<256xf32>
    %353 = vector.multi_reduction <add>, %352, %cst_91 [0] : vector<32x256xf32> to vector<256xf32>
    %354 = vector.shape_cast %353 : vector<256xf32> to vector<1x256xf32>
    %355 = vector.broadcast %354 : vector<1x256xf32> to vector<32x256xf32>
    %356 = arith.divf %352, %355 : vector<32x256xf32>
    %cst_92 = arith.constant 0.176776692 : f32
    %357 = vector.broadcast %cst_92 : f32 to vector<32x256xf32>
    %358 = arith.mulf %356, %357 : vector<32x256xf32>
    %cst_93 = arith.constant dense<0xFF800000> : vector<32xf32>
    %359 = vector.multi_reduction <maximumf>, %346, %cst_93 [1] : vector<32x256xf32> to vector<32xf32>
    %360 = vector.shape_cast %359 : vector<32xf32> to vector<32x1xf32>
    %361 = vector.broadcast %360 : vector<32x1xf32> to vector<32x256xf32>
    %362 = arith.subf %346, %361 : vector<32x256xf32>
    %363 = math.exp %362 : vector<32x256xf32>
    %cst_94 = arith.constant dense<0.000000e+00> : vector<32xf32>
    %364 = vector.multi_reduction <add>, %363, %cst_94 [1] : vector<32x256xf32> to vector<32xf32>
    %365 = vector.shape_cast %364 : vector<32xf32> to vector<32x1xf32>
    %366 = vector.broadcast %365 : vector<32x1xf32> to vector<32x256xf32>
    %367 = arith.divf %363, %366 : vector<32x256xf32>
    %368 = arith.truncf %358 : vector<32x256xf32> to vector<32x256xbf16>
    %369 = arith.truncf %367 : vector<32x256xf32> to vector<32x256xbf16>
    %370 = arith.truncf %347 : vector<32x256xf32> to vector<32x256xbf16>
    %cst_95 = arith.constant dense<0.000000e+00> : vector<32x32xf32>
    %371 = tpu.matmul %369, %370, %cst_95 {dimension_numbers = #tpu.dot_dimension_numbers<[1], [1], [0], [0], [0, 0, 1, 0], [], []>} : vector<32x256xbf16>, vector<32x256xbf16>, vector<32x32xf32> -> vector<32x32xf32>
    %372 = arith.truncf %371 : vector<32x32xf32> to vector<32x32xbf16>
    %cst_96 = arith.constant dense<0.000000e+00> : vector<32x256xf32>
    %373 = tpu.matmul %372, %368, %cst_96 {dimension_numbers = #tpu.dot_dimension_numbers<[0], [0], [1], [1], [0, 1, 1, 1], [], []>} : vector<32x32xbf16>, vector<32x256xbf16>, vector<32x256xf32> -> vector<32x256xf32>
    %374 = vector.extract_strided_slice %286 {offsets = [96, 0], sizes = [32, 256], strides = [1, 1]} : vector<384x256xf32> to vector<32x256xf32>
    %375 = vector.extract_strided_slice %286 {offsets = [224, 0], sizes = [32, 256], strides = [1, 1]} : vector<384x256xf32> to vector<32x256xf32>
    %376 = vector.extract_strided_slice %286 {offsets = [352, 0], sizes = [32, 256], strides = [1, 1]} : vector<384x256xf32> to vector<32x256xf32>
    %cst_97 = arith.constant dense<0xFF800000> : vector<256xf32>
    %377 = vector.multi_reduction <maximumf>, %374, %cst_97 [0] : vector<32x256xf32> to vector<256xf32>
    %378 = vector.shape_cast %377 : vector<256xf32> to vector<1x256xf32>
    %379 = vector.broadcast %378 : vector<1x256xf32> to vector<32x256xf32>
    %380 = arith.subf %374, %379 : vector<32x256xf32>
    %381 = math.exp %380 : vector<32x256xf32>
    %cst_98 = arith.constant dense<0.000000e+00> : vector<256xf32>
    %382 = vector.multi_reduction <add>, %381, %cst_98 [0] : vector<32x256xf32> to vector<256xf32>
    %383 = vector.shape_cast %382 : vector<256xf32> to vector<1x256xf32>
    %384 = vector.broadcast %383 : vector<1x256xf32> to vector<32x256xf32>
    %385 = arith.divf %381, %384 : vector<32x256xf32>
    %cst_99 = arith.constant 0.176776692 : f32
    %386 = vector.broadcast %cst_99 : f32 to vector<32x256xf32>
    %387 = arith.mulf %385, %386 : vector<32x256xf32>
    %cst_100 = arith.constant dense<0xFF800000> : vector<32xf32>
    %388 = vector.multi_reduction <maximumf>, %375, %cst_100 [1] : vector<32x256xf32> to vector<32xf32>
    %389 = vector.shape_cast %388 : vector<32xf32> to vector<32x1xf32>
    %390 = vector.broadcast %389 : vector<32x1xf32> to vector<32x256xf32>
    %391 = arith.subf %375, %390 : vector<32x256xf32>
    %392 = math.exp %391 : vector<32x256xf32>
    %cst_101 = arith.constant dense<0.000000e+00> : vector<32xf32>
    %393 = vector.multi_reduction <add>, %392, %cst_101 [1] : vector<32x256xf32> to vector<32xf32>
    %394 = vector.shape_cast %393 : vector<32xf32> to vector<32x1xf32>
    %395 = vector.broadcast %394 : vector<32x1xf32> to vector<32x256xf32>
    %396 = arith.divf %392, %395 : vector<32x256xf32>
    %397 = arith.truncf %387 : vector<32x256xf32> to vector<32x256xbf16>
    %398 = arith.truncf %396 : vector<32x256xf32> to vector<32x256xbf16>
    %399 = arith.truncf %376 : vector<32x256xf32> to vector<32x256xbf16>
    %cst_102 = arith.constant dense<0.000000e+00> : vector<32x32xf32>
    %400 = tpu.matmul %398, %399, %cst_102 {dimension_numbers = #tpu.dot_dimension_numbers<[1], [1], [0], [0], [0, 0, 1, 0], [], []>} : vector<32x256xbf16>, vector<32x256xbf16>, vector<32x32xf32> -> vector<32x32xf32>
    %401 = arith.truncf %400 : vector<32x32xf32> to vector<32x32xbf16>
    %cst_103 = arith.constant dense<0.000000e+00> : vector<32x256xf32>
    %402 = tpu.matmul %401, %397, %cst_103 {dimension_numbers = #tpu.dot_dimension_numbers<[0], [0], [1], [1], [0, 1, 1, 1], [], []>} : vector<32x32xbf16>, vector<32x256xbf16>, vector<32x256xf32> -> vector<32x256xf32>
    %403 = tpu.concatenate %315, %344, %373, %402 in 0 : vector<32x256xf32>, vector<32x256xf32>, vector<32x256xf32>, vector<32x256xf32> -> vector<128x256xf32>
    %404 = arith.truncf %403 : vector<128x256xf32> to vector<128x256xbf16>
    %cst_104 = arith.constant dense<0.000000e+00> : vector<8x256xf32>
    %405 = tpu.matmul %261, %404, %cst_104 {dimension_numbers = #tpu.dot_dimension_numbers<[1], [0], [0], [1], [0, 0, 1, 1], [], []>} : vector<8x128xbf16>, vector<128x256xbf16>, vector<8x256xf32> -> vector<8x256xf32>
    %406 = vector.broadcast %262 : vector<8x1xf32> to vector<8x256xf32>
    %407 = arith.addf %405, %406 : vector<8x256xf32>
    %408 = vector.shape_cast %407 : vector<8x256xf32> to vector<1x8x256xf32>
    %cst_105 = arith.constant dense<0.000000e+00> : vector<1xf32>
    %409 = vector.multi_reduction <add>, %408, %cst_105 [1, 2] : vector<1x8x256xf32> to vector<1xf32>
    %410 = vector.shape_cast %409 : vector<1xf32> to vector<1x1x1xf32>
    %411 = vector.extract %410[0, 0, 0] : f32 from vector<1x1x1xf32>
    %cst_106 = arith.constant 2.048000e+03 : f32
    %412 = arith.divf %411, %cst_106 : f32
    %413 = vector.broadcast %412 : f32 to vector<8x256xf32>
    %414 = arith.subf %407, %413 : vector<8x256xf32>
    %415 = arith.mulf %414, %414 : vector<8x256xf32>
    %416 = vector.shape_cast %415 : vector<8x256xf32> to vector<1x8x256xf32>
    %cst_107 = arith.constant dense<0.000000e+00> : vector<1xf32>
    %417 = vector.multi_reduction <add>, %416, %cst_107 [1, 2] : vector<1x8x256xf32> to vector<1xf32>
    %418 = vector.shape_cast %417 : vector<1xf32> to vector<1x1x1xf32>
    %419 = vector.extract %418[0, 0, 0] : f32 from vector<1x1x1xf32>
    %cst_108 = arith.constant 2.048000e+03 : f32
    %420 = arith.divf %419, %cst_108 : f32
    %cst_109 = arith.constant 9.99999974E-6 : f32
    %421 = arith.addf %420, %cst_109 : f32
    %422 = math.rsqrt %421 : f32
    %423 = vector.broadcast %422 : f32 to vector<8x256xf32>
    %424 = arith.mulf %414, %423 : vector<8x256xf32>
    %425 = vector.broadcast %263 : vector<8x1xf32> to vector<8x256xf32>
    %426 = arith.mulf %424, %425 : vector<8x256xf32>
    %427 = vector.broadcast %264 : vector<8x1xf32> to vector<8x256xf32>
    %428 = arith.addf %426, %427 : vector<8x256xf32>
    %429 = arith.addf %257, %428 : vector<8x256xf32>
    %c2 = arith.constant 2 : index
    %c0_110 = arith.constant 0 : index
    %c0_111 = arith.constant 0 : index
    %c0_112 = arith.constant 0 : index
    %430 = vector.load %arg5[%c2, %c0_110, %c0_111, %c0_112] : memref<4x9x8x8xbf16, #tpu.memory_space<vmem>>, vector<1x9x8x8xbf16>
    %431 = vector.shape_cast %430 : vector<1x9x8x8xbf16> to vector<9x8x8xbf16>
    %c3 = arith.constant 3 : index
    %c0_113 = arith.constant 0 : index
    %c0_114 = arith.constant 0 : index
    %c0_115 = arith.constant 0 : index
    %432 = vector.load %arg5[%c3, %c0_113, %c0_114, %c0_115] : memref<4x9x8x8xbf16, #tpu.memory_space<vmem>>, vector<1x9x8x8xbf16>
    %433 = vector.shape_cast %432 : vector<1x9x8x8xbf16> to vector<9x8x8xbf16>
    %434 = vector.extract_strided_slice %2 {offsets = [0, 7], sizes = [8, 1], strides = [1, 1]} : vector<8x19xf32> to vector<8x1xf32>
    %435 = vector.extract_strided_slice %2 {offsets = [0, 8], sizes = [8, 1], strides = [1, 1]} : vector<8x19xf32> to vector<8x1xf32>
    %436 = vector.extract_strided_slice %2 {offsets = [0, 9], sizes = [8, 1], strides = [1, 1]} : vector<8x19xf32> to vector<8x1xf32>
    %437 = vector.extract_strided_slice %2 {offsets = [0, 11], sizes = [8, 1], strides = [1, 1]} : vector<8x19xf32> to vector<8x1xf32>
    %438 = vector.extract_strided_slice %2 {offsets = [0, 12], sizes = [8, 1], strides = [1, 1]} : vector<8x19xf32> to vector<8x1xf32>
    %439 = vector.extract_strided_slice %2 {offsets = [0, 13], sizes = [8, 1], strides = [1, 1]} : vector<8x19xf32> to vector<8x1xf32>
    %440 = arith.truncf %429 : vector<8x256xf32> to vector<8x256xbf16>
    %cst_116 = arith.constant 0.000000e+00 : bf16
    %441 = vector.broadcast %cst_116 : bf16 to vector<8x17xbf16>
    %442 = tpu.concatenate %441, %440, %441 in 1 : vector<8x17xbf16>, vector<8x256xbf16>, vector<8x17xbf16> -> vector<8x290xbf16>
    %443 = vector.extract_strided_slice %442 {offsets = [0, 0], sizes = [8, 256], strides = [1, 1]} : vector<8x290xbf16> to vector<8x256xbf16>
    %cst_117 = arith.constant 0.000000e+00 : bf16
    %444 = vector.broadcast %cst_117 : bf16 to vector<8x256xbf16>
    %445 = vector.shape_cast %21 : vector<1x256xi1> to vector<1x256xi1>
    %446 = vector.broadcast %445 : vector<1x256xi1> to vector<8x256xi1>
    %447 = arith.select %446, %443, %444 : vector<8x256xi1>, vector<8x256xbf16>
    %448 = vector.extract_strided_slice %431 {offsets = [0, 0, 0], sizes = [1, 8, 8], strides = [1, 1, 1]} : vector<9x8x8xbf16> to vector<1x8x8xbf16>
    %449 = vector.shape_cast %448 : vector<1x8x8xbf16> to vector<8x8xbf16>
    %cst_118 = arith.constant dense<0.000000e+00> : vector<8x256xf32>
    %450 = tpu.matmul %449, %447, %cst_118 {dimension_numbers = #tpu.dot_dimension_numbers<[1], [0], [0], [1], [0, 0, 1, 1], [], []>} : vector<8x8xbf16>, vector<8x256xbf16>, vector<8x256xf32> -> vector<8x256xf32>
    %451 = vector.extract_strided_slice %442 {offsets = [0, 1], sizes = [8, 256], strides = [1, 1]} : vector<8x290xbf16> to vector<8x256xbf16>
    %452 = vector.extract_strided_slice %431 {offsets = [1, 0, 0], sizes = [1, 8, 8], strides = [1, 1, 1]} : vector<9x8x8xbf16> to vector<1x8x8xbf16>
    %453 = vector.shape_cast %452 : vector<1x8x8xbf16> to vector<8x8xbf16>
    %cst_119 = arith.constant dense<0.000000e+00> : vector<8x256xf32>
    %454 = tpu.matmul %453, %451, %cst_119 {dimension_numbers = #tpu.dot_dimension_numbers<[1], [0], [0], [1], [0, 0, 1, 1], [], []>} : vector<8x8xbf16>, vector<8x256xbf16>, vector<8x256xf32> -> vector<8x256xf32>
    %455 = arith.addf %450, %454 : vector<8x256xf32>
    %456 = vector.extract_strided_slice %442 {offsets = [0, 2], sizes = [8, 256], strides = [1, 1]} : vector<8x290xbf16> to vector<8x256xbf16>
    %cst_120 = arith.constant 0.000000e+00 : bf16
    %457 = vector.broadcast %cst_120 : bf16 to vector<8x256xbf16>
    %458 = vector.shape_cast %23 : vector<1x256xi1> to vector<1x256xi1>
    %459 = vector.broadcast %458 : vector<1x256xi1> to vector<8x256xi1>
    %460 = arith.select %459, %456, %457 : vector<8x256xi1>, vector<8x256xbf16>
    %461 = vector.extract_strided_slice %431 {offsets = [2, 0, 0], sizes = [1, 8, 8], strides = [1, 1, 1]} : vector<9x8x8xbf16> to vector<1x8x8xbf16>
    %462 = vector.shape_cast %461 : vector<1x8x8xbf16> to vector<8x8xbf16>
    %cst_121 = arith.constant dense<0.000000e+00> : vector<8x256xf32>
    %463 = tpu.matmul %462, %460, %cst_121 {dimension_numbers = #tpu.dot_dimension_numbers<[1], [0], [0], [1], [0, 0, 1, 1], [], []>} : vector<8x8xbf16>, vector<8x256xbf16>, vector<8x256xf32> -> vector<8x256xf32>
    %464 = arith.addf %455, %463 : vector<8x256xf32>
    %465 = vector.extract_strided_slice %442 {offsets = [0, 16], sizes = [8, 256], strides = [1, 1]} : vector<8x290xbf16> to vector<8x256xbf16>
    %cst_122 = arith.constant 0.000000e+00 : bf16
    %466 = vector.broadcast %cst_122 : bf16 to vector<8x256xbf16>
    %467 = vector.shape_cast %21 : vector<1x256xi1> to vector<1x256xi1>
    %468 = vector.broadcast %467 : vector<1x256xi1> to vector<8x256xi1>
    %469 = arith.select %468, %465, %466 : vector<8x256xi1>, vector<8x256xbf16>
    %470 = vector.extract_strided_slice %431 {offsets = [3, 0, 0], sizes = [1, 8, 8], strides = [1, 1, 1]} : vector<9x8x8xbf16> to vector<1x8x8xbf16>
    %471 = vector.shape_cast %470 : vector<1x8x8xbf16> to vector<8x8xbf16>
    %cst_123 = arith.constant dense<0.000000e+00> : vector<8x256xf32>
    %472 = tpu.matmul %471, %469, %cst_123 {dimension_numbers = #tpu.dot_dimension_numbers<[1], [0], [0], [1], [0, 0, 1, 1], [], []>} : vector<8x8xbf16>, vector<8x256xbf16>, vector<8x256xf32> -> vector<8x256xf32>
    %473 = arith.addf %464, %472 : vector<8x256xf32>
    %474 = vector.extract_strided_slice %442 {offsets = [0, 17], sizes = [8, 256], strides = [1, 1]} : vector<8x290xbf16> to vector<8x256xbf16>
    %475 = vector.extract_strided_slice %431 {offsets = [4, 0, 0], sizes = [1, 8, 8], strides = [1, 1, 1]} : vector<9x8x8xbf16> to vector<1x8x8xbf16>
    %476 = vector.shape_cast %475 : vector<1x8x8xbf16> to vector<8x8xbf16>
    %cst_124 = arith.constant dense<0.000000e+00> : vector<8x256xf32>
    %477 = tpu.matmul %476, %474, %cst_124 {dimension_numbers = #tpu.dot_dimension_numbers<[1], [0], [0], [1], [0, 0, 1, 1], [], []>} : vector<8x8xbf16>, vector<8x256xbf16>, vector<8x256xf32> -> vector<8x256xf32>
    %478 = arith.addf %473, %477 : vector<8x256xf32>
    %479 = vector.extract_strided_slice %442 {offsets = [0, 18], sizes = [8, 256], strides = [1, 1]} : vector<8x290xbf16> to vector<8x256xbf16>
    %cst_125 = arith.constant 0.000000e+00 : bf16
    %480 = vector.broadcast %cst_125 : bf16 to vector<8x256xbf16>
    %481 = vector.shape_cast %23 : vector<1x256xi1> to vector<1x256xi1>
    %482 = vector.broadcast %481 : vector<1x256xi1> to vector<8x256xi1>
    %483 = arith.select %482, %479, %480 : vector<8x256xi1>, vector<8x256xbf16>
    %484 = vector.extract_strided_slice %431 {offsets = [5, 0, 0], sizes = [1, 8, 8], strides = [1, 1, 1]} : vector<9x8x8xbf16> to vector<1x8x8xbf16>
    %485 = vector.shape_cast %484 : vector<1x8x8xbf16> to vector<8x8xbf16>
    %cst_126 = arith.constant dense<0.000000e+00> : vector<8x256xf32>
    %486 = tpu.matmul %485, %483, %cst_126 {dimension_numbers = #tpu.dot_dimension_numbers<[1], [0], [0], [1], [0, 0, 1, 1], [], []>} : vector<8x8xbf16>, vector<8x256xbf16>, vector<8x256xf32> -> vector<8x256xf32>
    %487 = arith.addf %478, %486 : vector<8x256xf32>
    %488 = vector.extract_strided_slice %442 {offsets = [0, 32], sizes = [8, 256], strides = [1, 1]} : vector<8x290xbf16> to vector<8x256xbf16>
    %cst_127 = arith.constant 0.000000e+00 : bf16
    %489 = vector.broadcast %cst_127 : bf16 to vector<8x256xbf16>
    %490 = vector.shape_cast %21 : vector<1x256xi1> to vector<1x256xi1>
    %491 = vector.broadcast %490 : vector<1x256xi1> to vector<8x256xi1>
    %492 = arith.select %491, %488, %489 : vector<8x256xi1>, vector<8x256xbf16>
    %493 = vector.extract_strided_slice %431 {offsets = [6, 0, 0], sizes = [1, 8, 8], strides = [1, 1, 1]} : vector<9x8x8xbf16> to vector<1x8x8xbf16>
    %494 = vector.shape_cast %493 : vector<1x8x8xbf16> to vector<8x8xbf16>
    %cst_128 = arith.constant dense<0.000000e+00> : vector<8x256xf32>
    %495 = tpu.matmul %494, %492, %cst_128 {dimension_numbers = #tpu.dot_dimension_numbers<[1], [0], [0], [1], [0, 0, 1, 1], [], []>} : vector<8x8xbf16>, vector<8x256xbf16>, vector<8x256xf32> -> vector<8x256xf32>
    %496 = arith.addf %487, %495 : vector<8x256xf32>
    %497 = vector.extract_strided_slice %442 {offsets = [0, 33], sizes = [8, 256], strides = [1, 1]} : vector<8x290xbf16> to vector<8x256xbf16>
    %498 = vector.extract_strided_slice %431 {offsets = [7, 0, 0], sizes = [1, 8, 8], strides = [1, 1, 1]} : vector<9x8x8xbf16> to vector<1x8x8xbf16>
    %499 = vector.shape_cast %498 : vector<1x8x8xbf16> to vector<8x8xbf16>
    %cst_129 = arith.constant dense<0.000000e+00> : vector<8x256xf32>
    %500 = tpu.matmul %499, %497, %cst_129 {dimension_numbers = #tpu.dot_dimension_numbers<[1], [0], [0], [1], [0, 0, 1, 1], [], []>} : vector<8x8xbf16>, vector<8x256xbf16>, vector<8x256xf32> -> vector<8x256xf32>
    %501 = arith.addf %496, %500 : vector<8x256xf32>
    %502 = vector.extract_strided_slice %442 {offsets = [0, 34], sizes = [8, 256], strides = [1, 1]} : vector<8x290xbf16> to vector<8x256xbf16>
    %cst_130 = arith.constant 0.000000e+00 : bf16
    %503 = vector.broadcast %cst_130 : bf16 to vector<8x256xbf16>
    %504 = vector.shape_cast %23 : vector<1x256xi1> to vector<1x256xi1>
    %505 = vector.broadcast %504 : vector<1x256xi1> to vector<8x256xi1>
    %506 = arith.select %505, %502, %503 : vector<8x256xi1>, vector<8x256xbf16>
    %507 = vector.extract_strided_slice %431 {offsets = [8, 0, 0], sizes = [1, 8, 8], strides = [1, 1, 1]} : vector<9x8x8xbf16> to vector<1x8x8xbf16>
    %508 = vector.shape_cast %507 : vector<1x8x8xbf16> to vector<8x8xbf16>
    %cst_131 = arith.constant dense<0.000000e+00> : vector<8x256xf32>
    %509 = tpu.matmul %508, %506, %cst_131 {dimension_numbers = #tpu.dot_dimension_numbers<[1], [0], [0], [1], [0, 0, 1, 1], [], []>} : vector<8x8xbf16>, vector<8x256xbf16>, vector<8x256xf32> -> vector<8x256xf32>
    %510 = arith.addf %501, %509 : vector<8x256xf32>
    %511 = vector.broadcast %434 : vector<8x1xf32> to vector<8x256xf32>
    %512 = arith.addf %510, %511 : vector<8x256xf32>
    %cst_132 = arith.constant dense<0.000000e+00> : vector<8xf32>
    %513 = vector.multi_reduction <add>, %512, %cst_132 [1] : vector<8x256xf32> to vector<8xf32>
    %514 = vector.shape_cast %513 : vector<8xf32> to vector<8x1xf32>
    %cst_133 = arith.constant 2.560000e+02 : f32
    %515 = vector.broadcast %cst_133 : f32 to vector<8x1xf32>
    %516 = arith.divf %514, %515 : vector<8x1xf32>
    %517 = vector.broadcast %516 : vector<8x1xf32> to vector<8x256xf32>
    %518 = arith.subf %512, %517 : vector<8x256xf32>
    %519 = arith.mulf %518, %518 : vector<8x256xf32>
    %cst_134 = arith.constant dense<0.000000e+00> : vector<8xf32>
    %520 = vector.multi_reduction <add>, %519, %cst_134 [1] : vector<8x256xf32> to vector<8xf32>
    %521 = vector.shape_cast %520 : vector<8xf32> to vector<8x1xf32>
    %cst_135 = arith.constant 2.560000e+02 : f32
    %522 = vector.broadcast %cst_135 : f32 to vector<8x1xf32>
    %523 = arith.divf %521, %522 : vector<8x1xf32>
    %cst_136 = arith.constant 9.99999974E-6 : f32
    %524 = vector.broadcast %cst_136 : f32 to vector<8x1xf32>
    %525 = arith.addf %523, %524 : vector<8x1xf32>
    %526 = math.rsqrt %525 : vector<8x1xf32>
    %527 = vector.broadcast %526 : vector<8x1xf32> to vector<8x256xf32>
    %528 = arith.mulf %518, %527 : vector<8x256xf32>
    %529 = vector.broadcast %435 : vector<8x1xf32> to vector<8x256xf32>
    %530 = arith.mulf %528, %529 : vector<8x256xf32>
    %531 = vector.broadcast %436 : vector<8x1xf32> to vector<8x256xf32>
    %532 = arith.addf %530, %531 : vector<8x256xf32>
    %533 = arith.negf %532 : vector<8x256xf32>
    %534 = math.exp %533 : vector<8x256xf32>
    %cst_137 = arith.constant 1.000000e+00 : f32
    %535 = vector.broadcast %cst_137 : f32 to vector<8x256xf32>
    %536 = arith.addf %535, %534 : vector<8x256xf32>
    %537 = arith.divf %535, %536 : vector<8x256xf32>
    %538 = arith.mulf %532, %537 : vector<8x256xf32>
    %539 = vector.broadcast %46 : vector<8x1xf32> to vector<8x256xf32>
    %540 = arith.addf %538, %539 : vector<8x256xf32>
    %541 = arith.truncf %540 : vector<8x256xf32> to vector<8x256xbf16>
    %cst_138 = arith.constant 0.000000e+00 : bf16
    %542 = vector.broadcast %cst_138 : bf16 to vector<8x17xbf16>
    %543 = tpu.concatenate %542, %541, %542 in 1 : vector<8x17xbf16>, vector<8x256xbf16>, vector<8x17xbf16> -> vector<8x290xbf16>
    %544 = vector.extract_strided_slice %543 {offsets = [0, 0], sizes = [8, 256], strides = [1, 1]} : vector<8x290xbf16> to vector<8x256xbf16>
    %cst_139 = arith.constant 0.000000e+00 : bf16
    %545 = vector.broadcast %cst_139 : bf16 to vector<8x256xbf16>
    %546 = vector.shape_cast %21 : vector<1x256xi1> to vector<1x256xi1>
    %547 = vector.broadcast %546 : vector<1x256xi1> to vector<8x256xi1>
    %548 = arith.select %547, %544, %545 : vector<8x256xi1>, vector<8x256xbf16>
    %549 = vector.extract_strided_slice %433 {offsets = [0, 0, 0], sizes = [1, 8, 8], strides = [1, 1, 1]} : vector<9x8x8xbf16> to vector<1x8x8xbf16>
    %550 = vector.shape_cast %549 : vector<1x8x8xbf16> to vector<8x8xbf16>
    %cst_140 = arith.constant dense<0.000000e+00> : vector<8x256xf32>
    %551 = tpu.matmul %550, %548, %cst_140 {dimension_numbers = #tpu.dot_dimension_numbers<[1], [0], [0], [1], [0, 0, 1, 1], [], []>} : vector<8x8xbf16>, vector<8x256xbf16>, vector<8x256xf32> -> vector<8x256xf32>
    %552 = vector.extract_strided_slice %543 {offsets = [0, 1], sizes = [8, 256], strides = [1, 1]} : vector<8x290xbf16> to vector<8x256xbf16>
    %553 = vector.extract_strided_slice %433 {offsets = [1, 0, 0], sizes = [1, 8, 8], strides = [1, 1, 1]} : vector<9x8x8xbf16> to vector<1x8x8xbf16>
    %554 = vector.shape_cast %553 : vector<1x8x8xbf16> to vector<8x8xbf16>
    %cst_141 = arith.constant dense<0.000000e+00> : vector<8x256xf32>
    %555 = tpu.matmul %554, %552, %cst_141 {dimension_numbers = #tpu.dot_dimension_numbers<[1], [0], [0], [1], [0, 0, 1, 1], [], []>} : vector<8x8xbf16>, vector<8x256xbf16>, vector<8x256xf32> -> vector<8x256xf32>
    %556 = arith.addf %551, %555 : vector<8x256xf32>
    %557 = vector.extract_strided_slice %543 {offsets = [0, 2], sizes = [8, 256], strides = [1, 1]} : vector<8x290xbf16> to vector<8x256xbf16>
    %cst_142 = arith.constant 0.000000e+00 : bf16
    %558 = vector.broadcast %cst_142 : bf16 to vector<8x256xbf16>
    %559 = vector.shape_cast %23 : vector<1x256xi1> to vector<1x256xi1>
    %560 = vector.broadcast %559 : vector<1x256xi1> to vector<8x256xi1>
    %561 = arith.select %560, %557, %558 : vector<8x256xi1>, vector<8x256xbf16>
    %562 = vector.extract_strided_slice %433 {offsets = [2, 0, 0], sizes = [1, 8, 8], strides = [1, 1, 1]} : vector<9x8x8xbf16> to vector<1x8x8xbf16>
    %563 = vector.shape_cast %562 : vector<1x8x8xbf16> to vector<8x8xbf16>
    %cst_143 = arith.constant dense<0.000000e+00> : vector<8x256xf32>
    %564 = tpu.matmul %563, %561, %cst_143 {dimension_numbers = #tpu.dot_dimension_numbers<[1], [0], [0], [1], [0, 0, 1, 1], [], []>} : vector<8x8xbf16>, vector<8x256xbf16>, vector<8x256xf32> -> vector<8x256xf32>
    %565 = arith.addf %556, %564 : vector<8x256xf32>
    %566 = vector.extract_strided_slice %543 {offsets = [0, 16], sizes = [8, 256], strides = [1, 1]} : vector<8x290xbf16> to vector<8x256xbf16>
    %cst_144 = arith.constant 0.000000e+00 : bf16
    %567 = vector.broadcast %cst_144 : bf16 to vector<8x256xbf16>
    %568 = vector.shape_cast %21 : vector<1x256xi1> to vector<1x256xi1>
    %569 = vector.broadcast %568 : vector<1x256xi1> to vector<8x256xi1>
    %570 = arith.select %569, %566, %567 : vector<8x256xi1>, vector<8x256xbf16>
    %571 = vector.extract_strided_slice %433 {offsets = [3, 0, 0], sizes = [1, 8, 8], strides = [1, 1, 1]} : vector<9x8x8xbf16> to vector<1x8x8xbf16>
    %572 = vector.shape_cast %571 : vector<1x8x8xbf16> to vector<8x8xbf16>
    %cst_145 = arith.constant dense<0.000000e+00> : vector<8x256xf32>
    %573 = tpu.matmul %572, %570, %cst_145 {dimension_numbers = #tpu.dot_dimension_numbers<[1], [0], [0], [1], [0, 0, 1, 1], [], []>} : vector<8x8xbf16>, vector<8x256xbf16>, vector<8x256xf32> -> vector<8x256xf32>
    %574 = arith.addf %565, %573 : vector<8x256xf32>
    %575 = vector.extract_strided_slice %543 {offsets = [0, 17], sizes = [8, 256], strides = [1, 1]} : vector<8x290xbf16> to vector<8x256xbf16>
    %576 = vector.extract_strided_slice %433 {offsets = [4, 0, 0], sizes = [1, 8, 8], strides = [1, 1, 1]} : vector<9x8x8xbf16> to vector<1x8x8xbf16>
    %577 = vector.shape_cast %576 : vector<1x8x8xbf16> to vector<8x8xbf16>
    %cst_146 = arith.constant dense<0.000000e+00> : vector<8x256xf32>
    %578 = tpu.matmul %577, %575, %cst_146 {dimension_numbers = #tpu.dot_dimension_numbers<[1], [0], [0], [1], [0, 0, 1, 1], [], []>} : vector<8x8xbf16>, vector<8x256xbf16>, vector<8x256xf32> -> vector<8x256xf32>
    %579 = arith.addf %574, %578 : vector<8x256xf32>
    %580 = vector.extract_strided_slice %543 {offsets = [0, 18], sizes = [8, 256], strides = [1, 1]} : vector<8x290xbf16> to vector<8x256xbf16>
    %cst_147 = arith.constant 0.000000e+00 : bf16
    %581 = vector.broadcast %cst_147 : bf16 to vector<8x256xbf16>
    %582 = vector.shape_cast %23 : vector<1x256xi1> to vector<1x256xi1>
    %583 = vector.broadcast %582 : vector<1x256xi1> to vector<8x256xi1>
    %584 = arith.select %583, %580, %581 : vector<8x256xi1>, vector<8x256xbf16>
    %585 = vector.extract_strided_slice %433 {offsets = [5, 0, 0], sizes = [1, 8, 8], strides = [1, 1, 1]} : vector<9x8x8xbf16> to vector<1x8x8xbf16>
    %586 = vector.shape_cast %585 : vector<1x8x8xbf16> to vector<8x8xbf16>
    %cst_148 = arith.constant dense<0.000000e+00> : vector<8x256xf32>
    %587 = tpu.matmul %586, %584, %cst_148 {dimension_numbers = #tpu.dot_dimension_numbers<[1], [0], [0], [1], [0, 0, 1, 1], [], []>} : vector<8x8xbf16>, vector<8x256xbf16>, vector<8x256xf32> -> vector<8x256xf32>
    %588 = arith.addf %579, %587 : vector<8x256xf32>
    %589 = vector.extract_strided_slice %543 {offsets = [0, 32], sizes = [8, 256], strides = [1, 1]} : vector<8x290xbf16> to vector<8x256xbf16>
    %cst_149 = arith.constant 0.000000e+00 : bf16
    %590 = vector.broadcast %cst_149 : bf16 to vector<8x256xbf16>
    %591 = vector.shape_cast %21 : vector<1x256xi1> to vector<1x256xi1>
    %592 = vector.broadcast %591 : vector<1x256xi1> to vector<8x256xi1>
    %593 = arith.select %592, %589, %590 : vector<8x256xi1>, vector<8x256xbf16>
    %594 = vector.extract_strided_slice %433 {offsets = [6, 0, 0], sizes = [1, 8, 8], strides = [1, 1, 1]} : vector<9x8x8xbf16> to vector<1x8x8xbf16>
    %595 = vector.shape_cast %594 : vector<1x8x8xbf16> to vector<8x8xbf16>
    %cst_150 = arith.constant dense<0.000000e+00> : vector<8x256xf32>
    %596 = tpu.matmul %595, %593, %cst_150 {dimension_numbers = #tpu.dot_dimension_numbers<[1], [0], [0], [1], [0, 0, 1, 1], [], []>} : vector<8x8xbf16>, vector<8x256xbf16>, vector<8x256xf32> -> vector<8x256xf32>
    %597 = arith.addf %588, %596 : vector<8x256xf32>
    %598 = vector.extract_strided_slice %543 {offsets = [0, 33], sizes = [8, 256], strides = [1, 1]} : vector<8x290xbf16> to vector<8x256xbf16>
    %599 = vector.extract_strided_slice %433 {offsets = [7, 0, 0], sizes = [1, 8, 8], strides = [1, 1, 1]} : vector<9x8x8xbf16> to vector<1x8x8xbf16>
    %600 = vector.shape_cast %599 : vector<1x8x8xbf16> to vector<8x8xbf16>
    %cst_151 = arith.constant dense<0.000000e+00> : vector<8x256xf32>
    %601 = tpu.matmul %600, %598, %cst_151 {dimension_numbers = #tpu.dot_dimension_numbers<[1], [0], [0], [1], [0, 0, 1, 1], [], []>} : vector<8x8xbf16>, vector<8x256xbf16>, vector<8x256xf32> -> vector<8x256xf32>
    %602 = arith.addf %597, %601 : vector<8x256xf32>
    %603 = vector.extract_strided_slice %543 {offsets = [0, 34], sizes = [8, 256], strides = [1, 1]} : vector<8x290xbf16> to vector<8x256xbf16>
    %cst_152 = arith.constant 0.000000e+00 : bf16
    %604 = vector.broadcast %cst_152 : bf16 to vector<8x256xbf16>
    %605 = vector.shape_cast %23 : vector<1x256xi1> to vector<1x256xi1>
    %606 = vector.broadcast %605 : vector<1x256xi1> to vector<8x256xi1>
    %607 = arith.select %606, %603, %604 : vector<8x256xi1>, vector<8x256xbf16>
    %608 = vector.extract_strided_slice %433 {offsets = [8, 0, 0], sizes = [1, 8, 8], strides = [1, 1, 1]} : vector<9x8x8xbf16> to vector<1x8x8xbf16>
    %609 = vector.shape_cast %608 : vector<1x8x8xbf16> to vector<8x8xbf16>
    %cst_153 = arith.constant dense<0.000000e+00> : vector<8x256xf32>
    %610 = tpu.matmul %609, %607, %cst_153 {dimension_numbers = #tpu.dot_dimension_numbers<[1], [0], [0], [1], [0, 0, 1, 1], [], []>} : vector<8x8xbf16>, vector<8x256xbf16>, vector<8x256xf32> -> vector<8x256xf32>
    %611 = arith.addf %602, %610 : vector<8x256xf32>
    %612 = vector.broadcast %437 : vector<8x1xf32> to vector<8x256xf32>
    %613 = arith.addf %611, %612 : vector<8x256xf32>
    %cst_154 = arith.constant dense<0.000000e+00> : vector<8xf32>
    %614 = vector.multi_reduction <add>, %613, %cst_154 [1] : vector<8x256xf32> to vector<8xf32>
    %615 = vector.shape_cast %614 : vector<8xf32> to vector<8x1xf32>
    %cst_155 = arith.constant 2.560000e+02 : f32
    %616 = vector.broadcast %cst_155 : f32 to vector<8x1xf32>
    %617 = arith.divf %615, %616 : vector<8x1xf32>
    %618 = vector.broadcast %617 : vector<8x1xf32> to vector<8x256xf32>
    %619 = arith.subf %613, %618 : vector<8x256xf32>
    %620 = arith.mulf %619, %619 : vector<8x256xf32>
    %cst_156 = arith.constant dense<0.000000e+00> : vector<8xf32>
    %621 = vector.multi_reduction <add>, %620, %cst_156 [1] : vector<8x256xf32> to vector<8xf32>
    %622 = vector.shape_cast %621 : vector<8xf32> to vector<8x1xf32>
    %cst_157 = arith.constant 2.560000e+02 : f32
    %623 = vector.broadcast %cst_157 : f32 to vector<8x1xf32>
    %624 = arith.divf %622, %623 : vector<8x1xf32>
    %cst_158 = arith.constant 9.99999974E-6 : f32
    %625 = vector.broadcast %cst_158 : f32 to vector<8x1xf32>
    %626 = arith.addf %624, %625 : vector<8x1xf32>
    %627 = math.rsqrt %626 : vector<8x1xf32>
    %628 = vector.broadcast %627 : vector<8x1xf32> to vector<8x256xf32>
    %629 = arith.mulf %619, %628 : vector<8x256xf32>
    %630 = vector.broadcast %438 : vector<8x1xf32> to vector<8x256xf32>
    %631 = arith.mulf %629, %630 : vector<8x256xf32>
    %632 = vector.broadcast %439 : vector<8x1xf32> to vector<8x256xf32>
    %633 = arith.addf %631, %632 : vector<8x256xf32>
    %634 = arith.addf %633, %429 : vector<8x256xf32>
    %635 = arith.negf %634 : vector<8x256xf32>
    %636 = math.exp %635 : vector<8x256xf32>
    %cst_159 = arith.constant 1.000000e+00 : f32
    %637 = vector.broadcast %cst_159 : f32 to vector<8x256xf32>
    %638 = arith.addf %637, %636 : vector<8x256xf32>
    %639 = arith.divf %637, %638 : vector<8x256xf32>
    %640 = arith.mulf %634, %639 : vector<8x256xf32>
    %c0_160 = arith.constant 0 : index
    %c0_161 = arith.constant 0 : index
    %641 = vector.load %arg11[%c0_160, %c0_161] : memref<16x2xf32, #tpu.memory_space<vmem>>, vector<16x2xf32>
    %c0_162 = arith.constant 0 : index
    %c0_163 = arith.constant 0 : index
    %c0_164 = arith.constant 0 : index
    %642 = vector.load %arg8[%c0_162, %c0_163, %c0_164] : memref<9x16x8xbf16, #tpu.memory_space<vmem>>, vector<9x16x8xbf16>
    %643 = arith.truncf %640 : vector<8x256xf32> to vector<8x256xbf16>
    %cst_165 = arith.constant 0.000000e+00 : bf16
    %644 = vector.broadcast %cst_165 : bf16 to vector<8x17xbf16>
    %645 = tpu.concatenate %644, %643, %644 in 1 : vector<8x17xbf16>, vector<8x256xbf16>, vector<8x17xbf16> -> vector<8x290xbf16>
    %646 = vector.extract_strided_slice %645 {offsets = [0, 0], sizes = [8, 256], strides = [1, 1]} : vector<8x290xbf16> to vector<8x256xbf16>
    %cst_166 = arith.constant 0.000000e+00 : bf16
    %647 = vector.broadcast %cst_166 : bf16 to vector<8x256xbf16>
    %648 = vector.shape_cast %21 : vector<1x256xi1> to vector<1x256xi1>
    %649 = vector.broadcast %648 : vector<1x256xi1> to vector<8x256xi1>
    %650 = arith.select %649, %646, %647 : vector<8x256xi1>, vector<8x256xbf16>
    %651 = vector.extract_strided_slice %642 {offsets = [0, 0, 0], sizes = [1, 16, 8], strides = [1, 1, 1]} : vector<9x16x8xbf16> to vector<1x16x8xbf16>
    %652 = vector.shape_cast %651 : vector<1x16x8xbf16> to vector<16x8xbf16>
    %cst_167 = arith.constant dense<0.000000e+00> : vector<16x256xf32>
    %653 = tpu.matmul %652, %650, %cst_167 {dimension_numbers = #tpu.dot_dimension_numbers<[1], [0], [0], [1], [0, 0, 1, 1], [], []>} : vector<16x8xbf16>, vector<8x256xbf16>, vector<16x256xf32> -> vector<16x256xf32>
    %654 = vector.extract_strided_slice %645 {offsets = [0, 1], sizes = [8, 256], strides = [1, 1]} : vector<8x290xbf16> to vector<8x256xbf16>
    %655 = vector.extract_strided_slice %642 {offsets = [1, 0, 0], sizes = [1, 16, 8], strides = [1, 1, 1]} : vector<9x16x8xbf16> to vector<1x16x8xbf16>
    %656 = vector.shape_cast %655 : vector<1x16x8xbf16> to vector<16x8xbf16>
    %cst_168 = arith.constant dense<0.000000e+00> : vector<16x256xf32>
    %657 = tpu.matmul %656, %654, %cst_168 {dimension_numbers = #tpu.dot_dimension_numbers<[1], [0], [0], [1], [0, 0, 1, 1], [], []>} : vector<16x8xbf16>, vector<8x256xbf16>, vector<16x256xf32> -> vector<16x256xf32>
    %658 = arith.addf %653, %657 : vector<16x256xf32>
    %659 = vector.extract_strided_slice %645 {offsets = [0, 2], sizes = [8, 256], strides = [1, 1]} : vector<8x290xbf16> to vector<8x256xbf16>
    %cst_169 = arith.constant 0.000000e+00 : bf16
    %660 = vector.broadcast %cst_169 : bf16 to vector<8x256xbf16>
    %661 = vector.shape_cast %23 : vector<1x256xi1> to vector<1x256xi1>
    %662 = vector.broadcast %661 : vector<1x256xi1> to vector<8x256xi1>
    %663 = arith.select %662, %659, %660 : vector<8x256xi1>, vector<8x256xbf16>
    %664 = vector.extract_strided_slice %642 {offsets = [2, 0, 0], sizes = [1, 16, 8], strides = [1, 1, 1]} : vector<9x16x8xbf16> to vector<1x16x8xbf16>
    %665 = vector.shape_cast %664 : vector<1x16x8xbf16> to vector<16x8xbf16>
    %cst_170 = arith.constant dense<0.000000e+00> : vector<16x256xf32>
    %666 = tpu.matmul %665, %663, %cst_170 {dimension_numbers = #tpu.dot_dimension_numbers<[1], [0], [0], [1], [0, 0, 1, 1], [], []>} : vector<16x8xbf16>, vector<8x256xbf16>, vector<16x256xf32> -> vector<16x256xf32>
    %667 = arith.addf %658, %666 : vector<16x256xf32>
    %668 = vector.extract_strided_slice %645 {offsets = [0, 16], sizes = [8, 256], strides = [1, 1]} : vector<8x290xbf16> to vector<8x256xbf16>
    %cst_171 = arith.constant 0.000000e+00 : bf16
    %669 = vector.broadcast %cst_171 : bf16 to vector<8x256xbf16>
    %670 = vector.shape_cast %21 : vector<1x256xi1> to vector<1x256xi1>
    %671 = vector.broadcast %670 : vector<1x256xi1> to vector<8x256xi1>
    %672 = arith.select %671, %668, %669 : vector<8x256xi1>, vector<8x256xbf16>
    %673 = vector.extract_strided_slice %642 {offsets = [3, 0, 0], sizes = [1, 16, 8], strides = [1, 1, 1]} : vector<9x16x8xbf16> to vector<1x16x8xbf16>
    %674 = vector.shape_cast %673 : vector<1x16x8xbf16> to vector<16x8xbf16>
    %cst_172 = arith.constant dense<0.000000e+00> : vector<16x256xf32>
    %675 = tpu.matmul %674, %672, %cst_172 {dimension_numbers = #tpu.dot_dimension_numbers<[1], [0], [0], [1], [0, 0, 1, 1], [], []>} : vector<16x8xbf16>, vector<8x256xbf16>, vector<16x256xf32> -> vector<16x256xf32>
    %676 = arith.addf %667, %675 : vector<16x256xf32>
    %677 = vector.extract_strided_slice %645 {offsets = [0, 17], sizes = [8, 256], strides = [1, 1]} : vector<8x290xbf16> to vector<8x256xbf16>
    %678 = vector.extract_strided_slice %642 {offsets = [4, 0, 0], sizes = [1, 16, 8], strides = [1, 1, 1]} : vector<9x16x8xbf16> to vector<1x16x8xbf16>
    %679 = vector.shape_cast %678 : vector<1x16x8xbf16> to vector<16x8xbf16>
    %cst_173 = arith.constant dense<0.000000e+00> : vector<16x256xf32>
    %680 = tpu.matmul %679, %677, %cst_173 {dimension_numbers = #tpu.dot_dimension_numbers<[1], [0], [0], [1], [0, 0, 1, 1], [], []>} : vector<16x8xbf16>, vector<8x256xbf16>, vector<16x256xf32> -> vector<16x256xf32>
    %681 = arith.addf %676, %680 : vector<16x256xf32>
    %682 = vector.extract_strided_slice %645 {offsets = [0, 18], sizes = [8, 256], strides = [1, 1]} : vector<8x290xbf16> to vector<8x256xbf16>
    %cst_174 = arith.constant 0.000000e+00 : bf16
    %683 = vector.broadcast %cst_174 : bf16 to vector<8x256xbf16>
    %684 = vector.shape_cast %23 : vector<1x256xi1> to vector<1x256xi1>
    %685 = vector.broadcast %684 : vector<1x256xi1> to vector<8x256xi1>
    %686 = arith.select %685, %682, %683 : vector<8x256xi1>, vector<8x256xbf16>
    %687 = vector.extract_strided_slice %642 {offsets = [5, 0, 0], sizes = [1, 16, 8], strides = [1, 1, 1]} : vector<9x16x8xbf16> to vector<1x16x8xbf16>
    %688 = vector.shape_cast %687 : vector<1x16x8xbf16> to vector<16x8xbf16>
    %cst_175 = arith.constant dense<0.000000e+00> : vector<16x256xf32>
    %689 = tpu.matmul %688, %686, %cst_175 {dimension_numbers = #tpu.dot_dimension_numbers<[1], [0], [0], [1], [0, 0, 1, 1], [], []>} : vector<16x8xbf16>, vector<8x256xbf16>, vector<16x256xf32> -> vector<16x256xf32>
    %690 = arith.addf %681, %689 : vector<16x256xf32>
    %691 = vector.extract_strided_slice %645 {offsets = [0, 32], sizes = [8, 256], strides = [1, 1]} : vector<8x290xbf16> to vector<8x256xbf16>
    %cst_176 = arith.constant 0.000000e+00 : bf16
    %692 = vector.broadcast %cst_176 : bf16 to vector<8x256xbf16>
    %693 = vector.shape_cast %21 : vector<1x256xi1> to vector<1x256xi1>
    %694 = vector.broadcast %693 : vector<1x256xi1> to vector<8x256xi1>
    %695 = arith.select %694, %691, %692 : vector<8x256xi1>, vector<8x256xbf16>
    %696 = vector.extract_strided_slice %642 {offsets = [6, 0, 0], sizes = [1, 16, 8], strides = [1, 1, 1]} : vector<9x16x8xbf16> to vector<1x16x8xbf16>
    %697 = vector.shape_cast %696 : vector<1x16x8xbf16> to vector<16x8xbf16>
    %cst_177 = arith.constant dense<0.000000e+00> : vector<16x256xf32>
    %698 = tpu.matmul %697, %695, %cst_177 {dimension_numbers = #tpu.dot_dimension_numbers<[1], [0], [0], [1], [0, 0, 1, 1], [], []>} : vector<16x8xbf16>, vector<8x256xbf16>, vector<16x256xf32> -> vector<16x256xf32>
    %699 = arith.addf %690, %698 : vector<16x256xf32>
    %700 = vector.extract_strided_slice %645 {offsets = [0, 33], sizes = [8, 256], strides = [1, 1]} : vector<8x290xbf16> to vector<8x256xbf16>
    %701 = vector.extract_strided_slice %642 {offsets = [7, 0, 0], sizes = [1, 16, 8], strides = [1, 1, 1]} : vector<9x16x8xbf16> to vector<1x16x8xbf16>
    %702 = vector.shape_cast %701 : vector<1x16x8xbf16> to vector<16x8xbf16>
    %cst_178 = arith.constant dense<0.000000e+00> : vector<16x256xf32>
    %703 = tpu.matmul %702, %700, %cst_178 {dimension_numbers = #tpu.dot_dimension_numbers<[1], [0], [0], [1], [0, 0, 1, 1], [], []>} : vector<16x8xbf16>, vector<8x256xbf16>, vector<16x256xf32> -> vector<16x256xf32>
    %704 = arith.addf %699, %703 : vector<16x256xf32>
    %705 = vector.extract_strided_slice %645 {offsets = [0, 34], sizes = [8, 256], strides = [1, 1]} : vector<8x290xbf16> to vector<8x256xbf16>
    %cst_179 = arith.constant 0.000000e+00 : bf16
    %706 = vector.broadcast %cst_179 : bf16 to vector<8x256xbf16>
    %707 = vector.shape_cast %23 : vector<1x256xi1> to vector<1x256xi1>
    %708 = vector.broadcast %707 : vector<1x256xi1> to vector<8x256xi1>
    %709 = arith.select %708, %705, %706 : vector<8x256xi1>, vector<8x256xbf16>
    %710 = vector.extract_strided_slice %642 {offsets = [8, 0, 0], sizes = [1, 16, 8], strides = [1, 1, 1]} : vector<9x16x8xbf16> to vector<1x16x8xbf16>
    %711 = vector.shape_cast %710 : vector<1x16x8xbf16> to vector<16x8xbf16>
    %cst_180 = arith.constant dense<0.000000e+00> : vector<16x256xf32>
    %712 = tpu.matmul %711, %709, %cst_180 {dimension_numbers = #tpu.dot_dimension_numbers<[1], [0], [0], [1], [0, 0, 1, 1], [], []>} : vector<16x8xbf16>, vector<8x256xbf16>, vector<16x256xf32> -> vector<16x256xf32>
    %713 = arith.addf %704, %712 : vector<16x256xf32>
    %714 = vector.extract_strided_slice %641 {offsets = [0, 0], sizes = [16, 1], strides = [1, 1]} : vector<16x2xf32> to vector<16x1xf32>
    %715 = vector.broadcast %714 : vector<16x1xf32> to vector<16x256xf32>
    %716 = arith.addf %713, %715 : vector<16x256xf32>
    %717 = arith.truncf %716 : vector<16x256xf32> to vector<16x256xbf16>
    %c0_181 = arith.constant 0 : index
    %c0_182 = arith.constant 0 : index
    %718 = vector.load %arg9[%c0_181, %c0_182] : memref<256x1024xbf16, #tpu.memory_space<vmem>>, vector<256x1024xbf16>
    %cst_183 = arith.constant dense<0.000000e+00> : vector<16x1024xf32>
    %719 = tpu.matmul %717, %718, %cst_183 {dimension_numbers = #tpu.dot_dimension_numbers<[1], [0], [0], [1], [0, 0, 1, 1], [], []>} : vector<16x256xbf16>, vector<256x1024xbf16>, vector<16x1024xf32> -> vector<16x1024xf32>
    %c0_184 = arith.constant 0 : index
    %c0_185 = arith.constant 0 : index
    %c0_186 = arith.constant 0 : index
    %720 = vector.load %arg10[%c0_184, %c0_185, %c0_186] : memref<16x16x16xbf16, #tpu.memory_space<vmem>>, vector<16x16x16xbf16>
    %721 = vector.extract_strided_slice %719 {offsets = [0, 0], sizes = [16, 64], strides = [1, 1]} : vector<16x1024xf32> to vector<16x64xf32>
    %722 = arith.truncf %721 : vector<16x64xf32> to vector<16x64xbf16>
    %723 = vector.extract_strided_slice %720 {offsets = [0, 0, 0], sizes = [1, 16, 16], strides = [1, 1, 1]} : vector<16x16x16xbf16> to vector<1x16x16xbf16>
    %724 = vector.shape_cast %723 : vector<1x16x16xbf16> to vector<16x16xbf16>
    %cst_187 = arith.constant dense<0.000000e+00> : vector<16x64xf32>
    %725 = tpu.matmul %724, %722, %cst_187 {dimension_numbers = #tpu.dot_dimension_numbers<[1], [0], [0], [1], [0, 0, 1, 1], [], []>} : vector<16x16xbf16>, vector<16x64xbf16>, vector<16x64xf32> -> vector<16x64xf32>
    %726 = vector.extract_strided_slice %719 {offsets = [0, 64], sizes = [16, 64], strides = [1, 1]} : vector<16x1024xf32> to vector<16x64xf32>
    %727 = arith.truncf %726 : vector<16x64xf32> to vector<16x64xbf16>
    %728 = vector.extract_strided_slice %720 {offsets = [1, 0, 0], sizes = [1, 16, 16], strides = [1, 1, 1]} : vector<16x16x16xbf16> to vector<1x16x16xbf16>
    %729 = vector.shape_cast %728 : vector<1x16x16xbf16> to vector<16x16xbf16>
    %cst_188 = arith.constant dense<0.000000e+00> : vector<16x64xf32>
    %730 = tpu.matmul %729, %727, %cst_188 {dimension_numbers = #tpu.dot_dimension_numbers<[1], [0], [0], [1], [0, 0, 1, 1], [], []>} : vector<16x16xbf16>, vector<16x64xbf16>, vector<16x64xf32> -> vector<16x64xf32>
    %731 = arith.addf %725, %730 : vector<16x64xf32>
    %732 = vector.extract_strided_slice %719 {offsets = [0, 128], sizes = [16, 64], strides = [1, 1]} : vector<16x1024xf32> to vector<16x64xf32>
    %733 = arith.truncf %732 : vector<16x64xf32> to vector<16x64xbf16>
    %734 = vector.extract_strided_slice %720 {offsets = [2, 0, 0], sizes = [1, 16, 16], strides = [1, 1, 1]} : vector<16x16x16xbf16> to vector<1x16x16xbf16>
    %735 = vector.shape_cast %734 : vector<1x16x16xbf16> to vector<16x16xbf16>
    %cst_189 = arith.constant dense<0.000000e+00> : vector<16x64xf32>
    %736 = tpu.matmul %735, %733, %cst_189 {dimension_numbers = #tpu.dot_dimension_numbers<[1], [0], [0], [1], [0, 0, 1, 1], [], []>} : vector<16x16xbf16>, vector<16x64xbf16>, vector<16x64xf32> -> vector<16x64xf32>
    %737 = arith.addf %731, %736 : vector<16x64xf32>
    %738 = vector.extract_strided_slice %719 {offsets = [0, 192], sizes = [16, 64], strides = [1, 1]} : vector<16x1024xf32> to vector<16x64xf32>
    %739 = arith.truncf %738 : vector<16x64xf32> to vector<16x64xbf16>
    %740 = vector.extract_strided_slice %720 {offsets = [3, 0, 0], sizes = [1, 16, 16], strides = [1, 1, 1]} : vector<16x16x16xbf16> to vector<1x16x16xbf16>
    %741 = vector.shape_cast %740 : vector<1x16x16xbf16> to vector<16x16xbf16>
    %cst_190 = arith.constant dense<0.000000e+00> : vector<16x64xf32>
    %742 = tpu.matmul %741, %739, %cst_190 {dimension_numbers = #tpu.dot_dimension_numbers<[1], [0], [0], [1], [0, 0, 1, 1], [], []>} : vector<16x16xbf16>, vector<16x64xbf16>, vector<16x64xf32> -> vector<16x64xf32>
    %743 = arith.addf %737, %742 : vector<16x64xf32>
    %744 = vector.extract_strided_slice %719 {offsets = [0, 256], sizes = [16, 64], strides = [1, 1]} : vector<16x1024xf32> to vector<16x64xf32>
    %745 = arith.truncf %744 : vector<16x64xf32> to vector<16x64xbf16>
    %746 = vector.extract_strided_slice %720 {offsets = [4, 0, 0], sizes = [1, 16, 16], strides = [1, 1, 1]} : vector<16x16x16xbf16> to vector<1x16x16xbf16>
    %747 = vector.shape_cast %746 : vector<1x16x16xbf16> to vector<16x16xbf16>
    %cst_191 = arith.constant dense<0.000000e+00> : vector<16x64xf32>
    %748 = tpu.matmul %747, %745, %cst_191 {dimension_numbers = #tpu.dot_dimension_numbers<[1], [0], [0], [1], [0, 0, 1, 1], [], []>} : vector<16x16xbf16>, vector<16x64xbf16>, vector<16x64xf32> -> vector<16x64xf32>
    %749 = arith.addf %743, %748 : vector<16x64xf32>
    %750 = vector.extract_strided_slice %719 {offsets = [0, 320], sizes = [16, 64], strides = [1, 1]} : vector<16x1024xf32> to vector<16x64xf32>
    %751 = arith.truncf %750 : vector<16x64xf32> to vector<16x64xbf16>
    %752 = vector.extract_strided_slice %720 {offsets = [5, 0, 0], sizes = [1, 16, 16], strides = [1, 1, 1]} : vector<16x16x16xbf16> to vector<1x16x16xbf16>
    %753 = vector.shape_cast %752 : vector<1x16x16xbf16> to vector<16x16xbf16>
    %cst_192 = arith.constant dense<0.000000e+00> : vector<16x64xf32>
    %754 = tpu.matmul %753, %751, %cst_192 {dimension_numbers = #tpu.dot_dimension_numbers<[1], [0], [0], [1], [0, 0, 1, 1], [], []>} : vector<16x16xbf16>, vector<16x64xbf16>, vector<16x64xf32> -> vector<16x64xf32>
    %755 = arith.addf %749, %754 : vector<16x64xf32>
    %756 = vector.extract_strided_slice %719 {offsets = [0, 384], sizes = [16, 64], strides = [1, 1]} : vector<16x1024xf32> to vector<16x64xf32>
    %757 = arith.truncf %756 : vector<16x64xf32> to vector<16x64xbf16>
    %758 = vector.extract_strided_slice %720 {offsets = [6, 0, 0], sizes = [1, 16, 16], strides = [1, 1, 1]} : vector<16x16x16xbf16> to vector<1x16x16xbf16>
    %759 = vector.shape_cast %758 : vector<1x16x16xbf16> to vector<16x16xbf16>
    %cst_193 = arith.constant dense<0.000000e+00> : vector<16x64xf32>
    %760 = tpu.matmul %759, %757, %cst_193 {dimension_numbers = #tpu.dot_dimension_numbers<[1], [0], [0], [1], [0, 0, 1, 1], [], []>} : vector<16x16xbf16>, vector<16x64xbf16>, vector<16x64xf32> -> vector<16x64xf32>
    %761 = arith.addf %755, %760 : vector<16x64xf32>
    %762 = vector.extract_strided_slice %719 {offsets = [0, 448], sizes = [16, 64], strides = [1, 1]} : vector<16x1024xf32> to vector<16x64xf32>
    %763 = arith.truncf %762 : vector<16x64xf32> to vector<16x64xbf16>
    %764 = vector.extract_strided_slice %720 {offsets = [7, 0, 0], sizes = [1, 16, 16], strides = [1, 1, 1]} : vector<16x16x16xbf16> to vector<1x16x16xbf16>
    %765 = vector.shape_cast %764 : vector<1x16x16xbf16> to vector<16x16xbf16>
    %cst_194 = arith.constant dense<0.000000e+00> : vector<16x64xf32>
    %766 = tpu.matmul %765, %763, %cst_194 {dimension_numbers = #tpu.dot_dimension_numbers<[1], [0], [0], [1], [0, 0, 1, 1], [], []>} : vector<16x16xbf16>, vector<16x64xbf16>, vector<16x64xf32> -> vector<16x64xf32>
    %767 = arith.addf %761, %766 : vector<16x64xf32>
    %768 = vector.extract_strided_slice %719 {offsets = [0, 512], sizes = [16, 64], strides = [1, 1]} : vector<16x1024xf32> to vector<16x64xf32>
    %769 = arith.truncf %768 : vector<16x64xf32> to vector<16x64xbf16>
    %770 = vector.extract_strided_slice %720 {offsets = [8, 0, 0], sizes = [1, 16, 16], strides = [1, 1, 1]} : vector<16x16x16xbf16> to vector<1x16x16xbf16>
    %771 = vector.shape_cast %770 : vector<1x16x16xbf16> to vector<16x16xbf16>
    %cst_195 = arith.constant dense<0.000000e+00> : vector<16x64xf32>
    %772 = tpu.matmul %771, %769, %cst_195 {dimension_numbers = #tpu.dot_dimension_numbers<[1], [0], [0], [1], [0, 0, 1, 1], [], []>} : vector<16x16xbf16>, vector<16x64xbf16>, vector<16x64xf32> -> vector<16x64xf32>
    %773 = arith.addf %767, %772 : vector<16x64xf32>
    %774 = vector.extract_strided_slice %719 {offsets = [0, 576], sizes = [16, 64], strides = [1, 1]} : vector<16x1024xf32> to vector<16x64xf32>
    %775 = arith.truncf %774 : vector<16x64xf32> to vector<16x64xbf16>
    %776 = vector.extract_strided_slice %720 {offsets = [9, 0, 0], sizes = [1, 16, 16], strides = [1, 1, 1]} : vector<16x16x16xbf16> to vector<1x16x16xbf16>
    %777 = vector.shape_cast %776 : vector<1x16x16xbf16> to vector<16x16xbf16>
    %cst_196 = arith.constant dense<0.000000e+00> : vector<16x64xf32>
    %778 = tpu.matmul %777, %775, %cst_196 {dimension_numbers = #tpu.dot_dimension_numbers<[1], [0], [0], [1], [0, 0, 1, 1], [], []>} : vector<16x16xbf16>, vector<16x64xbf16>, vector<16x64xf32> -> vector<16x64xf32>
    %779 = arith.addf %773, %778 : vector<16x64xf32>
    %780 = vector.extract_strided_slice %719 {offsets = [0, 640], sizes = [16, 64], strides = [1, 1]} : vector<16x1024xf32> to vector<16x64xf32>
    %781 = arith.truncf %780 : vector<16x64xf32> to vector<16x64xbf16>
    %782 = vector.extract_strided_slice %720 {offsets = [10, 0, 0], sizes = [1, 16, 16], strides = [1, 1, 1]} : vector<16x16x16xbf16> to vector<1x16x16xbf16>
    %783 = vector.shape_cast %782 : vector<1x16x16xbf16> to vector<16x16xbf16>
    %cst_197 = arith.constant dense<0.000000e+00> : vector<16x64xf32>
    %784 = tpu.matmul %783, %781, %cst_197 {dimension_numbers = #tpu.dot_dimension_numbers<[1], [0], [0], [1], [0, 0, 1, 1], [], []>} : vector<16x16xbf16>, vector<16x64xbf16>, vector<16x64xf32> -> vector<16x64xf32>
    %785 = arith.addf %779, %784 : vector<16x64xf32>
    %786 = vector.extract_strided_slice %719 {offsets = [0, 704], sizes = [16, 64], strides = [1, 1]} : vector<16x1024xf32> to vector<16x64xf32>
    %787 = arith.truncf %786 : vector<16x64xf32> to vector<16x64xbf16>
    %788 = vector.extract_strided_slice %720 {offsets = [11, 0, 0], sizes = [1, 16, 16], strides = [1, 1, 1]} : vector<16x16x16xbf16> to vector<1x16x16xbf16>
    %789 = vector.shape_cast %788 : vector<1x16x16xbf16> to vector<16x16xbf16>
    %cst_198 = arith.constant dense<0.000000e+00> : vector<16x64xf32>
    %790 = tpu.matmul %789, %787, %cst_198 {dimension_numbers = #tpu.dot_dimension_numbers<[1], [0], [0], [1], [0, 0, 1, 1], [], []>} : vector<16x16xbf16>, vector<16x64xbf16>, vector<16x64xf32> -> vector<16x64xf32>
    %791 = arith.addf %785, %790 : vector<16x64xf32>
    %792 = vector.extract_strided_slice %719 {offsets = [0, 768], sizes = [16, 64], strides = [1, 1]} : vector<16x1024xf32> to vector<16x64xf32>
    %793 = arith.truncf %792 : vector<16x64xf32> to vector<16x64xbf16>
    %794 = vector.extract_strided_slice %720 {offsets = [12, 0, 0], sizes = [1, 16, 16], strides = [1, 1, 1]} : vector<16x16x16xbf16> to vector<1x16x16xbf16>
    %795 = vector.shape_cast %794 : vector<1x16x16xbf16> to vector<16x16xbf16>
    %cst_199 = arith.constant dense<0.000000e+00> : vector<16x64xf32>
    %796 = tpu.matmul %795, %793, %cst_199 {dimension_numbers = #tpu.dot_dimension_numbers<[1], [0], [0], [1], [0, 0, 1, 1], [], []>} : vector<16x16xbf16>, vector<16x64xbf16>, vector<16x64xf32> -> vector<16x64xf32>
    %797 = arith.addf %791, %796 : vector<16x64xf32>
    %798 = vector.extract_strided_slice %719 {offsets = [0, 832], sizes = [16, 64], strides = [1, 1]} : vector<16x1024xf32> to vector<16x64xf32>
    %799 = arith.truncf %798 : vector<16x64xf32> to vector<16x64xbf16>
    %800 = vector.extract_strided_slice %720 {offsets = [13, 0, 0], sizes = [1, 16, 16], strides = [1, 1, 1]} : vector<16x16x16xbf16> to vector<1x16x16xbf16>
    %801 = vector.shape_cast %800 : vector<1x16x16xbf16> to vector<16x16xbf16>
    %cst_200 = arith.constant dense<0.000000e+00> : vector<16x64xf32>
    %802 = tpu.matmul %801, %799, %cst_200 {dimension_numbers = #tpu.dot_dimension_numbers<[1], [0], [0], [1], [0, 0, 1, 1], [], []>} : vector<16x16xbf16>, vector<16x64xbf16>, vector<16x64xf32> -> vector<16x64xf32>
    %803 = arith.addf %797, %802 : vector<16x64xf32>
    %804 = vector.extract_strided_slice %719 {offsets = [0, 896], sizes = [16, 64], strides = [1, 1]} : vector<16x1024xf32> to vector<16x64xf32>
    %805 = arith.truncf %804 : vector<16x64xf32> to vector<16x64xbf16>
    %806 = vector.extract_strided_slice %720 {offsets = [14, 0, 0], sizes = [1, 16, 16], strides = [1, 1, 1]} : vector<16x16x16xbf16> to vector<1x16x16xbf16>
    %807 = vector.shape_cast %806 : vector<1x16x16xbf16> to vector<16x16xbf16>
    %cst_201 = arith.constant dense<0.000000e+00> : vector<16x64xf32>
    %808 = tpu.matmul %807, %805, %cst_201 {dimension_numbers = #tpu.dot_dimension_numbers<[1], [0], [0], [1], [0, 0, 1, 1], [], []>} : vector<16x16xbf16>, vector<16x64xbf16>, vector<16x64xf32> -> vector<16x64xf32>
    %809 = arith.addf %803, %808 : vector<16x64xf32>
    %810 = vector.extract_strided_slice %719 {offsets = [0, 960], sizes = [16, 64], strides = [1, 1]} : vector<16x1024xf32> to vector<16x64xf32>
    %811 = arith.truncf %810 : vector<16x64xf32> to vector<16x64xbf16>
    %812 = vector.extract_strided_slice %720 {offsets = [15, 0, 0], sizes = [1, 16, 16], strides = [1, 1, 1]} : vector<16x16x16xbf16> to vector<1x16x16xbf16>
    %813 = vector.shape_cast %812 : vector<1x16x16xbf16> to vector<16x16xbf16>
    %cst_202 = arith.constant dense<0.000000e+00> : vector<16x64xf32>
    %814 = tpu.matmul %813, %811, %cst_202 {dimension_numbers = #tpu.dot_dimension_numbers<[1], [0], [0], [1], [0, 0, 1, 1], [], []>} : vector<16x16xbf16>, vector<16x64xbf16>, vector<16x64xf32> -> vector<16x64xf32>
    %815 = arith.addf %809, %814 : vector<16x64xf32>
    %816 = vector.extract_strided_slice %641 {offsets = [0, 1], sizes = [16, 1], strides = [1, 1]} : vector<16x2xf32> to vector<16x1xf32>
    %817 = vector.broadcast %816 : vector<16x1xf32> to vector<16x64xf32>
    %818 = arith.addf %815, %817 : vector<16x64xf32>
    %c0_203 = arith.constant 0 : index
    %c0_204 = arith.constant 0 : index
    %c0_205 = arith.constant 0 : index
    %819 = vector.load %arg12[%c0_203, %c0_204, %c0_205] : memref<1x16x64xf32, #tpu.memory_space<vmem>>, vector<1x16x64xf32>
    %820 = vector.shape_cast %819 : vector<1x16x64xf32> to vector<16x64xf32>
    %821 = vector.shape_cast %818 : vector<16x64xf32> to vector<1x16x64xf32>
    tpu.vector_store %arg12[%c0_203, %c0_204, %c0_205], %821 {strides = array<i32>} : memref<1x16x64xf32, #tpu.memory_space<vmem>>, vector<1x16x64xf32>,
    return
  }
  func.func @transform_0(%arg0: i32) -> (i32, i32, i32) {
    %c0_i32 = arith.constant 0 : i32
    %c0_i32_0 = arith.constant 0 : i32
    %c0_i32_1 = arith.constant 0 : i32
    return %arg0, %c0_i32, %c0_i32_0 : i32, i32, i32
  }
  func.func @transform_1(%arg0: i32) -> (i32, i32, i32) {
    %c0_i32 = arith.constant 0 : i32
    %c0_i32_0 = arith.constant 0 : i32
    %c0_i32_1 = arith.constant 0 : i32
    return %arg0, %c0_i32, %c0_i32_0 : i32, i32, i32
  }
  func.func @transform_2(%arg0: i32) -> (i32, i32) {
    %c0_i32 = arith.constant 0 : i32
    %c0_i32_0 = arith.constant 0 : i32
    %c0_i32_1 = arith.constant 0 : i32
    return %c0_i32, %c0_i32_0 : i32, i32
  }
  func.func @transform_3(%arg0: i32) -> (i32, i32) {
    %c0_i32 = arith.constant 0 : i32
    %c0_i32_0 = arith.constant 0 : i32
    %c0_i32_1 = arith.constant 0 : i32
    return %c0_i32, %c0_i32_0 : i32, i32
  }
  func.func @transform_4(%arg0: i32) -> (i32, i32, i32, i32) {
    %c0_i32 = arith.constant 0 : i32
    %c0_i32_0 = arith.constant 0 : i32
    %c0_i32_1 = arith.constant 0 : i32
    %c0_i32_2 = arith.constant 0 : i32
    %c0_i32_3 = arith.constant 0 : i32
    return %c0_i32, %c0_i32_0, %c0_i32_1, %c0_i32_2 : i32, i32, i32, i32
  }
  func.func @transform_5(%arg0: i32) -> (i32, i32) {
    %c0_i32 = arith.constant 0 : i32
    %c0_i32_0 = arith.constant 0 : i32
    %c0_i32_1 = arith.constant 0 : i32
    return %c0_i32, %c0_i32_0 : i32, i32
  }
  func.func @transform_6(%arg0: i32) -> (i32, i32) {
    %c0_i32 = arith.constant 0 : i32
    %c0_i32_0 = arith.constant 0 : i32
    %c0_i32_1 = arith.constant 0 : i32
    return %c0_i32, %c0_i32_0 : i32, i32
  }
  func.func @transform_7(%arg0: i32) -> (i32, i32, i32) {
    %c0_i32 = arith.constant 0 : i32
    %c0_i32_0 = arith.constant 0 : i32
    %c0_i32_1 = arith.constant 0 : i32
    %c0_i32_2 = arith.constant 0 : i32
    return %c0_i32, %c0_i32_0, %c0_i32_1 : i32, i32, i32
  }
  func.func @transform_8(%arg0: i32) -> (i32, i32) {
    %c0_i32 = arith.constant 0 : i32
    %c0_i32_0 = arith.constant 0 : i32
    %c0_i32_1 = arith.constant 0 : i32
    return %c0_i32, %c0_i32_0 : i32, i32
  }
  func.func @transform_9(%arg0: i32) -> (i32, i32, i32) {
    %c0_i32 = arith.constant 0 : i32
    %c0_i32_0 = arith.constant 0 : i32
    %c0_i32_1 = arith.constant 0 : i32
    %c0_i32_2 = arith.constant 0 : i32
    return %c0_i32, %c0_i32_0, %c0_i32_1 : i32, i32, i32
  }
  func.func @transform_10(%arg0: i32) -> (i32, i32) {
    %c0_i32 = arith.constant 0 : i32
    %c0_i32_0 = arith.constant 0 : i32
    %c0_i32_1 = arith.constant 0 : i32
    return %c0_i32, %c0_i32_0 : i32, i32
  }
  func.func @transform_11(%arg0: i32) -> (i32, i32, i32) {
    %c0_i32 = arith.constant 0 : i32
    %c0_i32_0 = arith.constant 0 : i32
    %c0_i32_1 = arith.constant 0 : i32
    return %arg0, %c0_i32, %c0_i32_0 : i32, i32, i32
  }
}

</mosaic_0001>

<bundles_post_ra>
// kernel: down_block.1
= control target key start
LH: loop header
LB: loop body
LE: loop exit
PB: predicated region body
PF: predicated region fallthrough
CT: control target
= control target key end

     0   :  { %16 = vsyncpa [#allocation3], 0  ;;  %s8484_s17 = smov 0   ;;  %s10608_s0 = inlined_call_operand.vmem [shape: f32[2,8,256], index: 0, kind: input, shape index: {}]   ;;  %s10609_s1 = inlined_call_operand.vmem [shape: f32[2,1,32], index: 1, kind: input, shape index: {}]   ;;  %s10610_s2 = inlined_call_operand.vmem [shape: f32[8,19], index: 2, kind: input, shape index: {}]   ;;  %s10611_s3 = inlined_call_operand.vmem [shape: f32[16,32], index: 3, kind: input, shape index: {}]   ;;  %s10612_s4 = inlined_call_operand.vmem [shape: bf16[4,9,8,8], index: 4, kind: input, shape index: {}]   ;;  %s10613_s5 = inlined_call_operand.vmem [shape: bf16[384,8], index: 5, kind: input, shape index: {}]   ;;  %s10614_s6 = inlined_call_operand.vmem [shape: bf16[8,128], index: 6, kind: input, shape index: {}]   ;;  %s10615_s7 = inlined_call_operand.vmem [shape: bf16[9,16,8], index: 7, kind: input, shape index: {}]   ;;  %s10616_s8 = inlined_call_operand.hbm [shape: bf16[256,1024], index: 8, kind: input, shape index: {}]   ;;  %s10617_s9 = inlined_call_operand.vmem [shape: bf16[16,16,16], index: 9, kind: input, shape index: {}]   ;;  %s10618_s10 = inlined_call_operand.vmem [shape: f32[16,2], index: 10, kind: input, shape index: {}]   ;;  %s10619_s11 = inlined_call_operand.vmem [shape: f32[2,16,64], index: 11, kind: output, shape index: {}]  }
   0x1 LB: > { %s323_s20 = sshll.u32 %s10616_s8, 4  ;;  %s6914_s21 = sadd.s32 4294967295, %s8383_s17   ;;  %s8383_s17 = sphi %s8484_s17, %s22_s17   ;;  %s324_s20 = int_to_ptr.hbm [resolvable:$true] %s323_s20 }
   0x2   : > { %p6916_p0 = scmp.ge.s32.totalorder %s8383_s17, 1  ;;  %p294_p1 = scmp.lt.s32.totalorder %s8383_s17, 3 }
   0x3   : > { %p8036_p2 = scmp.eq.s32.totalorder %s6914_s21, 0  ;;  %s8385_s22 = smov [#allocation2]  }
   0x4   : > { %p295_p3 = pnand %p6916_p0, %p294_p1  ;;  %s325_s23 = sshll.u32 %s8385_s22, 4  ;;  %s326_s23 = int_to_ptr.vmem [resolvable:$true] %s325_s23 }
   0x5   : > { %s8386_s24 = smov 512   ;;  %s8387_s25 = smov 32  }
   0x6   : > { %p8032_p4 = pneg %p295_p3  ;;  %361 = sbr.rel (%p295_p3) target bundleno = 7041 (0x1b81), region = 64 }
   0x8   : > { %p8033_p5 = pnand %p8036_p2, %p8032_p4 }
   0xa   : > { %8035 = dma.hbm_to_vmem [thread:$0]  (!%p8033_p5), %s324_s20, 16384, %s326_s23, [#allocation3], %s8386_s24, %s8386_s24, %s8387_s25  }
   0xb   : > { %8378 = dma.done.wait (%p8036_p2), [#allocation3], 16384  }
   0xc   : > { %8380 = vsyncadd (%p8036_p2), [#allocation3], 4294950912  ;;  %v424_v0 = vlaneseq  ;;  %p405_p6 = scmp.lt.s32.totalorder %s6914_s21, 1  ;;  %v10661_v1 = vmov 0   ;;  %s8389_s30 = smov 2   ;;  %vm10621_vm8 = vcmask 138240  }
   0xd   : > { %8085 = vset.pattern.permute.xlu0 %v10661_v1  ;;  %s8390_s12 = smov 17   ;;  %s8391_s13 = smov 16   ;;  %v8521_v19 = vunpack.c.l.b16 %v10661_v1  ;;  %v8524_v20 = vunpack.c.h.b16 %v10661_v1  ;;  %v10727_v24 = vmov 0  ;;  %vm10623_vm10 = vcmask 1043456  }
   0xe   : > { %v425_v2 = vand.u32 127, %v424_v0  ;;  %s11214_s21 = smov (!%p405_p6, %s6914_s21), 1  ;;  %s8392_s14 = smov 18   ;;  %vm651_vm13 = vcmask 15360   ;;  %v10730_v33 = vmov 0  ;;  %v10733_v45 = vmov 0 }
   0xf   : > { %s7841_s26 = sshll.u32 %s11214_s21, 4  ;;  %s8393_s15 = smov 32   ;;  %v10736_v52 = vmov 0  ;;  %v10739_v53 = vmov 0  ;;  %v10742_v56 = vmov 0  ;;  %v10745_v63 = vmov 0 }
  0x10   : > { %v426_v3 = vadd.s32 128, %v425_v2  ;;  %v431_v4 = vand.u32 15, %v425_v2  ;;  %s8504_s29 = scalar_lea.vmem %s10608_s0, %s7841_s26  ;;  %s8394_s16 = smov 127  }
  0x11   : > { %v421_v6 = vld [vmem:[%s8504_s29] sm:$0xff]  ;;  %v422_v7 = vld [vmem:[%s8504_s29 + $0x8] sm:$0xff]  ;;  %s8395_s18 = smov 34   ;;  %s8396_s19 = smov 126  }
  0x12   : > { %v438_v5 = vand.u32 15, %v426_v3  ;;  %vm453_vm0 = vcmp.ne.s32.totalorder %v431_v4, 15  ;;  %vm451_vm1 = vcmp.ne.s32.totalorder %v431_v4, 0  ;;  %v511_v8 = vpack.c.bf16 %v422_v7, %v421_v6  ;;  %s8397_s20 = smov 112   ;;  %s8398_s22 = smov 111  }
  0x13   : > { %v10748_v3 = vmov 0  ;;  %s8399_s23 = smov 110   ;;  %s8400_s24 = smov 96  }
  0x14   : > { %vm454_vm2 = vcmp.ne.s32.totalorder %v438_v5, 15  ;;  %vm452_vm3 = vcmp.ne.s32.totalorder %v438_v5, 0  ;;  %v513_v10 = vunpack.c.l.b16 %v511_v8  ;;  %v514_v15 = vunpack.c.h.b16 %v511_v8  ;;  %s8401_s25 = smov 95  }
  0x15   : > { %vm643_vm4 = vmpackc.low %vm454_vm2, %vm453_vm0  ;;  %vm10620_vm2 = vcmask 130048   ;;  %v10751_v8 = vmov 0 }
  0x16   : > { %v644_v9 = vsel %vm643_vm4, 65537, %v10661_v1  ;;  %vm536_vm5 = vmpackc.low %vm452_vm3, %vm451_vm1  ;;  %v515_v13 = vpack.c.b16 %v513_v10, %v513_v10  ;;  %v516_v17 = vpack.c.b16 %v514_v15, %v514_v15  ;;  %v10754_v15 = vmov 0 }
  0x17   : > { %v8509_v11 = vperm.slane %v644_v9, 0  ;;  %v537_v12 = vsel %vm536_vm5, 65537, %v10661_v1  ;;  %v646_v16 = vperm.slane %v644_v9, 4 }
  0x18   : > { %v538_v14 = vperm.slane %v537_v12, 0  ;;  %517 = vrot.lane.b32.xlu0 %v515_v13, %s8390_s12  ;;  %v8514_v18 = vperm.slane %v537_v12, 4 }
  0x19   : > { %647 = vrot.lane.b32.xlu1 %v8509_v11, %s8389_s30 }
  0x1a   : > { %726 = vrot.lane.b32.xlu2 %v538_v14, %s8391_s13  ;;  %v540_v21 = vunpack.c.l.b16 %v538_v14  ;;  %v541_v22 = vunpack.c.h.b16 %v538_v14  ;;  %v547_v26 = vunpack.c.l.b16 %v8514_v18  ;;  %v548_v27 = vunpack.c.h.b16 %v8514_v18 }
  0x1c   : > { %vm544_vm6 = vcmp.ne.s32.totalorder %v540_v21, %v8521_v19  ;;  %vm545_vm7 = vcmp.ne.s32.totalorder %v541_v22, %v8524_v20  ;;  %vm551_vm11 = vcmp.ne.s32.totalorder %v547_v26, %v8521_v19  ;;  %vm552_vm12 = vcmp.ne.s32.totalorder %v548_v27, %v8524_v20 }
  0x1d   : > { %vm8528_vm9 = vmpackc.low %vm545_vm7, %vm544_vm6 }
  0x1e   : > { %v10728_v24 = vsel %vm8528_vm9, 4294967295, %v10727_v24  ;;  %vm8545_vm14 = vmpackc.low %vm552_vm12, %vm551_vm11 }
  0x1f   : > { %10729 = vst [vmem:[#allocation5_spill] sm:$0xff] %v10728_v24  ;;  %v10731_v33 = vsel %vm8545_vm14, 4294967295, %v10730_v33 }
  0x20   : > { %519 = vrot.lane.b32.xlu0 %v516_v17, %s8390_s12  ;;  %10732 = vst [vmem:[#allocation6_spill] sm:$0xff] %v10731_v33 }
  0x21   : > { %649 = vrot.lane.b32.xlu1 %v646_v16, %s8389_s30 }
  0x22   : > { %728 = vrot.lane.b32.xlu2 %v8514_v18, %s8391_s13 }
  0x28   : > { %851 = vrot.lane.b32.xlu0 %v8509_v11, %s8392_s14 }
  0x29   : > { %853 = vrot.lane.b32.xlu1 %v646_v16, %s8392_s14  ;;  %s8402_s14 = smov 94  }
  0x2a   : > { %930 = vrot.lane.b32.xlu2 %v538_v14, %s8393_s15 }
  0x74   : > { %v727_v30 = vpop.permute.xlu2 %726 }
  0x75   : > { %v732_v57 = vunpack.c.l.b16 %v727_v30  ;;  %v733_v58 = vunpack.c.h.b16 %v727_v30 }
  0x7c   : > { %v729_v42 = vpop.permute.xlu2 %728 }
  0x7d   : > { %v746_v43 = vunpack.c.l.b16 %v729_v42  ;;  %v747_v44 = vunpack.c.h.b16 %v729_v42  ;;  %v731_v51 = vsel %vm10620_vm2, %v727_v30, %v729_v42 }
  0x7e   : > { %v739_v54 = vunpack.c.l.b16 %v731_v51  ;;  %v740_v55 = vunpack.c.h.b16 %v731_v51  ;;  %v10763_v51 = vmov 0 }
  0x7f   : > { %vm750_vm3 = vcmp.ne.s32.totalorder %v746_v43, %v8521_v19  ;;  %vm751_vm4 = vcmp.ne.s32.totalorder %v747_v44, %v8524_v20 }
  0x80   : > { %vm8583_vm12 = vmpackc.low %vm751_vm4, %vm750_vm3  ;;  %vm744_vm3 = vcmp.ne.s32.totalorder %v740_v55, %v8524_v20  ;;  %vm736_vm4 = vcmp.ne.s32.totalorder %v732_v57, %v8521_v19  ;;  %v10768_v55 = vmov 0  ;;  %v10771_v57 = vmov 0 }
  0x81   : > { %v10737_v52 = vsel %vm8583_vm12, 4294967295, %v10736_v52 }
  0x82   : > { %10738 = vst [vmem:[#allocation8_spill] sm:$0xff] %v10737_v52 }
  0x84   : > { %v931_v14 = vpop.permute.xlu2 %930 }
  0x85   : > { %v936_v17 = vunpack.c.l.b16 %v931_v14 }
  0x8a   : > { %v518_v25 = vpop.permute.xlu0 %517 }
  0x8b   : > { %v648_v23 = vpop.permute.xlu1 %647  ;;  %v8535_v28 = vsel %vm10621_vm8, 0, %v518_v25 }
  0x8c   : > { %558 = vrot.lane.b32.xlu2 %v8535_v28, %s8394_s16  ;;  %v554_v29 = vsel %vm8528_vm9, %v8535_v28, 0  ;;  %v653_v46 = vunpack.c.l.b16 %v648_v23  ;;  %v654_v47 = vunpack.c.h.b16 %v648_v23 }
  0x8d   : > { %v608_v31 = vsel %vm10623_vm10, %v554_v29, 0 }
  0x8e   : > { %620 = vmatpush.bf16.msra.mxu2 %v608_v31  ;;  %vm657_vm5 = vcmp.ne.s32.totalorder %v653_v46, %v8521_v19  ;;  %vm658_vm6 = vcmp.ne.s32.totalorder %v654_v47, %v8524_v20 }
  0x92   : > { %v520_v35 = vpop.permute.xlu0 %519 }
  0x93   : > { %v650_v32 = vpop.permute.xlu1 %649  ;;  %v8550_v38 = vsel %vm10621_vm8, %v518_v25, %v520_v35  ;;  %v8553_v39 = vsel %vm10621_vm8, %v520_v35, 0 }
  0x94   : > { %v652_v34 = vsel %vm651_vm13, %v648_v23, %v650_v32  ;;  %1057 = vrot.lane.b32.xlu2 %v646_v16, %s8395_s18  ;;  %562 = vrot.lane.b32.xlu1 %v8553_v39, %s8394_s16  ;;  %v555_v40 = vsel %vm8545_vm14, %v8550_v38, 0  ;;  %v667_v48 = vunpack.c.l.b16 %v650_v32  ;;  %v668_v49 = vunpack.c.h.b16 %v650_v32  ;;  %vm8587_vm13 = vmpackc.low %vm658_vm6, %vm657_vm5 }
  0x95   : > { %v660_v36 = vunpack.c.l.b16 %v652_v34  ;;  %v661_v37 = vunpack.c.h.b16 %v652_v34  ;;  %560 = vrot.lane.b32.xlu0 %v8550_v38, %s8394_s16  ;;  %v611_v41 = vsel %vm10623_vm10, %v555_v40, 0  ;;  %v10740_v53 = vsel %vm8587_vm13, 4294967295, %v10739_v53 }
  0x96   : > { %633 = vmatpush.bf16.msra.mxu3 %v611_v41  ;;  %vm671_vm7 = vcmp.ne.s32.totalorder %v667_v48, %v8521_v19  ;;  %vm672_vm11 = vcmp.ne.s32.totalorder %v668_v49, %v8524_v20  ;;  %10741 = vst [vmem:[#allocation9_spill] sm:$0xff] %v10740_v53  ;;  %v674_v59 = vsel %vm8587_vm13, %v8535_v28, 0  ;;  %v755_v60 = vsel %vm8583_vm12, %v8553_v39, 0  ;;  %v492_v49 = vld [vmem:[%s10612_s4] sm:$0xf] }
  0x97   : > { %vm664_vm15 = vcmp.ne.s32.totalorder %v660_v36, %v8521_v19  ;;  %vm665_vm0 = vcmp.ne.s32.totalorder %v661_v37, %v8524_v20  ;;  %vm737_vm5 = vcmp.ne.s32.totalorder %v733_v58, %v8524_v20  ;;  %v10757_v16 = vmov 0  ;;  %v493_v36 = vld [vmem:[%s10612_s4 + $0x4] sm:$0xf] }
  0x98   : > { %vm8565_vm1 = vmpackc.low %vm665_vm0, %vm664_vm15  ;;  %vm743_vm0 = vcmp.ne.s32.totalorder %v739_v54, %v8521_v19  ;;  %v10760_v23 = vmov 0 }
  0x99   : > { %v10734_v45 = vsel %vm8565_vm1, 4294967295, %v10733_v45  ;;  %v675_v50 = vsel %vm8565_vm1, %v8550_v38, 0  ;;  %vm8591_vm15 = vmpackc.low %vm672_vm11, %vm671_vm7  ;;  %vm855_vm11 = vcmask 146432  }
  0x9a   : > { %10735 = vst [vmem:[#allocation7_spill] sm:$0xff] %v10734_v45  ;;  %v10743_v56 = vsel %vm8591_vm15, 4294967295, %v10742_v56  ;;  %v676_v61 = vsel %vm8591_vm15, %v8553_v39, 0  ;;  %vm8611_vm6 = vmpackc.low %vm744_vm3, %vm743_vm0  ;;  %v852_v4 = vpop.permute.xlu0 %851 }
  0x9b   : > { %10744 = vst [vmem:[#allocation10_spill] sm:$0xff] %v10743_v56  ;;  %v854_v62 = vpop.permute.xlu1 %853  ;;  %v10746_v63 = vsel %vm8611_vm6, 4294967295, %v10745_v63  ;;  %vm8615_vm7 = vmpackc.low %vm737_vm5, %vm736_vm4  ;;  %v754_v5 = vsel %vm8611_vm6, %v8550_v38, 0  ;;  %v858_v12 = vunpack.c.h.b16 %v852_v4 }
  0x9c   : > { %1055 = vrot.lane.b32.xlu1 %v8509_v11, %s8395_s18  ;;  %682 = vrot.lane.b32.xlu2 %v675_v50, %s8396_s19  ;;  %10747 = vst [vmem:[#allocation11_spill] sm:$0xff] %v10746_v63  ;;  %v871_v0 = vunpack.c.l.b16 %v854_v62  ;;  %v872_v2 = vunpack.c.h.b16 %v854_v62  ;;  %v10749_v3 = vsel %vm8615_vm7, 4294967295, %v10748_v3  ;;  %v753_v6 = vsel %vm8615_vm7, %v8535_v28, 0 }
  0x9d   : > { %932 = vrot.lane.b32.xlu0 %v8514_v18, %s8393_s15  ;;  %10750 = vst [vmem:[#allocation12_spill] sm:$0xff] %v10749_v3  ;;  %v856_v7 = vsel %vm855_vm11, %v852_v4, %v854_v62  ;;  %v857_v11 = vunpack.c.l.b16 %v852_v4  ;;  %v937_v18 = vunpack.c.h.b16 %v931_v14  ;;  %s412_s15 = scalar_lea.vmem %s10609_s1, %s11214_s21 }
  0x9e   : > { %vm875_vm0 = vcmp.ne.s32.totalorder %v871_v0, %v8521_v19  ;;  %vm876_vm3 = vcmp.ne.s32.totalorder %v872_v2, %v8524_v20  ;;  %v864_v9 = vunpack.c.l.b16 %v856_v7  ;;  %v865_v10 = vunpack.c.h.b16 %v856_v7 }
  0x9f   : > { %vm8631_vm4 = vmpackc.low %vm876_vm3, %vm875_vm0  ;;  %vm861_vm0 = vcmp.ne.s32.totalorder %v857_v11, %v8521_v19  ;;  %vm862_vm3 = vcmp.ne.s32.totalorder %v858_v12, %v8524_v20 }
  0xa0   : > { %v10752_v8 = vsel %vm8631_vm4, 4294967295, %v10751_v8  ;;  %v880_v13 = vsel %vm8631_vm4, %v8553_v39, 0  ;;  %vm868_vm5 = vcmp.ne.s32.totalorder %v864_v9, %v8521_v19  ;;  %vm869_vm11 = vcmp.ne.s32.totalorder %v865_v10, %v8524_v20  ;;  %vm8651_vm8 = vmpackc.low %vm862_vm3, %vm861_vm0 }
  0xa1   : > { %10753 = vst [vmem:[#allocation13_spill] sm:$0xff] %v10752_v8  ;;  %vm8647_vm2 = vmpackc.low %vm869_vm11, %vm868_vm5  ;;  %v10758_v16 = vsel %vm8651_vm8, 4294967295, %v10757_v16  ;;  %v878_v22 = vsel %vm8651_vm8, %v8535_v28, 0  ;;  %vm940_vm5 = vcmp.ne.s32.totalorder %v936_v17, %v8521_v19  ;;  %vm941_vm11 = vcmp.ne.s32.totalorder %v937_v18, %v8524_v20  ;;  %v494_v18 = vld [vmem:[%s10612_s4 + $0x8] sm:$0xf] }
  0xa2   : > { %v10755_v15 = vsel %vm8647_vm2, 4294967295, %v10754_v15  ;;  %10759 = vst [vmem:[#allocation15_spill] sm:$0xff] %v10758_v16  ;;  %v879_v21 = vsel %vm8647_vm2, %v8550_v38, 0  ;;  %vm8665_vm0 = vmpackc.low %vm941_vm11, %vm940_vm5  ;;  %vm10622_vm3 = vcmask 1039360   ;;  %vm10624_vm5 = vcmask 64512  }
  0xa3   : > { %10756 = vst [vmem:[#allocation14_spill] sm:$0xff] %v10755_v15  ;;  %v10761_v23 = vsel %vm8665_vm0, 4294967295, %v10760_v23  ;;  %v957_v25 = vsel %vm8665_vm0, %v8535_v28, 0  ;;  %vm10629_vm11 = vcmask 261120   ;;  %vm10766_vm8 = vcmask 64512  }
  0xa4   : > { %680 = vrot.lane.b32.xlu1 %v674_v59, %s8396_s19  ;;  %763 = vrot.lane.b32.xlu2 %v755_v60, %s8397_s20  ;;  %10762 = vst [vmem:[#allocation16_spill] sm:$0xff] %v10761_v23 }
  0xa5   : > { %684 = vrot.lane.b32.xlu0 %v676_v61, %s8396_s19  ;;  %6937 = vmatmul.msk.bf16.vlgmr.msra.gmra.mxu2 %vm10766_vm8, %v492_v49 }
  0xac   : > { %761 = vrot.lane.b32.xlu1 %v754_v5, %s8397_s20  ;;  %809 = vrot.lane.b32.xlu2 %v8553_v39, %s8398_s22 }
  0xad   : > { %759 = vrot.lane.b32.xlu0 %v753_v6, %s8397_s20 }
  0xb4   : > { %807 = vrot.lane.b32.xlu1 %v8550_v38, %s8398_s22  ;;  %888 = vrot.lane.b32.xlu2 %v880_v13, %s8399_s23  ;;  %v499_v13 = vld [vmem:[%s10612_s4 + $0x1c] sm:$0xf] }
  0xb5   : > { %805 = vrot.lane.b32.xlu0 %v8535_v28, %s8398_s22 }
  0xbc   : > { %886 = vrot.lane.b32.xlu1 %v879_v21, %s8399_s23 }
  0xbd   : > { %884 = vrot.lane.b32.xlu0 %v878_v22, %s8399_s23 }
  0xc5   : > { %963 = vrot.lane.b32.xlu0 %v957_v25, %s8400_s24 }
  0xcd   : > { %1009 = vrot.lane.b32.xlu0 %v8535_v28, %s8401_s25 }
  0xe6   : > { %v559_v26 = vpop.permute.xlu2 %558 }
  0xee   : > { %v8675_v27 = vpop.permute.xlu2 %1057 }
  0xef   : > { %v1075_v9 = vunpack.c.l.b16 %v8675_v27  ;;  %v1076_v10 = vunpack.c.h.b16 %v8675_v27 }
  0xf6   : > { %v683_v43 = vpop.permute.xlu2 %682 }
  0xfe   : > { %v764_v5 = vpop.permute.xlu2 %763 }
 0x106   : > { %v563_v29 = vpop.permute.xlu1 %562 }
 0x107   : > { %v561_v30 = vpop.permute.xlu0 %560 }
 0x108   : > { %v565_v31 = vsel %vm10622_vm3, %v559_v26, %v561_v30  ;;  %v566_v32 = vsel %vm10622_vm3, %v561_v30, %v563_v29  ;;  %v495_v26 = vld [vmem:[%s10612_s4 + $0xc] sm:$0xf] }
 0x109   : > { %v573_v34 = vsel %vm10623_vm10, %v565_v31, 0  ;;  %v576_v35 = vsel %vm10623_vm10, %v566_v32, 0 }
 0x10a   : > { %585 = vmatpush.bf16.msra.mxu0 %v573_v34  ;;  %598 = vmatpush.bf16.msra.mxu1 %v576_v35 }
 0x10d   : > { %6935 = vmatmul.msk.bf16.vlgmr.msra.gmra.mxu0 %vm10624_vm5, %v493_v36  ;;  %6936 = vmatmul.msk.bf16.vlgmr.msra.gmra.mxu1 %vm10624_vm5, %v493_v36 }
 0x10e   : > { %v1056_v37 = vpop.permute.xlu1 %1055 }
 0x10f   : > { %v1061_v40 = vunpack.c.l.b16 %v1056_v37  ;;  %v1062_v41 = vunpack.c.h.b16 %v1056_v37  ;;  %v933_v42 = vpop.permute.xlu0 %932 }
 0x110   : > { %v935_v44 = vsel %vm10629_vm11, %v931_v14, %v933_v42  ;;  %v950_v46 = vunpack.c.l.b16 %v933_v42  ;;  %v951_v50 = vunpack.c.h.b16 %v933_v42  ;;  %vm10767_vm11 = vmmov %vm10766_vm8  ;;  %vm10636_vm8 = vcmask 1031168  }
 0x111   : > { %vm1065_vm3 = vcmp.ne.s32.totalorder %v1061_v40, %v8521_v19  ;;  %vm1066_vm10 = vcmp.ne.s32.totalorder %v1062_v41, %v8524_v20  ;;  %v943_v47 = vunpack.c.l.b16 %v935_v44  ;;  %v944_v48 = vunpack.c.h.b16 %v935_v44  ;;  %6938 = vmatmul.msk.bf16.vlgmr.msra.gmra.mxu3 %vm10767_vm11, %v492_v49 }
 0x112   : > { %vm954_vm5 = vcmp.ne.s32.totalorder %v950_v46, %v8521_v19  ;;  %vm8693_vm4 = vmpackc.low %vm1066_vm10, %vm1065_vm3  ;;  %vm955_vm7 = vcmp.ne.s32.totalorder %v951_v50, %v8524_v20  ;;  %vm1059_vm3 = vcmask 277504  }
 0x113   : > { %v10764_v51 = vsel %vm8693_vm4, 4294967295, %v10763_v51  ;;  %vm947_vm12 = vcmp.ne.s32.totalorder %v943_v47, %v8521_v19  ;;  %vm948_vm0 = vcmp.ne.s32.totalorder %v944_v48, %v8524_v20  ;;  %v1082_v54 = vsel %vm8693_vm4, %v8535_v28, 0  ;;  %vm8710_vm11 = vmpackc.low %vm955_vm7, %vm954_vm5  ;;  %v497_v47 = vld [vmem:[%s10612_s4 + $0x14] sm:$0xf]  ;;  %v8800_v48 = vld [vmem:[%s10610_s2] sm:$0xff] }
 0x114   : > { %10765 = vst [vmem:[#allocation17_spill] sm:$0xff] %v10764_v51  ;;  %1088 = vrot.lane.b32.xlu0 %v1082_v54, %s8402_s14  ;;  %vm8706_vm10 = vmpackc.low %vm948_vm0, %vm947_vm12  ;;  %v10772_v57 = vsel %vm8710_vm11, 4294967295, %v10771_v57  ;;  %v959_v28 = vsel %vm8710_vm11, %v8553_v39, 0  ;;  %v1060_v62 = vsel %vm1059_vm3, %v1056_v37, %v8675_v27  ;;  %vm10774_vm12 = vcmask 1043456   ;;  %v810_v27 = vpop.permute.xlu2 %809 }
 0x115   : > { %v10769_v55 = vsel %vm8706_vm10, 4294967295, %v10768_v55  ;;  %10773 = vst [vmem:[#allocation19_spill] sm:$0xff] %v10772_v57  ;;  %v958_v58 = vsel %vm8706_vm10, %v8550_v38, 0  ;;  %967 = vrot.lane.b32.xlu2 %v959_v28, %s8400_s24  ;;  %vm10775_vm7 = vmmov %vm10774_vm12  ;;  %v1068_v6 = vunpack.c.l.b16 %v1060_v62  ;;  %v1069_v7 = vunpack.c.h.b16 %v1060_v62 }
 0x116   : > { %10770 = vst [vmem:[#allocation18_spill] sm:$0xff] %v10769_v55  ;;  %965 = vrot.lane.b32.xlu1 %v958_v58, %s8400_s24  ;;  %v681_v59 = vpop.permute.xlu1 %680  ;;  %vm10645_vm0 = vcmask 916480   ;;  %vm10781_vm4 = vcmask 64512  }
 0x117   : > { %v685_v60 = vpop.permute.xlu0 %684  ;;  %v687_v61 = vsel %vm10636_vm8, %v681_v59, %v683_v43  ;;  %vm8732_vm5 = vcmp.ne.s32.totalorder %v1068_v6, %v8521_v19  ;;  %vm8737_vm3 = vcmp.ne.s32.totalorder %v1069_v7, %v8524_v20  ;;  %vm10782_vm11 = vmmov %vm10781_vm4 }
 0x118   : > { %v693_v0 = vsel %vm10774_vm12, %v687_v61, 0  ;;  %v688_v2 = vsel %vm10636_vm8, %v683_v43, %v685_v60  ;;  %vm1079_vm12 = vcmp.ne.s32.totalorder %v1075_v9, %v8521_v19  ;;  %vm10780_vm8 = vcmask 1043456   ;;  %vm8761_vm15 = vmpackc.low %vm8737_vm3, %vm8732_vm5 }
 0x119   : > { %705 = vmatpush.bf16.msrb.mxu0 %v693_v0  ;;  %v696_v4 = vsel %vm10775_vm7, %v688_v2, 0  ;;  %vm1080_vm7 = vcmp.ne.s32.totalorder %v1076_v10, %v8524_v20  ;;  %vm10783_vm2 = vmmov %vm10780_vm8  ;;  %v10784_v19 = vmov 0  ;;  %v10787_v20 = vmov 0  ;;  %v498_v0 = vld [vmem:[%s10612_s4 + $0x18] sm:$0xf] }
 0x11a   : > { %718 = vmatpush.bf16.msrb.mxu1 %v696_v4  ;;  %v10785_v19 = vsel %vm8761_vm15, 4294967295, %v10784_v19  ;;  %v1083_v29 = vsel %vm8761_vm15, %v8550_v38, 0  ;;  %vm10791_vm5 = vcmask 1043456  }
 0x11b   : > { %10786 = vst [vmem:[#allocation20_spill] sm:$0xff] %v10785_v19  ;;  %vm10792_vm3 = vmmov %vm10791_vm5 }
 0x11c   : > { %v889_v37 = vpop.permute.xlu2 %888  ;;  %1136 = vperm.xlu0 %8085, %v8800_v48  }
 0x11d   : > { %1013 = vrot.lane.b32.xlu2 %v8553_v39, %s8401_s25  ;;  %6939 = vmatmul.msk.bf16.vlgmr.msrb.gmra.mxu0 %vm10781_vm4, %v494_v18 }
 0x11e   : > { %1011 = vrot.lane.b32.xlu1 %v8550_v38, %s8401_s25  ;;  %v762_v11 = vpop.permute.xlu1 %761  ;;  %6940 = vmatmul.msk.bf16.vlgmr.msrb.gmra.mxu1 %vm10782_vm11, %v494_v18  ;;  %vm10790_vm11 = vmmov %vm10781_vm4 }
 0x11f   : > { %v760_v14 = vpop.permute.xlu0 %759  ;;  %v767_v17 = vsel %vm10645_vm0, %v762_v11, %v764_v5 }
 0x120   : > { %v766_v21 = vsel %vm10645_vm0, %v760_v14, %v762_v11  ;;  %v775_v22 = vsel %vm10780_vm8, %v767_v17, 0  ;;  %vm8765_vm8 = vmpackc.low %vm1080_vm7, %vm1079_vm12  ;;  %vm10646_vm12 = vcmask 900096  }
 0x121   : > { %v772_v25 = vsel %vm10783_vm2, %v766_v21, 0  ;;  %797 = vmatpush.bf16.msrb.mxu3 %v775_v22  ;;  %v10788_v20 = vsel %vm8765_vm8, 4294967295, %v10787_v20  ;;  %vm10650_vm2 = vcmask 908288   ;;  %v1084_v30 = vsel %vm8765_vm8, %v8553_v39, 0  ;;  %v496_v39 = vld [vmem:[%s10612_s4 + $0x10] sm:$0xf]  ;;  %vm10793_vm7 = vmmov %vm10792_vm3 }
 0x122   : > { %784 = vmatpush.bf16.msrb.mxu2 %v772_v25  ;;  %10789 = vst [vmem:[#allocation21_spill] sm:$0xff] %v10788_v20 }
 0x124   : > { %6942 = vmatmul.msk.bf16.vlgmr.msrb.gmra.mxu3 %vm10781_vm4, %v495_v26 }
 0x125   : > { %6941 = vmatmul.msk.bf16.vlgmr.msrb.gmra.mxu2 %vm10790_vm11, %v495_v26  ;;  %1092 = vrot.lane.b32.xlu2 %v1084_v30, %s8402_s14  ;;  %vm10794_vm11 = vmmov %vm10781_vm4 }
 0x126   : > { %1090 = vrot.lane.b32.xlu1 %v1083_v29, %s8402_s14  ;;  %v808_v31 = vpop.permute.xlu1 %807 }
 0x127   : > { %v813_v32 = vsel %vm10650_vm2, %v808_v31, %v810_v27  ;;  %v806_v34 = vpop.permute.xlu0 %805 }
 0x128   : > { %v812_v35 = vsel %vm10650_vm2, %v806_v34, %v808_v31  ;;  %v821_v36 = vsel %vm10791_vm5, %v813_v32, 0  ;;  %vm10795_vm5 = vmmov %vm10792_vm3  ;;  %v622_v14 = vpop.f32.mrf.mxu2  ;;  %v500_v32 = vld [vmem:[%s10612_s4 + $0x20] sm:$0xf] }
 0x129   : > { %v818_v38 = vsel %vm10792_vm3, %v812_v35, 0  ;;  %843 = vmatpush.bf16.msra.mxu1 %v821_v36  ;;  %vm10796_vm3 = vmmov %vm10781_vm4 }
 0x12a   : > { %830 = vmatpush.bf16.msra.mxu0 %v818_v38  ;;  %vm10797_vm0 = vmmov %vm10796_vm3 }
 0x12d   : > { %6943 = vmatmul.msk.bf16.vlgmr.msra.gmra.mxu0 %vm10781_vm4, %v496_v39  ;;  %vm10798_vm4 = vmmov %vm10795_vm5 }
 0x12e   : > { %v887_v40 = vpop.permute.xlu1 %886  ;;  %6944 = vmatmul.msk.bf16.vlgmr.msra.gmra.mxu1 %vm10794_vm11, %v496_v39  ;;  %vm10799_vm11 = vmmov %vm10798_vm4 }
 0x12f   : > { %v892_v41 = vsel %vm10646_vm12, %v887_v40, %v889_v37  ;;  %v885_v42 = vpop.permute.xlu0 %884 }
 0x130   : > { %v891_v43 = vsel %vm10646_vm12, %v885_v42, %v887_v40  ;;  %v900_v44 = vsel %vm10793_vm7, %v892_v41, 0  ;;  %vm10649_vm7 = vcmask 785408   ;;  %vm10648_vm12 = vcmask 769024   ;;  %v624_v34 = vpop.f32.mrf.mxu2 }
 0x131   : > { %v897_v46 = vsel %vm10795_vm5, %v891_v43, 0  ;;  %922 = vmatpush.bf16.msra.mxu3 %v900_v44  ;;  %vm10800_vm5 = vmmov %vm10797_vm0 }
 0x132   : > { %909 = vmatpush.bf16.msra.mxu2 %v897_v46 }
 0x134   : > { %6946 = vmatmul.msk.bf16.vlgmr.msra.gmra.mxu3 %vm10796_vm3, %v497_v47  ;;  %vm10647_vm3 = vcmask 777216  }
 0x135   : > { %6945 = vmatmul.msk.bf16.vlgmr.msra.gmra.mxu2 %vm10797_vm0, %v497_v47 }
 0x137   : > { %v964_v50 = vpop.permute.xlu0 %963 }
 0x13f   : > { %v1010_v4 = vpop.permute.xlu0 %1009 }
 0x16f   : > { %v968_v49 = vpop.permute.xlu2 %967 }
 0x177   : > { %v1014_v2 = vpop.permute.xlu2 %1013 }
 0x17f   : > { %v1093_v22 = vpop.permute.xlu2 %1092 }
 0x186   : > { %v1089_v25 = vpop.permute.xlu0 %1088 }
 0x188   : > { %v966_v54 = vpop.permute.xlu1 %965 }
 0x189   : > { %v970_v58 = vsel %vm10649_vm7, %v964_v50, %v966_v54  ;;  %v971_v28 = vsel %vm10649_vm7, %v966_v54, %v968_v49 }
 0x18a   : > { %v976_v59 = vsel %vm10798_vm4, %v970_v58, 0  ;;  %v979_v60 = vsel %vm10799_vm11, %v971_v28, 0  ;;  %v587_v61 = vpop.f32.mrf.mxu0  ;;  %v600_v62 = vpop.f32.mrf.mxu1  ;;  %vm10801_vm11 = vmmov %vm10798_vm4 }
 0x18b   : > { %988 = vmatpush.bf16.msrb.mxu0 %v976_v59  ;;  %1001 = vmatpush.bf16.msrb.mxu1 %v979_v60  ;;  %v623_v18 = vadd.f32 %v622_v14, %v587_v61 }
 0x18e   : > { %6947 = vmatmul.msk.bf16.vlgmr.msrb.gmra.mxu0 %vm10797_vm0, %v498_v0  ;;  %6948 = vmatmul.msk.bf16.vlgmr.msrb.gmra.mxu1 %vm10800_vm5, %v498_v0  ;;  %vm10802_vm5 = vmmov %vm10797_vm0  ;;  %v1137_v34 = vpop.permute.xlu0 %1136 }
 0x190   : > { %v1012_v5 = vpop.permute.xlu1 %1011 }
 0x191   : > { %v1016_v6 = vsel %vm10647_vm3, %v1010_v4, %v1012_v5  ;;  %v1017_v7 = vsel %vm10647_vm3, %v1012_v5, %v1014_v2 }
 0x192   : > { %v1022_v9 = vsel %vm10798_vm4, %v1016_v6, 0  ;;  %v1025_v10 = vsel %vm10801_vm11, %v1017_v7, 0  ;;  %v589_v11 = vpop.f32.mrf.mxu0  ;;  %v602_v12 = vpop.f32.mrf.mxu1  ;;  %vm10803_vm11 = vmmov %vm10798_vm4  ;;  %v455_v6 = vld [vmem:[%s412_s15] sm:$0x1] }
 0x193   : > { %1034 = vmatpush.bf16.msrb.mxu2 %v1022_v9  ;;  %1047 = vmatpush.bf16.msrb.mxu3 %v1025_v10  ;;  %v6925_v7 = vmul.f32 -1.442695, %v455_v6 }
 0x194   : > { %v635_v17 = vpop.f32.mrf.mxu3 }
 0x195   : > { %v636_v21 = vadd.f32 %v635_v17, %v600_v62  ;;  %8108 = vpow2.f32 %v6925_v7 }
 0x196   : > { %6949 = vmatmul.msk.bf16.vlgmr.msrb.gmra.mxu2 %vm10797_vm0, %v499_v13  ;;  %6950 = vmatmul.msk.bf16.vlgmr.msrb.gmra.mxu3 %vm10802_vm5, %v499_v13  ;;  %vm10804_vm5 = vmmov %vm10797_vm0 }
 0x198   : > { %v1091_v26 = vpop.permute.xlu1 %1090 }
 0x199   : > { %v1095_v27 = vsel %vm10648_vm12, %v1089_v25, %v1091_v26  ;;  %v1096_v29 = vsel %vm10648_vm12, %v1091_v26, %v1093_v22 }
 0x19a   : > { %v1101_v30 = vsel %vm10798_vm4, %v1095_v27, 0  ;;  %v1104_v31 = vsel %vm10803_vm11, %v1096_v29, 0  ;;  %v707_v36 = vpop.f32.mrf.mxu0 }
 0x19b   : > { %1113 = vmatpush.bf16.msra.mxu0 %v1101_v30  ;;  %1126 = vmatpush.bf16.msra.mxu1 %v1104_v31  ;;  %v720_v38 = vpop.f32.mrf.mxu1  ;;  %v724_v39 = vadd.f32 %v707_v36, %v623_v18  ;;  %v8109_v11 = vpop.eup %8108 }
 0x19c   : > { %v637_v35 = vpop.f32.mrf.mxu3  ;;  %v725_v37 = vadd.f32 %v720_v38, %v636_v21  ;;  %v459_v12 = vadd.f32 1.0, %v8109_v11 }
 0x19e   : > { %6951 = vmatmul.msk.bf16.vlgmr.msra.gmra.mxu0 %vm10797_vm0, %v500_v32  ;;  %6952 = vmatmul.msk.bf16.vlgmr.msra.gmra.mxu1 %vm10804_vm5, %v500_v32  ;;  %8110 = vrcp.f32 %v459_v12  ;;  %v471_v25 = vand.u32 2147483648, %v459_v12  ;;  %vm465_vm4 = vweird.f32 %v459_v12  ;;  %v469_v27 = vand.u32 2147483647, %v459_v12 }
 0x1a0   : > { %vm470_vm5 = vcmp.eq.f32.partialorder %v469_v27, 8.507059e+37 }
 0x1a2   : > { %v709_v40 = vpop.f32.mrf.mxu0 }
 0x1a3   : > { %v722_v41 = vpop.f32.mrf.mxu1 }
 0x1a4   : > { %v8111_v17 = vpop.eup %8110 }
 0x1a5   : > { %v461_v18 = vmul.f32 %v8111_v17, %v459_v12  ;;  %vm466_vm11 = vweird.f32 %v8111_v17 }
 0x1a6   : > { %vm467_vm0 = vmor %vm465_vm4, %vm466_vm11  ;;  %vm10806_vm4 = vcmask 261120  }
 0x1a7   : > { %v799_v42 = vpop.f32.mrf.mxu3  ;;  %v462_v26 = vsub.f32 1.0, %v461_v18 }
 0x1a8   : > { %v786_v43 = vpop.f32.mrf.mxu2  ;;  %v804_v44 = vadd.f32 %v799_v42, %v725_v37 }
 0x1a9   : > { %v803_v46 = vadd.f32 %v786_v43, %v724_v39  ;;  %v463_v35 = vmul.f32 %v8111_v17, %v462_v26  ;;  %v472_v39 = vor.u32 1.1754944e-38, %v471_v25 }
 0x1aa   : > { %v832_v47 = vpop.f32.mrf.mxu0 }
 0x1ab   : > { %v845_v49 = vpop.f32.mrf.mxu1  ;;  %v849_v54 = vadd.f32 %v832_v47, %v803_v46  ;;  %v464_v41 = vadd.f32 %v8111_v17, %v463_v35 }
 0x1ac   : > { %v850_v58 = vadd.f32 %v845_v49, %v804_v44 }
 0x1ad   : > { %v468_v44 = vsel %vm467_vm0, %v8111_v17, %v464_v41 }
 0x1ae   : > { %v473_v46 = vsel %vm470_vm5, %v472_v39, %v468_v44 }
 0x1af   : > { %v801_v50 = vpop.f32.mrf.mxu3  ;;  %v8834_v49 = vmul.f32 %v473_v46, %v455_v6 }
 0x1b0   : > { %v788_v28 = vpop.f32.mrf.mxu2 }
 0x1b1   : > { %10805 = vst [vmem:[#allocation22_spill] sm:$0xff] %v8834_v49  ;;  %v10663_v28 = vperm.slane %v8834_v49, 0 }
 0x1b2   : > { %v834_v59 = vpop.f32.mrf.mxu0 }
 0x1b3   : > { %v847_v60 = vpop.f32.mrf.mxu1 }
 0x1b7   : > { %v924_v61 = vpop.f32.mrf.mxu3 }
 0x1b8   : > { %v911_v62 = vpop.f32.mrf.mxu2  ;;  %v929_v0 = vadd.f32 %v924_v61, %v850_v58  ;;  %v476_v58 = vld [vmem:[%s10611_s3] sm:$0xff] }
 0x1b9   : > { %v928_v2 = vadd.f32 %v911_v62, %v849_v54  ;;  %v481_v61 = vmul.f32 %v10663_v28, %v476_v58 }
 0x1bb   : > { %v483_v62 = vsel %vm10806_vm4, %v481_v61, 0.0 }
 0x1bc   : > { %484 = vadd.xlane.f32.xlu0 %v483_v62 }
 0x1bf   : > { %v926_v4 = vpop.f32.mrf.mxu3 }
 0x1c0   : > { %v913_v5 = vpop.f32.mrf.mxu2  ;;  %v10659_v4 = vmov 1  }
 0x1c1   : > { %8086 = vset.pattern.permute.xlu2 %v10659_v4 }
 0x20b   : > { %v990_v9 = vpop.f32.mrf.mxu0  ;;  %v1003_v10 = vpop.f32.mrf.mxu1 }
 0x20c   : > { %v1007_v21 = vadd.f32 %v990_v9, %v928_v2  ;;  %v1008_v22 = vadd.f32 %v1003_v10, %v929_v0  ;;  %v8403_v0 = vmov 256.0   ;;  %v8404_v2 = vmov 2  }
 0x20d   : > { %8112 = vrcp.f32 %v8403_v0  ;;  %8087 = vset.pattern.permute.xlu1 %v8404_v2 }
 0x213   : > { %v992_v13 = vpop.f32.mrf.mxu0  ;;  %v1005_v14 = vpop.f32.mrf.mxu1 }
 0x214   : > { %v8113_v5 = vpop.eup %8112  ;;  %v8406_v14 = vmov 3  }
 0x215   : > { %v1145_v6 = vmul.f32 256.0, %v8113_v5  ;;  %vm1149_vm11 = vweird.f32 %v8113_v5  ;;  %8088 = vset.pattern.permute.xlu0 %v8406_v14 }
 0x217   : > { %v1146_v7 = vsub.f32 1.0, %v1145_v6 }
 0x219   : > { %v1036_v29 = vpop.f32.mrf.mxu2  ;;  %v1049_v30 = vpop.f32.mrf.mxu3  ;;  %v1147_v9 = vmul.f32 %v8113_v5, %v1146_v7 }
 0x21a   : > { %v1053_v31 = vadd.f32 %v1036_v29, %v1007_v21  ;;  %v1054_v32 = vadd.f32 %v1049_v30, %v1008_v22 }
 0x21b   : > { %v1115_v36 = vpop.f32.mrf.mxu0  ;;  %v1128_v38 = vpop.f32.mrf.mxu1  ;;  %v1148_v10 = vadd.f32 %v8113_v5, %v1147_v9 }
 0x21c   : > { %v1132_v37 = vadd.f32 %v1115_v36, %v1053_v31  ;;  %v1133_v40 = vadd.f32 %v1128_v38, %v1054_v32 }
 0x21d   : > { %v8845_v11 = vsel %vm1149_vm11, %v8113_v5, %v1148_v10 }
 0x21e   : > { %v1139_v42 = vadd.f32 %v1137_v34, %v1132_v37  ;;  %v1140_v43 = vadd.f32 %v1137_v34, %v1133_v40  ;;  %10807 = vst [vmem:[#allocation23_spill] sm:$0xff] %v8845_v11 }
 0x220   : > { %v1141_v47 = vadd.f32 %v1140_v43, %v1139_v42 }
 0x221   : > { %v1038_v50 = vpop.f32.mrf.mxu2  ;;  %v1051_v54 = vpop.f32.mrf.mxu3 }
 0x222   : > { %1142 = vadd.xlane.f32.xlu1 %v1141_v47 }
 0x223   : > { %v1117_v59 = vpop.f32.mrf.mxu0  ;;  %v1130_v60 = vpop.f32.mrf.mxu1 }
 0x22f   : > { %v485_v25 = vpop.xlane.xlu0 %484 }
 0x230   : > { %v486_v26 = vadd.f32 %v485_v25, %v8800_v48 }
 0x232   : > { %1227 = vperm.xlu0 %8088, %v486_v26  }
 0x23b   : > { %1180 = vperm.xlu1 %8087, %v8800_v48  }
 0x295   : > { %v1143_v12 = vpop.xlane.xlu1 %1142 }
 0x296   : > { %v1151_v13 = vmul.f32 %v8845_v11, %v1143_v12 }
 0x298   : > { %v1152_v17 = vsub.f32 %v1139_v42, %v1151_v13  ;;  %v1153_v18 = vsub.f32 %v1140_v43, %v1151_v13 }
 0x29a   : > { %v1154_v21 = vmul.f32 %v1152_v17, %v1152_v17  ;;  %v1155_v22 = vmul.f32 %v1153_v18, %v1153_v18 }
 0x29c   : > { %v1156_v27 = vadd.f32 %v1155_v22, %v1154_v21 }
 0x29e   : > { %1157 = vadd.xlane.f32.xlu2 %v1156_v27 }
 0x2ad   : > { %v1181_v43 = vpop.permute.xlu1 %1180 }
 0x2b6   : > { %1174 = vperm.xlu2 %8086, %v8800_v48  }
 0x311   : > { %v1158_v29 = vpop.xlane.xlu2 %1157 }
 0x312   : > { %v1159_v30 = vmul.f32 %v1158_v29, %v8845_v11 }
 0x314   : > { %v1160_v31 = vadd.f32 1e-05, %v1159_v30 }
 0x316   : > { %8114 = vrsqrt.f32 %v1160_v31  ;;  %vm1167_vm5 = vweird.f32 %v1160_v31 }
 0x319   : > { %v1175_v40 = vpop.permute.xlu2 %1174 }
 0x31c   : > { %v8115_v32 = vpop.eup %8114 }
 0x31d   : > { %v1162_v34 = vmul.f32 %v8115_v32, %v1160_v31  ;;  %vm1168_vm0 = vweird.f32 %v8115_v32  ;;  %v1228_v31 = vpop.permute.xlu0 %1227 }
 0x31e   : > { %vm1169_vm4 = vmor %vm1167_vm5, %vm1168_vm0 }
 0x31f   : > { %v1163_v35 = vmul.f32 %v8115_v32, %v1162_v34 }
 0x321   : > { %v1164_v36 = vmul.f32 0.5, %v1163_v35 }
 0x323   : > { %v1165_v38 = vsub.f32 1.5, %v1164_v36 }
 0x325   : > { %v1166_v39 = vmul.f32 %v8115_v32, %v1165_v38 }
 0x327   : > { %v1170_v37 = vsel %vm1169_vm4, %v8115_v32, %v1166_v39 }
 0x328   : > { %v1171_v41 = vmul.f32 %v1170_v37, %v1152_v17  ;;  %v1172_v42 = vmul.f32 %v1170_v37, %v1153_v18 }
 0x32a   : > { %v1177_v44 = vmul.f32 %v1175_v40, %v1171_v41  ;;  %v1178_v46 = vmul.f32 %v1175_v40, %v1172_v42 }
 0x32c   : > { %v1183_v47 = vadd.f32 %v1181_v43, %v1177_v44  ;;  %v1184_v50 = vadd.f32 %v1181_v43, %v1178_v46 }
 0x32e   : > { %v6953_v54 = vmul.f32 -1.442695, %v1183_v47  ;;  %v6954_v58 = vmul.f32 -1.442695, %v1184_v50 }
 0x330   : > { %8116 = vpow2.f32 %v6953_v54 }
 0x331   : > { %8118 = vpow2.f32 %v6954_v58 }
 0x336   : > { %v8117_v59 = vpop.eup %8116 }
 0x337   : > { %v8119_v60 = vpop.eup %8118  ;;  %v1191_v61 = vadd.f32 1.0, %v8117_v59 }
 0x338   : > { %v1192_v62 = vadd.f32 1.0, %v8119_v60 }
 0x339   : > { %8120 = vrcp.f32 %v1191_v61  ;;  %v1204_v9 = vand.u32 2147483648, %v1191_v61  ;;  %v1202_v13 = vand.u32 2147483647, %v1191_v61  ;;  %vm1198_vm5 = vweird.f32 %v1191_v61 }
 0x33a   : > { %8122 = vrcp.f32 %v1192_v62  ;;  %v1219_v14 = vand.u32 2147483648, %v1192_v62  ;;  %v1217_v18 = vand.u32 2147483647, %v1192_v62  ;;  %vm1213_vm3 = vweird.f32 %v1192_v62 }
 0x33b   : > { %v1205_v22 = vor.u32 1.1754944e-38, %v1204_v9  ;;  %vm1203_vm12 = vcmp.eq.f32.partialorder %v1202_v13, 8.507059e+37 }
 0x33c   : > { %v1220_v27 = vor.u32 1.1754944e-38, %v1219_v14  ;;  %vm1218_vm2 = vcmp.eq.f32.partialorder %v1217_v18, 8.507059e+37 }
 0x33f   : > { %v8121_v0 = vpop.eup %8120 }
 0x340   : > { %v8123_v2 = vpop.eup %8122  ;;  %v1194_v5 = vmul.f32 %v8121_v0, %v1191_v61  ;;  %vm1199_vm11 = vweird.f32 %v8121_v0 }
 0x341   : > { %v1209_v6 = vmul.f32 %v8123_v2, %v1192_v62  ;;  %vm1214_vm0 = vweird.f32 %v8123_v2  ;;  %vm1200_vm4 = vmor %vm1198_vm5, %vm1199_vm11  ;;  %vm10814_vm5 = vnez %v10755_v15 }
 0x342   : > { %v1195_v7 = vsub.f32 1.0, %v1194_v5  ;;  %vm1215_vm7 = vmor %vm1213_vm3, %vm1214_vm0  ;;  %vm10808_vm3 = vcmask 138240   ;;  %vm10813_vm0 = vnez %v10743_v56 }
 0x343   : > { %v1210_v10 = vsub.f32 1.0, %v1209_v6 }
 0x344   : > { %v1196_v12 = vmul.f32 %v8121_v0, %v1195_v7 }
 0x345   : > { %v1211_v17 = vmul.f32 %v8123_v2, %v1210_v10 }
 0x346   : > { %v1197_v21 = vadd.f32 %v8121_v0, %v1196_v12 }
 0x347   : > { %v1212_v25 = vadd.f32 %v8123_v2, %v1211_v17 }
 0x348   : > { %v1201_v26 = vsel %vm1200_vm4, %v8121_v0, %v1197_v21  ;;  %vm10815_vm4 = vnez %v10749_v3 }
 0x349   : > { %v1206_v29 = vsel %vm1203_vm12, %v1205_v22, %v1201_v26  ;;  %v1216_v30 = vsel %vm1215_vm7, %v8123_v2, %v1212_v25  ;;  %vm10810_vm12 = vmmov %vm10808_vm3  ;;  %v6926_v26 = vld [vmem:[%s10612_s4 + $0x24] sm:$0xf] }
 0x34a   : > { %v1221_v32 = vsel %vm1218_vm2, %v1220_v27, %v1216_v30  ;;  %v1223_v34 = vmul.f32 %v1206_v29, %v1183_v47  ;;  %vm10809_vm2 = vcmask 1043456   ;;  %vm10811_vm7 = vmmov %vm10808_vm3 }
 0x34b   : > { %v1224_v35 = vmul.f32 %v1221_v32, %v1184_v50  ;;  %vm10812_vm11 = vmmov %vm10809_vm2 }
 0x34c   : > { %v1230_v36 = vadd.f32 %v1228_v31, %v1223_v34 }
 0x34d   : > { %v1231_v38 = vadd.f32 %v1228_v31, %v1224_v35 }
 0x34f   : > { %v1232_v39 = vpack.c.bf16 %v1231_v38, %v1230_v36 }
 0x351   : > { %v1235_v37 = vunpack.c.h.b16 %v1232_v39  ;;  %v1234_v40 = vunpack.c.l.b16 %v1232_v39  ;;  %v6927_v39 = vld [vmem:[%s10612_s4 + $0x28] sm:$0xf] }
 0x353   : > { %v1237_v41 = vpack.c.b16 %v1235_v37, %v1235_v37  ;;  %v1236_v42 = vpack.c.b16 %v1234_v40, %v1234_v40 }
 0x355   : > { %1240 = vrot.lane.b32.xlu1 %v1237_v41, %s8390_s12  ;;  %1238 = vrot.lane.b32.xlu2 %v1236_v42, %s8390_s12 }
 0x3af   : > { %v1239_v43 = vpop.permute.xlu2 %1238 }
 0x3b0   : > { %v1245_v44 = vsel %vm10808_vm3, 0, %v1239_v43  ;;  %vm10816_vm3 = vnez %v10761_v23 }
 0x3b1   : > { %1254 = vrot.lane.b32.xlu2 %v1245_v44, %s8394_s16  ;;  %v1250_v46 = vsel %vm8528_vm9, %v1245_v44, 0  ;;  %v1332_v0 = vsel %vm8587_vm13, %v1245_v44, 0  ;;  %v1383_v7 = vsel %vm10815_vm4, %v1245_v44, 0  ;;  %v1530_v10 = vsel %vm10816_vm3, %v1245_v44, 0 }
 0x3b2   : > { %v1301_v47 = vsel %vm10809_vm2, %v1250_v46, 0  ;;  %vm10817_vm2 = vnez %v10737_v52  ;;  %vm10822_vm9 = vcmask 64512  }
 0x3b3   : > { %1313 = vmatpush.bf16.msrb.mxu0 %v1301_v47 }
 0x3b6   : > { %6957 = vmatmul.msk.bf16.vlgmr.msrb.gmra.mxu0 %vm10822_vm9, %v6926_v26 }
 0x3c7   : > { %v1241_v50 = vpop.permute.xlu1 %1240 }
 0x3c8   : > { %v1242_v54 = vsel %vm10810_vm12, %v1239_v43, %v1241_v50  ;;  %v1248_v58 = vsel %vm10811_vm7, %v1241_v50, 0  ;;  %vm10818_vm12 = vnez %v10758_v16  ;;  %vm10819_vm7 = vnez %v10772_v57  ;;  %v6929_v50 = vld [vmem:[%s10612_s4 + $0x30] sm:$0xf] }
 0x3c9   : > { %1258 = vrot.lane.b32.xlu2 %v1248_v58, %s8394_s16  ;;  %1436 = vrot.lane.b32.xlu0 %v1242_v54, %s8398_s22  ;;  %v1251_v59 = vsel %vm8545_vm14, %v1242_v54, 0  ;;  %v1384_v61 = vsel %vm8611_vm6, %v1242_v54, 0  ;;  %v1333_v62 = vsel %vm8565_vm1, %v1242_v54, 0  ;;  %v1531_v2 = vsel %vm8706_vm10, %v1242_v54, 0 }
 0x3ca   : > { %1256 = vrot.lane.b32.xlu1 %v1242_v54, %s8394_s16  ;;  %v1304_v60 = vsel %vm10812_vm11, %v1251_v59, 0  ;;  %v1334_v5 = vsel %vm10813_vm0, %v1248_v58, 0  ;;  %v1480_v6 = vsel %vm10814_vm5, %v1242_v54, 0  ;;  %v1627_v9 = vsel %vm8761_vm15, %v1242_v54, 0  ;;  %vm10823_vm15 = vmmov %vm10822_vm9 }
 0x3cb   : > { %1326 = vmatpush.bf16.msrb.mxu1 %v1304_v60  ;;  %v1385_v12 = vsel %vm10817_vm2, %v1248_v58, 0  ;;  %v1479_v13 = vsel %vm10818_vm12, %v1245_v44, 0  ;;  %v1532_v14 = vsel %vm10819_vm7, %v1248_v58, 0  ;;  %vm10820_vm11 = vnez %v10764_v51 }
 0x3cc   : > { %v1626_v17 = vsel %vm10820_vm11, %v1245_v44, 0  ;;  %vm10821_vm14 = vnez %v10752_v8  ;;  %v1628_v21 = vsel %vm8765_vm8, %v1248_v58, 0  ;;  %vm10824_vm10 = vcmask 1039360  }
 0x3cd   : > { %v1481_v18 = vsel %vm10821_vm14, %v1248_v58, 0  ;;  %vm10825_vm11 = vmmov %vm10824_vm10  ;;  %vm10826_vm14 = vcmask 1043456   ;;  %vm10829_vm12 = vcmask 908288  }
 0x3ce   : > { %6958 = vmatmul.msk.bf16.vlgmr.msrb.gmra.mxu1 %vm10823_vm15, %v6926_v26  ;;  %vm10827_vm3 = vmmov %vm10826_vm14 }
 0x3cf   : > { %vm10828_vm15 = vmmov %vm10822_vm9 }
 0x3d1   : > { %1391 = vrot.lane.b32.xlu0 %v1384_v61, %s8397_s20  ;;  %1340 = vrot.lane.b32.xlu2 %v1333_v62, %s8396_s19 }
 0x3d2   : > { %1338 = vrot.lane.b32.xlu1 %v1332_v0, %s8396_s19 }
 0x3d9   : > { %1538 = vrot.lane.b32.xlu0 %v1531_v2, %s8400_s24  ;;  %1434 = vrot.lane.b32.xlu2 %v1245_v44, %s8398_s22  ;;  %v6928_v2 = vld [vmem:[%s10612_s4 + $0x2c] sm:$0xf] }
 0x3da   : > { %1342 = vrot.lane.b32.xlu1 %v1334_v5, %s8396_s19 }
 0x3e1   : > { %1487 = vrot.lane.b32.xlu0 %v1480_v6, %s8399_s23  ;;  %1389 = vrot.lane.b32.xlu2 %v1383_v7, %s8397_s20 }
 0x3e2   : > { %1438 = vrot.lane.b32.xlu1 %v1248_v58, %s8398_s22 }
 0x3e9   : > { %1634 = vrot.lane.b32.xlu0 %v1627_v9, %s8402_s14  ;;  %1536 = vrot.lane.b32.xlu2 %v1530_v10, %s8400_s24 }
 0x3ea   : > { %1393 = vrot.lane.b32.xlu1 %v1385_v12, %s8397_s20 }
 0x3f1   : > { %1583 = vrot.lane.b32.xlu0 %v1242_v54, %s8401_s25  ;;  %1485 = vrot.lane.b32.xlu2 %v1479_v13, %s8399_s23 }
 0x3f2   : > { %1540 = vrot.lane.b32.xlu1 %v1532_v14, %s8400_s24  ;;  %v6931_v14 = vld [vmem:[%s10612_s4 + $0x38] sm:$0xf] }
 0x3f9   : > { %1632 = vrot.lane.b32.xlu2 %v1626_v17, %s8402_s14 }
 0x3fa   : > { %1489 = vrot.lane.b32.xlu1 %v1481_v18, %s8399_s23 }
 0x401   : > { %1581 = vrot.lane.b32.xlu2 %v1245_v44, %s8401_s25 }
 0x402   : > { %1636 = vrot.lane.b32.xlu1 %v1628_v21, %s8402_s14 }
 0x40a   : > { %1585 = vrot.lane.b32.xlu1 %v1248_v58, %s8401_s25 }
 0x40b   : > { %v1255_v22 = vpop.permute.xlu2 %1254 }
 0x423   : > { %v1259_v25 = vpop.permute.xlu2 %1258 }
 0x42b   : > { %v1341_v27 = vpop.permute.xlu2 %1340 }
 0x433   : > { %v1435_v29 = vpop.permute.xlu2 %1434 }
 0x43b   : > { %v1437_v30 = vpop.permute.xlu0 %1436  ;;  %v1390_v31 = vpop.permute.xlu2 %1389 }
 0x43c   : > { %v1257_v32 = vpop.permute.xlu1 %1256  ;;  %v1440_v40 = vsel %vm10829_vm12, %v1435_v29, %v1437_v30  ;;  %vm10834_vm12 = vmmov %vm10828_vm15 }
 0x43d   : > { %v1260_v34 = vsel %vm10824_vm10, %v1255_v22, %v1257_v32  ;;  %v1261_v35 = vsel %vm10825_vm11, %v1257_v32, %v1259_v25  ;;  %vm10830_vm10 = vcmask 916480   ;;  %vm10831_vm11 = vcmask 1031168  }
 0x43e   : > { %v1266_v36 = vsel %vm10826_vm14, %v1260_v34, 0  ;;  %v1269_v38 = vsel %vm10827_vm3, %v1261_v35, 0  ;;  %vm10832_vm14 = vmmov %vm10827_vm3  ;;  %v8407_v35 = vmov 4  }
 0x43f   : > { %1278 = vmatpush.bf16.msra.mxu2 %v1266_v36  ;;  %1291 = vmatpush.bf16.msra.mxu3 %v1269_v38 }
 0x440   : > { %8089 = vset.pattern.permute.xlu2 %v8407_v35 }
 0x441   : > { %1678 = vperm.xlu2 %8089, %v8800_v48  }
 0x442   : > { %6955 = vmatmul.msk.bf16.vlgmr.msra.gmra.mxu2 %vm10822_vm9, %v6927_v39  ;;  %6956 = vmatmul.msk.bf16.vlgmr.msra.gmra.mxu3 %vm10828_vm15, %v6927_v39  ;;  %vm10833_vm9 = vmmov %vm10827_vm3 }
 0x443   : > { %v1392_v37 = vpop.permute.xlu0 %1391  ;;  %v1537_v46 = vpop.permute.xlu2 %1536  ;;  %v1446_v54 = vsel %vm10833_vm9, %v1440_v40, 0  ;;  %vm10835_vm15 = vmmov %vm10831_vm11 }
 0x444   : > { %v1339_v41 = vpop.permute.xlu1 %1338  ;;  %v1395_v42 = vsel %vm10830_vm10, %v1390_v31, %v1392_v37  ;;  %vm10836_vm10 = vmmov %vm10827_vm3 }
 0x445   : > { %v1344_v43 = vsel %vm10831_vm11, %v1339_v41, %v1341_v27  ;;  %v1401_v44 = vsel %vm10832_vm14, %v1395_v42, 0  ;;  %vm10837_vm11 = vcmask 785408   ;;  %vm10838_vm14 = vmmov %vm10827_vm3 }
 0x446   : > { %v1350_v47 = vsel %vm10827_vm3, %v1344_v43, 0  ;;  %1413 = vmatpush.bf16.msra.mxu0 %v1401_v44  ;;  %vm10839_vm3 = vmmov %vm10834_vm12  ;;  %v6932_v43 = vld [vmem:[%s10612_s4 + $0x3c] sm:$0xf] }
 0x447   : > { %1362 = vmatpush.bf16.msrb.mxu2 %v1350_v47  ;;  %vm10840_vm9 = vmmov %vm10839_vm3 }
 0x449   : > { %6961 = vmatmul.msk.bf16.vlgmr.msra.gmra.mxu0 %vm10834_vm12, %v6929_v50  ;;  %vm10841_vm12 = vcmask 900096  }
 0x44b   : > { %1458 = vmatpush.bf16.msra.mxu2 %v1446_v54  ;;  %v1539_v58 = vpop.permute.xlu0 %1538  ;;  %v1486_v0 = vpop.permute.xlu2 %1485 }
 0x44c   : > { %v1343_v59 = vpop.permute.xlu1 %1342  ;;  %v1542_v62 = vsel %vm10837_vm11, %v1537_v46, %v1539_v58  ;;  %vm10843_vm11 = vmmov %vm10836_vm10 }
 0x44d   : > { %v1345_v60 = vsel %vm10835_vm15, %v1341_v27, %v1343_v59  ;;  %v1548_v5 = vsel %vm10838_vm14, %v1542_v62, 0  ;;  %vm10842_vm15 = vcmask 908288   ;;  %vm10844_vm14 = vmmov %vm10839_vm3  ;;  %v6930_v27 = vld [vmem:[%s10612_s4 + $0x34] sm:$0xf]  ;;  %v6934_v59 = vld [vmem:[%s10612_s4 + $0x44] sm:$0xf] }
 0x44e   : > { %v1353_v61 = vsel %vm10836_vm10, %v1345_v60, 0  ;;  %v1315_v60 = vpop.f32.mrf.mxu0 }
 0x44f   : > { %1375 = vmatpush.bf16.msrb.mxu3 %v1353_v61  ;;  %v1328_v61 = vpop.f32.mrf.mxu1 }
 0x452   : > { %6959 = vmatmul.msk.bf16.vlgmr.msrb.gmra.mxu2 %vm10839_vm3, %v6928_v2  ;;  %6960 = vmatmul.msk.bf16.vlgmr.msrb.gmra.mxu3 %vm10840_vm9, %v6928_v2  ;;  %vm10845_vm3 = vcmask 916480   ;;  %vm10846_vm9 = vmmov %vm10836_vm10 }
 0x453   : > { %1560 = vmatpush.bf16.msrb.mxu2 %v1548_v5  ;;  %v1488_v6 = vpop.permute.xlu0 %1487  ;;  %v1633_v17 = vpop.permute.xlu2 %1632 }
 0x454   : > { %v1439_v7 = vpop.permute.xlu1 %1438  ;;  %v1491_v9 = vsel %vm10841_vm12, %v1486_v0, %v1488_v6  ;;  %vm10847_vm12 = vcmask 769024  }
 0x455   : > { %v1441_v10 = vsel %vm10842_vm15, %v1437_v30, %v1439_v7  ;;  %v1497_v12 = vsel %vm10836_vm10, %v1491_v9, 0  ;;  %vm10848_vm15 = vmmov %vm10846_vm9 }
 0x456   : > { %v1449_v13 = vsel %vm10843_vm11, %v1441_v10, 0  ;;  %1509 = vmatpush.bf16.msrb.mxu0 %v1497_v12  ;;  %vm10849_vm10 = vmmov %vm10844_vm14  ;;  %v1317_v62 = vpop.f32.mrf.mxu0 }
 0x457   : > { %1471 = vmatpush.bf16.msra.mxu3 %v1449_v13  ;;  %vm10850_vm11 = vmmov %vm10849_vm10  ;;  %v1330_v0 = vpop.f32.mrf.mxu1 }
 0x459   : > { %6965 = vmatmul.msk.bf16.vlgmr.msrb.gmra.mxu0 %vm10844_vm14, %v6931_v14  ;;  %vm10851_vm14 = vmmov %vm10849_vm10 }
 0x45b   : > { %v1635_v18 = vpop.permute.xlu0 %1634  ;;  %v1582_v30 = vpop.permute.xlu2 %1581 }
 0x45c   : > { %v1394_v21 = vpop.permute.xlu1 %1393  ;;  %v1638_v26 = vsel %vm10847_vm12, %v1633_v17, %v1635_v18  ;;  %vm10854_vm12 = vmmov %vm10848_vm15 }
 0x45d   : > { %v1396_v22 = vsel %vm10845_vm3, %v1392_v37, %v1394_v21  ;;  %v1644_v29 = vsel %vm10848_vm15, %v1638_v26, 0  ;;  %vm10852_vm3 = vcmask 777216   ;;  %vm10855_vm15 = vmmov %vm10854_vm12  ;;  %v6933_v37 = vld [vmem:[%s10612_s4 + $0x40] sm:$0xf] }
 0x45e   : > { %v1404_v25 = vsel %vm10846_vm9, %v1396_v22, 0  ;;  %vm10853_vm9 = vcmask 785408  }
 0x45f   : > { %1426 = vmatpush.bf16.msra.mxu1 %v1404_v25 }
 0x462   : > { %6962 = vmatmul.msk.bf16.vlgmr.msra.gmra.mxu1 %vm10849_vm10, %v6929_v50  ;;  %6963 = vmatmul.msk.bf16.vlgmr.msra.gmra.mxu2 %vm10850_vm11, %v6930_v27  ;;  %vm10856_vm11 = vcmask 900096  }
 0x463   : > { %6964 = vmatmul.msk.bf16.vlgmr.msra.gmra.mxu3 %vm10851_vm14, %v6930_v27  ;;  %1656 = vmatpush.bf16.msra.mxu2 %v1644_v29  ;;  %v1584_v31 = vpop.permute.xlu0 %1583  ;;  %vm10857_vm14 = vmmov %vm10854_vm12 }
 0x464   : > { %v1541_v32 = vpop.permute.xlu1 %1540  ;;  %v1587_v34 = vsel %vm10852_vm3, %v1582_v30, %v1584_v31  ;;  %vm10858_vm3 = vmmov %vm10849_vm10 }
 0x465   : > { %v1543_v36 = vsel %vm10853_vm9, %v1539_v58, %v1541_v32  ;;  %v1593_v38 = vsel %vm10854_vm12, %v1587_v34, 0  ;;  %vm10859_vm9 = vmmov %vm10858_vm3 }
 0x466   : > { %v1551_v39 = vsel %vm10855_vm15, %v1543_v36, 0  ;;  %1605 = vmatpush.bf16.msra.mxu0 %v1593_v38  ;;  %vm10860_vm12 = vmmov %vm10858_vm3  ;;  %vm10861_vm15 = vcmask 769024  }
 0x467   : > { %1573 = vmatpush.bf16.msrb.mxu3 %v1551_v39 }
 0x469   : > { %6969 = vmatmul.msk.bf16.vlgmr.msra.gmra.mxu0 %vm10849_vm10, %v6933_v37  ;;  %vm10862_vm10 = vmmov %vm10857_vm14 }
 0x46c   : > { %v1490_v40 = vpop.permute.xlu1 %1489 }
 0x46d   : > { %v1492_v41 = vsel %vm10856_vm11, %v1488_v6, %v1490_v40  ;;  %vm10863_vm11 = vcmask 777216  }
 0x46e   : > { %v1500_v42 = vsel %vm10857_vm14, %v1492_v41, 0  ;;  %vm10864_vm14 = vmmov %vm10862_vm10 }
 0x46f   : > { %1522 = vmatpush.bf16.msrb.mxu1 %v1500_v42 }
 0x472   : > { %6966 = vmatmul.msk.bf16.vlgmr.msrb.gmra.mxu1 %vm10858_vm3, %v6931_v14  ;;  %6967 = vmatmul.msk.bf16.vlgmr.msrb.gmra.mxu2 %vm10859_vm9, %v6932_v43  ;;  %vm10865_vm9 = vmmov %vm10858_vm3 }
 0x473   : > { %6968 = vmatmul.msk.bf16.vlgmr.msrb.gmra.mxu3 %vm10860_vm12, %v6932_v43  ;;  %vm10866_vm12 = vmmov %vm10858_vm3 }
 0x474   : > { %v1637_v44 = vpop.permute.xlu1 %1636 }
 0x475   : > { %v1639_v46 = vsel %vm10861_vm15, %v1635_v18, %v1637_v44 }
 0x476   : > { %v1647_v47 = vsel %vm10862_vm10, %v1639_v46, 0 }
 0x477   : > { %1669 = vmatpush.bf16.msra.mxu3 %v1647_v47 }
 0x47c   : > { %v1586_v50 = vpop.permute.xlu1 %1585 }
 0x47d   : > { %v1588_v54 = vsel %vm10863_vm11, %v1584_v31, %v1586_v50 }
 0x47e   : > { %v1596_v58 = vsel %vm10864_vm14, %v1588_v54, 0 }
 0x47f   : > { %1618 = vmatpush.bf16.msra.mxu1 %v1596_v58 }
 0x482   : > { %6970 = vmatmul.msk.bf16.vlgmr.msra.gmra.mxu1 %vm10858_vm3, %v6933_v37  ;;  %6971 = vmatmul.msk.bf16.vlgmr.msra.gmra.mxu2 %vm10865_vm9, %v6934_v59 }
 0x483   : > { %6972 = vmatmul.msk.bf16.vlgmr.msra.gmra.mxu3 %vm10866_vm12, %v6934_v59 }
 0x4c5   : > { %v1280_v2 = vpop.f32.mrf.mxu2  ;;  %v1293_v5 = vpop.f32.mrf.mxu3 }
 0x4c6   : > { %v1415_v6 = vpop.f32.mrf.mxu0  ;;  %v1316_v35 = vadd.f32 %v1315_v60, %v1280_v2  ;;  %v1329_v41 = vadd.f32 %v1328_v61, %v1293_v5  ;;  %v1679_v2 = vpop.permute.xlu2 %1678 }
 0x4cd   : > { %v1282_v7 = vpop.f32.mrf.mxu2  ;;  %v1295_v9 = vpop.f32.mrf.mxu3 }
 0x4ce   : > { %v1417_v10 = vpop.f32.mrf.mxu0 }
 0x4d5   : > { %v1364_v12 = vpop.f32.mrf.mxu2  ;;  %v1377_v13 = vpop.f32.mrf.mxu3 }
 0x4d6   : > { %v1511_v14 = vpop.f32.mrf.mxu0  ;;  %v1381_v36 = vadd.f32 %v1364_v12, %v1316_v35  ;;  %v1382_v43 = vadd.f32 %v1377_v13, %v1329_v41 }
 0x4d8   : > { %v1432_v40 = vadd.f32 %v1415_v6, %v1381_v36 }
 0x4dd   : > { %v1366_v17 = vpop.f32.mrf.mxu2  ;;  %v1379_v18 = vpop.f32.mrf.mxu3 }
 0x4de   : > { %v1513_v21 = vpop.f32.mrf.mxu0 }
 0x4df   : > { %v1428_v22 = vpop.f32.mrf.mxu1  ;;  %v8408_v21 = vmov 5  }
 0x4e0   : > { %v1433_v44 = vadd.f32 %v1428_v22, %v1382_v43  ;;  %8090 = vset.pattern.permute.xlu2 %v8408_v21  ;;  %v8409_v22 = vmov 6  }
 0x4e1   : > { %1709 = vperm.xlu2 %8090, %v8800_v48  }
 0x4e5   : > { %v1460_v25 = vpop.f32.mrf.mxu2 }
 0x4e6   : > { %v1473_v26 = vpop.f32.mrf.mxu3  ;;  %v1607_v27 = vpop.f32.mrf.mxu0  ;;  %v1477_v42 = vadd.f32 %v1460_v25, %v1432_v40 }
 0x4e7   : > { %v1430_v29 = vpop.f32.mrf.mxu1  ;;  %v1478_v54 = vadd.f32 %v1473_v26, %v1433_v44 }
 0x4e8   : > { %v1528_v47 = vadd.f32 %v1511_v14, %v1477_v42 }
 0x4e9   : > { %8091 = vset.pattern.permute.xlu2 %v8409_v22 }
 0x4ea   : > { %1715 = vperm.xlu2 %8091, %v8800_v48  }
 0x4ed   : > { %v1462_v30 = vpop.f32.mrf.mxu2 }
 0x4ee   : > { %v1475_v31 = vpop.f32.mrf.mxu3  ;;  %v1609_v32 = vpop.f32.mrf.mxu0 }
 0x4ef   : > { %v1524_v34 = vpop.f32.mrf.mxu1 }
 0x4f0   : > { %v1529_v62 = vadd.f32 %v1524_v34, %v1478_v54 }
 0x4f5   : > { %v1562_v38 = vpop.f32.mrf.mxu2 }
 0x4f6   : > { %v1575_v39 = vpop.f32.mrf.mxu3  ;;  %v1579_v59 = vadd.f32 %v1562_v38, %v1528_v47 }
 0x4f7   : > { %v1526_v37 = vpop.f32.mrf.mxu1  ;;  %v1580_v0 = vadd.f32 %v1575_v39, %v1529_v62  ;;  %v8336_v62 = vld [vmem:[%s8504_s29] sm:$0xff] }
 0x4f8   : > { %v1624_v7 = vadd.f32 %v1607_v27, %v1579_v59 }
 0x4fd   : > { %v1564_v46 = vpop.f32.mrf.mxu2 }
 0x4fe   : > { %v1577_v50 = vpop.f32.mrf.mxu3 }
 0x4ff   : > { %v1620_v58 = vpop.f32.mrf.mxu1 }
 0x500   : > { %v1625_v9 = vadd.f32 %v1620_v58, %v1580_v0 }
 0x505   : > { %v1658_v60 = vpop.f32.mrf.mxu2 }
 0x506   : > { %v1675_v10 = vadd.f32 %v1658_v60, %v1624_v7  ;;  %v1671_v12 = vpop.f32.mrf.mxu3  ;;  %v8337_v7 = vld [vmem:[%s8504_s29 + $0x8] sm:$0xff] }
 0x507   : > { %v1676_v17 = vadd.f32 %v1671_v12, %v1625_v9  ;;  %v1622_v6 = vpop.f32.mrf.mxu1 }
 0x508   : > { %v1681_v61 = vadd.f32 %v1679_v2, %v1675_v10 }
 0x509   : > { %v1682_v5 = vadd.f32 %v1679_v2, %v1676_v17 }
 0x50b   : > { %v1683_v13 = vadd.f32 %v1682_v5, %v1681_v61 }
 0x50d   : > { %1684 = vadd.xlane.f32.xlu0 %v1683_v13  ;;  %v1660_v18 = vpop.f32.mrf.mxu2 }
 0x50e   : > { %v1673_v14 = vpop.f32.mrf.mxu3 }
 0x53b   : > { %v1710_v40 = vpop.permute.xlu2 %1709 }
 0x544   : > { %v1716_v47 = vpop.permute.xlu2 %1715 }
 0x580   : > { %v1685_v25 = vpop.xlane.xlu0 %1684 }
 0x581   : > { %v1686_v26 = vmul.f32 %v1685_v25, %v8845_v11 }
 0x583   : > { %v1687_v27 = vsub.f32 %v1681_v61, %v1686_v26  ;;  %v1688_v29 = vsub.f32 %v1682_v5, %v1686_v26 }
 0x585   : > { %v1689_v30 = vmul.f32 %v1687_v27, %v1687_v27  ;;  %v1690_v31 = vmul.f32 %v1688_v29, %v1688_v29 }
 0x587   : > { %v1691_v32 = vadd.f32 %v1690_v31, %v1689_v30 }
 0x589   : > { %1692 = vadd.xlane.f32.xlu1 %v1691_v32 }
 0x5fc   : > { %v1693_v34 = vpop.xlane.xlu1 %1692 }
 0x5fd   : > { %v1694_v35 = vmul.f32 %v1693_v34, %v8845_v11 }
 0x5ff   : > { %v1695_v36 = vadd.f32 1e-05, %v1694_v35 }
 0x601   : > { %8124 = vrsqrt.f32 %v1695_v36  ;;  %vm1702_vm10 = vweird.f32 %v1695_v36 }
 0x607   : > { %v8125_v38 = vpop.eup %8124 }
 0x608   : > { %v1697_v39 = vmul.f32 %v8125_v38, %v1695_v36  ;;  %vm1703_vm15 = vweird.f32 %v8125_v38 }
 0x609   : > { %vm1704_vm11 = vmor %vm1702_vm10, %vm1703_vm15 }
 0x60a   : > { %v1698_v37 = vmul.f32 %v8125_v38, %v1697_v39 }
 0x60c   : > { %v1699_v48 = vmul.f32 0.5, %v1698_v37 }
 0x60e   : > { %v1700_v41 = vsub.f32 1.5, %v1699_v48 }
 0x610   : > { %v1701_v42 = vmul.f32 %v8125_v38, %v1700_v41 }
 0x612   : > { %v1705_v43 = vsel %vm1704_vm11, %v8125_v38, %v1701_v42  ;;  %v8410_v42 = vmov 14  }
 0x613   : > { %v1706_v44 = vmul.f32 %v1705_v43, %v1687_v27  ;;  %v1707_v46 = vmul.f32 %v1705_v43, %v1688_v29  ;;  %8092 = vset.pattern.permute.xlu1 %v8410_v42  ;;  %v8411_v43 = vmov 15   ;;  %v7851_v42 = vld [vmem:[%s10613_s5 + $0x40] sm:$0xff] }
 0x614   : > { %8093 = vset.pattern.permute.xlu0 %v8411_v43 }
 0x615   : > { %v1712_v50 = vmul.f32 %v1710_v40, %v1706_v44  ;;  %v1713_v54 = vmul.f32 %v1710_v40, %v1707_v46  ;;  %v8338_v44 = vld [vmem:[%s10610_s2] sm:$0xff] }
 0x616   : > { %1837 = vperm.xlu1 %8092, %v8338_v44  }
 0x617   : > { %v1718_v58 = vadd.f32 %v1716_v47, %v1712_v50  ;;  %v1719_v59 = vadd.f32 %v1716_v47, %v1713_v54 }
 0x619   : > { %v1720_v0 = vadd.f32 %v8336_v62, %v1718_v58  ;;  %v1721_v9 = vadd.f32 %v8337_v7, %v1719_v59 }
 0x61b   : > { %v6973_v60 = vmul.f32 -1.442695, %v1720_v0  ;;  %v6974_v2 = vmul.f32 -1.442695, %v1721_v9 }
 0x61d   : > { %8126 = vpow2.f32 %v6973_v60 }
 0x61e   : > { %8128 = vpow2.f32 %v6974_v2 }
 0x623   : > { %v8127_v10 = vpop.eup %8126 }
 0x624   : > { %v8129_v12 = vpop.eup %8128  ;;  %v1728_v17 = vadd.f32 1.0, %v8127_v10 }
 0x625   : > { %v1729_v6 = vadd.f32 1.0, %v8129_v12 }
 0x626   : > { %8130 = vrcp.f32 %v1728_v17  ;;  %v1741_v21 = vand.u32 2147483648, %v1728_v17  ;;  %v1739_v26 = vand.u32 2147483647, %v1728_v17  ;;  %vm1735_vm9 = vweird.f32 %v1728_v17 }
 0x627   : > { %8132 = vrcp.f32 %v1729_v6  ;;  %v1756_v27 = vand.u32 2147483648, %v1729_v6  ;;  %v1754_v30 = vand.u32 2147483647, %v1729_v6  ;;  %vm1750_vm15 = vweird.f32 %v1729_v6 }
 0x628   : > { %v1742_v32 = vor.u32 1.1754944e-38, %v1741_v21  ;;  %vm1740_vm10 = vcmp.eq.f32.partialorder %v1739_v26, 8.507059e+37 }
 0x629   : > { %v1757_v36 = vor.u32 1.1754944e-38, %v1756_v27  ;;  %vm1755_vm5 = vcmp.eq.f32.partialorder %v1754_v30, 8.507059e+37 }
 0x62c   : > { %v8131_v61 = vpop.eup %8130 }
 0x62d   : > { %v8133_v5 = vpop.eup %8132  ;;  %v1731_v13 = vmul.f32 %v8131_v61, %v1728_v17  ;;  %vm1736_vm14 = vweird.f32 %v8131_v61 }
 0x62e   : > { %v1746_v18 = vmul.f32 %v8133_v5, %v1729_v6  ;;  %vm1751_vm3 = vweird.f32 %v8133_v5  ;;  %vm1737_vm12 = vmor %vm1735_vm9, %vm1736_vm14  ;;  %vm10869_vm9 = vcmask 1043456  }
 0x62f   : > { %v1732_v14 = vsub.f32 1.0, %v1731_v13  ;;  %vm1752_vm11 = vmor %vm1750_vm15, %vm1751_vm3  ;;  %vm10871_vm15 = vcmask 64512  }
 0x630   : > { %v1747_v22 = vsub.f32 1.0, %v1746_v18 }
 0x631   : > { %v1733_v25 = vmul.f32 %v8131_v61, %v1732_v14 }
 0x632   : > { %v1748_v29 = vmul.f32 %v8133_v5, %v1747_v22 }
 0x633   : > { %v1734_v31 = vadd.f32 %v8131_v61, %v1733_v25 }
 0x634   : > { %v1749_v34 = vadd.f32 %v8133_v5, %v1748_v29 }
 0x635   : > { %v1738_v35 = vsel %vm1737_vm12, %v8131_v61, %v1734_v31  ;;  %vm10870_vm12 = vmmov %vm10869_vm9 }
 0x636   : > { %v1743_v38 = vsel %vm1740_vm10, %v1742_v32, %v1738_v35  ;;  %v1753_v39 = vsel %vm1752_vm11, %v8133_v5, %v1749_v34  ;;  %v7843_v32 = vld [vmem:[%s10613_s5] sm:$0xff]  ;;  %vm10872_vm10 = vmmov %vm10871_vm15  ;;  %v7844_v34 = vld [vmem:[%s10613_s5 + $0x8] sm:$0xff] }
 0x637   : > { %v1758_v37 = vsel %vm1755_vm5, %v1757_v36, %v1753_v39  ;;  %v9000_v40 = vmul.f32 %v1743_v38, %v1720_v0  ;;  %vm10873_vm11 = vmmov %vm10872_vm10  ;;  %v7845_v35 = vld [vmem:[%s10613_s5 + $0x10] sm:$0xff]  ;;  %v7846_v36 = vld [vmem:[%s10613_s5 + $0x18] sm:$0xff] }
 0x638   : > { %v9002_v48 = vmul.f32 %v1758_v37, %v1721_v9  ;;  %v7847_v38 = vld [vmem:[%s10613_s5 + $0x20] sm:$0xff]  ;;  %v7848_v39 = vld [vmem:[%s10613_s5 + $0x28] sm:$0xff]  ;;  %v7849_v37 = vld [vmem:[%s10613_s5 + $0x30] sm:$0xff] }
 0x639   : > { %10867 = vst [vmem:[#allocation24_spill] sm:$0xff] %v9000_v40 }
 0x63a   : > { %10868 = vst [vmem:[#allocation25_spill] sm:$0xff] %v9002_v48  ;;  %v1811_v41 = vadd.f32 %v9002_v48, %v9000_v40 }
 0x63c   : > { %1812 = vadd.xlane.f32.xlu2 %v1811_v41  ;;  %v7850_v41 = vld [vmem:[%s10613_s5 + $0x38] sm:$0xff] }
 0x688   : > { %v1838_v5 = vpop.permute.xlu1 %1837 }
 0x6af   : > { %v1813_v46 = vpop.xlane.xlu2 %1812 }
 0x6b0   : > { %v1814_v47 = vmul.f32 %v1813_v46, %v8845_v11 }
 0x6b2   : > { %v1815_v50 = vsub.f32 %v9000_v40, %v1814_v47  ;;  %v1816_v54 = vsub.f32 %v9002_v48, %v1814_v47 }
 0x6b4   : > { %v1817_v58 = vmul.f32 %v1815_v50, %v1815_v50  ;;  %v1818_v59 = vmul.f32 %v1816_v54, %v1816_v54 }
 0x6b6   : > { %v1819_v62 = vadd.f32 %v1818_v59, %v1817_v58 }
 0x6b8   : > { %1820 = vadd.xlane.f32.xlu0 %v1819_v62 }
 0x6cc   : > { %1843 = vperm.xlu0 %8093, %v8338_v44  }
 0x72b   : > { %v1821_v0 = vpop.xlane.xlu0 %1820 }
 0x72c   : > { %v1822_v7 = vmul.f32 %v1821_v0, %v8845_v11 }
 0x72e   : > { %v1823_v9 = vadd.f32 1e-05, %v1822_v7 }
 0x730   : > { %8134 = vrsqrt.f32 %v1823_v9  ;;  %vm1830_vm14 = vweird.f32 %v1823_v9 }
 0x736   : > { %v8135_v60 = vpop.eup %8134 }
 0x737   : > { %v1825_v2 = vmul.f32 %v8135_v60, %v1823_v9  ;;  %vm1831_vm5 = vweird.f32 %v8135_v60 }
 0x738   : > { %vm1832_vm3 = vmor %vm1830_vm14, %vm1831_vm5 }
 0x739   : > { %v1826_v10 = vmul.f32 %v8135_v60, %v1825_v2  ;;  %vm10874_vm5 = vmmov %vm10872_vm10 }
 0x73a   : > { %vm10875_vm14 = vmmov %vm10874_vm5 }
 0x73b   : > { %v1827_v12 = vmul.f32 0.5, %v1826_v10 }
 0x73d   : > { %v1828_v17 = vsub.f32 1.5, %v1827_v12 }
 0x73e   : > { %v1844_v14 = vpop.permute.xlu0 %1843 }
 0x73f   : > { %v1829_v6 = vmul.f32 %v8135_v60, %v1828_v17 }
 0x741   : > { %v1833_v61 = vsel %vm1832_vm3, %v8135_v60, %v1829_v6  ;;  %vm10876_vm3 = vmmov %vm10874_vm5 }
 0x742   : > { %v1834_v13 = vmul.f32 %v1833_v61, %v1815_v50  ;;  %v1835_v18 = vmul.f32 %v1833_v61, %v1816_v54  ;;  %v7852_v50 = vld [vmem:[%s10613_s5 + $0x48] sm:$0xff] }
 0x744   : > { %v1840_v21 = vmul.f32 %v1838_v5, %v1834_v13  ;;  %v1841_v22 = vmul.f32 %v1838_v5, %v1835_v18  ;;  %v7853_v5 = vld [vmem:[%s10613_s5 + $0x50] sm:$0xff] }
 0x746   : > { %v1846_v25 = vadd.f32 %v1844_v14, %v1840_v21  ;;  %v1847_v26 = vadd.f32 %v1844_v14, %v1841_v22 }
 0x748   : > { %v1848_v27 = vpack.c.bf16 %v1846_v25, %v1846_v25  ;;  %v1849_v29 = vpack.c.bf16 %v1847_v26, %v1847_v26 }
 0x74a   : > { %v2043_v30 = vsel %vm10869_vm9, %v1848_v27, 0  ;;  %v2046_v31 = vsel %vm10870_vm12, %v1849_v29, 0  ;;  %vm10877_vm9 = vmmov %vm10876_vm3 }
 0x74b   : > { %2055 = vmatpush.bf16.msrb.mxu0 %v2043_v30  ;;  %2184 = vmatpush.bf16.msrb.mxu1 %v2046_v31  ;;  %vm10878_vm12 = vmmov %vm10876_vm3 }
 0x74e   : > { %7071 = vmatmul.msk.bf16.vlgmr.msrb.gmra.mxu0 %vm10871_vm15, %v7843_v32  ;;  %7095 = vmatmul.msk.bf16.vlgmr.msrb.gmra.mxu1 %vm10872_vm10, %v7843_v32  ;;  %vm10879_vm15 = vmmov %vm10876_vm3 }
 0x74f   : > { %vm10880_vm10 = vmmov %vm10876_vm3 }
 0x75e   : > { %7072 = vmatmul.msk.bf16.gmra.mxu0 %vm10873_vm11, %v7844_v34  ;;  %7096 = vmatmul.msk.bf16.gmra.mxu1 %vm10874_vm5, %v7844_v34  ;;  %vm10881_vm11 = vmmov %vm10876_vm3 }
 0x75f   : > { %vm10882_vm5 = vmmov %vm10876_vm3 }
 0x76e   : > { %7073 = vmatmul.msk.bf16.gmra.mxu0 %vm10875_vm14, %v7845_v35  ;;  %7097 = vmatmul.msk.bf16.gmra.mxu1 %vm10876_vm3, %v7845_v35  ;;  %vm10883_vm14 = vmmov %vm10876_vm3 }
 0x77e   : > { %7074 = vmatmul.msk.bf16.gmra.mxu0 %vm10877_vm9, %v7846_v36  ;;  %7098 = vmatmul.msk.bf16.gmra.mxu1 %vm10878_vm12, %v7846_v36  ;;  %vm10884_vm9 = vmmov %vm10876_vm3 }
 0x77f   : > { %vm10885_vm12 = vmmov %vm10876_vm3 }
 0x78e   : > { %7075 = vmatmul.msk.bf16.gmra.mxu0 %vm10879_vm15, %v7847_v38  ;;  %7099 = vmatmul.msk.bf16.gmra.mxu1 %vm10880_vm10, %v7847_v38  ;;  %vm10886_vm15 = vmmov %vm10876_vm3 }
 0x78f   : > { %vm10887_vm10 = vmmov %vm10876_vm3 }
 0x79e   : > { %7076 = vmatmul.msk.bf16.gmra.mxu0 %vm10881_vm11, %v7848_v39  ;;  %7100 = vmatmul.msk.bf16.gmra.mxu1 %vm10882_vm5, %v7848_v39  ;;  %vm10888_vm11 = vmmov %vm10876_vm3 }
 0x79f   : > { %vm10889_vm5 = vmmov %vm10876_vm3 }
 0x7ae   : > { %7077 = vmatmul.msk.bf16.gmra.mxu0 %vm10883_vm14, %v7849_v37  ;;  %7101 = vmatmul.msk.bf16.gmra.mxu1 %vm10876_vm3, %v7849_v37  ;;  %vm10890_vm14 = vmmov %vm10876_vm3 }
 0x7be   : > { %7078 = vmatmul.msk.bf16.gmra.mxu0 %vm10884_vm9, %v7850_v41  ;;  %7102 = vmatmul.msk.bf16.gmra.mxu1 %vm10885_vm12, %v7850_v41  ;;  %vm10891_vm9 = vmmov %vm10876_vm3 }
 0x7bf   : > { %vm10892_vm12 = vmmov %vm10876_vm3 }
 0x7cb   : > { %v2057_v43 = vpop.f32.mrf.mxu0  ;;  %v2186_v44 = vpop.f32.mrf.mxu1 }
 0x7ce   : > { %7079 = vmatmul.msk.bf16.gmra.mxu0 %vm10886_vm15, %v7851_v42  ;;  %7103 = vmatmul.msk.bf16.gmra.mxu1 %vm10887_vm10, %v7851_v42  ;;  %vm10893_vm15 = vmmov %vm10876_vm3 }
 0x7cf   : > { %vm10894_vm10 = vmmov %vm10876_vm3 }
 0x7d3   : > { %v2059_v46 = vpop.f32.mrf.mxu0  ;;  %v2188_v47 = vpop.f32.mrf.mxu1 }
 0x7db   : > { %v2062_v54 = vpop.f32.mrf.mxu0  ;;  %v2191_v58 = vpop.f32.mrf.mxu1 }
 0x7dc   : > { %v2306_v59 = vmax.f32 %v2057_v43, %v2062_v54  ;;  %v2315_v62 = vmax.f32 %v2186_v44, %v2191_v58 }
 0x7de   : > { %7080 = vmatmul.msk.bf16.gmra.mxu0 %vm10888_vm11, %v7852_v50  ;;  %7104 = vmatmul.msk.bf16.gmra.mxu1 %vm10889_vm5, %v7852_v50  ;;  %vm10895_vm5 = vmmov %vm10876_vm3 }
 0x7e3   : > { %v2064_v0 = vpop.f32.mrf.mxu0  ;;  %v2193_v7 = vpop.f32.mrf.mxu1 }
 0x7e4   : > { %v2307_v9 = vmax.f32 %v2059_v46, %v2064_v0  ;;  %v2316_v60 = vmax.f32 %v2188_v47, %v2193_v7 }
 0x7e6   : > { %v2308_v2 = vmax.f32 %v2306_v59, %v2307_v9  ;;  %v2317_v10 = vmax.f32 %v2315_v62, %v2316_v60 }
 0x7e8   : > { %v2309_v12 = vrot.slane %v2308_v2, 4  ;;  %v2318_v17 = vrot.slane %v2317_v10, 4 }
 0x7ea   : > { %v2310_v6 = vmax.f32 %v2308_v2, %v2309_v12  ;;  %v2319_v61 = vmax.f32 %v2317_v10, %v2318_v17 }
 0x7eb   : > { %v9068_v13 = vpop.f32.mrf.mxu0  ;;  %v9070_v18 = vpop.f32.mrf.mxu1 }
 0x7ec   : > { %v2311_v14 = vrot.slane %v2310_v6, 2  ;;  %v2320_v21 = vrot.slane %v2319_v61, 2 }
 0x7ee   : > { %v2312_v22 = vmax.f32 %v2310_v6, %v2311_v14  ;;  %v2321_v25 = vmax.f32 %v2319_v61, %v2320_v21  ;;  %7081 = vmatmul.msk.bf16.gmra.mxu0 %vm10890_vm14, %v7853_v5  ;;  %7105 = vmatmul.msk.bf16.gmra.mxu1 %vm10876_vm3, %v7853_v5  ;;  %vm10896_vm14 = vmmov %vm10876_vm3 }
 0x7f0   : > { %v2313_v26 = vrot.slane %v2312_v22, 1  ;;  %v2322_v27 = vrot.slane %v2321_v25, 1 }
 0x7f2   : > { %v2314_v29 = vmax.f32 %v2312_v22, %v2313_v26  ;;  %v2323_v30 = vmax.f32 %v2321_v25, %v2322_v27 }
 0x7f3   : > { %v9074_v31 = vpop.f32.mrf.mxu0  ;;  %v9076_v32 = vpop.f32.mrf.mxu1 }
 0x7f4   : > { %v2324_v34 = vsub.f32 %v2057_v43, %v2314_v29  ;;  %v2326_v35 = vsub.f32 %v2059_v46, %v2314_v29  ;;  %v2328_v36 = vsub.f32 %v2062_v54, %v2314_v29  ;;  %v2330_v38 = vsub.f32 %v2064_v0, %v2314_v29  ;;  %v7854_v43 = vld [vmem:[%s10613_s5 + $0x58] sm:$0xff] }
 0x7f5   : > { %v2325_v39 = vsub.f32 %v2186_v44, %v2323_v30  ;;  %v2327_v37 = vsub.f32 %v2188_v47, %v2323_v30  ;;  %v2329_v41 = vsub.f32 %v2191_v58, %v2323_v30  ;;  %v2331_v42 = vsub.f32 %v2193_v7, %v2323_v30 }
 0x7f6   : > { %v2332_v50 = vmul.f32 1.442695, %v2324_v34  ;;  %v2336_v59 = vmul.f32 1.442695, %v2326_v35  ;;  %v2340_v62 = vmul.f32 1.442695, %v2328_v36 }
 0x7f7   : > { %v2344_v9 = vmul.f32 1.442695, %v2330_v38  ;;  %v2334_v60 = vmul.f32 1.442695, %v2325_v39  ;;  %v2338_v2 = vmul.f32 1.442695, %v2327_v37 }
 0x7f8   : > { %8136 = vpow2.f32 %v2332_v50  ;;  %v2342_v46 = vmul.f32 1.442695, %v2329_v41  ;;  %v2346_v0 = vmul.f32 1.442695, %v2331_v42 }
 0x7f9   : > { %8138 = vpow2.f32 %v2336_v59 }
 0x7fa   : > { %8140 = vpow2.f32 %v2340_v62 }
 0x7fb   : > { %8142 = vpow2.f32 %v2344_v9  ;;  %v9081_v54 = vpop.f32.mrf.mxu0  ;;  %v9083_v44 = vpop.f32.mrf.mxu1 }
 0x7fc   : > { %8144 = vpow2.f32 %v2334_v60  ;;  %v2634_v47 = vmax.f32 %v9068_v13, %v9081_v54  ;;  %v2643_v58 = vmax.f32 %v9070_v18, %v9083_v44 }
 0x7fd   : > { %8146 = vpow2.f32 %v2338_v2  ;;  %v7855_v2 = vld [vmem:[%s10613_s5 + $0x60] sm:$0xff] }
 0x7fe   : > { %v9089_v7 = vpop.eup %8136  ;;  %7082 = vmatmul.msk.bf16.gmra.mxu0 %vm10891_vm9, %v7854_v43  ;;  %7106 = vmatmul.msk.bf16.gmra.mxu1 %vm10892_vm12, %v7854_v43  ;;  %8148 = vpow2.f32 %v2342_v46 }
 0x7ff   : > { %v9093_v10 = vpop.eup %8138  ;;  %8150 = vpow2.f32 %v2346_v0 }
 0x800   : > { %v9095_v12 = vpop.eup %8140  ;;  %v2348_v17 = vadd.f32 %v9093_v10, %v9089_v7 }
 0x801   : > { %v9099_v6 = vpop.eup %8142 }
 0x802   : > { %v9101_v61 = vpop.eup %8144  ;;  %v2349_v5 = vadd.f32 %v9095_v12, %v2348_v17 }
 0x803   : > { %v9104_v14 = vpop.eup %8146  ;;  %v2074_v21 = vpop.f32.mrf.mxu0 }
 0x804   : > { %v9106_v22 = vpop.f32.mrf.mxu1  ;;  %v2350_v25 = vadd.f32 %v9099_v6, %v2349_v5  ;;  %v2357_v26 = vadd.f32 %v9104_v14, %v9101_v61  ;;  %v2635_v27 = vmax.f32 %v9074_v31, %v2074_v21  ;;  %v9114_v30 = vpop.eup %8148 }
 0x805   : > { %v2644_v29 = vmax.f32 %v9076_v32, %v9106_v22  ;;  %v9117_v39 = vpop.eup %8150 }
 0x806   : > { %v2351_v34 = vrot.slane %v2350_v25, 4  ;;  %v2358_v35 = vadd.f32 %v9114_v30, %v2357_v26  ;;  %v2636_v36 = vmax.f32 %v2634_v47, %v2635_v27 }
 0x807   : > { %v2645_v38 = vmax.f32 %v2643_v58, %v2644_v29 }
 0x808   : > { %v2352_v37 = vadd.f32 %v2351_v34, %v2350_v25  ;;  %v2359_v41 = vadd.f32 %v9117_v39, %v2358_v35  ;;  %v2637_v42 = vrot.slane %v2636_v36, 4 }
 0x809   : > { %v2646_v50 = vrot.slane %v2645_v38, 4 }
 0x80a   : > { %v2353_v59 = vrot.slane %v2352_v37, 2  ;;  %v2360_v62 = vrot.slane %v2359_v41, 4  ;;  %v2638_v9 = vmax.f32 %v2636_v36, %v2637_v42 }
 0x80b   : > { %v2647_v60 = vmax.f32 %v2645_v38, %v2646_v50  ;;  %v9123_v43 = vpop.f32.mrf.mxu0 }
 0x80c   : > { %v9125_v46 = vpop.f32.mrf.mxu1  ;;  %v2354_v47 = vadd.f32 %v2353_v59, %v2352_v37  ;;  %v2361_v58 = vadd.f32 %v2360_v62, %v2359_v41  ;;  %v2639_v0 = vrot.slane %v2638_v9, 2 }
 0x80d   : > { %v2648_v17 = vrot.slane %v2647_v60, 2 }
 0x80e   : > { %v2355_v5 = vrot.slane %v2354_v47, 1  ;;  %v2362_v25 = vrot.slane %v2361_v58, 2  ;;  %v2640_v26 = vmax.f32 %v2638_v9, %v2639_v0  ;;  %7083 = vmatmul.msk.bf16.gmra.mxu0 %vm10893_vm15, %v7855_v2  ;;  %7107 = vmatmul.msk.bf16.gmra.mxu1 %vm10894_vm10, %v7855_v2 }
 0x80f   : > { %v2649_v27 = vmax.f32 %v2647_v60, %v2648_v17 }
 0x810   : > { %v9129_v29 = vadd.f32 %v2355_v5, %v2354_v47  ;;  %v2363_v34 = vadd.f32 %v2362_v25, %v2361_v58  ;;  %v2641_v35 = vrot.slane %v2640_v26, 1 }
 0x811   : > { %v2650_v36 = vrot.slane %v2649_v27, 1 }
 0x812   : > { %8152 = vrcp.f32 %v9129_v29  ;;  %v2364_v38 = vrot.slane %v2363_v34, 1  ;;  %v2642_v37 = vmax.f32 %v2640_v26, %v2641_v35  ;;  %vm2371_vm3 = vweird.f32 %v9129_v29 }
 0x813   : > { %v2651_v41 = vmax.f32 %v2649_v27, %v2650_v36  ;;  %v9132_v42 = vpop.f32.mrf.mxu0  ;;  %v2377_v36 = vand.u32 2147483648, %v9129_v29 }
 0x814   : > { %v9134_v50 = vpop.f32.mrf.mxu1  ;;  %v9136_v59 = vadd.f32 %v2364_v38, %v2363_v34  ;;  %v2652_v62 = vsub.f32 %v9068_v13, %v2642_v37  ;;  %v2654_v9 = vsub.f32 %v9074_v31, %v2642_v37  ;;  %v2656_v60 = vsub.f32 %v9081_v54, %v2642_v37 }
 0x815   : > { %v2658_v2 = vsub.f32 %v2074_v21, %v2642_v37  ;;  %v2653_v47 = vsub.f32 %v9070_v18, %v2651_v41  ;;  %v2655_v58 = vsub.f32 %v9076_v32, %v2651_v41  ;;  %v2657_v0 = vsub.f32 %v9083_v44, %v2651_v41  ;;  %v7856_v18 = vld [vmem:[%s10613_s5 + $0x68] sm:$0xff] }
 0x816   : > { %8154 = vrcp.f32 %v9136_v59  ;;  %v2660_v17 = vmul.f32 1.442695, %v2652_v62  ;;  %v2664_v5 = vmul.f32 1.442695, %v2654_v9  ;;  %v2668_v25 = vmul.f32 1.442695, %v2656_v60 }
 0x817   : > { %v2672_v26 = vmul.f32 1.442695, %v2658_v2  ;;  %v2659_v27 = vsub.f32 %v9106_v22, %v2651_v41  ;;  %v2662_v31 = vmul.f32 1.442695, %v2653_v47  ;;  %v2666_v54 = vmul.f32 1.442695, %v2655_v58 }
 0x818   : > { %v8153_v13 = vpop.eup %8152  ;;  %8156 = vpow2.f32 %v2660_v17  ;;  %v2375_v32 = vand.u32 2147483647, %v9129_v29  ;;  %v2670_v44 = vmul.f32 1.442695, %v2657_v0  ;;  %v2390_v47 = vand.u32 2147483647, %v9136_v59 }
 0x819   : > { %8158 = vpow2.f32 %v2664_v5  ;;  %v2367_v21 = vmul.f32 %v8153_v13, %v9129_v29  ;;  %v2674_v37 = vmul.f32 1.442695, %v2659_v27  ;;  %vm2372_vm11 = vweird.f32 %v8153_v13 }
 0x81a   : > { %8160 = vpow2.f32 %v2668_v25  ;;  %v2392_v58 = vand.u32 2147483648, %v9136_v59  ;;  %vm2386_vm9 = vweird.f32 %v9136_v59  ;;  %vm2373_vm12 = vmor %vm2371_vm3, %vm2372_vm11  ;;  %vm2376_vm15 = vcmp.eq.f32.partialorder %v2375_v32, 8.507059e+37 }
 0x81b   : > { %8162 = vpow2.f32 %v2672_v26  ;;  %v9151_v34 = vpop.f32.mrf.mxu0  ;;  %v2368_v22 = vsub.f32 1.0, %v2367_v21  ;;  %v2378_v27 = vor.u32 1.1754944e-38, %v2377_v36  ;;  %vm10899_vm3 = vmmov %vm10896_vm14 }
 0x81c   : > { %v9153_v35 = vpop.f32.mrf.mxu1  ;;  %v8155_v38 = vpop.eup %8154  ;;  %8164 = vpow2.f32 %v2662_v31  ;;  %v2962_v41 = vmax.f32 %v9123_v43, %v9151_v34 }
 0x81d   : > { %v2971_v62 = vmax.f32 %v9125_v46, %v9153_v35  ;;  %8166 = vpow2.f32 %v2666_v54  ;;  %v2382_v9 = vmul.f32 %v8155_v38, %v9136_v59  ;;  %v2369_v60 = vmul.f32 %v8153_v13, %v2368_v22 }
 0x81e   : > { %v9161_v2 = vpop.eup %8156  ;;  %7084 = vmatmul.msk.bf16.gmra.mxu0 %vm10895_vm5, %v7856_v18  ;;  %7108 = vmatmul.msk.bf16.gmra.mxu1 %vm10896_vm14, %v7856_v18  ;;  %8168 = vpow2.f32 %v2670_v44  ;;  %vm2387_vm10 = vweird.f32 %v8155_v38  ;;  %vm9180_vm5 = vcmp.eq.f32.partialorder %v2390_v47, 8.507059e+37  ;;  %v2393_v22 = vor.u32 1.1754944e-38, %v2392_v58 }
 0x81f   : > { %v9167_v0 = vpop.eup %8158  ;;  %v2383_v17 = vsub.f32 1.0, %v2382_v9  ;;  %v2370_v5 = vadd.f32 %v8153_v13, %v2369_v60  ;;  %8170 = vpow2.f32 %v2674_v37  ;;  %vm2388_vm11 = vmor %vm2386_vm9, %vm2387_vm10 }
 0x820   : > { %v9170_v25 = vpop.eup %8160  ;;  %v2676_v26 = vadd.f32 %v9167_v0, %v9161_v2 }
 0x821   : > { %v9175_v31 = vpop.eup %8162  ;;  %v2384_v54 = vmul.f32 %v8155_v38, %v2383_v17  ;;  %v2374_v21 = vsel %vm2373_vm12, %v8153_v13, %v2370_v5  ;;  %vm10900_vm12 = vmmov %vm10899_vm3 }
 0x822   : > { %v9177_v18 = vpop.eup %8164  ;;  %v2677_v29 = vadd.f32 %v9170_v25, %v2676_v26  ;;  %v2379_v9 = vsel %vm2376_vm15, %v2378_v27, %v2374_v21  ;;  %vm10901_vm15 = vmmov %vm10899_vm3 }
 0x823   : > { %v9184_v60 = vpop.eup %8166  ;;  %v9186_v32 = vpop.f32.mrf.mxu0  ;;  %v2385_v37 = vadd.f32 %v8155_v38, %v2384_v54  ;;  %v2398_v17 = vmul.f32 %v9095_v12, %v2379_v9  ;;  %v2400_v13 = vmul.f32 %v9099_v6, %v2379_v9  ;;  %v2380_v5 = vmul.f32 %v9089_v7, %v2379_v9 }
 0x824   : > { %v9188_v36 = vpop.f32.mrf.mxu1  ;;  %v2678_v47 = vadd.f32 %v9175_v31, %v2677_v29  ;;  %v2685_v26 = vadd.f32 %v9184_v60, %v9177_v18  ;;  %v2963_v58 = vmax.f32 %v9132_v42, %v9186_v32  ;;  %v9203_v12 = vpop.eup %8168  ;;  %v2396_v21 = vmul.f32 %v9093_v10, %v2379_v9 }
 0x825   : > { %v2972_v27 = vmax.f32 %v9134_v50, %v9188_v36  ;;  %v2389_v6 = vsel %vm2388_vm11, %v8155_v38, %v2385_v37  ;;  %v9205_v54 = vmul.f32 0.17677669, %v2398_v17  ;;  %v9207_v7 = vmul.f32 0.17677669, %v2400_v13  ;;  %v9211_v11 = vpop.eup %8170 }
 0x826   : > { %v2679_v29 = vrot.slane %v2678_v47, 4  ;;  %v2686_v4 = vadd.f32 %v9203_v12, %v2685_v26  ;;  %v2964_v1 = vmax.f32 %v2962_v41, %v2963_v58  ;;  %v2394_v59 = vsel %vm9180_vm5, %v2393_v22, %v2389_v6 }
 0x827   : > { %v2973_v28 = vmax.f32 %v2971_v62, %v2972_v27  ;;  %v9217_v38 = vmul.f32 0.17677669, %v2380_v5  ;;  %v9219_v37 = vmul.f32 0.17677669, %v2396_v21  ;;  %v2399_v41 = vmul.f32 %v9114_v30, %v2394_v59 }
 0x828   : > { %v2680_v17 = vadd.f32 %v2679_v29, %v2678_v47  ;;  %v2687_v10 = vadd.f32 %v9211_v11, %v2686_v4  ;;  %v2965_v9 = vrot.slane %v2964_v1, 4  ;;  %v2401_v62 = vmul.f32 %v9117_v39, %v2394_v59  ;;  %v7857_v47 = vld [vmem:[%s10613_s5 + $0x70] sm:$0xff] }
 0x829   : > { %v2974_v13 = vrot.slane %v2973_v28, 4  ;;  %v2395_v22 = vmul.f32 %v9101_v61, %v2394_v59  ;;  %v9234_v30 = vmul.f32 0.17677669, %v2399_v41  ;;  %v2397_v21 = vmul.f32 %v9104_v14, %v2394_v59 }
 0x82a   : > { %v2681_v26 = vrot.slane %v2680_v17, 2  ;;  %v2688_v58 = vrot.slane %v2687_v10, 4  ;;  %v2966_v5 = vmax.f32 %v2964_v1, %v2965_v9  ;;  %v9236_v39 = vmul.f32 0.17677669, %v2401_v62 }
 0x82b   : > { %v2975_v27 = vmax.f32 %v2973_v28, %v2974_v13  ;;  %v9230_v4 = vpop.f32.mrf.mxu0  ;;  %v9239_v29 = vmul.f32 0.17677669, %v2395_v22  ;;  %v9243_v13 = vmul.f32 0.17677669, %v2397_v21 }
 0x82c   : > { %v9232_v6 = vpop.f32.mrf.mxu1  ;;  %v2682_v61 = vadd.f32 %v2681_v26, %v2680_v17  ;;  %v2689_v44 = vadd.f32 %v2688_v58, %v2687_v10  ;;  %v2967_v1 = vrot.slane %v2966_v5, 2 }
 0x82d   : > { %v2976_v28 = vrot.slane %v2975_v27, 2 }
 0x82e   : > { %v2683_v49 = vrot.slane %v2682_v61, 1  ;;  %v2690_v33 = vrot.slane %v2689_v44, 2  ;;  %v2968_v24 = vmax.f32 %v2966_v5, %v2967_v1  ;;  %7085 = vmatmul.msk.bf16.gmra.mxu0 %vm10896_vm14, %v7857_v47  ;;  %7109 = vmatmul.msk.bf16.gmra.mxu1 %vm10899_vm3, %v7857_v47 }
 0x82f   : > { %v2977_v41 = vmax.f32 %v2975_v27, %v2976_v28 }
 0x830   : > { %v2684_v59 = vadd.f32 %v2683_v49, %v2682_v61  ;;  %v2691_v17 = vadd.f32 %v2690_v33, %v2689_v44  ;;  %v2969_v10 = vrot.slane %v2968_v24, 1 }
 0x831   : > { %v2978_v62 = vrot.slane %v2977_v41, 1 }
 0x832   : > { %8172 = vrcp.f32 %v2684_v59  ;;  %v2692_v22 = vrot.slane %v2691_v17, 1  ;;  %v2970_v26 = vmax.f32 %v2968_v24, %v2969_v10  ;;  %vm2699_vm10 = vweird.f32 %v2684_v59 }
 0x833   : > { %v2979_v58 = vmax.f32 %v2977_v41, %v2978_v62  ;;  %v9249_v21 = vpop.f32.mrf.mxu0 }
 0x834   : > { %v9251_v9 = vpop.f32.mrf.mxu1  ;;  %v9253_v5 = vadd.f32 %v2692_v22, %v2691_v17  ;;  %v2980_v27 = vsub.f32 %v9123_v43, %v2970_v26  ;;  %v2982_v47 = vsub.f32 %v9132_v42, %v2970_v26  ;;  %v2984_v1 = vsub.f32 %v9151_v34, %v2970_v26 }
 0x835   : > { %v2986_v33 = vsub.f32 %v9186_v32, %v2970_v26  ;;  %v2981_v49 = vsub.f32 %v9125_v46, %v2979_v58  ;;  %v2983_v44 = vsub.f32 %v9134_v50, %v2979_v58  ;;  %v2985_v24 = vsub.f32 %v9153_v35, %v2979_v58  ;;  %v7858_v46 = vld [vmem:[%s10613_s5 + $0x78] sm:$0xff] }
 0x836   : > { %8174 = vrcp.f32 %v9253_v5  ;;  %v2988_v61 = vmul.f32 1.442695, %v2980_v27  ;;  %v2992_v28 = vmul.f32 1.442695, %v2982_v47  ;;  %v2996_v41 = vmul.f32 1.442695, %v2984_v1 }
 0x837   : > { %v3000_v17 = vmul.f32 1.442695, %v2986_v33  ;;  %v2987_v43 = vsub.f32 %v9188_v36, %v2979_v58  ;;  %v2990_v42 = vmul.f32 1.442695, %v2981_v49  ;;  %v2994_v34 = vmul.f32 1.442695, %v2983_v44 }
 0x838   : > { %v8173_v10 = vpop.eup %8172  ;;  %8176 = vpow2.f32 %v2988_v61  ;;  %v2703_v50 = vand.u32 2147483647, %v2684_v59  ;;  %v2998_v35 = vmul.f32 1.442695, %v2985_v24  ;;  %v2705_v36 = vand.u32 2147483648, %v2684_v59 }
 0x839   : > { %8178 = vpow2.f32 %v2992_v28  ;;  %v2695_v32 = vmul.f32 %v8173_v10, %v2684_v59  ;;  %v3002_v27 = vmul.f32 1.442695, %v2987_v43  ;;  %vm2700_vm9 = vweird.f32 %v8173_v10 }
 0x83a   : > { %8180 = vpow2.f32 %v2996_v41  ;;  %v2718_v24 = vand.u32 2147483647, %v9253_v5  ;;  %v2720_v61 = vand.u32 2147483648, %v9253_v5  ;;  %vm2701_vm5 = vmor %vm2699_vm10, %vm2700_vm9  ;;  %vm2704_vm11 = vcmp.eq.f32.partialorder %v2703_v50, 8.507059e+37 }
 0x83b   : > { %8182 = vpow2.f32 %v3000_v17  ;;  %v9267_v62 = vpop.f32.mrf.mxu0  ;;  %v2696_v26 = vsub.f32 1.0, %v2695_v32  ;;  %vm2714_vm14 = vweird.f32 %v9253_v5  ;;  %vm10906_vm10 = vmmov %vm10901_vm15 }
 0x83c   : > { %v9269_v22 = vpop.f32.mrf.mxu1  ;;  %v8175_v58 = vpop.eup %8174  ;;  %8184 = vpow2.f32 %v2990_v42  ;;  %v3290_v47 = vmax.f32 %v9230_v4, %v9267_v62  ;;  %v2721_v14 = vor.u32 1.1754944e-38, %v2720_v61 }
 0x83d   : > { %v3299_v1 = vmax.f32 %v9232_v6, %v9269_v22  ;;  %8186 = vpow2.f32 %v2994_v34  ;;  %v2697_v33 = vmul.f32 %v8173_v10, %v2696_v26  ;;  %v2710_v49 = vmul.f32 %v8175_v58, %v9253_v5 }
 0x83e   : > { %v9276_v44 = vpop.eup %8176  ;;  %7086 = vmatmul.msk.bf16.gmra.mxu0 %vm10900_vm12, %v7858_v46  ;;  %7110 = vmatmul.msk.bf16.gmra.mxu1 %vm10901_vm15, %v7858_v46  ;;  %8188 = vpow2.f32 %v2998_v35  ;;  %v2706_v34 = vor.u32 1.1754944e-38, %v2705_v36  ;;  %vm2715_vm3 = vweird.f32 %v8175_v58  ;;  %vm9294_vm12 = vcmp.eq.f32.partialorder %v2718_v24, 8.507059e+37 }
 0x83f   : > { %v9282_v28 = vpop.eup %8178  ;;  %v2698_v41 = vadd.f32 %v8173_v10, %v2697_v33  ;;  %v2711_v17 = vsub.f32 1.0, %v2710_v49  ;;  %8190 = vpow2.f32 %v3002_v27  ;;  %vm2716_vm9 = vmor %vm2714_vm14, %vm2715_vm3 }
 0x840   : > { %v9284_v43 = vpop.eup %8180  ;;  %v3004_v42 = vadd.f32 %v9282_v28, %v9276_v44  ;;  %vm10908_vm14 = vmmov %vm10906_vm10 }
 0x841   : > { %v9289_v32 = vpop.eup %8182  ;;  %v2702_v46 = vsel %vm2701_vm5, %v8173_v10, %v2698_v41  ;;  %v2712_v26 = vmul.f32 %v8175_v58, %v2711_v17 }
 0x842   : > { %v9291_v35 = vpop.eup %8184  ;;  %v3005_v59 = vadd.f32 %v9284_v43, %v3004_v42  ;;  %v2707_v33 = vsel %vm2704_vm11, %v2706_v34, %v2702_v46  ;;  %vm10907_vm11 = vmmov %vm10906_vm10 }
 0x843   : > { %v9298_v50 = vpop.eup %8186  ;;  %v9300_v36 = vpop.f32.mrf.mxu0  ;;  %v2726_v10 = vmul.f32 %v9170_v25, %v2707_v33  ;;  %v2728_v27 = vmul.f32 %v9175_v31, %v2707_v33  ;;  %v2713_v41 = vadd.f32 %v8175_v58, %v2712_v26  ;;  %v2708_v17 = vmul.f32 %v9161_v2, %v2707_v33 }
 0x844   : > { %v9302_v19 = vpop.f32.mrf.mxu1  ;;  %v3006_v42 = vadd.f32 %v9289_v32, %v3005_v59  ;;  %v3013_v24 = vadd.f32 %v9298_v50, %v9291_v35  ;;  %v3291_v61 = vmax.f32 %v9249_v21, %v9300_v36  ;;  %v9317_v25 = vpop.eup %8188  ;;  %v2724_v26 = vmul.f32 %v9167_v0, %v2707_v33 }
 0x845   : > { %v3300_v34 = vmax.f32 %v9251_v9, %v9302_v19  ;;  %v9319_v31 = vmul.f32 0.17677669, %v2726_v10  ;;  %v9321_v2 = vmul.f32 0.17677669, %v2728_v27  ;;  %v2717_v46 = vsel %vm2716_vm9, %v8175_v58, %v2713_v41  ;;  %v9325_v23 = vpop.eup %8190 }
 0x846   : > { %v3007_v59 = vrot.slane %v3006_v42, 4  ;;  %v3014_v55 = vadd.f32 %v9317_v25, %v3013_v24  ;;  %v3292_v51 = vmax.f32 %v3290_v47, %v3291_v61  ;;  %v2722_v16 = vsel %vm9294_vm12, %v2721_v14, %v2717_v46 }
 0x847   : > { %v3301_v8 = vmax.f32 %v3299_v1, %v3300_v34  ;;  %v9331_v10 = vmul.f32 0.17677669, %v2708_v17  ;;  %v9333_v27 = vmul.f32 0.17677669, %v2724_v26  ;;  %v2727_v47 = vmul.f32 %v9203_v12, %v2722_v16 }
 0x848   : > { %v3008_v58 = vadd.f32 %v3007_v59, %v3006_v42  ;;  %v3015_v0 = vadd.f32 %v9325_v23, %v3014_v55  ;;  %v3293_v33 = vrot.slane %v3292_v51, 4  ;;  %v2729_v1 = vmul.f32 %v9211_v11, %v2722_v16  ;;  %v7859_v42 = vld [vmem:[%s10613_s5 + $0x80] sm:$0xff] }
 0x849   : > { %v3302_v41 = vrot.slane %v3301_v8, 4  ;;  %v2723_v61 = vmul.f32 %v9177_v18, %v2722_v16  ;;  %v9348_v12 = vmul.f32 0.17677669, %v2727_v47  ;;  %v2725_v26 = vmul.f32 %v9184_v60, %v2722_v16 }
 0x84a   : > { %v3009_v49 = vrot.slane %v3008_v58, 2  ;;  %v3016_v14 = vrot.slane %v3015_v0, 4  ;;  %v3294_v17 = vmax.f32 %v3292_v51, %v3293_v33  ;;  %v9350_v11 = vmul.f32 0.17677669, %v2729_v1 }
 0x84b   : > { %v3303_v34 = vmax.f32 %v3301_v8, %v3302_v41  ;;  %v9344_v55 = vpop.f32.mrf.mxu0  ;;  %v9353_v59 = vmul.f32 0.17677669, %v2723_v61  ;;  %v9359_v5 = vmul.f32 0.17677669, %v2725_v26 }
 0x84c   : > { %v9346_v46 = vpop.f32.mrf.mxu1  ;;  %v3010_v18 = vadd.f32 %v3009_v49, %v3008_v58  ;;  %v3017_v24 = vadd.f32 %v3016_v14, %v3015_v0  ;;  %v3295_v51 = vrot.slane %v3294_v17, 2 }
 0x84d   : > { %10904 = vst [vmem:[#allocation26_spill] sm:$0xff] %v9353_v59  ;;  %v3304_v8 = vrot.slane %v3303_v34, 2  ;;  %v2410_v33 = vmax.f32 %v9344_v55, %v9346_v46 }
 0x84e   : > { %10905 = vst [vmem:[#allocation27_spill] sm:$0xff] %v9359_v5  ;;  %v3011_v47 = vrot.slane %v3010_v18, 1  ;;  %v3018_v15 = vrot.slane %v3017_v24, 2  ;;  %v3296_v1 = vmax.f32 %v3294_v17, %v3295_v51  ;;  %7087 = vmatmul.msk.bf16.gmra.mxu0 %vm10901_vm15, %v7859_v42  ;;  %7111 = vmatmul.msk.bf16.gmra.mxu1 %vm10906_vm10, %v7859_v42 }
 0x84f   : > { %v3305_v63 = vmax.f32 %v3303_v34, %v3304_v8  ;;  %2411 = vmax.xlane.f32.xlu2 %v2410_v33 }
 0x850   : > { %v9365_v60 = vadd.f32 %v3011_v47, %v3010_v18  ;;  %v3019_v58 = vadd.f32 %v3018_v15, %v3017_v24  ;;  %v3297_v0 = vrot.slane %v3296_v1, 1 }
 0x851   : > { %v3306_v61 = vrot.slane %v3305_v63, 1 }
 0x852   : > { %8192 = vrcp.f32 %v9365_v60  ;;  %v3020_v49 = vrot.slane %v3019_v58, 1  ;;  %v3298_v14 = vmax.f32 %v3296_v1, %v3297_v0  ;;  %vm3027_vm3 = vweird.f32 %v9365_v60 }
 0x853   : > { %v3307_v26 = vmax.f32 %v3305_v63, %v3306_v61  ;;  %v9368_v17 = vpop.f32.mrf.mxu0 }
 0x854   : > { %v9370_v34 = vpop.f32.mrf.mxu1  ;;  %v9372_v51 = vadd.f32 %v3020_v49, %v3019_v58  ;;  %v3308_v42 = vsub.f32 %v9230_v4, %v3298_v14  ;;  %v3310_v8 = vsub.f32 %v9249_v21, %v3298_v14  ;;  %v3312_v18 = vsub.f32 %v9267_v62, %v3298_v14 }
 0x855   : > { %v3314_v15 = vsub.f32 %v9300_v36, %v3298_v14  ;;  %v3309_v24 = vsub.f32 %v9232_v6, %v3307_v26  ;;  %v3311_v33 = vsub.f32 %v9251_v9, %v3307_v26  ;;  %v3313_v63 = vsub.f32 %v9269_v22, %v3307_v26  ;;  %v7860_v22 = vld [vmem:[%s10613_s5 + $0x88] sm:$0xff] }
 0x856   : > { %8194 = vrcp.f32 %v9372_v51  ;;  %v3316_v47 = vmul.f32 1.442695, %v3308_v42  ;;  %v3320_v1 = vmul.f32 1.442695, %v3310_v8  ;;  %v3324_v58 = vmul.f32 1.442695, %v3312_v18 }
 0x857   : > { %v3328_v0 = vmul.f32 1.442695, %v3314_v15  ;;  %v3315_v4 = vsub.f32 %v9302_v19, %v3307_v26  ;;  %v3318_v21 = vmul.f32 1.442695, %v3309_v24  ;;  %v2413_v62 = vmax.f32 %v9368_v17, %v9370_v34 }
 0x858   : > { %v8193_v61 = vpop.eup %8192  ;;  %8196 = vpow2.f32 %v3316_v47  ;;  %v3322_v6 = vmul.f32 1.442695, %v3311_v33  ;;  %v3326_v36 = vmul.f32 1.442695, %v3313_v63  ;;  %v3031_v26 = vand.u32 2147483647, %v9365_v60 }
 0x859   : > { %8198 = vpow2.f32 %v3320_v1  ;;  %v3023_v9 = vmul.f32 %v8193_v61, %v9365_v60  ;;  %2414 = vmax.xlane.f32.xlu1 %v2413_v62  ;;  %v3330_v8 = vmul.f32 1.442695, %v3315_v4  ;;  %v3033_v15 = vand.u32 2147483648, %v9365_v60 }
 0x85a   : > { %8200 = vpow2.f32 %v3324_v58  ;;  %vm3028_vm5 = vweird.f32 %v8193_v61  ;;  %v3046_v47 = vand.u32 2147483647, %v9372_v51  ;;  %v3048_v1 = vand.u32 2147483648, %v9372_v51 }
 0x85b   : > { %8202 = vpow2.f32 %v3328_v0  ;;  %v9389_v49 = vpop.f32.mrf.mxu0  ;;  %v3024_v19 = vsub.f32 1.0, %v3023_v9  ;;  %vm3029_vm12 = vmor %vm3027_vm3, %vm3028_vm5  ;;  %vm3032_vm9 = vcmp.eq.f32.partialorder %v3031_v26, 8.507059e+37  ;;  %vm3042_vm15 = vweird.f32 %v9372_v51 }
 0x85c   : > { %v9391_v14 = vpop.f32.mrf.mxu1  ;;  %v8195_v42 = vpop.eup %8194  ;;  %8204 = vpow2.f32 %v3318_v21 }
 0x85d   : > { %v2416_v18 = vmax.f32 %v9389_v49, %v9391_v14  ;;  %8206 = vpow2.f32 %v3322_v6  ;;  %v3025_v24 = vmul.f32 %v8193_v61, %v3024_v19  ;;  %v3038_v33 = vmul.f32 %v8195_v42, %v9372_v51 }
 0x85e   : > { %v9398_v63 = vpop.eup %8196  ;;  %7088 = vmatmul.msk.bf16.gmra.mxu0 %vm10907_vm11, %v7860_v22  ;;  %7112 = vmatmul.msk.bf16.gmra.mxu1 %vm10908_vm14, %v7860_v22  ;;  %8208 = vpow2.f32 %v3326_v36  ;;  %v3034_v6 = vor.u32 1.1754944e-38, %v3033_v15  ;;  %vm3043_vm10 = vweird.f32 %v8195_v42  ;;  %vm9418_vm11 = vcmp.eq.f32.partialorder %v3046_v47, 8.507059e+37 }
 0x85f   : > { %v9404_v58 = vpop.eup %8198  ;;  %2417 = vmax.xlane.f32.xlu2 %v2416_v18  ;;  %v3026_v0 = vadd.f32 %v8193_v61, %v3025_v24  ;;  %v3039_v4 = vsub.f32 1.0, %v3038_v33  ;;  %8210 = vpow2.f32 %v3330_v8  ;;  %v3049_v33 = vor.u32 1.1754944e-38, %v3048_v1  ;;  %vm3044_vm5 = vmor %vm3042_vm15, %vm3043_vm10 }
 0x860   : > { %v9407_v21 = vpop.eup %8200  ;;  %v3332_v62 = vadd.f32 %v9404_v58, %v9398_v63 }
 0x861   : > { %v9413_v9 = vpop.eup %8202  ;;  %v3030_v22 = vsel %vm3029_vm12, %v8193_v61, %v3026_v0  ;;  %v3040_v36 = vmul.f32 %v8195_v42, %v3039_v4 }
 0x862   : > { %v9415_v19 = vpop.eup %8204  ;;  %v3333_v60 = vadd.f32 %v9407_v21, %v3332_v62  ;;  %v3035_v18 = vsel %vm3032_vm9, %v3034_v6, %v3030_v22 }
 0x863   : > { %v9422_v26 = vpop.eup %8206  ;;  %v9424_v15 = vpop.f32.mrf.mxu0  ;;  %v3054_v61 = vmul.f32 %v9284_v43, %v3035_v18  ;;  %v3056_v8 = vmul.f32 %v9289_v32, %v3035_v18  ;;  %v3041_v0 = vadd.f32 %v8195_v42, %v3040_v36  ;;  %v3036_v4 = vmul.f32 %v9276_v44, %v3035_v18 }
 0x864   : > { %v9426_v16 = vpop.f32.mrf.mxu1  ;;  %v3334_v62 = vadd.f32 %v9413_v9, %v3333_v60  ;;  %v3341_v47 = vadd.f32 %v9422_v26, %v9415_v19  ;;  %v3052_v6 = vmul.f32 %v9282_v28, %v3035_v18  ;;  %v9440_v43 = vpop.eup %8208 }
 0x865   : > { %v2419_v1 = vmax.f32 %v9424_v15, %v9426_v16  ;;  %v9442_v32 = vmul.f32 0.17677669, %v3054_v61  ;;  %v9444_v22 = vmul.f32 0.17677669, %v3056_v8  ;;  %v3045_v44 = vsel %vm3044_vm5, %v8195_v42, %v3041_v0  ;;  %v9453_v51 = vpop.eup %8210 }
 0x866   : > { %v9446_v36 = vmul.f32 0.17677669, %v3036_v4  ;;  %v3335_v60 = vrot.slane %v3334_v62, 4  ;;  %v3342_v41 = vadd.f32 %v9440_v43, %v3341_v47  ;;  %v3050_v52 = vsel %vm9418_vm11, %v3049_v33, %v3045_v44 }
 0x867   : > { %10911 = vst [vmem:[#allocation28_spill] sm:$0xff] %v9442_v32  ;;  %v9451_v56 = vmul.f32 0.17677669, %v3052_v6  ;;  %2420 = vmax.xlane.f32.xlu2 %v2419_v1  ;;  %v3055_v18 = vmul.f32 %v9317_v25, %v3050_v52  ;;  %v3057_v42 = vmul.f32 %v9325_v23, %v3050_v52  ;;  %v3051_v61 = vmul.f32 %v9291_v35, %v3050_v52 }
 0x868   : > { %10912 = vst [vmem:[#allocation29_spill] sm:$0xff] %v9444_v22  ;;  %v3336_v8 = vadd.f32 %v3335_v60, %v3334_v62  ;;  %v3343_v0 = vadd.f32 %v9453_v51, %v3342_v41  ;;  %v3053_v33 = vmul.f32 %v9298_v50, %v3050_v52 }
 0x869   : > { %10913 = vst [vmem:[#allocation30_spill] sm:$0xff] %v9446_v36  ;;  %v9464_v4 = vmul.f32 0.17677669, %v3055_v18  ;;  %v9466_v47 = vmul.f32 0.17677669, %v3057_v42 }
 0x86a   : > { %10914 = vst [vmem:[#allocation31_spill] sm:$0xff] %v9451_v56  ;;  %v9468_v1 = vmul.f32 0.17677669, %v3051_v61  ;;  %v3337_v6 = vrot.slane %v3336_v8, 2  ;;  %v3344_v25 = vrot.slane %v3343_v0, 4 }
 0x86b   : > { %10915 = vst [vmem:[#allocation32_spill] sm:$0xff] %v9464_v4  ;;  %v9470_v44 = vmul.f32 0.17677669, %v3053_v33  ;;  %v9472_v23 = vpop.f32.mrf.mxu0 }
 0x86c   : > { %10916 = vst [vmem:[#allocation33_spill] sm:$0xff] %v9466_v47  ;;  %v9474_v35 = vpop.f32.mrf.mxu1  ;;  %v3338_v62 = vadd.f32 %v3337_v6, %v3336_v8  ;;  %v3345_v60 = vadd.f32 %v3344_v25, %v3343_v0 }
 0x86d   : > { %10917 = vst [vmem:[#allocation34_spill] sm:$0xff] %v9468_v1  ;;  %v2738_v52 = vmax.f32 %v9472_v23, %v9474_v35 }
 0x86e   : > { %10918 = vst [vmem:[#allocation35_spill] sm:$0xff] %v9470_v44  ;;  %v3339_v18 = vrot.slane %v3338_v62, 1  ;;  %v3346_v42 = vrot.slane %v3345_v60, 2 }
 0x86f   : > { %2739 = vmax.xlane.f32.xlu1 %v2738_v52 }
 0x870   : > { %v3340_v61 = vadd.f32 %v3339_v18, %v3338_v62  ;;  %v3347_v33 = vadd.f32 %v3346_v42, %v3345_v60 }
 0x872   : > { %8212 = vrcp.f32 %v3340_v61  ;;  %v3348_v24 = vrot.slane %v3347_v33, 1  ;;  %v3361_v60 = vand.u32 2147483648, %v3340_v61  ;;  %v3359_v18 = vand.u32 2147483647, %v3340_v61 }
 0x873   : > { %v9482_v28 = vpop.f32.mrf.mxu0  ;;  %vm3355_vm3 = vweird.f32 %v3340_v61 }
 0x874   : > { %v9484_v3 = vpop.f32.mrf.mxu1  ;;  %v3349_v41 = vadd.f32 %v3348_v24, %v3347_v33  ;;  %v3362_v33 = vor.u32 1.1754944e-38, %v3361_v60  ;;  %vm3360_vm9 = vcmp.eq.f32.partialorder %v3359_v18, 8.507059e+37 }
 0x876   : > { %8214 = vrcp.f32 %v3349_v41  ;;  %v3374_v45 = vand.u32 2147483647, %v3349_v41  ;;  %v3376_v57 = vand.u32 2147483648, %v3349_v41  ;;  %vm3370_vm10 = vweird.f32 %v3349_v41 }
 0x878   : > { %v8213_v8 = vpop.eup %8212  ;;  %vm3375_vm5 = vcmp.eq.f32.partialorder %v3374_v45, 8.507059e+37  ;;  %v3377_v60 = vor.u32 1.1754944e-38, %v3376_v57 }
 0x879   : > { %v3351_v0 = vmul.f32 %v8213_v8, %v3340_v61  ;;  %vm3356_vm14 = vweird.f32 %v8213_v8 }
 0x87a   : > { %vm3357_vm12 = vmor %vm3355_vm3, %vm3356_vm14 }
 0x87b   : > { %v9486_v6 = vpop.f32.mrf.mxu0  ;;  %v3352_v50 = vsub.f32 1.0, %v3351_v0 }
 0x87c   : > { %v9488_v25 = vpop.f32.mrf.mxu1  ;;  %v8215_v20 = vpop.eup %8214 }
 0x87d   : > { %v2744_v62 = vmax.f32 %v9486_v6, %v9488_v25  ;;  %v3353_v52 = vmul.f32 %v8213_v8, %v3352_v50  ;;  %v3366_v42 = vmul.f32 %v8215_v20, %v3349_v41  ;;  %vm3371_vm15 = vweird.f32 %v8215_v20 }
 0x87e   : > { %vm3372_vm11 = vmor %vm3370_vm10, %vm3371_vm15 }
 0x87f   : > { %2745 = vmax.xlane.f32.xlu1 %v2744_v62  ;;  %v3354_v53 = vadd.f32 %v8213_v8, %v3353_v52  ;;  %v3367_v24 = vsub.f32 1.0, %v3366_v42 }
 0x881   : > { %v3358_v48 = vsel %vm3357_vm12, %v8213_v8, %v3354_v53  ;;  %v3368_v0 = vmul.f32 %v8215_v20, %v3367_v24 }
 0x882   : > { %v3363_v40 = vsel %vm3360_vm9, %v3362_v33, %v3358_v48 }
 0x883   : > { %v9492_v1 = vpop.f32.mrf.mxu0  ;;  %v3382_v44 = vmul.f32 %v9407_v21, %v3363_v40  ;;  %v3384_v62 = vmul.f32 %v9413_v9, %v3363_v40  ;;  %v3369_v61 = vadd.f32 %v8215_v20, %v3368_v0  ;;  %v3364_v52 = vmul.f32 %v9398_v63, %v3363_v40 }
 0x884   : > { %v9494_v50 = vpop.f32.mrf.mxu1  ;;  %v3380_v53 = vmul.f32 %v9404_v58, %v3363_v40 }
 0x885   : > { %v9500_v8 = vmul.f32 0.17677669, %v3382_v44  ;;  %v9502_v48 = vmul.f32 0.17677669, %v3384_v62  ;;  %v3373_v41 = vsel %vm3372_vm11, %v8215_v20, %v3369_v61  ;;  %v9504_v18 = vmul.f32 0.17677669, %v3364_v52 }
 0x886   : > { %v3378_v42 = vsel %vm3375_vm5, %v3377_v60, %v3373_v41  ;;  %v9506_v24 = vmul.f32 0.17677669, %v3380_v53 }
 0x887   : > { %10919 = vst [vmem:[#allocation36_spill] sm:$0xff] %v9500_v8  ;;  %v3383_v63 = vmul.f32 %v9440_v43, %v3378_v42  ;;  %v3385_v45 = vmul.f32 %v9453_v51, %v3378_v42  ;;  %v3379_v57 = vmul.f32 %v9415_v19, %v3378_v42  ;;  %v3381_v58 = vmul.f32 %v9422_v26, %v3378_v42 }
 0x888   : > { %10920 = vst [vmem:[#allocation37_spill] sm:$0xff] %v9502_v48 }
 0x889   : > { %10921 = vst [vmem:[#allocation38_spill] sm:$0xff] %v9504_v18  ;;  %v9516_v20 = vmul.f32 0.17677669, %v3383_v63  ;;  %v9518_v9 = vmul.f32 0.17677669, %v3385_v45 }
 0x88a   : > { %10922 = vst [vmem:[#allocation39_spill] sm:$0xff] %v9506_v24  ;;  %v9520_v44 = vmul.f32 0.17677669, %v3379_v57  ;;  %v9522_v33 = vmul.f32 0.17677669, %v3381_v58 }
 0x88b   : > { %10923 = vst [vmem:[#allocation40_spill] sm:$0xff] %v9516_v20  ;;  %v9524_v0 = vpop.f32.mrf.mxu0 }
 0x88c   : > { %10924 = vst [vmem:[#allocation41_spill] sm:$0xff] %v9518_v9  ;;  %v9526_v43 = vpop.f32.mrf.mxu1 }
 0x88d   : > { %10925 = vst [vmem:[#allocation42_spill] sm:$0xff] %v9520_v44 }
 0x88e   : > { %10926 = vst [vmem:[#allocation43_spill] sm:$0xff] %v9522_v33 }
 0x893   : > { %v9532_v62 = vpop.f32.mrf.mxu0 }
 0x894   : > { %v9534_v26 = vpop.f32.mrf.mxu1 }
 0x89b   : > { %v9536_v61 = vpop.f32.mrf.mxu0 }
 0x89c   : > { %v9538_v52 = vpop.f32.mrf.mxu1 }
 0x8a3   : > { %v9540_v60 = vpop.f32.mrf.mxu0 }
 0x8a4   : > { %v9542_v53 = vpop.f32.mrf.mxu1 }
 0x8ab   : > { %v9544_v41 = vpop.f32.mrf.mxu0 }
 0x8ac   : > { %v9546_v42 = vpop.f32.mrf.mxu1 }
 0x8b3   : > { %v9548_v63 = vpop.f32.mrf.mxu0 }
 0x8b4   : > { %v9550_v45 = vpop.f32.mrf.mxu1 }
 0x8bb   : > { %v9552_v57 = vpop.f32.mrf.mxu0 }
 0x8bc   : > { %v9554_v58 = vpop.f32.mrf.mxu1 }
 0x8c2   : > { %v2412_v51 = vpop.xlane.xlu2 %2411 }
 0x8c3   : > { %v2422_v40 = vsub.f32 %v9344_v55, %v2412_v51  ;;  %v2423_v19 = vsub.f32 %v9346_v46, %v2412_v51  ;;  %v9558_v21 = vpop.f32.mrf.mxu0 }
 0x8c4   : > { %v9560_v44 = vpop.f32.mrf.mxu1 }
 0x8c5   : > { %v2430_v33 = vmul.f32 1.442695, %v2422_v40  ;;  %v2432_v18 = vmul.f32 1.442695, %v2423_v19 }
 0x8c7   : > { %8216 = vpow2.f32 %v2430_v33 }
 0x8c8   : > { %8218 = vpow2.f32 %v2432_v18 }
 0x8cb   : > { %v2137_v24 = vpop.f32.mrf.mxu0 }
 0x8cc   : > { %v2266_v20 = vpop.f32.mrf.mxu1  ;;  %v2415_v8 = vpop.xlane.xlu1 %2414 }
 0x8cd   : > { %v9562_v9 = vpop.eup %8216  ;;  %v2424_v36 = vsub.f32 %v9368_v17, %v2415_v8  ;;  %v2425_v55 = vsub.f32 %v9370_v34, %v2415_v8 }
 0x8ce   : > { %v9564_v48 = vpop.eup %8218 }
 0x8cf   : > { %v2446_v46 = vadd.f32 %v9564_v48, %v9562_v9  ;;  %v2434_v51 = vmul.f32 1.442695, %v2424_v36  ;;  %v2436_v56 = vmul.f32 1.442695, %v2425_v55 }
 0x8d1   : > { %2447 = vadd.xlane.f32.xlu2 %v2446_v46  ;;  %8220 = vpow2.f32 %v2434_v51 }
 0x8d2   : > { %v2418_v40 = vpop.xlane.xlu2 %2417  ;;  %8222 = vpow2.f32 %v2436_v56 }
 0x8d3   : > { %v2426_v18 = vsub.f32 %v9389_v49, %v2418_v40  ;;  %v2427_v33 = vsub.f32 %v9391_v14, %v2418_v40  ;;  %v2139_v19 = vpop.f32.mrf.mxu0 }
 0x8d4   : > { %v2268_v4 = vpop.f32.mrf.mxu1 }
 0x8d5   : > { %v2438_v47 = vmul.f32 1.442695, %v2426_v18  ;;  %v2440_v32 = vmul.f32 1.442695, %v2427_v33 }
 0x8d7   : > { %8224 = vpow2.f32 %v2438_v47  ;;  %v9572_v17 = vpop.eup %8220 }
 0x8d8   : > { %8226 = vpow2.f32 %v2440_v32  ;;  %v9574_v34 = vpop.eup %8222 }
 0x8d9   : > { %v2449_v36 = vadd.f32 %v9574_v34, %v9572_v17 }
 0x8da   : > { %v2421_v8 = vpop.xlane.xlu2 %2420 }
 0x8db   : > { %v2428_v56 = vsub.f32 %v9424_v15, %v2421_v8  ;;  %v2429_v49 = vsub.f32 %v9426_v16, %v2421_v8  ;;  %v2142_v55 = vpop.f32.mrf.mxu0  ;;  %2450 = vadd.xlane.f32.xlu0 %v2449_v36 }
 0x8dc   : > { %v2271_v14 = vpop.f32.mrf.mxu1 }
 0x8dd   : > { %v9580_v46 = vpop.eup %8224  ;;  %v2442_v51 = vmul.f32 1.442695, %v2428_v56  ;;  %v2444_v47 = vmul.f32 1.442695, %v2429_v49 }
 0x8de   : > { %v9582_v40 = vpop.eup %8226 }
 0x8df   : > { %8228 = vpow2.f32 %v2442_v51  ;;  %v2452_v32 = vadd.f32 %v9582_v40, %v9580_v46 }
 0x8e0   : > { %8230 = vpow2.f32 %v2444_v47 }
 0x8e1   : > { %2453 = vadd.xlane.f32.xlu2 %v2452_v32 }
 0x8e2   : > { %v2740_v18 = vpop.xlane.xlu1 %2739 }
 0x8e3   : > { %v2750_v15 = vsub.f32 %v9472_v23, %v2740_v18  ;;  %v2751_v16 = vsub.f32 %v9474_v35, %v2740_v18  ;;  %v2144_v33 = vpop.f32.mrf.mxu0  ;;  %v2530_v23 = vpack.c.bf16 %v2139_v19, %v2137_v24  ;;  %v2531_v35 = vpack.c.bf16 %v2268_v4, %v2266_v20 }
 0x8e4   : > { %v2273_v8 = vpop.f32.mrf.mxu1  ;;  %v2532_v59 = vpack.c.bf16 %v2144_v33, %v2142_v55  ;;  %v10928_v24 = vpack.c.bf16 %v9207_v7, %v9205_v54  ;;  %v2747_v54 = vmax.f32 %v9492_v1, %v9494_v50 }
 0x8e5   : > { %v2758_v36 = vmul.f32 1.442695, %v2750_v15  ;;  %v2760_v22 = vmul.f32 1.442695, %v2751_v16  ;;  %v2533_v56 = vpack.c.bf16 %v2273_v8, %v2271_v14  ;;  %v9588_v49 = vpop.eup %8228  ;;  %v10929_v14 = vpack.c.bf16 %v9219_v37, %v9217_v38 }
 0x8e6   : > { %v9590_v5 = vpop.eup %8230  ;;  %2540 = vmatpush.bf16.xpose.msrb.mxu2 %v2532_v59  ;;  %v10927_v59 = vpack.c.bf16 %v9236_v39, %v9234_v30  ;;  %v10930_v30 = vpack.c.bf16 %v9243_v13, %v9239_v29  ;;  %v3066_v37 = vmax.f32 %v9524_v0, %v9526_v43  ;;  %v3072_v29 = vmax.f32 %v9536_v61, %v9538_v52 }
 0x8e7   : > { %8232 = vpow2.f32 %v2758_v36  ;;  %2559 = vmatpush.bf16.xpose.msrb.mxu3 %v2533_v56  ;;  %v2455_v51 = vadd.f32 %v9590_v5, %v9588_v49 }
 0x8e8   : > { %8234 = vpow2.f32 %v2760_v22  ;;  %v2741_v22 = vmax.f32 %v9482_v28, %v9484_v3 }
 0x8e9   : > { %2456 = vadd.xlane.f32.xlu2 %v2455_v51 }
 0x8ed   : > { %v9594_v47 = vpop.eup %8232 }
 0x8ee   : > { %v9596_v32 = vpop.eup %8234  ;;  %2541 = vmatpush.bf16.xpose.msrb.mxu2 %v2530_v23 }
 0x8ef   : > { %2560 = vmatpush.bf16.xpose.msrb.mxu3 %v2531_v35  ;;  %v2774_v55 = vadd.f32 %v9596_v32, %v9594_v47 }
 0x8f1   : > { %2775 = vadd.xlane.f32.xlu1 %v2774_v55  ;;  %2742 = vmax.xlane.f32.xlu2 %v2741_v22 }
 0x8f2   : > { %v2746_v4 = vpop.xlane.xlu1 %2745 }
 0x8f3   : > { %v2754_v20 = vsub.f32 %v9486_v6, %v2746_v4  ;;  %v2755_v19 = vsub.f32 %v9488_v25, %v2746_v4 }
 0x8f5   : > { %v2766_v39 = vmul.f32 1.442695, %v2754_v20  ;;  %v2768_v18 = vmul.f32 1.442695, %v2755_v19 }
 0x8f6   : > { %2602 = vmatpush.bf16.msra.mxu2 %v10928_v24 }
 0x8f7   : > { %2621 = vmatpush.bf16.msra.mxu3 %v10927_v59  ;;  %8236 = vpow2.f32 %v2766_v39 }
 0x8f8   : > { %8238 = vpow2.f32 %v2768_v18 }
 0x8f9   : > { %2748 = vmax.xlane.f32.xlu2 %v2747_v54 }
 0x8fa   : > { %2603 = vmatpush.bf16.msra.mxu2 %v10929_v14 }
 0x8fb   : > { %2622 = vmatpush.bf16.msra.mxu3 %v10930_v30 }
 0x8fd   : > { %v9618_v7 = vpop.eup %8236 }
 0x8fe   : > { %v9620_v6 = vpop.eup %8238 }
 0x8ff   : > { %v2780_v38 = vadd.f32 %v9620_v6, %v9618_v7 }
 0x901   : > { %2781 = vadd.xlane.f32.xlu1 %v2780_v38 }
 0x909   : > { %3067 = vmax.xlane.f32.xlu1 %v3066_v37 }
 0x911   : > { %3073 = vmax.xlane.f32.xlu1 %v3072_v29 }
 0x944   : > { %v2448_v13 = vpop.xlane.xlu2 %2447 }
 0x945   : > { %8240 = vrcp.f32 %v2448_v13  ;;  %v2469_v23 = vand.u32 2147483648, %v2448_v13  ;;  %vm2463_vm3 = vweird.f32 %v2448_v13  ;;  %v2467_v55 = vand.u32 2147483647, %v2448_v13 }
 0x947   : > { %v2470_v19 = vor.u32 1.1754944e-38, %v2469_v23  ;;  %vm2468_vm15 = vcmp.eq.f32.partialorder %v2467_v55, 8.507059e+37 }
 0x94b   : > { %v8241_v25 = vpop.eup %8240 }
 0x94c   : > { %v2459_v15 = vmul.f32 %v8241_v25, %v2448_v13  ;;  %vm2464_vm14 = vweird.f32 %v8241_v25 }
 0x94d   : > { %vm9631_vm12 = vmor %vm2463_vm3, %vm2464_vm14 }
 0x94e   : > { %v2460_v16 = vsub.f32 1.0, %v2459_v15  ;;  %v2451_v33 = vpop.xlane.xlu0 %2450 }
 0x94f   : > { %8242 = vrcp.f32 %v2451_v33  ;;  %v2485_v24 = vand.u32 2147483648, %v2451_v33  ;;  %v2483_v30 = vand.u32 2147483647, %v2451_v33  ;;  %vm2479_vm10 = vweird.f32 %v2451_v33 }
 0x950   : > { %v2461_v8 = vmul.f32 %v8241_v25, %v2460_v16 }
 0x951   : > { %v2486_v37 = vor.u32 1.1754944e-38, %v2485_v24  ;;  %vm2484_vm5 = vcmp.eq.f32.partialorder %v2483_v30, 8.507059e+37 }
 0x952   : > { %v2462_v51 = vadd.f32 %v8241_v25, %v2461_v8 }
 0x954   : > { %v9628_v36 = vpop.xlane.xlu2 %2453  ;;  %v2466_v4 = vsel %vm9631_vm12, %v8241_v25, %v2462_v51 }
 0x955   : > { %8244 = vrcp.f32 %v9628_v36  ;;  %v8243_v56 = vpop.eup %8242  ;;  %v2471_v38 = vsel %vm2468_vm15, %v2470_v19, %v2466_v4  ;;  %vm2495_vm3 = vweird.f32 %v9628_v36 }
 0x956   : > { %v2475_v35 = vmul.f32 %v8243_v56, %v2451_v33  ;;  %vm2480_vm9 = vweird.f32 %v8243_v56  ;;  %v2472_v25 = vmul.f32 %v9562_v9, %v2471_v38  ;;  %v2473_v8 = vmul.f32 %v9564_v48, %v2471_v38 }
 0x957   : > { %vm2481_vm11 = vmor %vm2479_vm10, %vm2480_vm9  ;;  %v2501_v48 = vand.u32 2147483648, %v9628_v36 }
 0x958   : > { %v2476_v22 = vsub.f32 1.0, %v2475_v35 }
 0x95a   : > { %v2477_v14 = vmul.f32 %v8243_v56, %v2476_v22 }
 0x95b   : > { %v8245_v20 = vpop.eup %8244 }
 0x95c   : > { %v2491_v39 = vmul.f32 %v8245_v20, %v9628_v36  ;;  %v2457_v18 = vpop.xlane.xlu2 %2456  ;;  %v2478_v54 = vadd.f32 %v8243_v56, %v2477_v14  ;;  %vm2496_vm14 = vweird.f32 %v8245_v20 }
 0x95d   : > { %8246 = vrcp.f32 %v2457_v18  ;;  %v2517_v14 = vand.u32 2147483648, %v2457_v18  ;;  %vm9647_vm12 = vmor %vm2495_vm3, %vm2496_vm14  ;;  %vm2511_vm15 = vweird.f32 %v2457_v18  ;;  %vm10935_vm14 = vcmask 64512  }
 0x95e   : > { %v2492_v29 = vsub.f32 1.0, %v2491_v39  ;;  %v2482_v13 = vsel %vm2481_vm11, %v8243_v56, %v2478_v54  ;;  %v2502_v54 = vor.u32 1.1754944e-38, %v2501_v48  ;;  %v3069_v48 = vmax.f32 %v9532_v62, %v9534_v26  ;;  %vm10936_vm3 = vmmov %vm10935_vm14 }
 0x95f   : > { %v2487_v15 = vsel %vm2484_vm5, %v2486_v37, %v2482_v13 }
 0x960   : > { %v2488_v16 = vmul.f32 %v9572_v17, %v2487_v15  ;;  %v2489_v51 = vmul.f32 %v9574_v34, %v2487_v15  ;;  %v2493_v23 = vmul.f32 %v8245_v20, %v2492_v29  ;;  %v2499_v17 = vand.u32 2147483647, %v9628_v36 }
 0x961   : > { %v2518_v36 = vor.u32 1.1754944e-38, %v2517_v14 }
 0x962   : > { %v2526_v55 = vpack.c.bf16 %v2488_v16, %v2472_v25  ;;  %v2527_v33 = vpack.c.bf16 %v2489_v51, %v2473_v8  ;;  %v2494_v9 = vadd.f32 %v8245_v20, %v2493_v23  ;;  %vm2500_vm10 = vcmp.eq.f32.partialorder %v2499_v17, 8.507059e+37 }
 0x963   : > { %v8247_v35 = vpop.eup %8246 }
 0x964   : > { %v2507_v59 = vmul.f32 %v8247_v35, %v2457_v18  ;;  %v2743_v22 = vpop.xlane.xlu2 %2742  ;;  %2542 = vmatmul.bf16.vlgmr.msrb.gmra.mxu2 %v2526_v55  ;;  %2561 = vmatmul.bf16.vlgmr.msrb.gmra.mxu3 %v2527_v33  ;;  %vm2512_vm9 = vweird.f32 %v8247_v35  ;;  %v9653_v37 = vpop.xlane.xlu1 %2775 }
 0x965   : > { %v2752_v56 = vsub.f32 %v9482_v28, %v2743_v22  ;;  %v2753_v24 = vsub.f32 %v9484_v3, %v2743_v22  ;;  %v2515_v28 = vand.u32 2147483647, %v2457_v18  ;;  %v2498_v3 = vsel %vm9647_vm12, %v8245_v20, %v2494_v9  ;;  %vm2513_vm11 = vmor %vm2511_vm15, %vm2512_vm9 }
 0x966   : > { %v2508_v4 = vsub.f32 1.0, %v2507_v59  ;;  %v2503_v13 = vsel %vm2500_vm10, %v2502_v54, %v2498_v3  ;;  %v7862_v3 = vld [vmem:[%s10613_s5 + $0x98] sm:$0xff]  ;;  %vm10937_vm12 = vmmov %vm10936_vm3 }
 0x967   : > { %v2762_v34 = vmul.f32 1.442695, %v2752_v56  ;;  %v2764_v19 = vmul.f32 1.442695, %v2753_v24  ;;  %vm2516_vm5 = vcmp.eq.f32.partialorder %v2515_v28, 8.507059e+37  ;;  %v2505_v33 = vmul.f32 %v9582_v40, %v2503_v13  ;;  %vm10938_vm9 = vmmov %vm10936_vm3 }
 0x968   : > { %v2509_v39 = vmul.f32 %v8247_v35, %v2508_v4  ;;  %v2504_v59 = vmul.f32 %v9580_v46, %v2503_v13 }
 0x969   : > { %8248 = vpow2.f32 %v2762_v34 }
 0x96a   : > { %8250 = vpow2.f32 %v2764_v19  ;;  %v2510_v38 = vadd.f32 %v8247_v35, %v2509_v39 }
 0x96c   : > { %v2749_v29 = vpop.xlane.xlu2 %2748  ;;  %v2514_v25 = vsel %vm2513_vm11, %v8247_v35, %v2510_v38 }
 0x96d   : > { %v2756_v15 = vsub.f32 %v9492_v1, %v2749_v29  ;;  %v2757_v16 = vsub.f32 %v9494_v50, %v2749_v29  ;;  %v2519_v8 = vsel %vm2516_vm5, %v2518_v36, %v2514_v25 }
 0x96e   : > { %v2521_v20 = vmul.f32 %v9590_v5, %v2519_v8  ;;  %v2520_v51 = vmul.f32 %v9588_v49, %v2519_v8 }
 0x96f   : > { %v9659_v23 = vpop.eup %8248  ;;  %v2770_v18 = vmul.f32 1.442695, %v2756_v15  ;;  %v2772_v55 = vmul.f32 1.442695, %v2757_v16 }
 0x970   : > { %v9663_v22 = vpop.eup %8250  ;;  %v2529_v35 = vpack.c.bf16 %v2521_v20, %v2505_v33  ;;  %v2528_v50 = vpack.c.bf16 %v2520_v51, %v2504_v59 }
 0x971   : > { %8252 = vpow2.f32 %v2770_v18  ;;  %v2777_v1 = vadd.f32 %v9663_v22, %v9659_v23 }
 0x972   : > { %8254 = vpow2.f32 %v2772_v55 }
 0x973   : > { %2778 = vadd.xlane.f32.xlu2 %v2777_v1 }
 0x974   : > { %v9667_v5 = vpop.xlane.xlu1 %2781  ;;  %2566 = vmatmul.bf16.gmra.mxu3 %v2529_v35  ;;  %2547 = vmatmul.bf16.gmra.mxu2 %v2528_v50 }
 0x977   : > { %v9669_v49 = vpop.eup %8252 }
 0x978   : > { %v9671_v56 = vpop.eup %8254 }
 0x979   : > { %v2783_v46 = vadd.f32 %v9671_v56, %v9669_v49 }
 0x97b   : > { %2784 = vadd.xlane.f32.xlu2 %v2783_v46 }
 0x97c   : > { %v3068_v40 = vpop.xlane.xlu1 %3067 }
 0x97d   : > { %v3078_v24 = vsub.f32 %v9524_v0, %v3068_v40  ;;  %v3079_v9 = vsub.f32 %v9526_v43, %v3068_v40  ;;  %v3075_v0 = vmax.f32 %v9540_v60, %v9542_v53  ;;  %v7861_v43 = vld [vmem:[%s10613_s5 + $0x90] sm:$0xff] }
 0x97e   : > { %7089 = vmatmul.msk.bf16.gmra.mxu0 %vm10935_vm14, %v7861_v43  ;;  %7113 = vmatmul.msk.bf16.gmra.mxu1 %vm10936_vm3, %v7861_v43 }
 0x97f   : > { %v3086_v4 = vmul.f32 1.442695, %v3078_v24  ;;  %v3088_v17 = vmul.f32 1.442695, %v3079_v9 }
 0x981   : > { %8256 = vpow2.f32 %v3086_v4 }
 0x982   : > { %8258 = vpow2.f32 %v3088_v17 }
 0x983   : > { %3070 = vmax.xlane.f32.xlu2 %v3069_v48 }
 0x984   : > { %v3074_v15 = vpop.xlane.xlu1 %3073 }
 0x985   : > { %v3082_v55 = vsub.f32 %v9536_v61, %v3074_v15  ;;  %v3083_v35 = vsub.f32 %v9538_v52, %v3074_v15 }
 0x987   : > { %v9679_v34 = vpop.eup %8256  ;;  %v3094_v1 = vmul.f32 1.442695, %v3082_v55  ;;  %v3096_v50 = vmul.f32 1.442695, %v3083_v35 }
 0x988   : > { %v9681_v19 = vpop.eup %8258 }
 0x989   : > { %v3102_v14 = vadd.f32 %v9681_v19, %v9679_v34 }
 0x98b   : > { %3103 = vadd.xlane.f32.xlu1 %v3102_v14  ;;  %3076 = vmax.xlane.f32.xlu2 %v3075_v0 }
 0x98e   : > { %7090 = vmatmul.msk.bf16.gmra.mxu0 %vm10937_vm12, %v7862_v3  ;;  %7114 = vmatmul.msk.bf16.gmra.mxu1 %vm10938_vm9, %v7862_v3 }
 0x9e6   : > { %v9692_v30 = vpop.xlane.xlu2 %2778 }
 0x9e7   : > { %v2562_v39 = vpop.f32.mrf.mxu3  ;;  %v2543_v28 = vpop.f32.mrf.mxu2 }
 0x9e8   : > { %v2563_v29 = vadd.f32 %v2562_v39, %v2543_v28 }
 0x9ee   : > { %v9697_v54 = vpop.xlane.xlu2 %2784 }
 0x9ef   : > { %v2564_v38 = vpop.f32.mrf.mxu3  ;;  %v2545_v36 = vpop.f32.mrf.mxu2 }
 0x9f0   : > { %v2565_v13 = vadd.f32 %v2564_v38, %v2545_v36  ;;  %v3394_v38 = vmax.f32 %v9544_v41, %v9546_v42  ;;  %v3400_v36 = vmax.f32 %v9552_v57, %v9554_v58 }
 0x9f2   : > { %v2572_v25 = vpack.c.bf16 %v2565_v13, %v2563_v29  ;;  %v3403_v29 = vmax.f32 %v9558_v21, %v9560_v44 }
 0x9f4   : > { %2574 = vxpose.xlu0.c.b16.start [1/2] (short) (narrow) %v2572_v25, 32 }
 0x9f6   : > { %v3071_v16 = vpop.xlane.xlu2 %3070 }
 0x9f7   : > { %v3080_v8 = vsub.f32 %v9532_v62, %v3071_v16  ;;  %v3081_v20 = vsub.f32 %v9534_v26, %v3071_v16  ;;  %v2567_v51 = vpop.f32.mrf.mxu3  ;;  %v2548_v18 = vpop.f32.mrf.mxu2 }
 0x9f8   : > { %v2568_v62 = vadd.f32 %v2567_v51, %v2548_v18  ;;  %v3397_v51 = vmax.f32 %v9548_v63, %v9550_v45 }
 0x9f9   : > { %v3090_v33 = vmul.f32 1.442695, %v3080_v8  ;;  %v3092_v59 = vmul.f32 1.442695, %v3081_v20 }
 0x9fb   : > { %8260 = vpow2.f32 %v3090_v33  ;;  %v2147_v13 = vpop.f32.mrf.mxu0  ;;  %v2276_v25 = vpop.f32.mrf.mxu1 }
 0x9fc   : > { %8262 = vpow2.f32 %v3092_v59 }
 0x9fd   : > { %8264 = vpow2.f32 %v3094_v1 }
 0x9fe   : > { %v3077_v46 = vpop.xlane.xlu2 %3076  ;;  %8266 = vpow2.f32 %v3096_v50 }
 0x9ff   : > { %v2569_v40 = vpop.f32.mrf.mxu3  ;;  %v2550_v24 = vpop.f32.mrf.mxu2  ;;  %v3084_v26 = vsub.f32 %v9540_v60, %v3077_v46  ;;  %v3085_v61 = vsub.f32 %v9542_v53, %v3077_v46 }
 0xa00   : > { %v2570_v4 = vadd.f32 %v2569_v40, %v2550_v24 }
 0xa01   : > { %v9705_v9 = vpop.eup %8260  ;;  %v3098_v14 = vmul.f32 1.442695, %v3084_v26  ;;  %v3100_v0 = vmul.f32 1.442695, %v3085_v61 }
 0xa02   : > { %v9708_v17 = vpop.eup %8262  ;;  %v2573_v52 = vpack.c.bf16 %v2570_v4, %v2568_v62 }
 0xa03   : > { %v3105_v48 = vadd.f32 %v9708_v17, %v9705_v9  ;;  %v9713_v43 = vpop.eup %8264  ;;  %8268 = vpow2.f32 %v3098_v14  ;;  %v2149_v15 = vpop.f32.mrf.mxu0 }
 0xa04   : > { %2575 = vxpose.xlu0.c.b16.end [2/2] (short) (narrow) %v2573_v52, 32  ;;  %v9715_v39 = vpop.eup %8266  ;;  %8270 = vpow2.f32 %v3100_v0  ;;  %v2278_v16 = vpop.f32.mrf.mxu1  ;;  %v2858_v1 = vpack.c.bf16 %v2149_v15, %v2147_v13 }
 0xa05   : > { %3106 = vadd.xlane.f32.xlu2 %v3105_v48  ;;  %v3108_v60 = vadd.f32 %v9715_v39, %v9713_v43  ;;  %v2859_v50 = vpack.c.bf16 %v2278_v16, %v2276_v25 }
 0xa09   : > { %v9719_v28 = vpop.eup %8268 }
 0xa0a   : > { %v9721_v53 = vpop.eup %8270 }
 0xa0b   : > { %v3111_v3 = vadd.f32 %v9721_v53, %v9719_v28  ;;  %v2152_v8 = vpop.f32.mrf.mxu0 }
 0xa0c   : > { %v2281_v20 = vpop.f32.mrf.mxu1 }
 0xa0d   : > { %3109 = vadd.xlane.f32.xlu2 %v3108_v60 }
 0xa13   : > { %v2154_v18 = vpop.f32.mrf.mxu0 }
 0xa14   : > { %v2283_v55 = vpop.f32.mrf.mxu1  ;;  %v2860_v33 = vpack.c.bf16 %v2154_v18, %v2152_v8 }
 0xa15   : > { %3112 = vadd.xlane.f32.xlu2 %v3111_v3  ;;  %v2861_v59 = vpack.c.bf16 %v2283_v55, %v2281_v20 }
 0xa16   : > { %2868 = vmatpush.bf16.xpose.msrb.mxu2 %v2860_v33 }
 0xa17   : > { %2887 = vmatpush.bf16.xpose.msrb.mxu3 %v2861_v59 }
 0xa1d   : > { %3395 = vmax.xlane.f32.xlu2 %v3394_v38 }
 0xa1e   : > { %2869 = vmatpush.bf16.xpose.msrb.mxu2 %v2858_v1 }
 0xa1f   : > { %2888 = vmatpush.bf16.xpose.msrb.mxu3 %v2859_v50 }
 0xa25   : > { %3401 = vmax.xlane.f32.xlu2 %v3400_v36 }
 0xa2d   : > { %3404 = vmax.xlane.f32.xlu2 %v3403_v29 }
 0xa75   : > { %3398 = vmax.xlane.f32.xlu0 %v3397_v51 }
 0xa78   : > { %v9733_v35 = vpop.xlane.xlu2 %3106 }
 0xa80   : > { %v3110_v46 = vpop.xlane.xlu2 %3109 }
 0xa81   : > { %8272 = vrcp.f32 %v3110_v46  ;;  %v3157_v0 = vand.u32 2147483648, %v3110_v46  ;;  %vm3151_vm10 = vweird.f32 %v3110_v46  ;;  %v3155_v38 = vand.u32 2147483647, %v3110_v46 }
 0xa83   : > { %v3158_v51 = vor.u32 1.1754944e-38, %v3157_v0  ;;  %vm3156_vm14 = vcmp.eq.f32.partialorder %v3155_v38, 8.507059e+37  ;;  %v10947_v0 = vld [vmem:[#allocation26_spill] sm:$0xff] }
 0xa87   : > { %v8273_v40 = vpop.eup %8272 }
 0xa88   : > { %v3147_v24 = vmul.f32 %v8273_v40, %v3110_v46  ;;  %v3113_v62 = vpop.xlane.xlu2 %3112  ;;  %vm3152_vm15 = vweird.f32 %v8273_v40 }
 0xa89   : > { %8274 = vrcp.f32 %v3113_v62  ;;  %vm9737_vm11 = vmor %vm3151_vm10, %vm3152_vm15  ;;  %v3173_v13 = vand.u32 2147483648, %v3113_v62  ;;  %v3171_v8 = vand.u32 2147483647, %v3113_v62  ;;  %vm3167_vm3 = vweird.f32 %v3113_v62 }
 0xa8a   : > { %v3148_v26 = vsub.f32 1.0, %v3147_v24  ;;  %vm10941_vm15 = vcmask 261120  }
 0xa8b   : > { %vm3172_vm9 = vcmp.eq.f32.partialorder %v3171_v8, 8.507059e+37  ;;  %vm10942_vm10 = vmmov %vm10941_vm15 }
 0xa8c   : > { %v3149_v4 = vmul.f32 %v8273_v40, %v3148_v26  ;;  %v10943_v26 = vpack.c.bf16 %v9321_v2, %v9319_v31 }
 0xa8e   : > { %v3150_v52 = vadd.f32 %v8273_v40, %v3149_v4  ;;  %v10944_v4 = vpack.c.bf16 %v9350_v11, %v9348_v12 }
 0xa8f   : > { %v8275_v61 = vpop.eup %8274 }
 0xa90   : > { %v3163_v48 = vmul.f32 %v8275_v61, %v3113_v62  ;;  %v3396_v14 = vpop.xlane.xlu2 %3395  ;;  %vm3168_vm5 = vweird.f32 %v8275_v61  ;;  %v3154_v20 = vsel %vm9737_vm11, %v8273_v40, %v3150_v52 }
 0xa91   : > { %v3406_v60 = vsub.f32 %v9544_v41, %v3396_v14  ;;  %v3407_v3 = vsub.f32 %v9546_v42, %v3396_v14  ;;  %vm3169_vm12 = vmor %vm3167_vm3, %vm3168_vm5  ;;  %v3174_v42 = vor.u32 1.1754944e-38, %v3173_v13  ;;  %v3159_v18 = vsel %vm3156_vm14, %v3158_v51, %v3154_v20  ;;  %v10946_v14 = vld [vmem:[#allocation27_spill] sm:$0xff] }
 0xa92   : > { %v3164_v36 = vsub.f32 1.0, %v3163_v48  ;;  %v9744_v59 = vmul.f32 %v9713_v43, %v3159_v18  ;;  %v9750_v50 = vmul.f32 %v9715_v39, %v3159_v18  ;;  %v10945_v48 = vpack.c.bf16 %v9333_v27, %v9331_v10  ;;  %vm10949_vm5 = vmmov %vm10942_vm10 }
 0xa93   : > { %v3414_v25 = vmul.f32 1.442695, %v3406_v60  ;;  %v3416_v15 = vmul.f32 1.442695, %v3407_v3  ;;  %v10948_v60 = vpack.c.bf16 %v10946_v14, %v10947_v0  ;;  %vm10950_vm14 = vmmov %vm10949_vm5  ;;  %v2813_v27 = vand.u32 2147483648, %v9692_v30 }
 0xa94   : > { %v3165_v16 = vmul.f32 %v8275_v61, %v3164_v36  ;;  %v2811_v13 = vand.u32 2147483647, %v9692_v30  ;;  %v2845_v0 = vand.u32 2147483648, %v9697_v54 }
 0xa95   : > { %8276 = vpow2.f32 %v3414_v25  ;;  %v2814_v51 = vor.u32 1.1754944e-38, %v2813_v27 }
 0xa96   : > { %v3166_v41 = vadd.f32 %v8275_v61, %v3165_v16  ;;  %8278 = vpow2.f32 %v3416_v15  ;;  %v2797_v15 = vand.u32 2147483648, %v9653_v37  ;;  %v2795_v16 = vand.u32 2147483647, %v9653_v37 }
 0xa97   : > { %8280 = vrcp.f32 %v9692_v30 }
 0xa98   : > { %v3170_v55 = vsel %vm3169_vm12, %v8275_v61, %v3166_v41  ;;  %8282 = vrcp.f32 %v9653_v37  ;;  %vm2807_vm12 = vweird.f32 %v9692_v30  ;;  %v2798_v18 = vor.u32 1.1754944e-38, %v2797_v15 }
 0xa99   : > { %v3175_v33 = vsel %vm3172_vm9, %v3174_v42, %v3170_v55  ;;  %8284 = vrcp.f32 %v9697_v54 }
 0xa9a   : > { %v9747_v1 = vmul.f32 %v9719_v28, %v3175_v33  ;;  %v9753_v46 = vmul.f32 %v9721_v53, %v3175_v33  ;;  %8286 = vrcp.f32 %v9667_v5 }
 0xa9b   : > { %v9755_v40 = vpop.eup %8276 }
 0xa9c   : > { %v9757_v24 = vpop.eup %8278  ;;  %v3184_v62 = vpack.c.bf16 %v9747_v1, %v9744_v59  ;;  %v3185_v43 = vpack.c.bf16 %v9753_v46, %v9750_v50 }
 0xa9d   : > { %v3430_v28 = vadd.f32 %v9757_v24, %v9755_v40  ;;  %v8281_v53 = vpop.eup %8280 }
 0xa9e   : > { %v8283_v61 = vpop.eup %8282  ;;  %v2803_v52 = vmul.f32 %v8281_v53, %v9692_v30  ;;  %vm2808_vm11 = vweird.f32 %v8281_v53 }
 0xa9f   : > { %3431 = vadd.xlane.f32.xlu2 %v3430_v28  ;;  %v2787_v3 = vmul.f32 %v8283_v61, %v9653_v37  ;;  %v8285_v10 = vpop.eup %8284  ;;  %vm2792_vm3 = vweird.f32 %v8283_v61  ;;  %vm2809_vm9 = vmor %vm2807_vm12, %vm2808_vm11  ;;  %vm2839_vm12 = vweird.f32 %v9697_v54 }
 0xaa0   : > { %v2582_v39 = vpop.trf.xlu0  ;;  %v2804_v38 = vsub.f32 1.0, %v2803_v52  ;;  %v8287_v25 = vpop.eup %8286  ;;  %v2835_v20 = vmul.f32 %v8285_v10, %v9697_v54  ;;  %vm2840_vm11 = vweird.f32 %v8285_v10 }
 0xaa1   : > { %7119 = vmatmul.msk.bf16.vlgmr.msra.gmra.mxu2 %vm10941_vm15, %v2582_v39  ;;  %7121 = vmatmul.msk.bf16.vlgmr.msra.gmra.mxu3 %vm10942_vm10, %v2582_v39  ;;  %v2788_v31 = vsub.f32 1.0, %v2787_v3  ;;  %vm2791_vm15 = vweird.f32 %v9653_v37  ;;  %v2819_v42 = vmul.f32 %v8287_v25, %v9667_v5  ;;  %v2846_v3 = vor.u32 1.1754944e-38, %v2845_v0 }
 0xaa2   : > { %2930 = vmatpush.bf16.msra.mxu2 %v10943_v26  ;;  %2949 = vmatpush.bf16.msra.mxu3 %v10944_v4  ;;  %v2805_v2 = vmul.f32 %v8281_v53, %v2804_v38  ;;  %vm2793_vm10 = vmor %vm2791_vm15, %vm2792_vm3  ;;  %v2836_v30 = vsub.f32 1.0, %v2835_v20  ;;  %vm2824_vm3 = vweird.f32 %v8287_v25  ;;  %vm2823_vm15 = vweird.f32 %v9667_v5 }
 0xaa3   : > { %v2789_v12 = vmul.f32 %v8283_v61, %v2788_v31  ;;  %v2820_v28 = vsub.f32 1.0, %v2819_v42 }
 0xaa4   : > { %v2806_v36 = vadd.f32 %v8281_v53, %v2805_v2  ;;  %v2837_v4 = vmul.f32 %v8285_v10, %v2836_v30 }
 0xaa5   : > { %v2790_v29 = vadd.f32 %v8283_v61, %v2789_v12  ;;  %v2821_v52 = vmul.f32 %v8287_v25, %v2820_v28 }
 0xaa6   : > { %2931 = vmatpush.bf16.msra.mxu2 %v10945_v48  ;;  %2950 = vmatpush.bf16.msra.mxu3 %v10948_v60  ;;  %v2810_v8 = vsel %vm2809_vm9, %v8281_v53, %v2806_v36  ;;  %v2838_v14 = vadd.f32 %v8285_v10, %v2837_v4  ;;  %vm2841_vm9 = vmor %vm2839_vm12, %vm2840_vm11  ;;  %vm10951_vm11 = vcmask 64512  }
 0xaa7   : > { %v2794_v41 = vsel %vm2793_vm10, %v8283_v61, %v2790_v29  ;;  %v2822_v60 = vadd.f32 %v8287_v25, %v2821_v52  ;;  %vm2825_vm10 = vmor %vm2823_vm15, %vm2824_vm3  ;;  %vm10955_vm15 = vcmask 261120  }
 0xaa8   : > { %vm10952_vm3 = vmmov %vm10951_vm11 }
 0xaa9   : > { %v2826_v38 = vsel %vm2825_vm10, %v8287_v25, %v2822_v60  ;;  %vm10953_vm12 = vmmov %vm10952_vm3 }
 0xaaa   : > { %vm10956_vm10 = vmmov %vm10955_vm15 }
 0xab0   : > { %v2583_v11 = vpop.trf.xlu0 }
 0xab1   : > { %7120 = vmatmul.msk.bf16.gmra.mxu2 %vm10949_vm5, %v2583_v11  ;;  %7122 = vmatmul.msk.bf16.gmra.mxu3 %vm10950_vm14, %v2583_v11  ;;  %vm2812_vm5 = vcmp.eq.f32.partialorder %v2811_v13, 8.507059e+37  ;;  %vm2796_vm14 = vcmp.eq.f32.partialorder %v2795_v16, 8.507059e+37 }
 0xab2   : > { %v2815_v55 = vsel %vm2812_vm5, %v2814_v51, %v2810_v8  ;;  %v2799_v33 = vsel %vm2796_vm14, %v2798_v18, %v2794_v41  ;;  %v7863_v41 = vld [vmem:[%s10613_s5 + $0xa0] sm:$0xff] }
 0xab3   : > { %v2816_v39 = vmul.f32 %v9659_v23, %v2815_v55  ;;  %v2817_v26 = vmul.f32 %v9663_v22, %v2815_v55  ;;  %v2800_v37 = vmul.f32 %v9594_v47, %v2799_v33  ;;  %v2801_v53 = vmul.f32 %v9596_v32, %v2799_v33  ;;  %7091 = vmatmul.msk.bf16.gmra.mxu0 %vm10951_vm11, %v7863_v41  ;;  %v7864_v55 = vld [vmem:[%s10613_s5 + $0xa8] sm:$0xff]  ;;  %vm10970_vm11 = vmmov %vm10956_vm10 }
 0xab4   : > { %v2843_v23 = vand.u32 2147483647, %v9697_v54  ;;  %v2829_v47 = vand.u32 2147483648, %v9667_v5  ;;  %v2827_v32 = vand.u32 2147483647, %v9667_v5  ;;  %v2842_v22 = vsel %vm2841_vm9, %v8285_v10, %v2838_v14  ;;  %7115 = vmatmul.msk.bf16.gmra.mxu1 %vm10952_vm3, %v7863_v41  ;;  %vm10954_vm9 = vmmov %vm10952_vm3  ;;  %v10957_v41 = vld [vmem:[#allocation29_spill] sm:$0xff] }
 0xab5   : > { %v2854_v61 = vpack.c.bf16 %v2816_v39, %v2800_v37  ;;  %v2855_v48 = vpack.c.bf16 %v2817_v26, %v2801_v53 }
 0xab6   : > { %vm2844_vm5 = vcmp.eq.f32.partialorder %v2843_v23, 8.507059e+37  ;;  %v2830_v31 = vor.u32 1.1754944e-38, %v2829_v47  ;;  %vm2828_vm14 = vcmp.eq.f32.partialorder %v2827_v32, 8.507059e+37  ;;  %v3402_v23 = vpop.xlane.xlu2 %3401 }
 0xab7   : > { %v2847_v2 = vsel %vm2844_vm5, %v2846_v3, %v2842_v22  ;;  %v3410_v47 = vsub.f32 %v9552_v57, %v3402_v23  ;;  %v3411_v32 = vsub.f32 %v9554_v58, %v3402_v23 }
 0xab8   : > { %v2831_v12 = vsel %vm2828_vm14, %v2830_v31, %v2826_v38  ;;  %v2848_v11 = vmul.f32 %v9669_v49, %v2847_v2  ;;  %v2849_v54 = vmul.f32 %v9671_v56, %v2847_v2  ;;  %vm10969_vm14 = vmmov %vm10956_vm10 }
 0xab9   : > { %v2832_v36 = vmul.f32 %v9618_v7, %v2831_v12  ;;  %v2833_v27 = vmul.f32 %v9620_v6, %v2831_v12  ;;  %v3422_v22 = vmul.f32 1.442695, %v3410_v47  ;;  %v3424_v3 = vmul.f32 1.442695, %v3411_v32 }
 0xabb   : > { %v2856_v29 = vpack.c.bf16 %v2848_v11, %v2832_v36  ;;  %v2857_v13 = vpack.c.bf16 %v2849_v54, %v2833_v27 }
 0xac1   : > { %2870 = vmatmul.bf16.vlgmr.msrb.gmra.mxu2 %v2854_v61  ;;  %2889 = vmatmul.bf16.vlgmr.msrb.gmra.mxu3 %v2855_v48 }
 0xac3   : > { %7092 = vmatmul.msk.bf16.gmra.mxu0 %vm10953_vm12, %v7864_v55  ;;  %vm3135_vm12 = vweird.f32 %v9733_v35 }
 0xac4   : > { %7116 = vmatmul.msk.bf16.gmra.mxu1 %vm10954_vm9, %v7864_v55  ;;  %v10958_v55 = vld [vmem:[#allocation28_spill] sm:$0xff] }
 0xad1   : > { %2875 = vmatmul.bf16.gmra.mxu2 %v2856_v29  ;;  %2894 = vmatmul.bf16.gmra.mxu3 %v2857_v13 }
 0xae8   : > { %v3399_v5 = vpop.xlane.xlu0 %3398 }
 0xae9   : > { %v3408_v10 = vsub.f32 %v9548_v63, %v3399_v5  ;;  %v3409_v25 = vsub.f32 %v9550_v45, %v3399_v5 }
 0xaeb   : > { %v3418_v15 = vmul.f32 1.442695, %v3408_v10  ;;  %v3420_v16 = vmul.f32 1.442695, %v3409_v25 }
 0xaed   : > { %8288 = vpow2.f32 %v3418_v15  ;;  %v3104_v15 = vpop.xlane.xlu1 %3103 }
 0xaee   : > { %8290 = vpow2.f32 %v3420_v16 }
 0xaef   : > { %8292 = vpow2.f32 %v3422_v22 }
 0xaf0   : > { %8294 = vpow2.f32 %v3424_v3 }
 0xaf1   : > { %8296 = vrcp.f32 %v9733_v35 }
 0xaf2   : > { %8298 = vrcp.f32 %v3104_v15 }
 0xaf3   : > { %v9811_v49 = vpop.eup %8288 }
 0xaf4   : > { %v9813_v56 = vpop.eup %8290 }
 0xaf5   : > { %v3433_v7 = vadd.f32 %v9813_v56, %v9811_v49  ;;  %v9845_v2 = vpop.eup %8292 }
 0xaf6   : > { %v9847_v12 = vpop.eup %8294 }
 0xaf7   : > { %3434 = vadd.xlane.f32.xlu2 %v3433_v7  ;;  %v3436_v36 = vadd.f32 %v9847_v12, %v9845_v2  ;;  %v8297_v7 = vpop.eup %8296 }
 0xaf8   : > { %vm3136_vm5 = vweird.f32 %v8297_v7 }
 0xaf9   : > { %vm3137_vm9 = vmor %vm3135_vm12, %vm3136_vm5  ;;  %vm10975_vm12 = vcmask 261120  }
 0xb24   : > { %v9817_v6 = vpop.f32.mrf.mxu2  ;;  %v9819_v8 = vpop.f32.mrf.mxu3 }
 0xb2c   : > { %v9821_v20 = vpop.f32.mrf.mxu2  ;;  %v9823_v63 = vpop.f32.mrf.mxu3 }
 0xb30   : > { %v2157_v38 = vpop.f32.mrf.mxu0 }
 0xb31   : > { %v2286_v31 = vpop.f32.mrf.mxu1 }
 0xb34   : > { %v9825_v45 = vpop.f32.mrf.mxu2  ;;  %v9827_v51 = vpop.f32.mrf.mxu3 }
 0xb38   : > { %v2159_v11 = vpop.f32.mrf.mxu0 }
 0xb39   : > { %v2288_v54 = vpop.f32.mrf.mxu1  ;;  %v3186_v10 = vpack.c.bf16 %v2159_v11, %v2157_v38  ;;  %v3141_v38 = vand.u32 2147483648, %v9733_v35  ;;  %v3139_v11 = vand.u32 2147483647, %v9733_v35 }
 0xb3a   : > { %v3187_v25 = vpack.c.bf16 %v2288_v54, %v2286_v31  ;;  %v3125_v54 = vand.u32 2147483648, %v3104_v15 }
 0xb3b   : > { %vm3140_vm6 = vcmp.eq.f32.partialorder %v3139_v11, 8.507059e+37 }
 0xb3c   : > { %v9834_v42 = vpop.f32.mrf.mxu2  ;;  %v9836_v18 = vpop.f32.mrf.mxu3 }
 0xb40   : > { %v2162_v27 = vpop.f32.mrf.mxu0 }
 0xb41   : > { %v2291_v57 = vpop.f32.mrf.mxu1 }
 0xb44   : > { %v2871_v30 = vpop.f32.mrf.mxu2  ;;  %v2890_v33 = vpop.f32.mrf.mxu3 }
 0xb45   : > { %v2891_v26 = vadd.f32 %v2890_v33, %v2871_v30  ;;  %v10959_v30 = vpack.c.bf16 %v10957_v41, %v10958_v55  ;;  %v10960_v33 = vld [vmem:[#allocation33_spill] sm:$0xff] }
 0xb48   : > { %v2164_v29 = vpop.f32.mrf.mxu0 }
 0xb49   : > { %v2293_v58 = vpop.f32.mrf.mxu1  ;;  %v3188_v13 = vpack.c.bf16 %v2164_v29, %v2162_v27 }
 0xb4a   : > { %v3189_v5 = vpack.c.bf16 %v2293_v58, %v2291_v57  ;;  %v3142_v57 = vor.u32 1.1754944e-38, %v3141_v38  ;;  %v3126_v58 = vor.u32 1.1754944e-38, %v3125_v54 }
 0xb4b   : > { %3196 = vmatpush.bf16.xpose.msrb.mxu2 %v3188_v13 }
 0xb4c   : > { %v2873_v28 = vpop.f32.mrf.mxu2  ;;  %v2892_v39 = vpop.f32.mrf.mxu3  ;;  %3215 = vmatpush.bf16.xpose.msrb.mxu3 %v3189_v5 }
 0xb4d   : > { %v2893_v37 = vadd.f32 %v2892_v39, %v2873_v28  ;;  %v10961_v28 = vld [vmem:[#allocation32_spill] sm:$0xff] }
 0xb4e   : > { %v10962_v39 = vpack.c.bf16 %v10960_v33, %v10961_v28 }
 0xb4f   : > { %v2900_v53 = vpack.c.bf16 %v2893_v37, %v2891_v26  ;;  %v8299_v26 = vpop.eup %8298  ;;  %v3131_v37 = vmul.f32 %v8297_v7, %v9733_v35 }
 0xb50   : > { %vm3120_vm3 = vweird.f32 %v8299_v26 }
 0xb51   : > { %2902 = vxpose.xlu1.c.b16.start [1/2] (short) (narrow) %v2900_v53, 32  ;;  %v10963_v53 = vld [vmem:[#allocation31_spill] sm:$0xff] }
 0xb53   : > { %3197 = vmatpush.bf16.xpose.msrb.mxu2 %v3186_v10 }
 0xb54   : > { %v2876_v4 = vpop.f32.mrf.mxu2  ;;  %v2895_v52 = vpop.f32.mrf.mxu3  ;;  %3216 = vmatpush.bf16.xpose.msrb.mxu3 %v3187_v25 }
 0xb55   : > { %v2896_v14 = vadd.f32 %v2895_v52, %v2876_v4  ;;  %v10964_v4 = vld [vmem:[#allocation30_spill] sm:$0xff] }
 0xb56   : > { %v10965_v52 = vpack.c.bf16 %v10963_v53, %v10964_v4 }
 0xb5c   : > { %v2878_v61 = vpop.f32.mrf.mxu2  ;;  %v2897_v48 = vpop.f32.mrf.mxu3 }
 0xb5d   : > { %v2898_v0 = vadd.f32 %v2897_v48, %v2878_v61  ;;  %v10966_v61 = vld [vmem:[#allocation35_spill] sm:$0xff]  ;;  %v10967_v48 = vld [vmem:[#allocation34_spill] sm:$0xff] }
 0xb5f   : > { %v2901_v60 = vpack.c.bf16 %v2898_v0, %v2896_v14  ;;  %v10968_v14 = vpack.c.bf16 %v10966_v61, %v10967_v48  ;;  %v3115_v0 = vmul.f32 %v8299_v26, %v3104_v15 }
 0xb61   : > { %2903 = vxpose.xlu1.c.b16.end [2/2] (short) (narrow) %v2901_v60, 32  ;;  %v3132_v60 = vsub.f32 1.0, %v3131_v37  ;;  %v3116_v23 = vsub.f32 1.0, %v3115_v0 }
 0xb63   : > { %v3133_v47 = vmul.f32 %v8297_v7, %v3132_v60  ;;  %v3117_v32 = vmul.f32 %v8299_v26, %v3116_v23 }
 0xb65   : > { %v3134_v3 = vadd.f32 %v8297_v7, %v3133_v47  ;;  %v3118_v31 = vadd.f32 %v8299_v26, %v3117_v32  ;;  %v3405_v32 = vpop.xlane.xlu2 %3404 }
 0xb67   : > { %v3138_v27 = vsel %vm3137_vm9, %v8297_v7, %v3134_v3  ;;  %v3413_v3 = vsub.f32 %v9560_v44, %v3405_v32  ;;  %vm10976_vm9 = vmmov %vm10975_vm12 }
 0xb68   : > { %v3143_v13 = vsel %vm3140_vm6, %v3142_v57, %v3138_v27  ;;  %vm10971_vm6 = vcmask 64512  }
 0xb69   : > { %v3144_v10 = vmul.f32 %v9705_v9, %v3143_v13  ;;  %v3145_v25 = vmul.f32 %v9708_v17, %v3143_v13  ;;  %vm10972_vm5 = vmmov %vm10971_vm6  ;;  %v3428_v54 = vmul.f32 1.442695, %v3413_v3 }
 0xbc1   : > { %3437 = vadd.xlane.f32.xlu1 %v3436_v36  ;;  %v3123_v36 = vand.u32 2147483647, %v3104_v15 }
 0xbfd   : > { %v2910_v16 = vpop.trf.xlu1 }
 0xbfe   : > { %7123 = vmatmul.msk.bf16.vlgmr.msra.gmra.mxu2 %vm10955_vm15, %v2910_v16  ;;  %7125 = vmatmul.msk.bf16.vlgmr.msra.gmra.mxu3 %vm10956_vm10, %v2910_v16  ;;  %vm3119_vm15 = vweird.f32 %v3104_v15 }
 0xbff   : > { %3258 = vmatpush.bf16.msra.mxu2 %v10959_v30  ;;  %3277 = vmatpush.bf16.msra.mxu3 %v10962_v39  ;;  %vm3121_vm10 = vmor %vm3119_vm15, %vm3120_vm3 }
 0xc00   : > { %v3122_v29 = vsel %vm3121_vm10, %v8299_v26, %v3118_v31  ;;  %vm10974_vm3 = vmmov %vm10972_vm5 }
 0xc01   : > { %vm10989_vm10 = vmmov %vm10976_vm9 }
 0xc03   : > { %3259 = vmatpush.bf16.msra.mxu2 %v10965_v52  ;;  %3278 = vmatpush.bf16.msra.mxu3 %v10968_v14 }
 0xc0d   : > { %v2911_v22 = vpop.trf.xlu1 }
 0xc0e   : > { %7124 = vmatmul.msk.bf16.gmra.mxu2 %vm10969_vm14, %v2911_v22  ;;  %7126 = vmatmul.msk.bf16.gmra.mxu3 %vm10970_vm11, %v2911_v22  ;;  %vm3124_vm14 = vcmp.eq.f32.partialorder %v3123_v36, 8.507059e+37  ;;  %vm10973_vm11 = vmmov %vm10972_vm5  ;;  %v3412_v22 = vsub.f32 %v9558_v21, %v3405_v32 }
 0xc0f   : > { %v3127_v5 = vsel %vm3124_vm14, %v3126_v58, %v3122_v29  ;;  %vm10990_vm14 = vmmov %vm10976_vm9 }
 0xc10   : > { %v3128_v16 = vmul.f32 %v9679_v34, %v3127_v5  ;;  %v3129_v35 = vmul.f32 %v9681_v19, %v3127_v5  ;;  %v7865_v19 = vld [vmem:[%s10613_s5 + $0xb0] sm:$0xff]  ;;  %v3426_v11 = vmul.f32 1.442695, %v3412_v22 }
 0xc11   : > { %7093 = vmatmul.msk.bf16.gmra.mxu0 %vm10971_vm6, %v7865_v19  ;;  %7117 = vmatmul.msk.bf16.gmra.mxu1 %vm10972_vm5, %v7865_v19 }
 0xc12   : > { %v3182_v41 = vpack.c.bf16 %v3144_v10, %v3128_v16  ;;  %v3183_v55 = vpack.c.bf16 %v3145_v25, %v3129_v35  ;;  %8300 = vpow2.f32 %v3426_v11  ;;  %v3432_v10 = vpop.xlane.xlu2 %3431 }
 0xc13   : > { %8302 = vpow2.f32 %v3428_v54  ;;  %v3453_v3 = vand.u32 2147483648, %v3432_v10 }
 0xc18   : > { %v9910_v58 = vpop.eup %8300 }
 0xc19   : > { %v9912_v13 = vpop.eup %8302 }
 0xc1a   : > { %v3439_v44 = vadd.f32 %v9912_v13, %v9910_v58  ;;  %v3435_v25 = vpop.xlane.xlu2 %3434 }
 0xc1b   : > { %8304 = vrcp.f32 %v3435_v25  ;;  %vm3463_vm5 = vweird.f32 %v3435_v25  ;;  %v3467_v22 = vand.u32 2147483647, %v3435_v25 }
 0xc1c   : > { %8306 = vrcp.f32 %v3432_v10 }
 0xc1e   : > { %3198 = vmatmul.bf16.vlgmr.msrb.gmra.mxu2 %v3182_v41  ;;  %3217 = vmatmul.bf16.vlgmr.msrb.gmra.mxu3 %v3183_v55  ;;  %v10977_v41 = vld [vmem:[#allocation37_spill] sm:$0xff]  ;;  %v10978_v55 = vld [vmem:[#allocation36_spill] sm:$0xff] }
 0xc1f   : > { %v10979_v19 = vpack.c.bf16 %v10977_v41, %v10978_v55 }
 0xc21   : > { %v8305_v35 = vpop.eup %8304 }
 0xc22   : > { %vm3464_vm15 = vweird.f32 %v8305_v35 }
 0xc2e   : > { %3203 = vmatmul.bf16.gmra.mxu2 %v3184_v62  ;;  %3222 = vmatmul.bf16.gmra.mxu3 %v3185_v43  ;;  %v7866_v62 = vld [vmem:[%s10613_s5 + $0xb8] sm:$0xff] }
 0xc2f   : > { %7094 = vmatmul.msk.bf16.gmra.mxu0 %vm10973_vm11, %v7866_v62  ;;  %7118 = vmatmul.msk.bf16.gmra.mxu1 %vm10974_vm3, %v7866_v62  ;;  %v10980_v62 = vld [vmem:[#allocation41_spill] sm:$0xff]  ;;  %vm3465_vm11 = vmor %vm3463_vm5, %vm3464_vm15  ;;  %vm3447_vm3 = vweird.f32 %v3432_v10 }
 0xc81   : > { %v9882_v15 = vpop.f32.mrf.mxu2  ;;  %v9884_v9 = vpop.f32.mrf.mxu3 }
 0xc89   : > { %v9886_v17 = vpop.f32.mrf.mxu2  ;;  %v9888_v34 = vpop.f32.mrf.mxu3 }
 0xc8e   : > { %v2167_v0 = vpop.f32.mrf.mxu0  ;;  %v2296_v60 = vpop.f32.mrf.mxu1 }
 0xc91   : > { %v9895_v59 = vpop.f32.mrf.mxu2  ;;  %v9897_v1 = vpop.f32.mrf.mxu3 }
 0xc96   : > { %v2169_v23 = vpop.f32.mrf.mxu0  ;;  %v2298_v47 = vpop.f32.mrf.mxu1 }
 0xc97   : > { %v3514_v5 = vpack.c.bf16 %v2169_v23, %v2167_v0  ;;  %v3515_v21 = vpack.c.bf16 %v2298_v47, %v2296_v60  ;;  %v3469_v47 = vand.u32 2147483648, %v3435_v25 }
 0xc99   : > { %v9899_v50 = vpop.f32.mrf.mxu2  ;;  %v9901_v46 = vpop.f32.mrf.mxu3  ;;  %v3470_v11 = vor.u32 1.1754944e-38, %v3469_v47 }
 0xca1   : > { %v3199_v43 = vpop.f32.mrf.mxu2  ;;  %v3218_v7 = vpop.f32.mrf.mxu3 }
 0xca2   : > { %v3219_v28 = vadd.f32 %v3218_v7, %v3199_v43  ;;  %v10981_v43 = vld [vmem:[#allocation40_spill] sm:$0xff] }
 0xca3   : > { %v10982_v7 = vpack.c.bf16 %v10980_v62, %v10981_v43 }
 0xca9   : > { %v3201_v30 = vpop.f32.mrf.mxu2  ;;  %v3220_v33 = vpop.f32.mrf.mxu3 }
 0xcaa   : > { %v3221_v39 = vadd.f32 %v3220_v33, %v3201_v30  ;;  %v8307_v30 = vpop.eup %8306  ;;  %v3459_v33 = vmul.f32 %v8305_v35, %v3435_v25 }
 0xcab   : > { %vm3448_vm6 = vweird.f32 %v8307_v30 }
 0xcac   : > { %v3228_v26 = vpack.c.bf16 %v3221_v39, %v3219_v28  ;;  %v2172_v38 = vpop.f32.mrf.mxu0  ;;  %v2301_v31 = vpop.f32.mrf.mxu1  ;;  %v10983_v28 = vld [vmem:[#allocation39_spill] sm:$0xff]  ;;  %v10984_v39 = vld [vmem:[#allocation38_spill] sm:$0xff] }
 0xcae   : > { %3230 = vxpose.xlu2.c.b16.start [1/2] (short) (narrow) %v3228_v26, 32  ;;  %v10985_v26 = vpack.c.bf16 %v10983_v28, %v10984_v39 }
 0xcb1   : > { %v3204_v37 = vpop.f32.mrf.mxu2  ;;  %v3223_v53 = vpop.f32.mrf.mxu3 }
 0xcb2   : > { %v3224_v61 = vadd.f32 %v3223_v53, %v3204_v37  ;;  %v10986_v37 = vld [vmem:[#allocation43_spill] sm:$0xff]  ;;  %v10987_v53 = vld [vmem:[#allocation42_spill] sm:$0xff] }
 0xcb4   : > { %v2174_v36 = vpop.f32.mrf.mxu0  ;;  %v2303_v27 = vpop.f32.mrf.mxu1 }
 0xcb5   : > { %v3516_v57 = vpack.c.bf16 %v2174_v36, %v2172_v38  ;;  %v3517_v29 = vpack.c.bf16 %v2303_v27, %v2301_v31  ;;  %v3451_v38 = vand.u32 2147483647, %v3432_v10  ;;  %v3454_v36 = vor.u32 1.1754944e-38, %v3453_v3 }
 0xcb7   : > { %3524 = vmatpush.bf16.xpose.msrb.mxu2 %v3516_v57  ;;  %3543 = vmatpush.bf16.xpose.msrb.mxu3 %v3517_v29  ;;  %vm3452_vm2 = vcmp.eq.f32.partialorder %v3451_v38, 8.507059e+37 }
 0xcb9   : > { %v3206_v4 = vpop.f32.mrf.mxu2  ;;  %v3225_v52 = vpop.f32.mrf.mxu3 }
 0xcba   : > { %v3226_v48 = vadd.f32 %v3225_v52, %v3206_v4  ;;  %v10988_v4 = vpack.c.bf16 %v10986_v37, %v10987_v53  ;;  %v3443_v52 = vmul.f32 %v8307_v30, %v3432_v10  ;;  %v3438_v10 = vpop.xlane.xlu1 %3437 }
 0xcbb   : > { %8308 = vrcp.f32 %v3438_v10  ;;  %vm3479_vm15 = vweird.f32 %v3438_v10 }
 0xcbc   : > { %v3229_v14 = vpack.c.bf16 %v3226_v48, %v3224_v61  ;;  %v3460_v61 = vsub.f32 1.0, %v3459_v33  ;;  %v3444_v48 = vsub.f32 1.0, %v3443_v52 }
 0xcbe   : > { %3231 = vxpose.xlu2.c.b16.end [2/2] (short) (narrow) %v3229_v14, 32  ;;  %v3461_v14 = vmul.f32 %v8305_v35, %v3460_v61  ;;  %v3445_v0 = vmul.f32 %v8307_v30, %v3444_v48 }
 0xcbf   : > { %3544 = vmatpush.bf16.xpose.msrb.mxu3 %v3515_v21  ;;  %3525 = vmatpush.bf16.xpose.msrb.mxu2 %v3514_v5 }
 0xcc0   : > { %v3462_v23 = vadd.f32 %v8305_v35, %v3461_v14  ;;  %v3446_v32 = vadd.f32 %v8307_v30, %v3445_v0 }
 0xcc2   : > { %v3466_v31 = vsel %vm3465_vm11, %v8305_v35, %v3462_v23  ;;  %v8309_v35 = vpop.eup %8308 }
 0xcc3   : > { %v3475_v41 = vmul.f32 %v8309_v35, %v3438_v10 }
 0xcc5   : > { %v3476_v55 = vsub.f32 1.0, %v3475_v41 }
 0xcc7   : > { %v3477_v62 = vmul.f32 %v8309_v35, %v3476_v55 }
 0xd2f   : > { %3440 = vadd.xlane.f32.xlu2 %v3439_v44 }
 0xd4f   : > { %v3238_v16 = vpop.trf.xlu2 }
 0xd50   : > { %7127 = vmatmul.msk.bf16.vlgmr.msra.gmra.mxu2 %vm10975_vm12, %v3238_v16  ;;  %7129 = vmatmul.msk.bf16.vlgmr.msra.gmra.mxu3 %vm10976_vm9, %v3238_v16  ;;  %vm3449_vm12 = vmor %vm3447_vm3, %vm3448_vm6  ;;  %vm3468_vm9 = vcmp.eq.f32.partialorder %v3467_v22, 8.507059e+37 }
 0xd51   : > { %3586 = vmatpush.bf16.msra.mxu2 %v10979_v19  ;;  %3605 = vmatpush.bf16.msra.mxu3 %v10982_v7  ;;  %v3450_v54 = vsel %vm3449_vm12, %v8307_v30, %v3446_v32  ;;  %v3471_v27 = vsel %vm3468_vm9, %v3470_v11, %v3466_v31  ;;  %v3485_v7 = vand.u32 2147483648, %v3438_v10  ;;  %vm10991_vm12 = vcmask 261120  }
 0xd52   : > { %v3455_v57 = vsel %vm3452_vm2, %v3454_v36, %v3450_v54  ;;  %v3472_v29 = vmul.f32 %v9811_v49, %v3471_v27  ;;  %v3473_v5 = vmul.f32 %v9813_v56, %v3471_v27  ;;  %v3478_v49 = vadd.f32 %v8309_v35, %v3477_v62  ;;  %vm10992_vm9 = vmmov %vm10991_vm12 }
 0xd53   : > { %v3456_v21 = vmul.f32 %v9755_v40, %v3455_v57  ;;  %v3457_v44 = vmul.f32 %v9757_v24, %v3455_v57  ;;  %vm3480_vm2 = vweird.f32 %v8309_v35  ;;  %v3483_v40 = vand.u32 2147483647, %v3438_v10 }
 0xd55   : > { %3587 = vmatpush.bf16.msra.mxu2 %v10985_v26  ;;  %3606 = vmatpush.bf16.msra.mxu3 %v10988_v4  ;;  %v3510_v25 = vpack.c.bf16 %v3472_v29, %v3456_v21  ;;  %v3511_v16 = vpack.c.bf16 %v3473_v5, %v3457_v44  ;;  %v3486_v26 = vor.u32 1.1754944e-38, %v3485_v7  ;;  %vm3484_vm6 = vcmp.eq.f32.partialorder %v3483_v40, 8.507059e+37 }
 0xd5f   : > { %v3239_v60 = vpop.trf.xlu2 }
 0xd60   : > { %7128 = vmatmul.msk.bf16.gmra.mxu2 %vm10989_vm10, %v3239_v60  ;;  %7130 = vmatmul.msk.bf16.gmra.mxu3 %vm10990_vm14, %v3239_v60  ;;  %vm3481_vm10 = vmor %vm3479_vm15, %vm3480_vm2 }
 0xd61   : > { %v3482_v39 = vsel %vm3481_vm10, %v8309_v35, %v3478_v49  ;;  %vm10993_vm2 = vmmov %vm10992_vm9 }
 0xd62   : > { %v3487_v4 = vsel %vm3484_vm6, %v3486_v26, %v3482_v39  ;;  %vm10994_vm15 = vmmov %vm10993_vm2 }
 0xd63   : > { %v3488_v48 = vmul.f32 %v9845_v2, %v3487_v4  ;;  %v3489_v0 = vmul.f32 %v9847_v12, %v3487_v4 }
 0xd70   : > { %3526 = vmatmul.bf16.vlgmr.msrb.gmra.mxu2 %v3510_v25  ;;  %3545 = vmatmul.bf16.vlgmr.msrb.gmra.mxu3 %v3511_v16 }
 0xda2   : > { %v3441_v19 = vpop.xlane.xlu2 %3440 }
 0xda3   : > { %8310 = vrcp.f32 %v3441_v19  ;;  %v3501_v30 = vand.u32 2147483648, %v3441_v19  ;;  %v3499_v28 = vand.u32 2147483647, %v3441_v19  ;;  %vm3495_vm5 = vweird.f32 %v3441_v19 }
 0xda5   : > { %v3502_v53 = vor.u32 1.1754944e-38, %v3501_v30  ;;  %vm3500_vm3 = vcmp.eq.f32.partialorder %v3499_v28, 8.507059e+37  ;;  %v8412_v28 = vmov 16  }
 0xda6   : > { %8094 = vset.pattern.permute.xlu1 %v8412_v28 }
 0xda9   : > { %v8311_v43 = vpop.eup %8310 }
 0xdaa   : > { %v3491_v56 = vmul.f32 %v8311_v43, %v3441_v19  ;;  %vm3496_vm14 = vweird.f32 %v8311_v43 }
 0xdab   : > { %vm3497_vm11 = vmor %vm3495_vm5, %vm3496_vm14 }
 0xdac   : > { %v3492_v24 = vsub.f32 1.0, %v3491_v56 }
 0xdae   : > { %v3493_v33 = vmul.f32 %v8311_v43, %v3492_v24 }
 0xdb0   : > { %v3494_v37 = vadd.f32 %v8311_v43, %v3493_v33 }
 0xdb2   : > { %v3498_v52 = vsel %vm3497_vm11, %v8311_v43, %v3494_v37  ;;  %v9947_v37 = vld [vmem:[%s10610_s2] sm:$0xff]  ;;  %vm10997_vm11 = vcmask 138240  }
 0xdb3   : > { %v3503_v61 = vsel %vm3500_vm3, %v3502_v53, %v3498_v52  ;;  %3635 = vperm.xlu1 %8094, %v9947_v37   ;;  %vm10998_vm3 = vmmov %vm10997_vm11 }
 0xdb4   : > { %v3504_v14 = vmul.f32 %v9910_v58, %v3503_v61  ;;  %v3505_v60 = vmul.f32 %v9912_v13, %v3503_v61 }
 0xdb6   : > { %v3512_v23 = vpack.c.bf16 %v3504_v14, %v3488_v48  ;;  %v3513_v47 = vpack.c.bf16 %v3505_v60, %v3489_v0  ;;  %v3624_v48 = vpack.c.bf16 %v9899_v50, %v9895_v59  ;;  %v3625_v14 = vpack.c.bf16 %v9901_v46, %v9897_v1 }
 0xdb7   : > { %v3622_v0 = vpack.c.bf16 %v9886_v17, %v9882_v15  ;;  %v3623_v60 = vpack.c.bf16 %v9888_v34, %v9884_v9  ;;  %v3618_v59 = vpack.c.bf16 %v9821_v20, %v9817_v6  ;;  %v3619_v1 = vpack.c.bf16 %v9823_v63, %v9819_v8  ;;  %v1810_v15 = vld [vmem:[%s10614_s6] sm:$0xf] }
 0xdb8   : > { %3531 = vmatmul.bf16.gmra.mxu2 %v3512_v23  ;;  %3550 = vmatmul.bf16.gmra.mxu3 %v3513_v47  ;;  %v3620_v23 = vpack.c.bf16 %v9834_v42, %v9825_v45  ;;  %v3621_v47 = vpack.c.bf16 %v9836_v18, %v9827_v51  ;;  %v8413_v20 = vmov 2048.0  }
 0xdb9   : > { %8312 = vrcp.f32 %v8413_v20 }
 0xdbf   : > { %v8313_v8 = vpop.eup %8312 }
 0xdc0   : > { %v3675_v63 = vmul.f32 2048.0, %v8313_v8  ;;  %vm3679_vm10 = vweird.f32 %v8313_v8 }
 0xdc2   : > { %v3676_v50 = vsub.f32 1.0, %v3675_v63 }
 0xdd3   : > { %v3261_v32 = vpop.f32.mrf.mxu2  ;;  %v3280_v22 = vpop.f32.mrf.mxu3 }
 0xddb   : > { %v3263_v3 = vpop.f32.mrf.mxu2  ;;  %v3282_v38 = vpop.f32.mrf.mxu3 }
 0xddc   : > { %v3626_v52 = vpack.c.bf16 %v3263_v3, %v3261_v32  ;;  %v3627_v61 = vpack.c.bf16 %v3282_v38, %v3280_v22  ;;  %v3677_v3 = vmul.f32 %v8313_v8, %v3676_v50  ;;  %v11003_v50 = vld [vmem:[#allocation21_spill] sm:$0xff] }
 0xde3   : > { %v3266_v31 = vpop.f32.mrf.mxu2  ;;  %v3285_v11 = vpop.f32.mrf.mxu3 }
 0xdeb   : > { %v3268_v54 = vpop.f32.mrf.mxu2  ;;  %v3287_v36 = vpop.f32.mrf.mxu3 }
 0xdec   : > { %v3628_v53 = vpack.c.bf16 %v3268_v54, %v3266_v31  ;;  %v3629_v4 = vpack.c.bf16 %v3287_v36, %v3285_v11  ;;  %v3678_v11 = vadd.f32 %v8313_v8, %v3677_v3 }
 0xdf3   : > { %v3527_v27 = vpop.f32.mrf.mxu2  ;;  %v3546_v2 = vpop.f32.mrf.mxu3 }
 0xdf4   : > { %v3547_v29 = vadd.f32 %v3546_v2, %v3527_v27  ;;  %v3680_v27 = vsel %vm3679_vm10, %v8313_v8, %v3678_v11 }
 0xdfb   : > { %v3529_v57 = vpop.f32.mrf.mxu2  ;;  %v3548_v58 = vpop.f32.mrf.mxu3 }
 0xdfc   : > { %v3549_v12 = vadd.f32 %v3548_v58, %v3529_v57 }
 0xdfe   : > { %v3556_v5 = vpack.c.bf16 %v3549_v12, %v3547_v29 }
 0xe00   : > { %3558 = vxpose.xlu0.c.b16.start [1/2] (short) (narrow) %v3556_v5, 32 }
 0xe25   : > { %v3636_v45 = vpop.permute.xlu1 %3635 }
 0xe3b   : > { %v3532_v13 = vpop.f32.mrf.mxu2  ;;  %v3551_v21 = vpop.f32.mrf.mxu3 }
 0xe3c   : > { %v3552_v16 = vadd.f32 %v3551_v21, %v3532_v13  ;;  %v8414_v13 = vmov 18   ;;  %v8415_v21 = vmov 17  }
 0xe3d   : > { %8096 = vset.pattern.permute.xlu1 %v8414_v13  ;;  %8095 = vset.pattern.permute.xlu2 %v8415_v21  ;;  %v11018_v21 = vld [vmem:[#allocation17_spill] sm:$0xff] }
 0xe3e   : > { %3724 = vperm.xlu2 %8095, %v9947_v37  }
 0xe43   : > { %v3534_v44 = vpop.f32.mrf.mxu2  ;;  %v3553_v25 = vpop.f32.mrf.mxu3 }
 0xe44   : > { %v3554_v10 = vadd.f32 %v3553_v25, %v3534_v44 }
 0xe46   : > { %v3557_v35 = vpack.c.bf16 %v3554_v10, %v3552_v16 }
 0xe48   : > { %3559 = vxpose.xlu0.c.b16.end [2/2] (short) (narrow) %v3557_v35, 32 }
 0xee4   : > { %v3566_v41 = vpop.trf.xlu0 }
 0xee5   : > { %7131 = vmatmul.msk.bf16.vlgmr.msra.gmra.mxu2 %vm10991_vm12, %v3566_v41  ;;  %7133 = vmatmul.msk.bf16.vlgmr.msra.gmra.mxu3 %vm10992_vm9, %v3566_v41  ;;  %vm10999_vm12 = vmmov %vm10998_vm3 }
 0xef4   : > { %v3567_v55 = vpop.trf.xlu0 }
 0xef5   : > { %7132 = vmatmul.msk.bf16.gmra.mxu2 %vm10993_vm2, %v3567_v55  ;;  %7134 = vmatmul.msk.bf16.gmra.mxu3 %vm10994_vm15, %v3567_v55 }
 0xf68   : > { %v3589_v19 = vpop.f32.mrf.mxu2  ;;  %v3608_v62 = vpop.f32.mrf.mxu3 }
 0xf70   : > { %v3591_v43 = vpop.f32.mrf.mxu2  ;;  %v3610_v49 = vpop.f32.mrf.mxu3 }
 0xf71   : > { %v3630_v39 = vpack.c.bf16 %v3591_v43, %v3589_v19  ;;  %v3631_v26 = vpack.c.bf16 %v3610_v49, %v3608_v62 }
 0xf78   : > { %v3594_v56 = vpop.f32.mrf.mxu2  ;;  %v3613_v7 = vpop.f32.mrf.mxu3 }
 0xf80   : > { %v3596_v40 = vpop.f32.mrf.mxu2  ;;  %v3615_v24 = vpop.f32.mrf.mxu3 }
 0xf81   : > { %v3632_v30 = vpack.c.bf16 %v3596_v40, %v3594_v56  ;;  %v3633_v33 = vpack.c.bf16 %v3615_v24, %v3613_v7 }
 0xf83   : > { %3638 = vmatpush.bf16.msrb.mxu2 %v3632_v30  ;;  %3651 = vmatpush.bf16.msrb.mxu3 %v3633_v33  ;;  %v3725_v33 = vpop.permute.xlu2 %3724 }
 0xf87   : > { %3639 = vmatpush.bf16.msrb.mxu2 %v3630_v39  ;;  %3652 = vmatpush.bf16.msrb.mxu3 %v3631_v26 }
 0xf8b   : > { %3640 = vmatpush.bf16.msrb.mxu2 %v3628_v53  ;;  %3653 = vmatpush.bf16.msrb.mxu3 %v3629_v4 }
 0xf8f   : > { %3641 = vmatpush.bf16.msrb.mxu2 %v3626_v52  ;;  %3654 = vmatpush.bf16.msrb.mxu3 %v3627_v61 }
 0xf93   : > { %3642 = vmatpush.bf16.msrb.mxu2 %v3624_v48  ;;  %3655 = vmatpush.bf16.msrb.mxu3 %v3625_v14  ;;  %v10995_v48 = vld [vmem:[#allocation24_spill] sm:$0xff] }
 0xf97   : > { %3643 = vmatpush.bf16.msrb.mxu2 %v3622_v0  ;;  %3656 = vmatpush.bf16.msrb.mxu3 %v3623_v60  ;;  %v10996_v0 = vld [vmem:[#allocation25_spill] sm:$0xff] }
 0xf9b   : > { %3644 = vmatpush.bf16.msrb.mxu2 %v3620_v23  ;;  %3657 = vmatpush.bf16.msrb.mxu3 %v3621_v47 }
 0xf9f   : > { %3645 = vmatpush.bf16.msrb.mxu2 %v3618_v59  ;;  %3658 = vmatpush.bf16.msrb.mxu3 %v3619_v1 }
 0xfa2   : > { %3646 = vmatmul.bf16.vlgmr.msrb.gmra.mxu2 %v1810_v15  ;;  %3659 = vmatmul.bf16.vlgmr.msrb.gmra.mxu3 %v1810_v15 }
0x1025   : > { %v3647_v42 = vpop.f32.mrf.mxu2  ;;  %v3660_v9 = vpop.f32.mrf.mxu3 }
0x1026   : > { %v3648_v51 = vadd.f32 %v3647_v42, %v3636_v45  ;;  %v3661_v18 = vadd.f32 %v3660_v9, %v3636_v45 }
0x1028   : > { %v3664_v17 = vadd.f32 %v3661_v18, %v3648_v51 }
0x102a   : > { %3665 = vadd.xlane.f32.xlu0 %v3664_v17  ;;  %v11000_v17 = vld [vmem:[#allocation19_spill] sm:$0xff] }
0x102d   : > { %v3649_v34 = vpop.f32.mrf.mxu2  ;;  %v3662_v6 = vpop.f32.mrf.mxu3 }
0x109d   : > { %v3666_v46 = vpop.xlane.xlu0 %3665 }
0x109e   : > { %v3667_v32 = vrot.slane %v3666_v46, 4 }
0x10a0   : > { %v3668_v22 = vadd.f32 %v3667_v32, %v3666_v46 }
0x10a2   : > { %v3669_v38 = vrot.slane %v3668_v22, 2 }
0x10a4   : > { %v3670_v31 = vadd.f32 %v3669_v38, %v3668_v22 }
0x10a6   : > { %v3671_v54 = vrot.slane %v3670_v31, 1 }
0x10a8   : > { %v3672_v36 = vadd.f32 %v3671_v54, %v3670_v31  ;;  %v11006_v31 = vld [vmem:[#allocation8_spill] sm:$0xff]  ;;  %v11008_v54 = vld [vmem:[#allocation11_spill] sm:$0xff] }
0x10a9   : > { %vm11007_vm9 = vnez %v11006_v31  ;;  %vm11009_vm2 = vnez %v11008_v54 }
0x10aa   : > { %8020 = vpush %v3672_v36 }
0x10ab   : > { %8022 = vpush %v3680_v27  ;;  %v11010_v27 = vld [vmem:[#allocation14_spill] sm:$0xff] }
0x10ac   : > { %vm11011_vm15 = vnez %v11010_v27 }
0x10db   : > { %s8021_s18 = spop %8020 }
0x10dc   : > { %s8023_s27 = spop %8022 }
0x10dd   : > { %s3682_s29 = smul.f32 %s8023_s27, %s8021_s18 }
0x10df   : > { %v3683_v2 = vstv %s3682_s29  ;;  %s417_s29 = scalar_lea.vmem %s10619_s11, %s7841_s26 }
0x10e0   : > { %v3684_v57 = vsub.f32 %v3648_v51, %v3683_v2  ;;  %v3685_v58 = vsub.f32 %v3661_v18, %v3683_v2 }
0x10e2   : > { %v3686_v29 = vmul.f32 %v3684_v57, %v3684_v57  ;;  %v3687_v12 = vmul.f32 %v3685_v58, %v3685_v58 }
0x10e4   : > { %v3688_v5 = vadd.f32 %v3687_v12, %v3686_v29  ;;  %v11014_v29 = vld [vmem:[#allocation16_spill] sm:$0xff] }
0x10e6   : > { %3689 = vadd.xlane.f32.xlu1 %v3688_v5  ;;  %v11016_v5 = vld [vmem:[#allocation13_spill] sm:$0xff] }
0x10ff   : > { %3730 = vperm.xlu1 %8096, %v9947_v37  }
0x1159   : > { %v3690_v44 = vpop.xlane.xlu1 %3689 }
0x115a   : > { %v3691_v25 = vrot.slane %v3690_v44, 4 }
0x115c   : > { %v3692_v16 = vadd.f32 %v3691_v25, %v3690_v44  ;;  %v11020_v25 = vld [vmem:[#allocation18_spill] sm:$0xff] }
0x115e   : > { %v3693_v10 = vrot.slane %v3692_v16, 2 }
0x1160   : > { %v3694_v35 = vadd.f32 %v3693_v10, %v3692_v16  ;;  %v11022_v10 = vld [vmem:[#allocation20_spill] sm:$0xff] }
0x1162   : > { %v3695_v41 = vrot.slane %v3694_v35, 1 }
0x1164   : > { %v3696_v55 = vadd.f32 %v3695_v41, %v3694_v35 }
0x1166   : > { %8024 = vpush %v3696_v55 }
0x1171   : > { %v3731_v26 = vpop.permute.xlu1 %3730 }
0x1197   : > { %s8025_s28 = spop %8024 }
0x1198   : > { %s3706_s30 = smul.f32 %s8025_s28, %s8023_s27 }
0x119a   : > { %s3707_s13 = sadd.f32 1e-05, %s3706_s30 }
0x119c   : > { %v3708_v19 = vstv %s3707_s13 }
0x119d   : > { %8314 = vrsqrt.f32 %v3708_v19  ;;  %vm3715_vm6 = vweird.f32 %v3708_v19 }
0x11a3   : > { %v8315_v62 = vpop.eup %8314 }
0x11a4   : > { %v3710_v43 = vmul.f32 %v8315_v62, %v3708_v19  ;;  %vm3716_vm14 = vweird.f32 %v8315_v62 }
0x11a5   : > { %vm3717_vm5 = vmor %vm3715_vm6, %vm3716_vm14  ;;  %vm11015_vm14 = vnez %v11014_v29  ;;  %vm11017_vm6 = vnez %v11016_v5 }
0x11a6   : > { %v3711_v49 = vmul.f32 %v8315_v62, %v3710_v43 }
0x11a8   : > { %v3712_v56 = vmul.f32 0.5, %v3711_v49 }
0x11aa   : > { %v3713_v7 = vsub.f32 1.5, %v3712_v56 }
0x11ac   : > { %v3714_v40 = vmul.f32 %v8315_v62, %v3713_v7 }
0x11ae   : > { %v3718_v24 = vsel %vm3717_vm5, %v8315_v62, %v3714_v40  ;;  %vm11019_vm5 = vnez %v11018_v21  ;;  %v11024_v62 = vld [vmem:[#allocation5_spill] sm:$0xff] }
0x11af   : > { %8026 = vpush %v3718_v24  ;;  %v7136_v24 = vld [vmem:[%s10612_s4 + $0x4c] sm:$0xf] }
0x11e0   : > { %s8027_s15 = spop %8026 }
0x11e1   : > { %v3720_v30 = vstv %s8027_s15 }
0x11e2   : > { %v3721_v28 = vmul.f32 %v3720_v30, %v3684_v57  ;;  %v3722_v39 = vmul.f32 %v3720_v30, %v3685_v58  ;;  %v11012_v57 = vld [vmem:[#allocation15_spill] sm:$0xff] }
0x11e3   : > { %vm11013_vm10 = vnez %v11012_v57 }
0x11e4   : > { %v3727_v53 = vmul.f32 %v3725_v33, %v3721_v28  ;;  %v3728_v4 = vmul.f32 %v3725_v33, %v3722_v39  ;;  %v11030_v33 = vld [vmem:[#allocation6_spill] sm:$0xff] }
0x11e6   : > { %v3733_v52 = vadd.f32 %v3731_v26, %v3727_v53  ;;  %v3734_v61 = vadd.f32 %v3731_v26, %v3728_v4 }
0x11e8   : > { %v9972_v14 = vadd.f32 %v3733_v52, %v10995_v48  ;;  %v9975_v60 = vadd.f32 %v3734_v61, %v10996_v0 }
0x11ea   : > { %v3757_v23 = vpack.c.bf16 %v9975_v60, %v9972_v14 }
0x11ec   : > { %v3759_v47 = vunpack.c.l.b16 %v3757_v23  ;;  %v3760_v1 = vunpack.c.h.b16 %v3757_v23 }
0x11ee   : > { %v3761_v59 = vpack.c.b16 %v3759_v47, %v3759_v47  ;;  %v3762_v15 = vpack.c.b16 %v3760_v1, %v3760_v1 }
0x11f0   : > { %3763 = vrot.lane.b32.xlu2 %v3761_v59, %s8390_s12  ;;  %v7135_v59 = vld [vmem:[%s10612_s4 + $0x48] sm:$0xf] }
0x11f8   : > { %3765 = vrot.lane.b32.xlu2 %v3762_v15, %s8390_s12 }
0x124a   : > { %v3764_v45 = vpop.permute.xlu2 %3763 }
0x124b   : > { %v3770_v42 = vsel %vm10997_vm11, 0, %v3764_v45  ;;  %vm11021_vm11 = vnez %v11020_v25 }
0x124c   : > { %3779 = vrot.lane.b32.xlu1 %v3770_v42, %s8394_s16  ;;  %v3857_v63 = vsel %vm8587_vm13, %v3770_v42, 0  ;;  %v3908_v22 = vsel %vm10815_vm4, %v3770_v42, 0  ;;  %v4004_v58 = vsel %vm11013_vm10, %v3770_v42, 0  ;;  %v4055_v12 = vsel %vm11015_vm14, %v3770_v42, 0 }
0x124d   : > { %v4151_v44 = vsel %vm11019_vm5, %v3770_v42, 0  ;;  %vm11036_vm5 = vcmask 1031168  }
0x1252   : > { %v3766_v9 = vpop.permute.xlu2 %3765 }
0x1253   : > { %v3767_v51 = vsel %vm10998_vm3, %v3764_v45, %v3766_v9  ;;  %v3773_v18 = vsel %vm10999_vm12, %v3766_v9, 0  ;;  %vm11023_vm3 = vnez %v11022_v10  ;;  %vm11025_vm12 = vnez %v11024_v62 }
0x1254   : > { %3963 = vrot.lane.b32.xlu0 %v3773_v18, %s8398_s22  ;;  %3783 = vrot.lane.b32.xlu1 %v3773_v18, %s8394_s16  ;;  %v4057_v34 = vsel %vm10819_vm7, %v3773_v18, 0  ;;  %v3858_v20 = vsel %vm8565_vm1, %v3767_v51, 0  ;;  %v4153_v46 = vsel %vm8765_vm8, %v3773_v18, 0  ;;  %v3859_v38 = vsel %vm10813_vm0, %v3773_v18, 0 }
0x1255   : > { %3781 = vrot.lane.b32.xlu2 %v3767_v51, %s8394_s16  ;;  %v3910_v11 = vsel %vm11007_vm9, %v3773_v18, 0  ;;  %v3909_v36 = vsel %vm11009_vm2, %v3767_v51, 0  ;;  %v4005_v2 = vsel %vm11011_vm15, %v3767_v51, 0  ;;  %v4006_v13 = vsel %vm11017_vm6, %v3773_v18, 0 }
0x1256   : > { %v4056_v16 = vsel %vm11021_vm11, %v3767_v51, 0  ;;  %v4152_v35 = vsel %vm11023_vm3, %v3767_v51, 0  ;;  %v3775_v43 = vsel %vm11025_vm12, %v3770_v42, 0  ;;  %vm11026_vm8 = vcmask 1039360  }
0x1257   : > { %vm11027_vm11 = vcmask 1043456   ;;  %vm11029_vm3 = vcmask 64512   ;;  %vm11031_vm15 = vnez %v11030_v33  ;;  %vm11032_vm6 = vmmov %vm11026_vm8 }
0x1258   : > { %vm11028_vm7 = vmmov %vm11027_vm11  ;;  %v3776_v28 = vsel %vm11031_vm15, %v3767_v51, 0 }
0x1259   : > { %v3826_v40 = vsel %vm11028_vm7, %v3775_v43, 0 }
0x125c   : > { %4065 = vrot.lane.b32.xlu0 %v4057_v34, %s8400_s24  ;;  %3865 = vrot.lane.b32.xlu1 %v3858_v20, %s8396_s19 }
0x125d   : > { %3863 = vrot.lane.b32.xlu2 %v3857_v63, %s8396_s19  ;;  %v7137_v63 = vld [vmem:[%s10612_s4 + $0x50] sm:$0xf] }
0x1264   : > { %4161 = vrot.lane.b32.xlu0 %v4153_v46, %s8402_s14  ;;  %3914 = vrot.lane.b32.xlu1 %v3908_v22, %s8397_s20 }
0x1265   : > { %3867 = vrot.lane.b32.xlu2 %v3859_v38, %s8396_s19 }
0x126c   : > { %4110 = vrot.lane.b32.xlu0 %v3773_v18, %s8401_s25  ;;  %3918 = vrot.lane.b32.xlu1 %v3910_v11, %s8397_s20 }
0x126d   : > { %3916 = vrot.lane.b32.xlu2 %v3909_v36, %s8397_s20 }
0x1274   : > { %3961 = vrot.lane.b32.xlu1 %v3767_v51, %s8398_s22 }
0x1275   : > { %3959 = vrot.lane.b32.xlu2 %v3770_v42, %s8398_s22 }
0x127c   : > { %4012 = vrot.lane.b32.xlu1 %v4005_v2, %s8399_s23 }
0x127d   : > { %4010 = vrot.lane.b32.xlu2 %v4004_v58, %s8399_s23 }
0x1284   : > { %4061 = vrot.lane.b32.xlu1 %v4055_v12, %s8400_s24 }
0x1285   : > { %4014 = vrot.lane.b32.xlu2 %v4006_v13, %s8399_s23 }
0x128c   : > { %4157 = vrot.lane.b32.xlu1 %v4151_v44, %s8402_s14 }
0x128d   : > { %4063 = vrot.lane.b32.xlu2 %v4056_v16, %s8400_s24 }
0x1294   : > { %4106 = vrot.lane.b32.xlu1 %v3770_v42, %s8401_s25 }
0x1295   : > { %4159 = vrot.lane.b32.xlu2 %v4152_v35, %s8402_s14  ;;  %v7138_v35 = vld [vmem:[%s10612_s4 + $0x54] sm:$0xf] }
0x129d   : > { %4108 = vrot.lane.b32.xlu2 %v3767_v51, %s8401_s25 }
0x12af   : > { %v3782_v41 = vpop.permute.xlu2 %3781 }
0x12b7   : > { %v3864_v55 = vpop.permute.xlu2 %3863 }
0x12be   : > { %v3780_v19 = vpop.permute.xlu1 %3779 }
0x12bf   : > { %v3785_v49 = vsel %vm11026_vm8, %v3780_v19, %v3782_v41  ;;  %v3868_v56 = vpop.permute.xlu2 %3867  ;;  %vm11033_vm8 = vmmov %vm11028_vm7 }
0x12c0   : > { %v3791_v7 = vsel %vm11027_vm11, %v3785_v49, 0  ;;  %vm11034_vm11 = vmmov %vm11028_vm7 }
0x12c1   : > { %3803 = vmatpush.bf16.msra.mxu2 %v3791_v7  ;;  %v3829_v4 = vsel %vm11034_vm11, %v3776_v28, 0  ;;  %vm11035_vm7 = vmmov %vm11029_vm3  ;;  %v7139_v28 = vld [vmem:[%s10612_s4 + $0x58] sm:$0xf] }
0x12c2   : > { %vm11038_vm2 = vmmov %vm11033_vm8 }
0x12c3   : > { %vm11039_vm9 = vmmov %vm11038_vm2 }
0x12c4   : > { %7153 = vmatmul.msk.bf16.vlgmr.msra.gmra.mxu2 %vm11029_vm3, %v7136_v24  ;;  %vm11037_vm3 = vmmov %vm11036_vm5 }
0x12c5   : > { %3838 = vmatpush.bf16.msrb.mxu2 %v3826_v40  ;;  %vm11042_vm11 = vmmov %vm11038_vm2 }
0x12c6   : > { %v3784_v30 = vpop.permute.xlu1 %3783  ;;  %v3964_v9 = vpop.permute.xlu0 %3963 }
0x12c7   : > { %v3786_v39 = vsel %vm11032_vm6, %v3782_v41, %v3784_v30  ;;  %v3917_v26 = vpop.permute.xlu2 %3916  ;;  %vm11040_vm6 = vmmov %vm11035_vm7 }
0x12c8   : > { %v3794_v53 = vsel %vm11033_vm8, %v3786_v39, 0  ;;  %vm11041_vm8 = vcmask 916480  }
0x12c9   : > { %3816 = vmatpush.bf16.msra.mxu3 %v3794_v53 }
0x12cc   : > { %7154 = vmatmul.msk.bf16.vlgmr.msra.gmra.mxu3 %vm11035_vm7, %v7136_v24 }
0x12cd   : > { %3851 = vmatpush.bf16.msrb.mxu3 %v3829_v4 }
0x12ce   : > { %v3866_v52 = vpop.permute.xlu1 %3865  ;;  %v4066_v46 = vpop.permute.xlu0 %4065 }
0x12cf   : > { %v3960_v61 = vpop.permute.xlu2 %3959  ;;  %v3869_v48 = vsel %vm11036_vm5, %v3864_v55, %v3866_v52  ;;  %v3870_v0 = vsel %vm11037_vm3, %v3866_v52, %v3868_v56  ;;  %vm11043_vm5 = vmmov %vm11040_vm6  ;;  %vm11046_vm3 = vcmask 908288  }
0x12d0   : > { %v3875_v23 = vsel %vm11038_vm2, %v3869_v48, 0  ;;  %v3878_v47 = vsel %vm11039_vm9, %v3870_v0, 0  ;;  %vm11044_vm9 = vmmov %vm11041_vm8  ;;  %v7142_v48 = vld [vmem:[%s10612_s4 + $0x64] sm:$0xf] }
0x12d1   : > { %3887 = vmatpush.bf16.msra.mxu2 %v3875_v23  ;;  %3900 = vmatpush.bf16.msra.mxu3 %v3878_v47  ;;  %vm11045_vm7 = vmmov %vm11043_vm5  ;;  %v7140_v23 = vld [vmem:[%s10612_s4 + $0x5c] sm:$0xf] }
0x12d4   : > { %7155 = vmatmul.msk.bf16.vlgmr.msrb.gmra.mxu2 %vm11040_vm6, %v7135_v59  ;;  %vm11047_vm6 = vmmov %vm11038_vm2 }
0x12d6   : > { %v3915_v1 = vpop.permute.xlu1 %3914  ;;  %v4162_v12 = vpop.permute.xlu0 %4161 }
0x12d7   : > { %v4011_v15 = vpop.permute.xlu2 %4010  ;;  %v3920_v45 = vsel %vm11041_vm8, %v3915_v1, %v3917_v26  ;;  %vm11048_vm8 = vmmov %vm11046_vm3 }
0x12d8   : > { %v3926_v42 = vsel %vm11042_vm11, %v3920_v45, 0  ;;  %vm11049_vm11 = vmmov %vm11038_vm2  ;;  %v7141_v45 = vld [vmem:[%s10612_s4 + $0x60] sm:$0xf] }
0x12d9   : > { %3938 = vmatpush.bf16.msrb.mxu2 %v3926_v42  ;;  %v7143_v42 = vld [vmem:[%s10612_s4 + $0x68] sm:$0xf] }
0x12dc   : > { %7156 = vmatmul.msk.bf16.vlgmr.msrb.gmra.mxu3 %vm11043_vm5, %v7135_v59 }
0x12de   : > { %v3919_v51 = vpop.permute.xlu1 %3918  ;;  %v4111_v19 = vpop.permute.xlu0 %4110 }
0x12df   : > { %v4015_v18 = vpop.permute.xlu2 %4014  ;;  %v3921_v34 = vsel %vm11044_vm9, %v3917_v26, %v3919_v51  ;;  %vm11050_vm9 = vcmask 900096  }
0x12e0   : > { %v3929_v20 = vsel %vm11038_vm2, %v3921_v34, 0 }
0x12e1   : > { %3951 = vmatpush.bf16.msrb.mxu3 %v3929_v20 }
0x12e4   : > { %7157 = vmatmul.msk.bf16.vlgmr.msra.gmra.mxu2 %vm11045_vm7, %v7137_v63  ;;  %vm11051_vm7 = vmmov %vm11043_vm5 }
0x12e6   : > { %v3962_v22 = vpop.permute.xlu1 %3961 }
0x12e7   : > { %v4064_v38 = vpop.permute.xlu2 %4063  ;;  %v3965_v11 = vsel %vm11046_vm3, %v3960_v61, %v3962_v22  ;;  %v3966_v2 = vsel %vm11048_vm8, %v3962_v22, %v3964_v9  ;;  %vm11052_vm3 = vcmask 777216   ;;  %vm11054_vm8 = vmmov %vm11038_vm2 }
0x12e8   : > { %v3971_v36 = vsel %vm11047_vm6, %v3965_v11, 0  ;;  %v3974_v58 = vsel %vm11049_vm11, %v3966_v2, 0  ;;  %vm11053_vm6 = vmmov %vm11050_vm9 }
0x12e9   : > { %3983 = vmatpush.bf16.msra.mxu2 %v3971_v36  ;;  %vm11055_vm11 = vmmov %vm11038_vm2 }
0x12ec   : > { %7158 = vmatmul.msk.bf16.vlgmr.msra.gmra.mxu3 %vm11043_vm5, %v7137_v63 }
0x12ed   : > { %3996 = vmatpush.bf16.msra.mxu3 %v3974_v58 }
0x12ee   : > { %v4013_v13 = vpop.permute.xlu1 %4012 }
0x12ef   : > { %v4160_v44 = vpop.permute.xlu2 %4159  ;;  %v4016_v16 = vsel %vm11050_vm9, %v4011_v15, %v4013_v13  ;;  %v4017_v56 = vsel %vm11053_vm6, %v4013_v13, %v4015_v18  ;;  %vm11056_vm9 = vcmask 785408   ;;  %vm11058_vm6 = vmmov %vm11038_vm2  ;;  %v8416_v15 = vmov 7  }
0x12f0   : > { %v4022_v41 = vsel %vm11038_vm2, %v4016_v16, 0  ;;  %v4025_v40 = vsel %vm11055_vm11, %v4017_v56, 0  ;;  %vm11060_vm11 = vmmov %vm11038_vm2  ;;  %8097 = vset.pattern.permute.xlu1 %v8416_v15 }
0x12f1   : > { %4203 = vperm.xlu1 %8097, %v9947_v37  }
0x12f4   : > { %7159 = vmatmul.msk.bf16.vlgmr.msrb.gmra.mxu2 %vm11051_vm7, %v7138_v35  ;;  %vm11057_vm7 = vmmov %vm11043_vm5 }
0x12f5   : > { %4034 = vmatpush.bf16.msrb.mxu2 %v4022_v41 }
0x12f6   : > { %v4062_v55 = vpop.permute.xlu1 %4061 }
0x12f7   : > { %v4109_v43 = vpop.permute.xlu2 %4108  ;;  %v4067_v30 = vsel %vm11056_vm9, %v4062_v55, %v4064_v38 }
0x12f8   : > { %v4113_v49 = vsel %vm11052_vm3, %v4109_v43, %v4111_v19  ;;  %v4073_v39 = vsel %vm11038_vm2, %v4067_v30, 0  ;;  %vm11062_vm2 = vmmov %vm11043_vm5 }
0x12f9   : > { %v4121_v7 = vsel %vm11054_vm8, %v4113_v49, 0  ;;  %vm11059_vm8 = vmmov %vm11056_vm9  ;;  %vm11061_vm9 = vcmask 769024  }
0x12fa   : > { %4143 = vmatpush.bf16.msra.mxu1 %v4121_v7  ;;  %v4068_v52 = vsel %vm11059_vm8, %v4064_v38, %v4066_v46  ;;  %vm11066_vm8 = vmmov %vm11061_vm9 }
0x12fb   : > { %v4076_v61 = vsel %vm11060_vm11, %v4068_v52, 0  ;;  %v4164_v59 = vsel %vm11066_vm8, %v4160_v44, %v4162_v12 }
0x12fc   : > { %7160 = vmatmul.msk.bf16.vlgmr.msrb.gmra.mxu3 %vm11043_vm5, %v7138_v35 }
0x12fd   : > { %4047 = vmatpush.bf16.msrb.mxu3 %v4025_v40 }
0x12fe   : > { %v4158_v24 = vpop.permute.xlu1 %4157 }
0x12ff   : > { %v4163_v0 = vsel %vm11061_vm9, %v4158_v24, %v4160_v44  ;;  %vm11069_vm9 = vmmov %vm11062_vm2 }
0x1304   : > { %7161 = vmatmul.msk.bf16.vlgmr.msra.gmra.mxu2 %vm11057_vm7, %v7139_v28  ;;  %vm11063_vm7 = vmmov %vm11062_vm2 }
0x1305   : > { %4085 = vmatpush.bf16.msra.mxu2 %v4073_v39  ;;  %7168 = vmatmul.msk.bf16.vlgmr.msra.gmra.mxu1 %vm11063_vm7, %v7142_v48  ;;  %vm11070_vm7 = vmmov %vm11062_vm2 }
0x1306   : > { %v4107_v26 = vpop.permute.xlu1 %4106 }
0x1307   : > { %v4112_v53 = vsel %vm11052_vm3, %v4107_v26, %v4109_v43  ;;  %vm11064_vm3 = vmmov %vm11058_vm6 }
0x1308   : > { %v4118_v4 = vsel %vm11058_vm6, %v4112_v53, 0  ;;  %v4169_v47 = vsel %vm11064_vm3, %v4163_v0, 0  ;;  %vm11065_vm6 = vmmov %vm11062_vm2  ;;  %v477_v53 = vld [vmem:[%s10611_s3 + $0x8] sm:$0xff] }
0x1309   : > { %4130 = vmatpush.bf16.msra.mxu0 %v4118_v4  ;;  %vm11067_vm11 = vmmov %vm11064_vm3 }
0x130a   : > { %v4172_v1 = vsel %vm11067_vm11, %v4164_v59, 0  ;;  %vm11071_vm3 = vmmov %vm11062_vm2 }
0x130c   : > { %7162 = vmatmul.msk.bf16.vlgmr.msra.gmra.mxu3 %vm11043_vm5, %v7139_v28  ;;  %7167 = vmatmul.msk.bf16.vlgmr.msra.gmra.mxu0 %vm11062_vm2, %v7142_v48  ;;  %vm11068_vm5 = vmmov %vm11062_vm2 }
0x130d   : > { %4098 = vmatpush.bf16.msra.mxu3 %v4076_v61  ;;  %v11072_v61 = vld [vmem:[#allocation22_spill] sm:$0xff] }
0x130e   : > { %v11073_v48 = vperm.slane %v11072_v61, 0 }
0x1310   : > { %v487_v0 = vmul.f32 %v11073_v48, %v477_v53 }
0x1314   : > { %7163 = vmatmul.msk.bf16.vlgmr.msrb.gmra.mxu2 %vm11065_vm6, %v7140_v23  ;;  %vm11074_vm6 = vcmask 261120  }
0x1315   : > { %4181 = vmatpush.bf16.msrb.mxu2 %v4169_v47 }
0x131c   : > { %7164 = vmatmul.msk.bf16.vlgmr.msrb.gmra.mxu3 %vm11068_vm5, %v7140_v23  ;;  %v488_v23 = vsel %vm11074_vm6, %v487_v0, 0.0 }
0x131d   : > { %4194 = vmatpush.bf16.msrb.mxu3 %v4172_v1  ;;  %489 = vadd.xlane.f32.xlu1 %v488_v23 }
0x1324   : > { %7165 = vmatmul.msk.bf16.vlgmr.msra.gmra.mxu2 %vm11069_vm9, %v7141_v45 }
0x132c   : > { %7166 = vmatmul.msk.bf16.vlgmr.msra.gmra.mxu3 %vm11062_vm2, %v7141_v45 }
0x1334   : > { %7169 = vmatmul.msk.bf16.vlgmr.msrb.gmra.mxu2 %vm11070_vm7, %v7143_v42 }
0x133c   : > { %7170 = vmatmul.msk.bf16.vlgmr.msrb.gmra.mxu3 %vm11071_vm3, %v7143_v42 }
0x1347   : > { %v3805_v9 = vpop.f32.mrf.mxu2 }
0x134f   : > { %v3818_v51 = vpop.f32.mrf.mxu3  ;;  %v3807_v18 = vpop.f32.mrf.mxu2 }
0x1357   : > { %v3820_v34 = vpop.f32.mrf.mxu3  ;;  %v3840_v20 = vpop.f32.mrf.mxu2 }
0x1358   : > { %v3841_v63 = vadd.f32 %v3840_v20, %v3805_v9 }
0x135f   : > { %v3853_v46 = vpop.f32.mrf.mxu3  ;;  %v3842_v22 = vpop.f32.mrf.mxu2 }
0x1360   : > { %v3854_v38 = vadd.f32 %v3853_v46, %v3818_v51 }
0x1367   : > { %v3855_v11 = vpop.f32.mrf.mxu3  ;;  %v3889_v36 = vpop.f32.mrf.mxu2 }
0x1368   : > { %v3906_v2 = vadd.f32 %v3889_v36, %v3841_v63  ;;  %v4204_v11 = vpop.permute.xlu1 %4203 }
0x136f   : > { %v3902_v58 = vpop.f32.mrf.mxu3  ;;  %v3891_v12 = vpop.f32.mrf.mxu2 }
0x1370   : > { %v3907_v13 = vadd.f32 %v3902_v58, %v3854_v38 }
0x1377   : > { %v3904_v44 = vpop.f32.mrf.mxu3  ;;  %v3940_v16 = vpop.f32.mrf.mxu2 }
0x1378   : > { %v3957_v1 = vadd.f32 %v3940_v16, %v3906_v2 }
0x137f   : > { %v3953_v35 = vpop.f32.mrf.mxu3  ;;  %v3942_v41 = vpop.f32.mrf.mxu2 }
0x1380   : > { %v3958_v15 = vadd.f32 %v3953_v35, %v3907_v13  ;;  %v8417_v13 = vmov 9   ;;  %v8418_v35 = vmov 8  }
0x1381   : > { %8099 = vset.pattern.permute.xlu0 %v8417_v13  ;;  %8098 = vset.pattern.permute.xlu2 %v8418_v35 }
0x1382   : > { %v4145_v7 = vpop.f32.mrf.mxu1 }
0x1387   : > { %v3955_v55 = vpop.f32.mrf.mxu3  ;;  %v3985_v19 = vpop.f32.mrf.mxu2 }
0x1388   : > { %v4002_v45 = vadd.f32 %v3985_v19, %v3957_v1 }
0x1389   : > { %v4132_v43 = vpop.f32.mrf.mxu0 }
0x138a   : > { %v4147_v28 = vpop.f32.mrf.mxu1 }
0x138f   : > { %v3998_v49 = vpop.f32.mrf.mxu3  ;;  %v3987_v56 = vpop.f32.mrf.mxu2 }
0x1390   : > { %v4003_v42 = vadd.f32 %v3998_v49, %v3958_v15  ;;  %v490_v16 = vpop.xlane.xlu1 %489  ;;  %v8419_v49 = vmov 10   ;;  %v11075_v56 = vld [vmem:[#allocation23_spill] sm:$0xff] }
0x1391   : > { %v4134_v40 = vpop.f32.mrf.mxu0  ;;  %v491_v19 = vadd.f32 %v9947_v37, %v490_v16  ;;  %8100 = vset.pattern.permute.xlu1 %v8419_v49 }
0x1393   : > { %4287 = vperm.xlu1 %8100, %v491_v19  }
0x1397   : > { %v4000_v24 = vpop.f32.mrf.mxu3  ;;  %v4036_v30 = vpop.f32.mrf.mxu2 }
0x1398   : > { %v4053_v9 = vadd.f32 %v4036_v30, %v4002_v45 }
0x139f   : > { %v4049_v39 = vpop.f32.mrf.mxu3  ;;  %v4038_v26 = vpop.f32.mrf.mxu2 }
0x13a0   : > { %v4054_v34 = vadd.f32 %v4049_v39, %v4003_v42  ;;  %v11076_v26 = vmov 0  }
0x13a1   : > { %8104 = vset.pattern.permute.xlu1 %v11076_v26 }
0x13a7   : > { %v4051_v4 = vpop.f32.mrf.mxu3  ;;  %v4087_v52 = vpop.f32.mrf.mxu2 }
0x13a8   : > { %v4104_v20 = vadd.f32 %v4087_v52, %v4053_v9 }
0x13aa   : > { %v4149_v46 = vadd.f32 %v4132_v43, %v4104_v20 }
0x13af   : > { %v4100_v47 = vpop.f32.mrf.mxu3  ;;  %v4089_v59 = vpop.f32.mrf.mxu2 }
0x13b0   : > { %v4105_v63 = vadd.f32 %v4100_v47, %v4054_v34 }
0x13b2   : > { %v4150_v22 = vadd.f32 %v4145_v7, %v4105_v63 }
0x13b7   : > { %v4102_v51 = vpop.f32.mrf.mxu3  ;;  %v4183_v18 = vpop.f32.mrf.mxu2 }
0x13b8   : > { %v4200_v38 = vadd.f32 %v4183_v18, %v4149_v46 }
0x13ba   : > { %v4206_v44 = vadd.f32 %v4204_v11, %v4200_v38 }
0x13bf   : > { %v4196_v36 = vpop.f32.mrf.mxu3  ;;  %v4185_v58 = vpop.f32.mrf.mxu2 }
0x13c0   : > { %v4201_v12 = vadd.f32 %v4196_v36, %v4150_v22 }
0x13c2   : > { %v4207_v41 = vadd.f32 %v4204_v11, %v4201_v12 }
0x13c4   : > { %v4208_v55 = vadd.f32 %v4207_v41, %v4206_v44 }
0x13c6   : > { %4209 = vadd.xlane.f32.xlu2 %v4208_v55 }
0x13c7   : > { %v4198_v2 = vpop.f32.mrf.mxu3 }
0x13de   : > { %4234 = vperm.xlu2 %8098, %v9947_v37  }
0x13e6   : > { %8105 = vset.pattern.permute.xlu2 %v11076_v26 }
0x1439   : > { %v4210_v43 = vpop.xlane.xlu2 %4209 }
0x143a   : > { %v4211_v7 = vmul.f32 %v4210_v43, %v11075_v56 }
0x143c   : > { %v4212_v40 = vsub.f32 %v4206_v44, %v4211_v7  ;;  %v4213_v24 = vsub.f32 %v4207_v41, %v4211_v7 }
0x143e   : > { %v4214_v30 = vmul.f32 %v4212_v40, %v4212_v40  ;;  %v4215_v28 = vmul.f32 %v4213_v24, %v4213_v24 }
0x1440   : > { %v4216_v39 = vadd.f32 %v4215_v28, %v4214_v30  ;;  %v4288_v28 = vpop.permute.xlu1 %4287 }
0x1441   : > { %v4235_v15 = vpop.permute.xlu2 %4234 }
0x1442   : > { %4217 = vadd.xlane.f32.xlu0 %v4216_v39 }
0x1456   : > { %4240 = vperm.xlu0 %8099, %v9947_v37  }
0x14b5   : > { %v4218_v53 = vpop.xlane.xlu0 %4217 }
0x14b6   : > { %v4219_v4 = vmul.f32 %v4218_v53, %v11075_v56 }
0x14b8   : > { %v4220_v52 = vadd.f32 1e-05, %v4219_v4 }
0x14ba   : > { %8316 = vrsqrt.f32 %v4220_v52  ;;  %vm4227_vm11 = vweird.f32 %v4220_v52 }
0x14c0   : > { %v8317_v61 = vpop.eup %8316 }
0x14c1   : > { %v4222_v48 = vmul.f32 %v8317_v61, %v4220_v52  ;;  %vm4228_vm8 = vweird.f32 %v8317_v61 }
0x14c2   : > { %vm4229_vm5 = vmor %vm4227_vm11, %vm4228_vm8 }
0x14c3   : > { %v4223_v0 = vmul.f32 %v8317_v61, %v4222_v48 }
0x14c5   : > { %v4224_v23 = vmul.f32 0.5, %v4223_v0 }
0x14c7   : > { %v4225_v47 = vsub.f32 1.5, %v4224_v23 }
0x14c8   : > { %v4241_v9 = vpop.permute.xlu0 %4240 }
0x14c9   : > { %v4226_v59 = vmul.f32 %v8317_v61, %v4225_v47 }
0x14cb   : > { %v4230_v1 = vsel %vm4229_vm5, %v8317_v61, %v4226_v59 }
0x14cc   : > { %v4231_v45 = vmul.f32 %v4230_v1, %v4212_v40  ;;  %v4232_v42 = vmul.f32 %v4230_v1, %v4213_v24 }
0x14ce   : > { %v4237_v37 = vmul.f32 %v4235_v15, %v4231_v45  ;;  %v4238_v51 = vmul.f32 %v4235_v15, %v4232_v42 }
0x14d0   : > { %v4243_v18 = vadd.f32 %v4241_v9, %v4237_v37  ;;  %v4244_v34 = vadd.f32 %v4241_v9, %v4238_v51 }
0x14d2   : > { %v7171_v20 = vmul.f32 -1.442695, %v4243_v18  ;;  %v7172_v63 = vmul.f32 -1.442695, %v4244_v34 }
0x14d4   : > { %8318 = vpow2.f32 %v7171_v20 }
0x14d5   : > { %8320 = vpow2.f32 %v7172_v63 }
0x14da   : > { %v8319_v46 = vpop.eup %8318 }
0x14db   : > { %v8321_v22 = vpop.eup %8320  ;;  %v4251_v38 = vadd.f32 1.0, %v8319_v46 }
0x14dc   : > { %v4252_v11 = vadd.f32 1.0, %v8321_v22 }
0x14dd   : > { %8322 = vrcp.f32 %v4251_v38  ;;  %v4264_v55 = vand.u32 2147483648, %v4251_v38  ;;  %v4262_v16 = vand.u32 2147483647, %v4251_v38  ;;  %vm4258_vm7 = vweird.f32 %v4251_v38 }
0x14de   : > { %8324 = vrcp.f32 %v4252_v11  ;;  %v4279_v35 = vand.u32 2147483648, %v4252_v11  ;;  %v4277_v49 = vand.u32 2147483647, %v4252_v11  ;;  %vm4273_vm6 = vweird.f32 %v4252_v11 }
0x14df   : > { %v4265_v7 = vor.u32 1.1754944e-38, %v4264_v55  ;;  %vm4263_vm8 = vcmp.eq.f32.partialorder %v4262_v16, 8.507059e+37 }
0x14e0   : > { %v4280_v30 = vor.u32 1.1754944e-38, %v4279_v35  ;;  %vm4278_vm5 = vcmp.eq.f32.partialorder %v4277_v49, 8.507059e+37 }
0x14e3   : > { %v8323_v36 = vpop.eup %8322 }
0x14e4   : > { %v8325_v58 = vpop.eup %8324  ;;  %v4254_v12 = vmul.f32 %v8323_v36, %v4251_v38  ;;  %vm4259_vm9 = vweird.f32 %v8323_v36 }
0x14e5   : > { %v4269_v44 = vmul.f32 %v8325_v58, %v4252_v11  ;;  %vm4274_vm2 = vweird.f32 %v8325_v58  ;;  %vm4260_vm3 = vmor %vm4258_vm7, %vm4259_vm9  ;;  %vm11077_vm9 = vcmask 138240  }
0x14e6   : > { %v4255_v41 = vsub.f32 1.0, %v4254_v12  ;;  %vm4275_vm11 = vmor %vm4273_vm6, %vm4274_vm2  ;;  %vm11078_vm2 = vcmask 1043456  }
0x14e7   : > { %v4270_v2 = vsub.f32 1.0, %v4269_v44  ;;  %vm11079_vm7 = vmmov %vm11077_vm9 }
0x14e8   : > { %v4256_v13 = vmul.f32 %v8323_v36, %v4255_v41  ;;  %vm11081_vm6 = vmmov %vm11078_vm2 }
0x14e9   : > { %v4271_v19 = vmul.f32 %v8325_v58, %v4270_v2 }
0x14ea   : > { %v4257_v43 = vadd.f32 %v8323_v36, %v4256_v13 }
0x14eb   : > { %v4272_v40 = vadd.f32 %v8325_v58, %v4271_v19  ;;  %v7144_v19 = vld [vmem:[%s10612_s4 + $0x6c] sm:$0xf] }
0x14ec   : > { %v4261_v24 = vsel %vm4260_vm3, %v8323_v36, %v4257_v43  ;;  %vm11080_vm3 = vmmov %vm11079_vm7 }
0x14ed   : > { %v4266_v39 = vsel %vm4263_vm8, %v4265_v7, %v4261_v24  ;;  %v4276_v26 = vsel %vm4275_vm11, %v8325_v58, %v4272_v40  ;;  %vm11082_vm8 = vnez %v11006_v31  ;;  %vm11083_vm11 = vnez %v11008_v54 }
0x14ee   : > { %v4281_v53 = vsel %vm4278_vm5, %v4280_v30, %v4276_v26  ;;  %v4283_v4 = vmul.f32 %v4266_v39, %v4243_v18  ;;  %vm11084_vm5 = vnez %v11018_v21 }
0x14ef   : > { %v4284_v52 = vmul.f32 %v4281_v53, %v4244_v34  ;;  %v7145_v53 = vld [vmem:[%s10612_s4 + $0x70] sm:$0xf] }
0x14f0   : > { %v4290_v61 = vadd.f32 %v4288_v28, %v4283_v4 }
0x14f1   : > { %v4291_v48 = vadd.f32 %v4288_v28, %v4284_v52 }
0x14f3   : > { %v4292_v0 = vpack.c.bf16 %v4291_v48, %v4290_v61 }
0x14f5   : > { %v4294_v23 = vunpack.c.l.b16 %v4292_v0  ;;  %v4295_v47 = vunpack.c.h.b16 %v4292_v0 }
0x14f7   : > { %v4296_v59 = vpack.c.b16 %v4294_v23, %v4294_v23  ;;  %v4297_v1 = vpack.c.b16 %v4295_v47, %v4295_v47 }
0x14f9   : > { %4300 = vrot.lane.b32.xlu1 %v4297_v1, %s8390_s12  ;;  %4298 = vrot.lane.b32.xlu2 %v4296_v59, %s8390_s12 }
0x1553   : > { %v4299_v15 = vpop.permute.xlu2 %4298 }
0x1554   : > { %v4305_v45 = vsel %vm11077_vm9, 0, %v4299_v15  ;;  %vm11085_vm9 = vnez %v11016_v5 }
0x1555   : > { %4314 = vrot.lane.b32.xlu2 %v4305_v45, %s8394_s16  ;;  %v4392_v42 = vsel %vm8587_vm13, %v4305_v45, 0  ;;  %v4310_v9 = vsel %vm11025_vm12, %v4305_v45, 0  ;;  %v4443_v51 = vsel %vm10815_vm4, %v4305_v45, 0  ;;  %v4539_v63 = vsel %vm11013_vm10, %v4305_v45, 0 }
0x1556   : > { %4398 = vrot.lane.b32.xlu0 %v4392_v42, %s8396_s19  ;;  %v4361_v37 = vsel %vm11078_vm2, %v4310_v9, 0  ;;  %v4590_v36 = vsel %vm11015_vm14, %v4305_v45, 0  ;;  %v4686_v44 = vsel %vm11084_vm5, %v4305_v45, 0  ;;  %vm11086_vm2 = vnez %v11010_v27 }
0x1557   : > { %4373 = vmatpush.bf16.msra.mxu2 %v4361_v37  ;;  %vm11101_vm10 = vcmask 916480  }
0x155e   : > { %4449 = vrot.lane.b32.xlu0 %v4443_v51, %s8397_s20  ;;  %v7146_v51 = vld [vmem:[%s10612_s4 + $0x74] sm:$0xf] }
0x1566   : > { %4494 = vrot.lane.b32.xlu0 %v4305_v45, %s8398_s22 }
0x156b   : > { %v4301_v18 = vpop.permute.xlu1 %4300 }
0x156c   : > { %v4302_v34 = vsel %vm11079_vm7, %v4299_v15, %v4301_v18  ;;  %v4308_v20 = vsel %vm11080_vm3, %v4301_v18, 0  ;;  %vm11087_vm7 = vnez %v11000_v17  ;;  %vm11088_vm3 = vnez %v11020_v25  ;;  %v7147_v18 = vld [vmem:[%s10612_s4 + $0x78] sm:$0xf] }
0x156d   : > { %4318 = vrot.lane.b32.xlu2 %v4308_v20, %s8394_s16  ;;  %4316 = vrot.lane.b32.xlu1 %v4302_v34, %s8394_s16  ;;  %v4311_v46 = vsel %vm11031_vm15, %v4302_v34, 0  ;;  %v4394_v38 = vsel %vm10813_vm0, %v4308_v20, 0  ;;  %v4393_v11 = vsel %vm8565_vm1, %v4302_v34, 0  ;;  %v4445_v58 = vsel %vm11082_vm8, %v4308_v20, 0 }
0x156e   : > { %4545 = vrot.lane.b32.xlu0 %v4539_v63, %s8399_s23  ;;  %v4364_v22 = vsel %vm11081_vm6, %v4311_v46, 0  ;;  %v4444_v12 = vsel %vm11083_vm11, %v4302_v34, 0  ;;  %v4541_v41 = vsel %vm11085_vm9, %v4308_v20, 0  ;;  %v4540_v55 = vsel %vm11086_vm2, %v4302_v34, 0 }
0x156f   : > { %4386 = vmatpush.bf16.msra.mxu3 %v4364_v22  ;;  %v4592_v2 = vsel %vm11087_vm7, %v4308_v20, 0  ;;  %v4591_v13 = vsel %vm11088_vm3, %v4302_v34, 0  ;;  %vm11089_vm6 = vnez %v11003_v50  ;;  %vm11090_vm9 = vnez %v11022_v10  ;;  %vm11102_vm3 = vmmov %vm11101_vm10 }
0x1570   : > { %v4688_v16 = vsel %vm11089_vm6, %v4308_v20, 0  ;;  %v4687_v35 = vsel %vm11090_vm9, %v4302_v34, 0  ;;  %vm11091_vm7 = vcmask 64512   ;;  %vm11093_vm6 = vcmask 1039360  }
0x1571   : > { %7175 = vmatmul.msk.bf16.vlgmr.msra.gmra.mxu2 %vm11091_vm7, %v7144_v19  ;;  %vm11092_vm5 = vmmov %vm11091_vm7  ;;  %vm11095_vm8 = vcmask 1043456  }
0x1572   : > { %7176 = vmatmul.msk.bf16.vlgmr.msra.gmra.mxu3 %vm11092_vm5, %v7144_v19  ;;  %vm11094_vm9 = vmmov %vm11093_vm6  ;;  %v8420_v19 = vmov 11  }
0x1573   : > { %vm11096_vm2 = vmmov %vm11095_vm8  ;;  %8101 = vset.pattern.permute.xlu0 %v8420_v19 }
0x1574   : > { %vm11097_vm7 = vmmov %vm11092_vm5 }
0x1575   : > { %4402 = vrot.lane.b32.xlu2 %v4394_v38, %s8396_s19  ;;  %4400 = vrot.lane.b32.xlu1 %v4393_v11, %s8396_s19 }
0x1576   : > { %4596 = vrot.lane.b32.xlu0 %v4590_v36, %s8400_s24 }
0x157d   : > { %4453 = vrot.lane.b32.xlu2 %v4445_v58, %s8397_s20  ;;  %4451 = vrot.lane.b32.xlu1 %v4444_v12, %s8397_s20 }
0x157e   : > { %4641 = vrot.lane.b32.xlu0 %v4305_v45, %s8401_s25 }
0x1585   : > { %4498 = vrot.lane.b32.xlu2 %v4308_v20, %s8398_s22  ;;  %4496 = vrot.lane.b32.xlu1 %v4302_v34, %s8398_s22 }
0x1586   : > { %4692 = vrot.lane.b32.xlu0 %v4686_v44, %s8402_s14 }
0x158d   : > { %4549 = vrot.lane.b32.xlu2 %v4541_v41, %s8399_s23  ;;  %4547 = vrot.lane.b32.xlu1 %v4540_v55, %s8399_s23 }
0x1595   : > { %4600 = vrot.lane.b32.xlu2 %v4592_v2, %s8400_s24  ;;  %4598 = vrot.lane.b32.xlu1 %v4591_v13, %s8400_s24  ;;  %v7148_v2 = vld [vmem:[%s10612_s4 + $0x7c] sm:$0xf] }
0x159d   : > { %4645 = vrot.lane.b32.xlu2 %v4308_v20, %s8401_s25  ;;  %4643 = vrot.lane.b32.xlu1 %v4302_v34, %s8401_s25 }
0x15a5   : > { %4696 = vrot.lane.b32.xlu2 %v4688_v16, %s8402_s14  ;;  %4694 = vrot.lane.b32.xlu1 %v4687_v35, %s8402_s14  ;;  %v7149_v16 = vld [vmem:[%s10612_s4 + $0x80] sm:$0xf] }
0x15af   : > { %v4315_v49 = vpop.permute.xlu2 %4314 }
0x15c7   : > { %v4319_v43 = vpop.permute.xlu2 %4318 }
0x15c8   : > { %v4399_v7 = vpop.permute.xlu0 %4398 }
0x15cf   : > { %v4403_v40 = vpop.permute.xlu2 %4402 }
0x15d0   : > { %v4450_v4 = vpop.permute.xlu0 %4449 }
0x15d7   : > { %v4454_v52 = vpop.permute.xlu2 %4453 }
0x15d8   : > { %v4495_v59 = vpop.permute.xlu0 %4494 }
0x15df   : > { %v4317_v24 = vpop.permute.xlu1 %4316  ;;  %v4499_v1 = vpop.permute.xlu2 %4498 }
0x15e0   : > { %v4320_v30 = vsel %vm11093_vm6, %v4315_v49, %v4317_v24  ;;  %v4321_v28 = vsel %vm11094_vm9, %v4317_v24, %v4319_v43  ;;  %vm11098_vm6 = vcmask 1031168   ;;  %v4546_v20 = vpop.permute.xlu0 %4545 }
0x15e1   : > { %v4326_v39 = vsel %vm11095_vm8, %v4320_v30, 0  ;;  %v4329_v26 = vsel %vm11096_vm2, %v4321_v28, 0  ;;  %vm11099_vm9 = vmmov %vm11098_vm6 }
0x15e2   : > { %4338 = vmatpush.bf16.msrb.mxu0 %v4326_v39  ;;  %4351 = vmatpush.bf16.msrb.mxu1 %v4329_v26  ;;  %vm11100_vm8 = vmmov %vm11096_vm2 }
0x15e5   : > { %7173 = vmatmul.msk.bf16.vlgmr.msrb.gmra.mxu0 %vm11092_vm5, %v7145_v53  ;;  %7174 = vmatmul.msk.bf16.vlgmr.msrb.gmra.mxu1 %vm11097_vm7, %v7145_v53  ;;  %vm11103_vm5 = vmmov %vm11096_vm2 }
0x15e6   : > { %vm11104_vm7 = vmmov %vm11096_vm2 }
0x15e7   : > { %v4401_v61 = vpop.permute.xlu1 %4400  ;;  %v4550_v22 = vpop.permute.xlu2 %4549 }
0x15e8   : > { %v4404_v48 = vsel %vm11098_vm6, %v4399_v7, %v4401_v61  ;;  %v4405_v0 = vsel %vm11099_vm9, %v4401_v61, %v4403_v40  ;;  %vm11105_vm6 = vcmask 64512   ;;  %v4597_v55 = vpop.permute.xlu0 %4596  ;;  %v10255_v7 = vld [vmem:[%s10610_s2] sm:$0xff] }
0x15e9   : > { %v4410_v23 = vsel %vm11100_vm8, %v4404_v48, 0  ;;  %v4413_v47 = vsel %vm11096_vm2, %v4405_v0, 0  ;;  %vm11106_vm9 = vmmov %vm11105_vm6  ;;  %vm11109_vm8 = vcmask 908288   ;;  %4738 = vperm.xlu0 %8101, %v10255_v7   ;;  %v7150_v61 = vld [vmem:[%s10612_s4 + $0x84] sm:$0xf] }
0x15ea   : > { %4422 = vmatpush.bf16.msra.mxu0 %v4410_v23  ;;  %4435 = vmatpush.bf16.msra.mxu1 %v4413_v47  ;;  %vm11110_vm2 = vmmov %vm11109_vm8  ;;  %v7151_v48 = vld [vmem:[%s10612_s4 + $0x88] sm:$0xf] }
0x15ef   : > { %v4452_v15 = vpop.permute.xlu1 %4451  ;;  %v4601_v13 = vpop.permute.xlu2 %4600 }
0x15f0   : > { %v4455_v45 = vsel %vm11101_vm10, %v4450_v4, %v4452_v15  ;;  %v4456_v42 = vsel %vm11102_vm3, %v4452_v15, %v4454_v52  ;;  %vm11107_vm10 = vmmov %vm11105_vm6  ;;  %v4642_v30 = vpop.permute.xlu0 %4641 }
0x15f1   : > { %v4461_v9 = vsel %vm11103_vm5, %v4455_v45, 0  ;;  %v4464_v37 = vsel %vm11104_vm7, %v4456_v42, 0  ;;  %vm11108_vm3 = vmmov %vm11105_vm6  ;;  %v7152_v42 = vld [vmem:[%s10612_s4 + $0x8c] sm:$0xf] }
0x15f2   : > { %4473 = vmatpush.bf16.msrb.mxu2 %v4461_v9  ;;  %4486 = vmatpush.bf16.msrb.mxu3 %v4464_v37  ;;  %vm11111_vm7 = vmmov %vm11103_vm5 }
0x15f4   : > { %v4375_v9 = vpop.f32.mrf.mxu2 }
0x15f5   : > { %7177 = vmatmul.msk.bf16.vlgmr.msra.gmra.mxu0 %vm11105_vm6, %v7146_v51  ;;  %7178 = vmatmul.msk.bf16.vlgmr.msra.gmra.mxu1 %vm11106_vm9, %v7146_v51  ;;  %vm11112_vm6 = vcmask 900096   ;;  %v4388_v37 = vpop.f32.mrf.mxu3 }
0x15f6   : > { %7179 = vmatmul.msk.bf16.vlgmr.msrb.gmra.mxu2 %vm11107_vm10, %v7147_v18  ;;  %7180 = vmatmul.msk.bf16.vlgmr.msrb.gmra.mxu3 %vm11108_vm3, %v7147_v18  ;;  %vm11113_vm9 = vmmov %vm11112_vm6 }
0x15f7   : > { %v4497_v34 = vpop.permute.xlu1 %4496  ;;  %vm11114_vm10 = vmmov %vm11103_vm5  ;;  %v4646_v28 = vpop.permute.xlu2 %4645 }
0x15f8   : > { %v4500_v63 = vsel %vm11109_vm8, %v4495_v59, %v4497_v34  ;;  %v4501_v46 = vsel %vm11110_vm2, %v4497_v34, %v4499_v1  ;;  %vm11115_vm3 = vmmov %vm11103_vm5  ;;  %vm11116_vm8 = vcmask 64512   ;;  %v4693_v0 = vpop.permute.xlu0 %4692 }
0x15f9   : > { %v4506_v38 = vsel %vm11103_vm5, %v4500_v63, 0  ;;  %v4509_v11 = vsel %vm11111_vm7, %v4501_v46, 0  ;;  %vm11117_vm2 = vmmov %vm11116_vm8 }
0x15fa   : > { %4518 = vmatpush.bf16.msrb.mxu0 %v4506_v38  ;;  %4531 = vmatpush.bf16.msrb.mxu1 %v4509_v11  ;;  %vm11118_vm5 = vmmov %vm11117_vm2 }
0x15fb   : > { %vm11119_vm7 = vmmov %vm11117_vm2 }
0x15fc   : > { %v4377_v51 = vpop.f32.mrf.mxu2 }
0x15fd   : > { %v4390_v18 = vpop.f32.mrf.mxu3 }
0x15ff   : > { %v4548_v36 = vpop.permute.xlu1 %4547  ;;  %v4697_v23 = vpop.permute.xlu2 %4696 }
0x1600   : > { %v4551_v58 = vsel %vm11112_vm6, %v4546_v20, %v4548_v36  ;;  %v4552_v12 = vsel %vm11113_vm9, %v4548_v36, %v4550_v22  ;;  %vm11120_vm6 = vcmask 785408  }
0x1601   : > { %v4557_v44 = vsel %vm11114_vm10, %v4551_v58, 0  ;;  %v4560_v41 = vsel %vm11115_vm3, %v4552_v12, 0  ;;  %vm11121_vm9 = vmmov %vm11120_vm6 }
0x1602   : > { %4569 = vmatpush.bf16.msra.mxu2 %v4557_v44  ;;  %4582 = vmatpush.bf16.msra.mxu3 %v4560_v41  ;;  %vm11122_vm10 = vmmov %vm11115_vm3 }
0x1605   : > { %7181 = vmatmul.msk.bf16.vlgmr.msrb.gmra.mxu0 %vm11116_vm8, %v7148_v2  ;;  %7182 = vmatmul.msk.bf16.vlgmr.msrb.gmra.mxu1 %vm11117_vm2, %v7148_v2  ;;  %vm11123_vm8 = vcmask 777216  }
0x1606   : > { %7183 = vmatmul.msk.bf16.vlgmr.msra.gmra.mxu2 %vm11118_vm5, %v7149_v16  ;;  %7184 = vmatmul.msk.bf16.vlgmr.msra.gmra.mxu3 %vm11119_vm7, %v7149_v16  ;;  %vm11124_vm2 = vmmov %vm11123_vm8 }
0x1607   : > { %v4599_v35 = vpop.permute.xlu1 %4598  ;;  %vm11125_vm5 = vmmov %vm11115_vm3 }
0x1608   : > { %v4602_v49 = vsel %vm11120_vm6, %v4597_v55, %v4599_v35  ;;  %v4603_v43 = vsel %vm11121_vm9, %v4599_v35, %v4601_v13  ;;  %vm11126_vm7 = vmmov %vm11115_vm3  ;;  %vm11127_vm6 = vcmask 64512  }
0x1609   : > { %v4608_v40 = vsel %vm11122_vm10, %v4602_v49, 0  ;;  %v4611_v24 = vsel %vm11115_vm3, %v4603_v43, 0  ;;  %vm11128_vm9 = vmmov %vm11127_vm6 }
0x160a   : > { %4620 = vmatpush.bf16.msra.mxu0 %v4608_v40  ;;  %4633 = vmatpush.bf16.msra.mxu1 %v4611_v24  ;;  %vm11129_vm10 = vmmov %vm11127_vm6 }
0x160b   : > { %vm11130_vm3 = vmmov %vm11127_vm6 }
0x160f   : > { %v4644_v39 = vpop.permute.xlu1 %4643 }
0x1610   : > { %v4647_v26 = vsel %vm11123_vm8, %v4642_v30, %v4644_v39  ;;  %v4648_v53 = vsel %vm11124_vm2, %v4644_v39, %v4646_v28  ;;  %vm11131_vm8 = vcmask 769024  }
0x1611   : > { %v4653_v4 = vsel %vm11125_vm5, %v4647_v26, 0  ;;  %v4656_v52 = vsel %vm11126_vm7, %v4648_v53, 0  ;;  %vm11132_vm2 = vmmov %vm11131_vm8 }
0x1612   : > { %4665 = vmatpush.bf16.msrb.mxu2 %v4653_v4  ;;  %4678 = vmatpush.bf16.msrb.mxu3 %v4656_v52  ;;  %vm11133_vm7 = vmmov %vm11125_vm5 }
0x1615   : > { %7185 = vmatmul.msk.bf16.vlgmr.msra.gmra.mxu0 %vm11127_vm6, %v7150_v61  ;;  %7186 = vmatmul.msk.bf16.vlgmr.msra.gmra.mxu1 %vm11128_vm9, %v7150_v61  ;;  %vm11134_vm6 = vmmov %vm11130_vm3 }
0x1616   : > { %7187 = vmatmul.msk.bf16.vlgmr.msrb.gmra.mxu2 %vm11129_vm10, %v7151_v48  ;;  %7188 = vmatmul.msk.bf16.vlgmr.msrb.gmra.mxu3 %vm11130_vm3, %v7151_v48  ;;  %vm11135_vm9 = vmmov %vm11130_vm3 }
0x1617   : > { %v4695_v47 = vpop.permute.xlu1 %4694 }
0x1618   : > { %v4698_v59 = vsel %vm11131_vm8, %v4693_v0, %v4695_v47  ;;  %v4699_v1 = vsel %vm11132_vm2, %v4695_v47, %v4697_v23 }
0x1619   : > { %v4704_v15 = vsel %vm11125_vm5, %v4698_v59, 0  ;;  %v4707_v45 = vsel %vm11133_vm7, %v4699_v1, 0 }
0x161a   : > { %4716 = vmatpush.bf16.msrb.mxu0 %v4704_v15  ;;  %4729 = vmatpush.bf16.msrb.mxu1 %v4707_v45 }
0x1625   : > { %7189 = vmatmul.msk.bf16.vlgmr.msrb.gmra.mxu0 %vm11134_vm6, %v7152_v42  ;;  %7190 = vmatmul.msk.bf16.vlgmr.msrb.gmra.mxu1 %vm11135_vm9, %v7152_v42 }
0x165b   : > { %v4739_v42 = vpop.permute.xlu0 %4738 }
0x1662   : > { %v4340_v34 = vpop.f32.mrf.mxu0  ;;  %v4353_v20 = vpop.f32.mrf.mxu1 }
0x1663   : > { %v4376_v30 = vadd.f32 %v4375_v9, %v4340_v34  ;;  %v4389_v28 = vadd.f32 %v4388_v37, %v4353_v20 }
0x166a   : > { %v4342_v63 = vpop.f32.mrf.mxu0  ;;  %v4355_v46 = vpop.f32.mrf.mxu1 }
0x1672   : > { %v4424_v22 = vpop.f32.mrf.mxu0  ;;  %v4437_v38 = vpop.f32.mrf.mxu1 }
0x1673   : > { %v4441_v39 = vadd.f32 %v4424_v22, %v4376_v30  ;;  %v4442_v26 = vadd.f32 %v4437_v38, %v4389_v28 }
0x1679   : > { %v4475_v11 = vpop.f32.mrf.mxu2  ;;  %v4488_v36 = vpop.f32.mrf.mxu3 }
0x167a   : > { %v4426_v58 = vpop.f32.mrf.mxu0  ;;  %v4439_v12 = vpop.f32.mrf.mxu1  ;;  %v4492_v53 = vadd.f32 %v4475_v11, %v4441_v39  ;;  %v4493_v4 = vadd.f32 %v4488_v36, %v4442_v26 }
0x167b   : > { %v8421_v12 = vmov 12  }
0x167c   : > { %8102 = vset.pattern.permute.xlu0 %v8421_v12 }
0x167d   : > { %4769 = vperm.xlu0 %8102, %v10255_v7  }
0x1681   : > { %v4477_v44 = vpop.f32.mrf.mxu2  ;;  %v4490_v41 = vpop.f32.mrf.mxu3 }
0x1682   : > { %v4520_v55 = vpop.f32.mrf.mxu0  ;;  %v4533_v2 = vpop.f32.mrf.mxu1  ;;  %v8422_v44 = vmov 13   ;;  %v11136_v41 = vmov 1  }
0x1683   : > { %v4537_v23 = vadd.f32 %v4520_v55, %v4492_v53  ;;  %v4538_v47 = vadd.f32 %v4533_v2, %v4493_v4 }
0x1685   : > { %8103 = vset.pattern.permute.xlu0 %v8422_v44 }
0x1686   : > { %4775 = vperm.xlu0 %8103, %v10255_v7  }
0x1689   : > { %v4571_v13 = vpop.f32.mrf.mxu2  ;;  %v4584_v16 = vpop.f32.mrf.mxu3 }
0x168a   : > { %v4522_v35 = vpop.f32.mrf.mxu0  ;;  %v4535_v19 = vpop.f32.mrf.mxu1  ;;  %v4588_v59 = vadd.f32 %v4571_v13, %v4537_v23  ;;  %v4589_v1 = vadd.f32 %v4584_v16, %v4538_v47 }
0x168e   : > { %8107 = vset.pattern.permute.xlu0 %v11136_v41 }
0x1691   : > { %v4573_v49 = vpop.f32.mrf.mxu2  ;;  %v4586_v43 = vpop.f32.mrf.mxu3 }
0x1692   : > { %v4622_v40 = vpop.f32.mrf.mxu0  ;;  %v4635_v24 = vpop.f32.mrf.mxu1 }
0x1693   : > { %v4639_v15 = vadd.f32 %v4622_v40, %v4588_v59  ;;  %v4640_v45 = vadd.f32 %v4635_v24, %v4589_v1 }
0x1699   : > { %v4667_v52 = vpop.f32.mrf.mxu2  ;;  %v4680_v61 = vpop.f32.mrf.mxu3 }
0x169a   : > { %v4624_v48 = vpop.f32.mrf.mxu0  ;;  %v4637_v0 = vpop.f32.mrf.mxu1  ;;  %v4684_v51 = vadd.f32 %v4667_v52, %v4639_v15  ;;  %v4685_v18 = vadd.f32 %v4680_v61, %v4640_v45 }
0x16a1   : > { %v4669_v63 = vpop.f32.mrf.mxu2  ;;  %v4682_v9 = vpop.f32.mrf.mxu3 }
0x16a2   : > { %v4718_v37 = vpop.f32.mrf.mxu0  ;;  %v4731_v34 = vpop.f32.mrf.mxu1 }
0x16a3   : > { %v4735_v20 = vadd.f32 %v4718_v37, %v4684_v51  ;;  %v4736_v46 = vadd.f32 %v4731_v34, %v4685_v18 }
0x16a5   : > { %v4741_v22 = vadd.f32 %v4739_v42, %v4735_v20  ;;  %v4742_v38 = vadd.f32 %v4739_v42, %v4736_v46 }
0x16a7   : > { %v4743_v11 = vadd.f32 %v4742_v38, %v4741_v22 }
0x16a9   : > { %4744 = vadd.xlane.f32.xlu1 %v4743_v11 }
0x16aa   : > { %v4720_v36 = vpop.f32.mrf.mxu0  ;;  %v4733_v58 = vpop.f32.mrf.mxu1 }
0x16ef   : > { %v4770_v7 = vpop.permute.xlu0 %4769 }
0x16f8   : > { %v4776_v0 = vpop.permute.xlu0 %4775 }
0x171c   : > { %v4745_v55 = vpop.xlane.xlu1 %4744 }
0x171d   : > { %v4746_v2 = vmul.f32 %v4745_v55, %v11075_v56 }
0x171f   : > { %v4747_v13 = vsub.f32 %v4741_v22, %v4746_v2  ;;  %v4748_v16 = vsub.f32 %v4742_v38, %v4746_v2 }
0x1721   : > { %v4749_v35 = vmul.f32 %v4747_v13, %v4747_v13  ;;  %v4750_v19 = vmul.f32 %v4748_v16, %v4748_v16 }
0x1723   : > { %v4751_v49 = vadd.f32 %v4750_v19, %v4749_v35 }
0x1725   : > { %4752 = vadd.xlane.f32.xlu2 %v4751_v49 }
0x1798   : > { %v4753_v43 = vpop.xlane.xlu2 %4752 }
0x1799   : > { %v4754_v40 = vmul.f32 %v4753_v43, %v11075_v56 }
0x179b   : > { %v4755_v24 = vadd.f32 1e-05, %v4754_v40 }
0x179d   : > { %8326 = vrsqrt.f32 %v4755_v24  ;;  %vm4762_vm3 = vweird.f32 %v4755_v24 }
0x17a3   : > { %v8327_v30 = vpop.eup %8326 }
0x17a4   : > { %v4757_v28 = vmul.f32 %v8327_v30, %v4755_v24  ;;  %vm4763_vm10 = vweird.f32 %v8327_v30 }
0x17a5   : > { %vm4764_vm8 = vmor %vm4762_vm3, %vm4763_vm10 }
0x17a6   : > { %v4758_v39 = vmul.f32 %v8327_v30, %v4757_v28 }
0x17a8   : > { %v4759_v26 = vmul.f32 0.5, %v4758_v39 }
0x17aa   : > { %v4760_v53 = vsub.f32 1.5, %v4759_v26 }
0x17ac   : > { %v4761_v4 = vmul.f32 %v8327_v30, %v4760_v53 }
0x17ae   : > { %v4765_v52 = vsel %vm4764_vm8, %v8327_v30, %v4761_v4 }
0x17af   : > { %v4766_v61 = vmul.f32 %v4765_v52, %v4747_v13  ;;  %v4767_v48 = vmul.f32 %v4765_v52, %v4748_v16 }
0x17b1   : > { %v4772_v23 = vmul.f32 %v4770_v7, %v4766_v61  ;;  %v4773_v47 = vmul.f32 %v4770_v7, %v4767_v48 }
0x17b3   : > { %v4778_v59 = vadd.f32 %v4776_v0, %v4772_v23  ;;  %v4779_v56 = vadd.f32 %v4776_v0, %v4773_v47 }
0x17b5   : > { %v4780_v1 = vadd.f32 %v4778_v59, %v9972_v14  ;;  %v4781_v15 = vadd.f32 %v4779_v56, %v9975_v60 }
0x17b7   : > { %v7191_v45 = vmul.f32 -1.442695, %v4780_v1  ;;  %v7192_v42 = vmul.f32 -1.442695, %v4781_v15 }
0x17b9   : > { %8328 = vpow2.f32 %v7191_v45 }
0x17ba   : > { %8330 = vpow2.f32 %v7192_v42 }
0x17bf   : > { %v8329_v51 = vpop.eup %8328 }
0x17c0   : > { %v8331_v18 = vpop.eup %8330  ;;  %v4788_v63 = vadd.f32 1.0, %v8329_v51 }
0x17c1   : > { %v4789_v9 = vadd.f32 1.0, %v8331_v18 }
0x17c2   : > { %8332 = vrcp.f32 %v4788_v63  ;;  %v4801_v38 = vand.u32 2147483648, %v4788_v63  ;;  %v4799_v60 = vand.u32 2147483647, %v4788_v63  ;;  %vm4795_vm7 = vweird.f32 %v4788_v63 }
0x17c3   : > { %8334 = vrcp.f32 %v4789_v9  ;;  %v4816_v36 = vand.u32 2147483648, %v4789_v9  ;;  %v4814_v12 = vand.u32 2147483647, %v4789_v9  ;;  %vm4810_vm9 = vweird.f32 %v4789_v9 }
0x17c4   : > { %v4802_v55 = vor.u32 1.1754944e-38, %v4801_v38  ;;  %vm4800_vm10 = vcmp.eq.f32.partialorder %v4799_v60, 8.507059e+37 }
0x17c5   : > { %v4817_v16 = vor.u32 1.1754944e-38, %v4816_v36  ;;  %vm4815_vm8 = vcmp.eq.f32.partialorder %v4814_v12, 8.507059e+37 }
0x17c8   : > { %v8333_v37 = vpop.eup %8332 }
0x17c9   : > { %v8335_v34 = vpop.eup %8334  ;;  %v4791_v20 = vmul.f32 %v8333_v37, %v4788_v63  ;;  %vm4796_vm2 = vweird.f32 %v8333_v37 }
0x17ca   : > { %v4806_v46 = vmul.f32 %v8335_v34, %v4789_v9  ;;  %vm4811_vm5 = vweird.f32 %v8335_v34  ;;  %vm4797_vm6 = vmor %vm4795_vm7, %vm4796_vm2  ;;  %vm11137_vm2 = vcmask 138240   ;;  %vm11139_vm7 = vcmask 1043456   ;;  %v7868_v9 = vld [vmem:[%s10615_s7 + $0x8] sm:$0xff] }
0x17cb   : > { %v4792_v22 = vsub.f32 1.0, %v4791_v20  ;;  %vm4812_vm3 = vmor %vm4810_vm9, %vm4811_vm5  ;;  %vm11149_vm9 = vnez %v11016_v5 }
0x17cc   : > { %v4807_v11 = vsub.f32 1.0, %v4806_v46  ;;  %vm11138_vm5 = vmmov %vm11137_vm2 }
0x17cd   : > { %v4793_v14 = vmul.f32 %v8333_v37, %v4792_v22 }
0x17ce   : > { %v4808_v58 = vmul.f32 %v8335_v34, %v4807_v11 }
0x17cf   : > { %v4794_v44 = vadd.f32 %v8333_v37, %v4793_v14 }
0x17d0   : > { %v4809_v2 = vadd.f32 %v8335_v34, %v4808_v58  ;;  %v7870_v58 = vld [vmem:[%s10615_s7 + $0x18] sm:$0xff] }
0x17d1   : > { %v4798_v13 = vsel %vm4797_vm6, %v8333_v37, %v4794_v44  ;;  %vm11140_vm6 = vmmov %vm11139_vm7 }
0x17d2   : > { %v4803_v35 = vsel %vm4800_vm10, %v4802_v55, %v4798_v13  ;;  %v4813_v19 = vsel %vm4812_vm3, %v8335_v34, %v4809_v2  ;;  %vm11150_vm10 = vnez %v11003_v50  ;;  %vm11151_vm3 = vcmask 64512   ;;  %v7869_v13 = vld [vmem:[%s10615_s7 + $0x10] sm:$0xff] }
0x17d3   : > { %v4818_v49 = vsel %vm4815_vm8, %v4817_v16, %v4813_v19  ;;  %v4820_v43 = vmul.f32 %v4803_v35, %v4780_v1  ;;  %vm11152_vm8 = vmmov %vm11151_vm3 }
0x17d4   : > { %v4821_v40 = vmul.f32 %v4818_v49, %v4781_v15 }
0x17d6   : > { %v4842_v24 = vpack.c.bf16 %v4821_v40, %v4820_v43 }
0x17d8   : > { %v4845_v30 = vunpack.c.h.b16 %v4842_v24  ;;  %v4844_v28 = vunpack.c.l.b16 %v4842_v24 }
0x17da   : > { %v4847_v39 = vpack.c.b16 %v4845_v30, %v4845_v30  ;;  %v4846_v7 = vpack.c.b16 %v4844_v28, %v4844_v28 }
0x17dc   : > { %4850 = vrot.lane.b32.xlu2 %v4847_v39, %s8390_s12  ;;  %4848 = vrot.lane.b32.xlu1 %v4846_v7, %s8390_s12  ;;  %v7872_v39 = vld [vmem:[%s10615_s7 + $0x28] sm:$0xff] }
0x1836   : > { %v4851_v26 = vpop.permute.xlu2 %4850 }
0x184e   : > { %v4849_v53 = vpop.permute.xlu1 %4848 }
0x184f   : > { %v4852_v4 = vsel %vm11137_vm2, %v4849_v53, %v4851_v26  ;;  %v4855_v52 = vsel %vm11138_vm5, 0, %v4849_v53  ;;  %vm11154_vm5 = vcmask 1039360  }
0x1850   : > { %4869 = vrot.lane.b32.xlu0 %v4855_v52, %s8394_s16  ;;  %v4956_v61 = vsel %vm8587_vm13, %v4855_v52, 0  ;;  %v4957_v48 = vsel %vm8565_vm1, %v4852_v4, 0  ;;  %v4860_v0 = vsel %vm11025_vm12, %v4855_v52, 0  ;;  %v4861_v23 = vsel %vm11031_vm15, %v4852_v4, 0  ;;  %vm11141_vm1 = vmmov %vm11137_vm2 }
0x1851   : > { %4967 = vrot.lane.b32.xlu1 %v4956_v61, %s8396_s19  ;;  %4969 = vrot.lane.b32.xlu2 %v4957_v48, %s8396_s19  ;;  %v4923_v47 = vsel %vm11139_vm7, %v4860_v0, 0  ;;  %v4926_v59 = vsel %vm11140_vm6, %v4861_v23, 0  ;;  %v4858_v6 = vsel %vm11141_vm1, %v4851_v26, 0  ;;  %v5016_v8 = vsel %vm10815_vm4, %v4855_v52, 0  ;;  %vm11155_vm7 = vmmov %vm11140_vm6  ;;  %v7871_v61 = vld [vmem:[%s10615_s7 + $0x20] sm:$0xff] }
0x1852   : > { %4935 = vmatpush.bf16.msra.mxu0 %v4923_v47  ;;  %4949 = vmatpush.bf16.msra.mxu1 %v4926_v59  ;;  %v5017_v62 = vsel %vm11083_vm11, %v4852_v4, 0  ;;  %v4958_v33 = vsel %vm10813_vm0, %v4858_v6, 0  ;;  %v5190_v56 = vsel %vm11015_vm14, %v4855_v52, 0  ;;  %vm11142_vm13 = vnez %v11020_v25 }
0x1853   : > { %v5191_v1 = vsel %vm11142_vm13, %v4852_v4, 0  ;;  %vm11143_vm4 = vnez %v11012_v57  ;;  %vm11144_vm15 = vnez %v11010_v27  ;;  %vm11145_vm0 = vnez %v11006_v31  ;;  %vm11157_vm13 = vmmov %vm11140_vm6 }
0x1854   : > { %v5130_v32 = vsel %vm11143_vm4, %v4855_v52, 0  ;;  %v5131_v3 = vsel %vm11144_vm15, %v4852_v4, 0  ;;  %v5018_v54 = vsel %vm11145_vm0, %v4858_v6, 0  ;;  %vm11146_vm14 = vnez %v11018_v21  ;;  %v7867_v21 = vld [vmem:[%s10615_s7] sm:$0xff]  ;;  %vm11158_vm4 = vmmov %vm11151_vm3 }
0x1855   : > { %v5304_v29 = vsel %vm11146_vm14, %v4855_v52, 0  ;;  %vm11147_vm12 = vnez %v11022_v10  ;;  %vm11148_vm11 = vnez %v11000_v17  ;;  %v5132_v31 = vsel %vm11149_vm9, %v4858_v6, 0  ;;  %7203 = vmatmul.msk.bf16.vlgmr.msra.gmra.mxu0 %vm11151_vm3, %v7867_v21  ;;  %7204 = vmatmul.msk.bf16.vlgmr.msra.gmra.mxu1 %vm11152_vm8, %v7867_v21  ;;  %vm11159_vm15 = vmmov %vm11154_vm5 }
0x1856   : > { %v5305_v25 = vsel %vm11147_vm12, %v4852_v4, 0  ;;  %v5192_v27 = vsel %vm11148_vm11, %v4858_v6, 0  ;;  %v5306_v57 = vsel %vm11150_vm10, %v4858_v6, 0  ;;  %vm11153_vm2 = vcmask 1031168   ;;  %vm11160_vm0 = vmmov %vm11140_vm6 }
0x1857   : > { %vm11156_vm1 = vcmask 908288   ;;  %vm11161_vm14 = vcmask 916480   ;;  %vm11162_vm12 = vmmov %vm11160_vm0  ;;  %vm11167_vm8 = vcmask 785408  }
0x1858   : > { %4871 = vrot.lane.b32.xlu0 %v4852_v4, %s8394_s16  ;;  %vm11163_vm11 = vmmov %vm11151_vm3 }
0x1859   : > { %5081 = vrot.lane.b32.xlu1 %v4855_v52, %s8398_s22  ;;  %5083 = vrot.lane.b32.xlu2 %v4852_v4, %s8398_s22  ;;  %vm11164_vm9 = vmmov %vm11151_vm3 }
0x185a   : > { %vm11165_vm10 = vmmov %vm11153_vm2 }
0x185b   : > { %vm11166_vm3 = vmmov %vm11160_vm0 }
0x1860   : > { %4873 = vrot.lane.b32.xlu0 %v4858_v6, %s8394_s16 }
0x1861   : > { %5027 = vrot.lane.b32.xlu1 %v5016_v8, %s8397_s20  ;;  %5029 = vrot.lane.b32.xlu2 %v5017_v62, %s8397_s20 }
0x1868   : > { %4971 = vrot.lane.b32.xlu0 %v4958_v33, %s8396_s19 }
0x1869   : > { %5201 = vrot.lane.b32.xlu1 %v5190_v56, %s8400_s24  ;;  %5203 = vrot.lane.b32.xlu2 %v5191_v1, %s8400_s24  ;;  %v7874_v56 = vld [vmem:[%s10615_s7 + $0x38] sm:$0xff]  ;;  %v4822_v1 = vld [vmem:[%s10618_s10] sm:$0xff] }
0x1870   : > { %5085 = vrot.lane.b32.xlu0 %v4858_v6, %s8398_s22 }
0x1871   : > { %5141 = vrot.lane.b32.xlu1 %v5130_v32, %s8399_s23  ;;  %5143 = vrot.lane.b32.xlu2 %v5131_v3, %s8399_s23  ;;  %v4823_v32 = vld [vmem:[%s10618_s10 + $0x8] sm:$0xff] }
0x1878   : > { %5031 = vrot.lane.b32.xlu0 %v5018_v54, %s8397_s20 }
0x1879   : > { %5315 = vrot.lane.b32.xlu1 %v5304_v29, %s8402_s14  ;;  %5317 = vrot.lane.b32.xlu2 %v5305_v25, %s8402_s14  ;;  %v7873_v25 = vld [vmem:[%s10615_s7 + $0x30] sm:$0xff] }
0x1880   : > { %5205 = vrot.lane.b32.xlu0 %v5192_v27, %s8400_s24  ;;  %s8423_s24 = smov 64  }
0x1881   : > { %5255 = vrot.lane.b32.xlu1 %v4855_v52, %s8401_s25  ;;  %5257 = vrot.lane.b32.xlu2 %v4852_v4, %s8401_s25 }
0x1888   : > { %5145 = vrot.lane.b32.xlu0 %v5132_v31, %s8399_s23 }
0x1889   : > { %5366 = vperm.xlu1 %8104, %v4822_v1   ;;  %5371 = vperm.xlu2 %8105, %v4823_v32  }
0x1890   : > { %5319 = vrot.lane.b32.xlu0 %v5306_v57, %s8402_s14 }
0x1891   : > { %8106 = vset.pattern.permute.xlu2 %v11136_v41  ;;  %v7473_v41 = vld [vmem:[#allocation2 + $0x1c0] sm:$0xf] }
0x1898   : > { %5259 = vrot.lane.b32.xlu0 %v4858_v6, %s8401_s25 }
0x18ab   : > { %v4970_v17 = vpop.permute.xlu2 %4969 }
0x18b3   : > { %v5084_v5 = vpop.permute.xlu2 %5083 }
0x18bb   : > { %v5030_v42 = vpop.permute.xlu2 %5029 }
0x18c2   : > { %v4870_v10 = vpop.permute.xlu0 %4869 }
0x18c3   : > { %v4968_v15 = vpop.permute.xlu1 %4967  ;;  %v5204_v60 = vpop.permute.xlu2 %5203 }
0x18c4   : > { %v4973_v45 = vsel %vm11153_vm2, %v4968_v15, %v4970_v17  ;;  %vm11168_vm2 = vmmov %vm11160_vm0  ;;  %v7936_v15 = vld [vmem:[#allocation2 + $0x1dc] sm:$0xf0] }
0x18c5   : > { %v4979_v37 = vsel %vm11140_vm6, %v4973_v45, 0  ;;  %vm11171_vm6 = vmmov %vm11160_vm0  ;;  %v7932_v45 = vld [vmem:[#allocation2 + $0x1c4] sm:$0xf] }
0x18ca   : > { %v4872_v50 = vpop.permute.xlu0 %4871 }
0x18cb   : > { %v4875_v51 = vsel %vm11154_vm5, %v4870_v10, %v4872_v50  ;;  %v5082_v18 = vpop.permute.xlu1 %5081  ;;  %v5144_v35 = vpop.permute.xlu2 %5143  ;;  %vm11169_vm5 = vmmov %vm11158_vm4  ;;  %v7875_v10 = vld [vmem:[%s10615_s7 + $0x40] sm:$0xff] }
0x18cc   : > { %v4881_v63 = vsel %vm11155_vm7, %v4875_v51, 0  ;;  %v5087_v34 = vsel %vm11156_vm1, %v5082_v18, %v5084_v5  ;;  %vm11170_vm7 = vmmov %vm11156_vm1  ;;  %vm11172_vm1 = vcmask 900096   ;;  %v7441_v18 = vld [vmem:[#allocation2 + $0x180] sm:$0xf] }
0x18cd   : > { %4893 = vmatpush.bf16.msra.mxu2 %v4881_v63  ;;  %v5093_v20 = vsel %vm11157_vm13, %v5087_v34, 0  ;;  %vm11173_vm13 = vmmov %vm11160_vm0  ;;  %v7928_v63 = vld [vmem:[#allocation2 + $0x19c] sm:$0xf0]  ;;  %v7443_v34 = vld [vmem:[#allocation2 + $0x1a0] sm:$0xf0] }
0x18d0   : > { %7197 = vmatmul.msk.bf16.vlgmr.msra.gmra.mxu2 %vm11158_vm4, %v7868_v9 }
0x18d1   : > { %4991 = vmatpush.bf16.msrb.mxu2 %v4979_v37  ;;  %v7442_v37 = vor.u32 %v7928_v63, %v7441_v18  ;;  %v7888_v18 = vld [vmem:[#allocation2 + $0x5c] sm:$0xf0]  ;;  %v7964_v63 = vld [vmem:[#allocation2 + $0x2c4] sm:$0xf] }
0x18d2   : > { %v4874_v46 = vpop.permute.xlu0 %4873 }
0x18d3   : > { %v4876_v22 = vsel %vm11159_vm15, %v4872_v50, %v4874_v46  ;;  %v5028_v38 = vpop.permute.xlu1 %5027  ;;  %v5318_v7 = vpop.permute.xlu2 %5317  ;;  %vm11174_vm15 = vmmov %vm11158_vm4  ;;  %v7474_v50 = vor.u32 %v7936_v15, %v7473_v41  ;;  %v7729_v46 = vld [vmem:[#allocation2 + $0x3c0] sm:$0xf]  ;;  %v7315_v41 = vld [vmem:[#allocation2 + $0xa0] sm:$0xf0] }
0x18d4   : > { %v4884_v11 = vsel %vm11160_vm0, %v4876_v22, 0  ;;  %v5033_v14 = vsel %vm11161_vm14, %v5028_v38, %v5030_v42  ;;  %vm11175_vm0 = vmmov %vm11161_vm14  ;;  %v8000_v22 = vld [vmem:[#allocation2 + $0x3dc] sm:$0xf0] }
0x18d5   : > { %5105 = vmatpush.bf16.msra.mxu2 %v5093_v20  ;;  %v5039_v36 = vsel %vm11162_vm12, %v5033_v14, 0  ;;  %4907 = vmatpush.bf16.msra.mxu3 %v4884_v11  ;;  %vm11176_vm14 = vmmov %vm11168_vm2  ;;  %vm11177_vm12 = vcmask 769024   ;;  %v7409_v38 = vld [vmem:[#allocation2 + $0x140] sm:$0xf]  ;;  %v7730_v11 = vor.u32 %v8000_v22, %v7729_v46  ;;  %v7283_v46 = vld [vmem:[#allocation2 + $0x60] sm:$0xf0] }
0x18d6   : > { %5051 = vmatpush.bf16.msrb.mxu0 %v5039_v36  ;;  %v7920_v14 = vld [vmem:[#allocation2 + $0x15c] sm:$0xf0]  ;;  %v7731_v36 = vld [vmem:[#allocation2 + $0x3e0] sm:$0xf0] }
0x18d8   : > { %7198 = vmatmul.msk.bf16.vlgmr.msra.gmra.mxu3 %vm11163_vm11, %v7868_v9  ;;  %vm11178_vm11 = vmmov %vm11168_vm2  ;;  %v7924_v9 = vld [vmem:[#allocation2 + $0x184] sm:$0xf] }
0x18d9   : > { %7215 = vmatmul.msk.bf16.vlgmr.msrb.gmra.mxu0 %vm11164_vm9, %v7870_v58  ;;  %vm11179_vm9 = vmmov %vm11158_vm4  ;;  %v7446_v20 = vor.u32 %v7924_v9, %v7443_v34  ;;  %v7603_v9 = vld [vmem:[#allocation2 + $0x2e0] sm:$0xf0] }
0x18da   : > { %v4972_v12 = vpop.permute.xlu0 %4971  ;;  %v7606_v34 = vor.u32 %v7964_v63, %v7603_v9  ;;  %v7921_v63 = vld [vmem:[#allocation2 + $0x164] sm:$0xf0]  ;;  %v7917_v9 = vld [vmem:[#allocation2 + $0x14c] sm:$0xf] }
0x18db   : > { %v4974_v44 = vsel %vm11165_vm10, %v4970_v17, %v4972_v12  ;;  %v5202_v55 = vpop.permute.xlu1 %5201  ;;  %vm11180_vm10 = vmmov %vm11158_vm4  ;;  %v5258_v47 = vpop.permute.xlu2 %5257  ;;  %v7410_v12 = vor.u32 %v7920_v14, %v7409_v38 }
0x18dc   : > { %v4982_v2 = vsel %vm11166_vm3, %v4974_v44, 0  ;;  %v5207_v16 = vsel %vm11167_vm8, %v5202_v55, %v5204_v60  ;;  %vm11181_vm3 = vmmov %vm11167_vm8  ;;  %v7916_v55 = vld [vmem:[#allocation2 + $0x144] sm:$0xf] }
0x18dd   : > { %5005 = vmatpush.bf16.msrb.mxu3 %v4982_v2  ;;  %v5213_v19 = vsel %vm11168_vm2, %v5207_v16, 0  ;;  %vm11182_vm8 = vmmov %vm11168_vm2  ;;  %vm11183_vm2 = vcmask 777216   ;;  %v7411_v2 = vld [vmem:[#allocation2 + $0x160] sm:$0xf0] }
0x18de   : > { %v7414_v16 = vor.u32 %v7916_v55, %v7411_v2  ;;  %v7880_v2 = vld [vmem:[#allocation2 + $0x1c] sm:$0xf0] }
0x18e0   : > { %7209 = vmatmul.msk.bf16.vlgmr.msrb.gmra.mxu2 %vm11169_vm5, %v7869_v13  ;;  %vm11184_vm5 = vmmov %vm11171_vm6 }
0x18e1   : > { %5225 = vmatpush.bf16.msrb.mxu2 %v5213_v19  ;;  %v7992_v19 = vld [vmem:[#allocation2 + $0x39c] sm:$0xf0] }
0x18e2   : > { %v5086_v49 = vpop.permute.xlu0 %5085 }
0x18e3   : > { %v5088_v43 = vsel %vm11170_vm7, %v5084_v5, %v5086_v49  ;;  %v5142_v40 = vpop.permute.xlu1 %5141  ;;  %vm11185_vm7 = vmmov %vm11158_vm4  ;;  %v7377_v49 = vld [vmem:[#allocation2 + $0x100] sm:$0xf] }
0x18e4   : > { %v5096_v24 = vsel %vm11171_vm6, %v5088_v43, 0  ;;  %v5147_v30 = vsel %vm11172_vm1, %v5142_v40, %v5144_v35  ;;  %vm11186_vm6 = vmmov %vm11158_vm4  ;;  %v7912_v40 = vld [vmem:[#allocation2 + $0x11c] sm:$0xf0] }
0x18e5   : > { %v5153_v28 = vsel %vm11173_vm13, %v5147_v30, 0  ;;  %5119 = vmatpush.bf16.msra.mxu3 %v5096_v24  ;;  %vm11187_vm13 = vmmov %vm11184_vm5  ;;  %v7988_v24 = vld [vmem:[#allocation2 + $0x384] sm:$0xf] }
0x18e6   : > { %5165 = vmatpush.bf16.msra.mxu0 %v5153_v28  ;;  %v7699_v30 = vld [vmem:[#allocation2 + $0x3a0] sm:$0xf0]  ;;  %v7378_v28 = vor.u32 %v7912_v40, %v7377_v49 }
0x18e7   : > { %v7251_v40 = vld [vmem:[#allocation2 + $0x20] sm:$0xf0] }
0x18e8   : > { %7210 = vmatmul.msk.bf16.vlgmr.msrb.gmra.mxu3 %vm11158_vm4, %v7869_v13 }
0x18e9   : > { %7227 = vmatmul.msk.bf16.vlgmr.msra.gmra.mxu0 %vm11174_vm15, %v7872_v39  ;;  %vm11188_vm15 = vmmov %vm11158_vm4 }
0x18ea   : > { %v5032_v26 = vpop.permute.xlu0 %5031 }
0x18eb   : > { %v5034_v53 = vsel %vm11175_vm0, %v5030_v42, %v5032_v26  ;;  %v5316_v4 = vpop.permute.xlu1 %5315  ;;  %vm11189_vm0 = vmmov %vm11177_vm12  ;;  %v7475_v42 = vld [vmem:[#allocation2 + $0x1e0] sm:$0xf0] }
0x18ec   : > { %v5042_v52 = vsel %vm11176_vm14, %v5034_v53, 0  ;;  %v5321_v48 = vsel %vm11177_vm12, %v5316_v4, %v5318_v7  ;;  %vm11190_vm14 = vmmov %vm11184_vm5  ;;  %v7478_v51 = vor.u32 %v7932_v45, %v7475_v42  ;;  %v7379_v26 = vld [vmem:[#allocation2 + $0x120] sm:$0xf0]  ;;  %v7665_v4 = vld [vmem:[#allocation2 + $0x340] sm:$0xf] }
0x18ed   : > { %5065 = vmatpush.bf16.msrb.mxu1 %v5042_v52  ;;  %v5327_v0 = vsel %vm11178_vm11, %v5321_v48, 0  ;;  %vm11191_vm12 = vmmov %vm11158_vm4  ;;  %v7984_v52 = vld [vmem:[#allocation2 + $0x35c] sm:$0xf0] }
0x18ee   : > { %vm11192_vm11 = vmmov %vm11183_vm2  ;;  %v7666_v48 = vor.u32 %v7984_v52, %v7665_v4  ;;  %v7601_v45 = vld [vmem:[#allocation2 + $0x2c0] sm:$0xf]  ;;  %v7948_v4 = vld [vmem:[#allocation2 + $0x244] sm:$0xf] }
0x18ef   : > { %v7281_v42 = vld [vmem:[#allocation2 + $0x40] sm:$0xf] }
0x18f0   : > { %7221 = vmatmul.msk.bf16.vlgmr.msra.gmra.mxu2 %vm11179_vm9, %v7871_v61  ;;  %7216 = vmatmul.msk.bf16.vlgmr.msrb.gmra.mxu1 %vm11180_vm10, %v7870_v58  ;;  %vm11193_vm9 = vmmov %vm11184_vm5  ;;  %v10439_v58 = vpop.f32.mrf.mxu0 }
0x18f1   : > { %5339 = vmatpush.bf16.msra.mxu2 %v5327_v0  ;;  %vm11194_vm10 = vmmov %vm11158_vm4  ;;  %v7904_v0 = vld [vmem:[#allocation2 + $0xdc] sm:$0xf0] }
0x18f2   : > { %v5206_v23 = vpop.permute.xlu0 %5205 }
0x18f3   : > { %v5208_v59 = vsel %vm11181_vm3, %v5204_v60, %v5206_v23  ;;  %v5256_v6 = vpop.permute.xlu1 %5255  ;;  %vm11195_vm3 = vmmov %vm11158_vm4  ;;  %v7996_v60 = vld [vmem:[#allocation2 + $0x3c4] sm:$0xf] }
0x18f4   : > { %v5216_v8 = vsel %vm11182_vm8, %v5208_v59, 0  ;;  %v5261_v62 = vsel %vm11183_vm2, %v5256_v6, %v5258_v47  ;;  %vm11196_vm8 = vmmov %vm11195_vm3  ;;  %v7734_v44 = vor.u32 %v7996_v60, %v7731_v36  ;;  %v7980_v23 = vld [vmem:[#allocation2 + $0x344] sm:$0xf]  ;;  %v10443_v59 = vpop.f32.mrf.mxu1  ;;  %v7569_v60 = vld [vmem:[#allocation2 + $0x280] sm:$0xf]  ;;  %vm11197_vm2 = vcmask 130048  }
0x18f5   : > { %v5267_v33 = vsel %vm11184_vm5, %v5261_v62, 0  ;;  %5239 = vmatpush.bf16.msrb.mxu3 %v5216_v8  ;;  %v7900_v62 = vld [vmem:[#allocation2 + $0xc4] sm:$0xf]  ;;  %v7960_v36 = vld [vmem:[#allocation2 + $0x29c] sm:$0xf0]  ;;  %vm11198_vm5 = vmmov %vm11197_vm2 }
0x18f6   : > { %5279 = vmatpush.bf16.msrb.mxu0 %v5267_v33  ;;  %v7347_v33 = vld [vmem:[#allocation2 + $0xe0] sm:$0xf0]  ;;  %v7570_v55 = vor.u32 %v7960_v36, %v7569_v60  ;;  %v7989_v60 = vld [vmem:[#allocation2 + $0x38c] sm:$0xf] }
0x18f7   : > { %v7350_v32 = vor.u32 %v7900_v62, %v7347_v33  ;;  %v7925_v62 = vld [vmem:[#allocation2 + $0x18c] sm:$0xf] }
0x18f8   : > { %7222 = vmatmul.msk.bf16.vlgmr.msra.gmra.mxu3 %vm11185_vm7, %v7871_v61  ;;  %v7345_v61 = vld [vmem:[#allocation2 + $0xc0] sm:$0xf]  ;;  %v7451_v33 = vld [vmem:[#allocation2 + $0x1a8] sm:$0xf0]  ;;  %vm11199_vm7 = vmmov %vm11197_vm2 }
0x18f9   : > { %7239 = vmatmul.msk.bf16.vlgmr.msrb.gmra.mxu0 %vm11186_vm6, %v7874_v56  ;;  %v7346_v6 = vor.u32 %v7904_v0, %v7345_v61  ;;  %v7539_v0 = vld [vmem:[#allocation2 + $0x260] sm:$0xf0]  ;;  %vm11200_vm6 = vmmov %vm11197_vm2 }
0x18fa   : > { %v5146_v3 = vpop.permute.xlu0 %5145  ;;  %6148 = vmatpush.bf16.msra.mxu0 %v7474_v50  ;;  %v7968_v50 = vld [vmem:[#allocation2 + $0x2dc] sm:$0xf0] }
0x18fb   : > { %v5148_v54 = vsel %vm11172_vm1, %v5144_v35, %v5146_v3  ;;  %v7697_v35 = vld [vmem:[#allocation2 + $0x380] sm:$0xf]  ;;  %v10449_v3 = vpop.f32.mrf.mxu0  ;;  %vm11201_vm1 = vmmov %vm11197_vm2 }
0x18fc   : > { %v5156_v29 = vsel %vm11187_vm13, %v5148_v54, 0  ;;  %v7698_v43 = vor.u32 %v7992_v19, %v7697_v35  ;;  %v7633_v54 = vld [vmem:[#allocation2 + $0x300] sm:$0xf]  ;;  %v7571_v35 = vld [vmem:[#allocation2 + $0x2a0] sm:$0xf0]  ;;  %vm11202_vm13 = vmmov %vm11201_vm1 }
0x18fd   : > { %5179 = vmatpush.bf16.msra.mxu1 %v5156_v29  ;;  %v7976_v29 = vld [vmem:[#allocation2 + $0x31c] sm:$0xf0] }
0x18fe   : > { %6149 = vmatpush.bf16.msra.mxu0 %v7442_v37  ;;  %v7282_v37 = vor.u32 %v7888_v18, %v7281_v42  ;;  %v7739_v42 = vld [vmem:[#allocation2 + $0x3e8] sm:$0xf0] }
0x1900   : > { %7233 = vmatmul.msk.bf16.vlgmr.msrb.gmra.mxu2 %vm11158_vm4, %v7873_v25  ;;  %7228 = vmatmul.msk.bf16.vlgmr.msra.gmra.mxu1 %vm11188_vm15, %v7872_v39  ;;  %v7702_v39 = vor.u32 %v7988_v24, %v7699_v30  ;;  %v7481_v24 = vld [vmem:[#allocation2 + $0x1c8] sm:$0xf]  ;;  %vm11203_vm4 = vmmov %vm11201_vm1 }
0x1901   : > { %6176 = vmatpush.bf16.msrb.mxu2 %v7478_v51  ;;  %v7602_v51 = vor.u32 %v7968_v50, %v7601_v45  ;;  %v7997_v50 = vld [vmem:[#allocation2 + $0x3cc] sm:$0xf]  ;;  %vm11204_vm15 = vmmov %vm11201_vm1 }
0x1902   : > { %v5320_v27 = vpop.permute.xlu0 %5319  ;;  %6150 = vmatpush.bf16.msra.mxu0 %v7410_v12  ;;  %v7249_v12 = vld [vmem:[#allocation2] sm:$0xf]  ;;  %v7742_v18 = vor.u32 %v7997_v50, %v7739_v42  ;;  %v7609_v42 = vld [vmem:[#allocation2 + $0x2c8] sm:$0xf] }
0x1903   : > { %v5322_v31 = vsel %vm11189_vm0, %v5318_v7, %v5320_v27  ;;  %v7908_v7 = vld [vmem:[#allocation2 + $0x104] sm:$0xf]  ;;  %v7634_v27 = vor.u32 %v7976_v29, %v7633_v54  ;;  %v7250_v19 = vor.u32 %v7880_v2, %v7249_v12  ;;  %v7454_v29 = vor.u32 %v7925_v62, %v7451_v33  ;;  %v7707_v12 = vld [vmem:[#allocation2 + $0x3a8] sm:$0xf0]  ;;  %v7913_v2 = vld [vmem:[#allocation2 + $0x124] sm:$0xf0] }
0x1904   : > { %v5330_v57 = vsel %vm11190_vm14, %v5322_v31, 0  ;;  %v7382_v53 = vor.u32 %v7908_v7, %v7379_v26  ;;  %v7896_v31 = vld [vmem:[#allocation2 + $0x9c] sm:$0xf0]  ;;  %v7483_v7 = vld [vmem:[#allocation2 + $0x1e8] sm:$0xf0]  ;;  %vm11205_vm0 = vmmov %vm11201_vm1 }
0x1905   : > { %5353 = vmatpush.bf16.msra.mxu3 %v5330_v57  ;;  %6177 = vmatpush.bf16.msrb.mxu2 %v7446_v20  ;;  %v7972_v57 = vld [vmem:[#allocation2 + $0x304] sm:$0xf]  ;;  %v7537_v26 = vld [vmem:[#allocation2 + $0x240] sm:$0xf]  ;;  %v7977_v62 = vld [vmem:[#allocation2 + $0x324] sm:$0xf0] }
0x1906   : > { %6151 = vmatpush.bf16.msra.mxu0 %v7378_v28  ;;  %v7884_v20 = vld [vmem:[#allocation2 + $0x44] sm:$0xf]  ;;  %v7937_v28 = vld [vmem:[#allocation2 + $0x1e4] sm:$0xf0]  ;;  %v7973_v33 = vld [vmem:[#allocation2 + $0x30c] sm:$0xf] }
0x1907   : > { %v7482_v52 = vor.u32 %v7937_v28, %v7481_v24  ;;  %v7985_v28 = vld [vmem:[#allocation2 + $0x364] sm:$0xf0]  ;;  %vm11206_vm14 = vmmov %vm11205_vm0 }
0x1908   : > { %7234 = vmatmul.msk.bf16.vlgmr.msrb.gmra.mxu3 %vm11191_vm12, %v7873_v25  ;;  %v7313_v25 = vld [vmem:[#allocation2 + $0x80] sm:$0xf]  ;;  %vm11207_vm12 = vmmov %vm11205_vm0 }
0x1909   : > { %6190 = vmatpush.bf16.msrb.mxu3 %v7734_v44  ;;  %6178 = vmatpush.bf16.msrb.mxu2 %v7414_v16  ;;  %v10457_v44 = vpop.f32.mrf.mxu1  ;;  %v7956_v16 = vld [vmem:[#allocation2 + $0x284] sm:$0xf] }
0x190a   : > { %v5260_v17 = vpop.permute.xlu0 %5259  ;;  %6152 = vmatpush.bf16.msra.mxu0 %v7346_v6  ;;  %v7574_v49 = vor.u32 %v7956_v16, %v7571_v35  ;;  %v7542_v6 = vor.u32 %v7948_v4, %v7539_v0  ;;  %v7353_v4 = vld [vmem:[#allocation2 + $0xc8] sm:$0xf]  ;;  %v7901_v0 = vld [vmem:[#allocation2 + $0xcc] sm:$0xf] }
0x190b   : > { %v5262_v21 = vsel %vm11192_vm11, %v5258_v47, %v5260_v17  ;;  %v7667_v47 = vld [vmem:[#allocation2 + $0x360] sm:$0xf0]  ;;  %vm11208_vm11 = vmmov %vm11205_vm0 }
0x190c   : > { %v5270_v5 = vsel %vm11193_vm9, %v5262_v21, 0  ;;  %v7670_v8 = vor.u32 %v7980_v23, %v7667_v47  ;;  %v7635_v17 = vld [vmem:[#allocation2 + $0x320] sm:$0xf0]  ;;  %v7314_v21 = vor.u32 %v7896_v31, %v7313_v25  ;;  %v7449_v23 = vld [vmem:[#allocation2 + $0x188] sm:$0xf]  ;;  %vm11209_vm9 = vmmov %vm11205_vm0 }
0x190d   : > { %5293 = vmatpush.bf16.msrb.mxu1 %v5270_v5  ;;  %6191 = vmatpush.bf16.msrb.mxu3 %v7702_v39  ;;  %v7638_v5 = vor.u32 %v7972_v57, %v7635_v17  ;;  %v7933_v39 = vld [vmem:[#allocation2 + $0x1cc] sm:$0xf]  ;;  %v7929_v47 = vld [vmem:[#allocation2 + $0x1a4] sm:$0xf0]  ;;  %v7505_v25 = vld [vmem:[#allocation2 + $0x200] sm:$0xf] }
0x190e   : > { %6179 = vmatpush.bf16.msrb.mxu2 %v7382_v53  ;;  %6153 = vmatpush.bf16.msra.mxu0 %v7314_v21  ;;  %v7952_v53 = vld [vmem:[#allocation2 + $0x25c] sm:$0xf0]  ;;  %v7486_v61 = vor.u32 %v7933_v39, %v7483_v7  ;;  %v7940_v31 = vld [vmem:[#allocation2 + $0x204] sm:$0xf]  ;;  %v7981_v39 = vld [vmem:[#allocation2 + $0x34c] sm:$0xf] }
0x190f   : > { %v7507_v21 = vld [vmem:[#allocation2 + $0x220] sm:$0xf0] }
0x1910   : > { %7245 = vmatmul.msk.bf16.vlgmr.msra.gmra.mxu2 %vm11194_vm10, %v7875_v10  ;;  %7240 = vmatmul.msk.bf16.vlgmr.msrb.gmra.mxu1 %vm11195_vm3, %v7874_v56  ;;  %vm11210_vm10 = vmmov %vm11205_vm0 }
0x1911   : > { %6162 = vmatpush.bf16.msra.mxu1 %v7730_v11  ;;  %6192 = vmatpush.bf16.msrb.mxu3 %v7670_v8  ;;  %v7286_v11 = vor.u32 %v7884_v20, %v7283_v46  ;;  %v7450_v8 = vor.u32 %v7929_v47, %v7449_v23  ;;  %v7705_v46 = vld [vmem:[#allocation2 + $0x388] sm:$0xf]  ;;  %v7355_v23 = vld [vmem:[#allocation2 + $0xe8] sm:$0xf0]  ;;  %vm11211_vm3 = vmmov %vm11205_vm0 }
0x1912   : > { %6180 = vmatpush.bf16.msrb.mxu2 %v7350_v32  ;;  %6154 = vmatpush.bf16.msra.mxu0 %v7282_v37  ;;  %v7419_v37 = vld [vmem:[#allocation2 + $0x168] sm:$0xf0] }
0x1913   : > { %v7422_v20 = vor.u32 %v7917_v9, %v7419_v37  ;;  %v7611_v9 = vld [vmem:[#allocation2 + $0x2e8] sm:$0xf0]  ;;  %v7289_v37 = vld [vmem:[#allocation2 + $0x48] sm:$0xf] }
0x1915   : > { %6163 = vmatpush.bf16.msra.mxu1 %v7698_v43  ;;  %6193 = vmatpush.bf16.msrb.mxu3 %v7638_v5  ;;  %v7876_v43 = vld [vmem:[#allocation2 + $0x4] sm:$0xf]  ;;  %v7737_v5 = vld [vmem:[#allocation2 + $0x3c8] sm:$0xf] }
0x1916   : > { %v7254_v30 = vor.u32 %v7876_v43, %v7251_v40  ;;  %6155 = vmatpush.bf16.msra.mxu0 %v7250_v19  ;;  %v7710_v19 = vor.u32 %v7989_v60, %v7707_v12  ;;  %v7909_v43 = vld [vmem:[#allocation2 + $0x10c] sm:$0xf] }
0x1917   : > { %v7387_v40 = vld [vmem:[#allocation2 + $0x128] sm:$0xf0] }
0x1918   : > { %7246 = vmatmul.msk.bf16.vlgmr.msra.gmra.mxu3 %vm11196_vm8, %v7875_v10  ;;  %v7892_v10 = vld [vmem:[#allocation2 + $0x84] sm:$0xf]  ;;  %v7390_v24 = vor.u32 %v7909_v43, %v7387_v40  ;;  %v7291_v60 = vld [vmem:[#allocation2 + $0x68] sm:$0xf0]  ;;  %vm11212_vm8 = vmmov %vm11205_vm0 }
0x1919   : > { %6164 = vmatpush.bf16.msra.mxu1 %v7666_v48  ;;  %v7318_v15 = vor.u32 %v7892_v10, %v7315_v41  ;;  %6194 = vmatpush.bf16.msrb.mxu3 %v7606_v34  ;;  %v7538_v48 = vor.u32 %v7952_v53, %v7537_v26  ;;  %v8001_v10 = vld [vmem:[#allocation2 + $0x3e4] sm:$0xf0]  ;;  %v7675_v53 = vld [vmem:[#allocation2 + $0x368] sm:$0xf0] }
0x191a   : > { %6204 = vmatpush.bf16.msrb.mxu0 %v7482_v52  ;;  %v7738_v45 = vor.u32 %v8001_v10, %v7737_v5  ;;  %v7905_v52 = vld [vmem:[#allocation2 + $0xe4] sm:$0xf0]  ;;  %v7579_v40 = vld [vmem:[#allocation2 + $0x2a8] sm:$0xf0] }
0x191b   : > { %6181 = vmatpush.bf16.msrb.mxu2 %v7318_v15  ;;  %v7510_v15 = vor.u32 %v7940_v31, %v7507_v21  ;;  %v7897_v31 = vld [vmem:[#allocation2 + $0xa4] sm:$0xf0] }
0x191d   : > { %6165 = vmatpush.bf16.msra.mxu1 %v7634_v27  ;;  %6195 = vmatpush.bf16.msrb.mxu3 %v7574_v49  ;;  %v7944_v27 = vld [vmem:[#allocation2 + $0x21c] sm:$0xf0] }
0x191e   : > { %v7506_v17 = vor.u32 %v7944_v27, %v7505_v25  ;;  %6205 = vmatpush.bf16.msrb.mxu0 %v7450_v8  ;;  %v7641_v8 = vld [vmem:[#allocation2 + $0x308] sm:$0xf]  ;;  %v7643_v25 = vld [vmem:[#allocation2 + $0x328] sm:$0xf0] }
0x191f   : > { %6182 = vmatpush.bf16.msrb.mxu2 %v7286_v11  ;;  %v7993_v11 = vld [vmem:[#allocation2 + $0x3a4] sm:$0xf0]  ;;  %v7646_v5 = vor.u32 %v7973_v33, %v7643_v25 }
0x1920   : > { %v7706_v36 = vor.u32 %v7993_v11, %v7705_v46  ;;  %v7321_v27 = vld [vmem:[#allocation2 + $0x88] sm:$0xf]  ;;  %v7885_v11 = vld [vmem:[#allocation2 + $0x4c] sm:$0xf] }
0x1921   : > { %6166 = vmatpush.bf16.msra.mxu1 %v7602_v51  ;;  %6196 = vmatpush.bf16.msrb.mxu3 %v7542_v6  ;;  %v7417_v51 = vld [vmem:[#allocation2 + $0x148] sm:$0xf]  ;;  %v7358_v6 = vor.u32 %v7901_v0, %v7355_v23  ;;  %v7322_v10 = vor.u32 %v7897_v31, %v7321_v27  ;;  %v7294_v12 = vor.u32 %v7885_v11, %v7291_v60  ;;  %v7949_v23 = vld [vmem:[#allocation2 + $0x24c] sm:$0xf] }
0x1922   : > { %v7418_v34 = vor.u32 %v7921_v63, %v7417_v51  ;;  %v7969_v51 = vld [vmem:[#allocation2 + $0x2e4] sm:$0xf0] }
0x1923   : > { %6183 = vmatpush.bf16.msrb.mxu2 %v7254_v30  ;;  %v7673_v30 = vld [vmem:[#allocation2 + $0x348] sm:$0xf]  ;;  %v7610_v63 = vor.u32 %v7969_v51, %v7609_v42 }
0x1924   : > { %6206 = vmatpush.bf16.msrb.mxu0 %v7418_v34  ;;  %v7674_v26 = vor.u32 %v7985_v28, %v7673_v30  ;;  %v7889_v34 = vld [vmem:[#allocation2 + $0x64] sm:$0xf0] }
0x1925   : > { %6167 = vmatpush.bf16.msra.mxu1 %v7570_v55  ;;  %6197 = vmatpush.bf16.msrb.mxu3 %v7510_v15  ;;  %v7385_v55 = vld [vmem:[#allocation2 + $0x108] sm:$0xf]  ;;  %v7893_v15 = vld [vmem:[#allocation2 + $0x8c] sm:$0xf]  ;;  %v7290_v46 = vor.u32 %v7889_v34, %v7289_v37 }
0x1926   : > { %v7386_v49 = vor.u32 %v7913_v2, %v7385_v55  ;;  %v7577_v55 = vld [vmem:[#allocation2 + $0x288] sm:$0xf] }
0x1927   : > { %6232 = vmatpush.bf16.msra.mxu2 %v7486_v61  ;;  %v7678_v61 = vor.u32 %v7981_v39, %v7675_v53  ;;  %v7961_v2 = vld [vmem:[#allocation2 + $0x2a4] sm:$0xf0] }
0x1928   : > { %6207 = vmatpush.bf16.msrb.mxu0 %v7386_v49  ;;  %v7578_v43 = vor.u32 %v7961_v2, %v7577_v55  ;;  %v7881_v30 = vld [vmem:[#allocation2 + $0x24] sm:$0xf0]  ;;  %v5372_v55 = vpop.permute.xlu2 %5371 }
0x1929   : > { %6168 = vmatpush.bf16.msra.mxu1 %v7538_v48  ;;  %6246 = vmatpush.bf16.msra.mxu3 %v7742_v18  ;;  %v7354_v48 = vor.u32 %v7905_v52, %v7353_v4  ;;  %v7965_v18 = vld [vmem:[#allocation2 + $0x2cc] sm:$0xf]  ;;  %v7953_v0 = vld [vmem:[#allocation2 + $0x264] sm:$0xf0] }
0x192a   : > { %v7877_v4 = vld [vmem:[#allocation2 + $0xc] sm:$0xf]  ;;  %v7513_v27 = vld [vmem:[#allocation2 + $0x208] sm:$0xf] }
0x192b   : > { %6233 = vmatpush.bf16.msra.mxu2 %v7454_v29  ;;  %v7642_v29 = vor.u32 %v7977_v62, %v7641_v8  ;;  %v7259_v52 = vld [vmem:[#allocation2 + $0x28] sm:$0xf0]  ;;  %v7945_v31 = vld [vmem:[#allocation2 + $0x224] sm:$0xf0] }
0x192c   : > { %6208 = vmatpush.bf16.msrb.mxu0 %v7354_v48  ;;  %v7545_v48 = vld [vmem:[#allocation2 + $0x248] sm:$0xf]  ;;  %v7547_v62 = vld [vmem:[#allocation2 + $0x268] sm:$0xf0] }
0x192d   : > { %6169 = vmatpush.bf16.msra.mxu1 %v7506_v17  ;;  %6247 = vmatpush.bf16.msra.mxu3 %v7710_v19  ;;  %v7957_v19 = vld [vmem:[#allocation2 + $0x28c] sm:$0xf]  ;;  %v7546_v8 = vor.u32 %v7953_v0, %v7545_v48  ;;  %v7550_v33 = vor.u32 %v7949_v23, %v7547_v62  ;;  %v7930_v48 = vld [vmem:[#allocation2 + $0x1ac] sm:$0xf0]  ;;  %v7926_v0 = vld [vmem:[#allocation2 + $0x194] sm:$0xf] }
0x192e   : > { %v7459_v23 = vld [vmem:[#allocation2 + $0x1b0] sm:$0xf0] }
0x192f   : > { %6234 = vmatpush.bf16.msra.mxu2 %v7422_v20  ;;  %v7614_v20 = vor.u32 %v7965_v18, %v7611_v9 }
0x1930   : > { %6209 = vmatpush.bf16.msrb.mxu0 %v7322_v10 }
0x1931   : > { %6218 = vmatpush.bf16.msrb.mxu1 %v7738_v45  ;;  %6248 = vmatpush.bf16.msra.mxu3 %v7678_v61  ;;  %v7323_v45 = vld [vmem:[#allocation2 + $0xa8] sm:$0xf0]  ;;  %v7262_v61 = vor.u32 %v7877_v4, %v7259_v52 }
0x1932   : > { %v7326_v50 = vor.u32 %v7893_v15, %v7323_v45  ;;  %v7514_v45 = vor.u32 %v7945_v31, %v7513_v27  ;;  %v7462_v27 = vor.u32 %v7926_v0, %v7459_v23  ;;  %v7297_v0 = vld [vmem:[#allocation2 + $0x50] sm:$0xf] }
0x1933   : > { %6235 = vmatpush.bf16.msra.mxu2 %v7390_v24  ;;  %v7257_v24 = vld [vmem:[#allocation2 + $0x8] sm:$0xf]  ;;  %v7890_v23 = vld [vmem:[#allocation2 + $0x6c] sm:$0xf0] }
0x1934   : > { %6210 = vmatpush.bf16.msrb.mxu0 %v7290_v46  ;;  %v7258_v53 = vor.u32 %v7881_v30, %v7257_v24  ;;  %v7938_v24 = vld [vmem:[#allocation2 + $0x1ec] sm:$0xf0]  ;;  %v7491_v30 = vld [vmem:[#allocation2 + $0x1f0] sm:$0xf0] }
0x1935   : > { %6219 = vmatpush.bf16.msrb.mxu1 %v7706_v36  ;;  %6249 = vmatpush.bf16.msra.mxu3 %v7646_v5  ;;  %v7941_v5 = vld [vmem:[#allocation2 + $0x20c] sm:$0xf] }
0x1937   : > { %6236 = vmatpush.bf16.msra.mxu2 %v7358_v6 }
0x1938   : > { %6211 = vmatpush.bf16.msrb.mxu0 %v7258_v53 }
0x1939   : > { %6220 = vmatpush.bf16.msrb.mxu1 %v7674_v26  ;;  %6250 = vmatpush.bf16.msra.mxu3 %v7614_v20  ;;  %v7582_v26 = vor.u32 %v7957_v19, %v7579_v40 }
0x193b   : > { %6237 = vmatpush.bf16.msra.mxu2 %v7326_v50 }
0x193d   : > { %6221 = vmatpush.bf16.msrb.mxu1 %v7642_v29  ;;  %6251 = vmatpush.bf16.msra.mxu3 %v7582_v26 }
0x193f   : > { %6238 = vmatpush.bf16.msra.mxu2 %v7294_v12 }
0x1941   : > { %6222 = vmatpush.bf16.msrb.mxu1 %v7610_v63  ;;  %6252 = vmatpush.bf16.msra.mxu3 %v7550_v33  ;;  %v7745_v33 = vld [vmem:[#allocation2 + $0x3d0] sm:$0xf] }
0x1943   : > { %6239 = vmatpush.bf16.msra.mxu2 %v7262_v61 }
0x1945   : > { %6223 = vmatpush.bf16.msrb.mxu1 %v7578_v43 }
0x1949   : > { %6224 = vmatpush.bf16.msrb.mxu1 %v7546_v8 }
0x194d   : > { %6225 = vmatpush.bf16.msrb.mxu1 %v7514_v45  ;;  %v7922_v45 = vld [vmem:[#allocation2 + $0x16c] sm:$0xf0] }
0x1953   : > { %v10441_v13 = vpop.f32.mrf.mxu2 }
0x1954   : > { %v4938_v6 = vadd.f32 %v10439_v58, %v10441_v13  ;;  %v7515_v58 = vld [vmem:[#allocation2 + $0x228] sm:$0xf0] }
0x1955   : > { %v7518_v42 = vor.u32 %v7941_v5, %v7515_v58  ;;  %v7998_v5 = vld [vmem:[#allocation2 + $0x3d4] sm:$0xf] }
0x1956   : > { %v10455_v14 = vpop.f32.mrf.mxu0  ;;  %v7918_v58 = vld [vmem:[#allocation2 + $0x154] sm:$0xf] }
0x1957   : > { %6253 = vmatpush.bf16.msra.mxu3 %v7518_v42 }
0x195b   : > { %v10445_v56 = vpop.f32.mrf.mxu3  ;;  %v10447_v1 = vpop.f32.mrf.mxu2 }
0x195c   : > { %v4940_v25 = vadd.f32 %v10449_v3, %v10447_v1  ;;  %v4952_v1 = vadd.f32 %v10443_v59, %v10445_v56 }
0x195e   : > { %v10465_v41 = vpop.f32.mrf.mxu0 }
0x1963   : > { %v10451_v22 = vpop.f32.mrf.mxu3  ;;  %v10453_v38 = vpop.f32.mrf.mxu2 }
0x1964   : > { %v5012_v29 = vadd.f32 %v10453_v38, %v4938_v6  ;;  %v4954_v63 = vadd.f32 %v10457_v44, %v10451_v22 }
0x1966   : > { %v10473_v47 = vpop.f32.mrf.mxu0  ;;  %v5072_v51 = vadd.f32 %v10455_v14, %v5012_v29  ;;  %v8002_v29 = vld [vmem:[#allocation2 + $0x3ec] sm:$0xf0] }
0x196b   : > { %v10459_v32 = vpop.f32.mrf.mxu3  ;;  %v10461_v54 = vpop.f32.mrf.mxu2 }
0x196c   : > { %v5014_v10 = vadd.f32 %v10461_v54, %v4940_v25  ;;  %v5013_v54 = vadd.f32 %v10459_v32, %v4952_v1  ;;  %v7713_v1 = vld [vmem:[#allocation2 + $0x390] sm:$0xf] }
0x196d   : > { %v10463_v57 = vpop.f32.mrf.mxu1 }
0x196e   : > { %v5169_v49 = vpop.f32.mrf.mxu0  ;;  %v5074_v18 = vadd.f32 %v10465_v41, %v5014_v10  ;;  %v5073_v46 = vadd.f32 %v10463_v57, %v5013_v54  ;;  %v7489_v57 = vld [vmem:[#allocation2 + $0x1d0] sm:$0xf]  ;;  %v7747_v10 = vld [vmem:[#allocation2 + $0x3f0] sm:$0xf0] }
0x196f   : > { %v7490_v53 = vor.u32 %v7938_v24, %v7489_v57  ;;  %v7990_v54 = vld [vmem:[#allocation2 + $0x394] sm:$0xf]  ;;  %v7329_v24 = vld [vmem:[#allocation2 + $0x90] sm:$0xf] }
0x1970   : > { %v7974_v57 = vld [vmem:[#allocation2 + $0x314] sm:$0xf] }
0x1973   : > { %v10467_v16 = vpop.f32.mrf.mxu3  ;;  %v10469_v35 = vpop.f32.mrf.mxu2 }
0x1974   : > { %v5126_v3 = vadd.f32 %v10469_v35, %v5072_v51  ;;  %v5015_v37 = vadd.f32 %v10467_v16, %v4954_v63  ;;  %v7746_v51 = vor.u32 %v8002_v29, %v7745_v33  ;;  %v7715_v63 = vld [vmem:[#allocation2 + $0x3b0] sm:$0xf0]  ;;  %v7585_v29 = vld [vmem:[#allocation2 + $0x290] sm:$0xf] }
0x1975   : > { %v10471_v7 = vpop.f32.mrf.mxu1 }
0x1976   : > { %v5281_v38 = vpop.f32.mrf.mxu0  ;;  %v5186_v14 = vadd.f32 %v10473_v47, %v5126_v3  ;;  %v5075_v32 = vadd.f32 %v10471_v7, %v5015_v37  ;;  %v5367_v47 = vpop.permute.xlu1 %5366  ;;  %v7994_v3 = vld [vmem:[#allocation2 + $0x3ac] sm:$0xf0] }
0x197b   : > { %v10475_v17 = vpop.f32.mrf.mxu3  ;;  %v10477_v21 = vpop.f32.mrf.mxu2 }
0x197c   : > { %v5128_v9 = vadd.f32 %v10477_v21, %v5074_v18  ;;  %v5127_v41 = vadd.f32 %v10475_v17, %v5073_v46  ;;  %v7934_v17 = vld [vmem:[#allocation2 + $0x1d4] sm:$0xf] }
0x197d   : > { %v10479_v36 = vpop.f32.mrf.mxu1  ;;  %v7494_v4 = vor.u32 %v7934_v17, %v7491_v30  ;;  %v7395_v46 = vld [vmem:[#allocation2 + $0x130] sm:$0xf0]  ;;  %v7898_v17 = vld [vmem:[#allocation2 + $0xac] sm:$0xf0] }
0x197e   : > { %v5188_v56 = vadd.f32 %v5169_v49, %v5128_v9  ;;  %v5283_v60 = vpop.f32.mrf.mxu0  ;;  %v5187_v21 = vadd.f32 %v10479_v36, %v5127_v41  ;;  %v7457_v36 = vld [vmem:[#allocation2 + $0x190] sm:$0xf]  ;;  %v7894_v30 = vld [vmem:[#allocation2 + $0x94] sm:$0xf] }
0x197f   : > { %v7458_v25 = vor.u32 %v7930_v48, %v7457_v36  ;;  %v7986_v41 = vld [vmem:[#allocation2 + $0x36c] sm:$0xf0]  ;;  %v7619_v36 = vld [vmem:[#allocation2 + $0x2f0] sm:$0xf0] }
0x1983   : > { %v5123_v28 = vpop.f32.mrf.mxu3  ;;  %v5227_v39 = vpop.f32.mrf.mxu2 }
0x1984   : > { %v5246_v59 = vadd.f32 %v5227_v39, %v5186_v14  ;;  %v5129_v22 = vadd.f32 %v5123_v28, %v5075_v32  ;;  %v7393_v14 = vld [vmem:[#allocation2 + $0x110] sm:$0xf]  ;;  %v7982_v32 = vld [vmem:[#allocation2 + $0x354] sm:$0xf] }
0x1985   : > { %v5183_v15 = vpop.f32.mrf.mxu1 }
0x1986   : > { %v5300_v44 = vadd.f32 %v5281_v38, %v5246_v59  ;;  %v5189_v49 = vadd.f32 %v5183_v15, %v5129_v22  ;;  %v7425_v15 = vld [vmem:[#allocation2 + $0x150] sm:$0xf]  ;;  %v7750_v38 = vor.u32 %v7998_v5, %v7747_v10  ;;  %v7714_v59 = vor.u32 %v7994_v3, %v7713_v1 }
0x1987   : > { %v7426_v9 = vor.u32 %v7922_v45, %v7425_v15  ;;  %v7298_v5 = vor.u32 %v7890_v23, %v7297_v0  ;;  %v7265_v15 = vld [vmem:[#allocation2 + $0x10] sm:$0xf]  ;;  %v7911_v0 = vld [vmem:[#allocation2 + $0x11c] sm:$0xf] }
0x1988   : > { %v7882_v45 = vld [vmem:[#allocation2 + $0x2c] sm:$0xf0]  ;;  %v7403_v23 = vld [vmem:[#allocation2 + $0x138] sm:$0xf0] }
0x198b   : > { %v5241_v13 = vpop.f32.mrf.mxu3  ;;  %v5229_v50 = vpop.f32.mrf.mxu2 }
0x198c   : > { %v5248_v11 = vadd.f32 %v5229_v50, %v5188_v56  ;;  %v5247_v43 = vadd.f32 %v5241_v13, %v5187_v21  ;;  %v7427_v13 = vld [vmem:[#allocation2 + $0x170] sm:$0xf0]  ;;  %v7718_v56 = vor.u32 %v7990_v54, %v7715_v63  ;;  %v7906_v21 = vld [vmem:[#allocation2 + $0xec] sm:$0xf0] }
0x198d   : > { %v5295_v35 = vpop.f32.mrf.mxu1  ;;  %v7430_v37 = vor.u32 %v7918_v58, %v7427_v13  ;;  %v7878_v58 = vld [vmem:[#allocation2 + $0x14] sm:$0xf]  ;;  %v7553_v54 = vld [vmem:[#allocation2 + $0x250] sm:$0xf] }
0x198e   : > { %v5302_v12 = vadd.f32 %v5283_v60, %v5248_v11  ;;  %v5301_v52 = vadd.f32 %v5295_v35, %v5247_v43  ;;  %v7681_v35 = vld [vmem:[#allocation2 + $0x350] sm:$0xf]  ;;  %v7683_v11 = vld [vmem:[#allocation2 + $0x370] sm:$0xf0] }
0x198f   : > { %v7651_v43 = vld [vmem:[#allocation2 + $0x330] sm:$0xf0]  ;;  %v7954_v63 = vld [vmem:[#allocation2 + $0x26c] sm:$0xf0] }
0x1990   : > { %v7267_v13 = vld [vmem:[#allocation2 + $0x30] sm:$0xf0] }
0x1993   : > { %v5243_v34 = vpop.f32.mrf.mxu3  ;;  %v5341_v20 = vpop.f32.mrf.mxu2 }
0x1994   : > { %v5360_v16 = vadd.f32 %v5341_v20, %v5300_v44  ;;  %v5249_v7 = vadd.f32 %v5243_v34, %v5189_v49  ;;  %v7914_v34 = vld [vmem:[#allocation2 + $0x12c] sm:$0xf0]  ;;  %v7910_v20 = vld [vmem:[#allocation2 + $0x114] sm:$0xf] }
0x1995   : > { %v5297_v28 = vpop.f32.mrf.mxu1  ;;  %v7394_v60 = vor.u32 %v7914_v34, %v7393_v14  ;;  %v7398_v22 = vor.u32 %v7910_v20, %v7395_v46  ;;  %v7361_v44 = vld [vmem:[#allocation2 + $0xd0] sm:$0xf]  ;;  %v7266_v14 = vor.u32 %v7882_v45, %v7265_v15  ;;  %v7270_v34 = vor.u32 %v7878_v58, %v7267_v13  ;;  %v7903_v15 = vld [vmem:[#allocation2 + $0xdc] sm:$0xf] }
0x1996   : > { %v5374_v39 = vadd.f32 %v5367_v47, %v5360_v16  ;;  %v5303_v8 = vadd.f32 %v5297_v28, %v5249_v7  ;;  %v7902_v16 = vld [vmem:[#allocation2 + $0xd4] sm:$0xf]  ;;  %v7362_v49 = vor.u32 %v7906_v21, %v7361_v44  ;;  %v7617_v28 = vld [vmem:[#allocation2 + $0x2d0] sm:$0xf]  ;;  %v7371_v45 = vld [vmem:[#allocation2 + $0xf8] sm:$0xf0] }
0x1997   : > { %v7331_v7 = vld [vmem:[#allocation2 + $0xb0] sm:$0xf0] }
0x1998   : > { %v7334_v48 = vor.u32 %v7894_v30, %v7331_v7  ;;  %v7942_v44 = vld [vmem:[#allocation2 + $0x214] sm:$0xf] }
0x1999   : > { %v7523_v21 = vld [vmem:[#allocation2 + $0x230] sm:$0xf0] }
0x199b   : > { %v5355_v2 = vpop.f32.mrf.mxu3  ;;  %v5343_v19 = vpop.f32.mrf.mxu2 }
0x199c   : > { %v5362_v40 = vadd.f32 %v5343_v19, %v5302_v12  ;;  %v5361_v6 = vadd.f32 %v5355_v2, %v5301_v52  ;;  %v7363_v12 = vld [vmem:[#allocation2 + $0xf0] sm:$0xf0]  ;;  %v7649_v2 = vld [vmem:[#allocation2 + $0x310] sm:$0xf]  ;;  %v7330_v52 = vor.u32 %v7898_v17, %v7329_v24  ;;  %v7526_v17 = vor.u32 %v7942_v44, %v7523_v21 }
0x199d   : > { %v7978_v19 = vld [vmem:[#allocation2 + $0x32c] sm:$0xf0] }
0x199e   : > { %v5376_v26 = vadd.f32 %v5372_v55, %v5362_v40  ;;  %v5375_v50 = vadd.f32 %v5367_v47, %v5361_v6  ;;  %v7682_v47 = vor.u32 %v7986_v41, %v7681_v35  ;;  %v7366_v40 = vor.u32 %v7902_v16, %v7363_v12  ;;  %v7886_v6 = vld [vmem:[#allocation2 + $0x54] sm:$0xf]  ;;  %v7927_v35 = vld [vmem:[#allocation2 + $0x19c] sm:$0xf]  ;;  %v7753_v16 = vld [vmem:[#allocation2 + $0x3d8] sm:$0xf] }
0x199f   : > { %v7467_v41 = vld [vmem:[#allocation2 + $0x1b8] sm:$0xf0]  ;;  %v8003_v12 = vld [vmem:[#allocation2 + $0x3f4] sm:$0xf0] }
0x19a0   : > { %v10502_v61 = vpack.c.bf16 %v5376_v26, %v5374_v39  ;;  %v7650_v39 = vor.u32 %v7978_v19, %v7649_v2  ;;  %v7654_v26 = vor.u32 %v7974_v57, %v7651_v43  ;;  %v7470_v19 = vor.u32 %v7927_v35, %v7467_v41  ;;  %v7433_v57 = vld [vmem:[#allocation2 + $0x158] sm:$0xf] }
0x19a1   : > { %v7923_v43 = vld [vmem:[#allocation2 + $0x174] sm:$0xf0]  ;;  %v7754_v30 = vor.u32 %v8003_v12, %v7753_v16 }
0x19a2   : > { %6156 = vmatmul.bf16.vlgmr.msra.gmra.mxu0 %v10502_v61  ;;  %6184 = vmatmul.bf16.vlgmr.msrb.gmra.mxu2 %v10502_v61  ;;  %v7593_v16 = vld [vmem:[#allocation2 + $0x298] sm:$0xf] }
0x19a3   : > { %v5357_v62 = vpop.f32.mrf.mxu3  ;;  %6260 = vmatpush.bf16.msra.mxu0 %v7490_v53  ;;  %6288 = vmatpush.bf16.msrb.mxu2 %v7494_v4  ;;  %v7970_v53 = vld [vmem:[#allocation2 + $0x2ec] sm:$0xf0]  ;;  %v7966_v4 = vld [vmem:[#allocation2 + $0x2d4] sm:$0xf]  ;;  %v7963_v12 = vld [vmem:[#allocation2 + $0x2b4] sm:$0xf0] }
0x19a4   : > { %v5363_v31 = vadd.f32 %v5357_v62, %v5303_v8  ;;  %v7299_v8 = vld [vmem:[#allocation2 + $0x70] sm:$0xf0]  ;;  %v7618_v62 = vor.u32 %v7970_v53, %v7617_v28  ;;  %v7622_v33 = vor.u32 %v7966_v4, %v7619_v36  ;;  %v7991_v28 = vld [vmem:[#allocation2 + $0x39c] sm:$0xf]  ;;  %v7434_v4 = vor.u32 %v7923_v43, %v7433_v57  ;;  %v7273_v57 = vld [vmem:[#allocation2 + $0x18] sm:$0xf] }
0x19a5   : > { %v7302_v10 = vor.u32 %v7886_v6, %v7299_v8  ;;  %v7723_v53 = vld [vmem:[#allocation2 + $0x3b8] sm:$0xf0]  ;;  %v7883_v43 = vld [vmem:[#allocation2 + $0x34] sm:$0xf0] }
0x19a6   : > { %v5377_v42 = vadd.f32 %v5372_v55, %v5363_v31  ;;  %v7686_v55 = vor.u32 %v7982_v32, %v7683_v11  ;;  %v7587_v31 = vld [vmem:[#allocation2 + $0x2b0] sm:$0xf0]  ;;  %v7554_v32 = vor.u32 %v7954_v63, %v7553_v54  ;;  %v7726_v8 = vor.u32 %v7991_v28, %v7723_v53  ;;  %v7337_v54 = vld [vmem:[#allocation2 + $0x98] sm:$0xf] }
0x19a7   : > { %6261 = vmatpush.bf16.msra.mxu0 %v7458_v25  ;;  %6289 = vmatpush.bf16.msrb.mxu2 %v7462_v27  ;;  %v7962_v25 = vld [vmem:[#allocation2 + $0x2ac] sm:$0xf0]  ;;  %v7958_v27 = vld [vmem:[#allocation2 + $0x294] sm:$0xf]  ;;  %v7899_v63 = vld [vmem:[#allocation2 + $0xb4] sm:$0xf0]  ;;  %v7274_v28 = vor.u32 %v7883_v43, %v7273_v57 }
0x19a8   : > { %v10506_v18 = vpack.c.bf16 %v5377_v42, %v5375_v50  ;;  %v7497_v50 = vld [vmem:[#allocation2 + $0x1d8] sm:$0xf]  ;;  %v7586_v1 = vor.u32 %v7962_v25, %v7585_v29  ;;  %v7590_v3 = vor.u32 %v7958_v27, %v7587_v31  ;;  %v7983_v29 = vld [vmem:[#allocation2 + $0x35c] sm:$0xf]  ;;  %v7406_v31 = vor.u32 %v7911_v0, %v7403_v23  ;;  %v8341_v57 = vld [vmem:[%s10618_s10] sm:$0xff] }
0x19a9   : > { %v7939_v42 = vld [vmem:[#allocation2 + $0x1f4] sm:$0xf0]  ;;  %v7691_v25 = vld [vmem:[#allocation2 + $0x378] sm:$0xf0]  ;;  %v7338_v35 = vor.u32 %v7899_v63, %v7337_v54 }
0x19aa   : > { %6170 = vmatmul.bf16.vlgmr.msra.gmra.mxu1 %v10506_v18  ;;  %6198 = vmatmul.bf16.vlgmr.msrb.gmra.mxu3 %v10506_v18  ;;  %v7498_v20 = vor.u32 %v7939_v42, %v7497_v50  ;;  %v7694_v13 = vor.u32 %v7983_v29, %v7691_v25  ;;  %v7657_v50 = vld [vmem:[#allocation2 + $0x318] sm:$0xf]  ;;  %v7943_v0 = vld [vmem:[#allocation2 + $0x21c] sm:$0xf] }
0x19ab   : > { %6274 = vmatpush.bf16.msra.mxu1 %v7746_v51  ;;  %6302 = vmatpush.bf16.msrb.mxu3 %v7750_v38  ;;  %v7935_v51 = vld [vmem:[#allocation2 + $0x1dc] sm:$0xf]  ;;  %v7979_v42 = vld [vmem:[#allocation2 + $0x334] sm:$0xf0] }
0x19ac   : > { %6262 = vmatpush.bf16.msra.mxu0 %v7426_v9  ;;  %6290 = vmatpush.bf16.msrb.mxu2 %v7430_v37  ;;  %v7499_v38 = vld [vmem:[#allocation2 + $0x1f8] sm:$0xf0]  ;;  %v7950_v9 = vld [vmem:[#allocation2 + $0x254] sm:$0xf] }
0x19ad   : > { %v7555_v37 = vld [vmem:[#allocation2 + $0x270] sm:$0xf0]  ;;  %v7502_v46 = vor.u32 %v7935_v51, %v7499_v38  ;;  %v7975_v51 = vld [vmem:[#allocation2 + $0x31c] sm:$0xf] }
0x19ae   : > { %v7558_v11 = vor.u32 %v7950_v9, %v7555_v37  ;;  %v7659_v38 = vld [vmem:[#allocation2 + $0x338] sm:$0xf0] }
0x19af   : > { %6275 = vmatpush.bf16.msra.mxu1 %v7714_v59  ;;  %6303 = vmatpush.bf16.msrb.mxu3 %v7718_v56  ;;  %v7465_v59 = vld [vmem:[#allocation2 + $0x198] sm:$0xf]  ;;  %v7895_v9 = vld [vmem:[#allocation2 + $0x9c] sm:$0xf] }
0x19b0   : > { %6263 = vmatpush.bf16.msra.mxu0 %v7394_v60  ;;  %6291 = vmatpush.bf16.msrb.mxu2 %v7398_v22  ;;  %v7931_v56 = vld [vmem:[#allocation2 + $0x1b4] sm:$0xf0]  ;;  %v7521_v60 = vld [vmem:[#allocation2 + $0x210] sm:$0xf]  ;;  %v7339_v37 = vld [vmem:[#allocation2 + $0xb8] sm:$0xf0] }
0x19b1   : > { %v7946_v22 = vld [vmem:[#allocation2 + $0x22c] sm:$0xf0]  ;;  %v7466_v2 = vor.u32 %v7931_v56, %v7465_v59  ;;  %v7967_v59 = vld [vmem:[#allocation2 + $0x2dc] sm:$0xf]  ;;  %v7342_v41 = vor.u32 %v7895_v9, %v7339_v37 }
0x19b2   : > { %6212 = vmatmul.bf16.vlgmr.msrb.gmra.mxu0 %v10502_v61  ;;  %6240 = vmatmul.bf16.vlgmr.msra.gmra.mxu2 %v10502_v61  ;;  %v7522_v24 = vor.u32 %v7946_v22, %v7521_v60  ;;  %v7627_v56 = vld [vmem:[#allocation2 + $0x2f8] sm:$0xf0] }
0x19b3   : > { %6276 = vmatpush.bf16.msra.mxu1 %v7682_v47  ;;  %6304 = vmatpush.bf16.msrb.mxu3 %v7686_v55  ;;  %v7999_v47 = vld [vmem:[#allocation2 + $0x3dc] sm:$0xf]  ;;  %v7630_v21 = vor.u32 %v7967_v59, %v7627_v56 }
0x19b4   : > { %6264 = vmatpush.bf16.msra.mxu0 %v7362_v49  ;;  %6292 = vmatpush.bf16.msrb.mxu2 %v7366_v40  ;;  %v7755_v55 = vld [vmem:[#allocation2 + $0x3f8] sm:$0xf0] }
0x19b5   : > { %v7919_v49 = vld [vmem:[#allocation2 + $0x15c] sm:$0xf]  ;;  %v7758_v7 = vor.u32 %v7999_v47, %v7755_v55 }
0x19b6   : > { %v7435_v40 = vld [vmem:[#allocation2 + $0x178] sm:$0xf0] }
0x19b7   : > { %6277 = vmatpush.bf16.msra.mxu1 %v7650_v39  ;;  %6305 = vmatpush.bf16.msrb.mxu3 %v7654_v26  ;;  %v7721_v39 = vld [vmem:[#allocation2 + $0x398] sm:$0xf]  ;;  %v7438_v36 = vor.u32 %v7919_v49, %v7435_v40  ;;  %v7887_v60 = vld [vmem:[#allocation2 + $0x5c] sm:$0xf] }
0x19b8   : > { %6265 = vmatpush.bf16.msra.mxu0 %v7330_v52  ;;  %6293 = vmatpush.bf16.msrb.mxu2 %v7334_v48  ;;  %v7995_v26 = vld [vmem:[#allocation2 + $0x3b4] sm:$0xf0]  ;;  %v7307_v22 = vld [vmem:[#allocation2 + $0x78] sm:$0xf0] }
0x19b9   : > { %v7401_v52 = vld [vmem:[#allocation2 + $0x118] sm:$0xf]  ;;  %v7722_v6 = vor.u32 %v7995_v26, %v7721_v39  ;;  %v7959_v47 = vld [vmem:[#allocation2 + $0x29c] sm:$0xf] }
0x19ba   : > { %6226 = vmatmul.bf16.vlgmr.msrb.gmra.mxu1 %v10506_v18  ;;  %6254 = vmatmul.bf16.vlgmr.msra.gmra.mxu3 %v10506_v18  ;;  %v7915_v48 = vld [vmem:[#allocation2 + $0x134] sm:$0xf0]  ;;  %v7595_v55 = vld [vmem:[#allocation2 + $0x2b8] sm:$0xf0] }
0x19bb   : > { %6278 = vmatpush.bf16.msra.mxu1 %v7618_v62  ;;  %6306 = vmatpush.bf16.msrb.mxu3 %v7622_v33  ;;  %v7689_v62 = vld [vmem:[#allocation2 + $0x358] sm:$0xf]  ;;  %v7402_v27 = vor.u32 %v7915_v48, %v7401_v52  ;;  %v7879_v49 = vld [vmem:[#allocation2 + $0x1c] sm:$0xf] }
0x19bc   : > { %6266 = vmatpush.bf16.msra.mxu0 %v7298_v5  ;;  %6294 = vmatpush.bf16.msrb.mxu2 %v7302_v10  ;;  %v7987_v33 = vld [vmem:[#allocation2 + $0x374] sm:$0xf0]  ;;  %v7275_v40 = vld [vmem:[#allocation2 + $0x38] sm:$0xf0] }
0x19bd   : > { %v7369_v5 = vld [vmem:[#allocation2 + $0xd8] sm:$0xf]  ;;  %v7690_v58 = vor.u32 %v7987_v33, %v7689_v62  ;;  %v7951_v39 = vld [vmem:[#allocation2 + $0x25c] sm:$0xf]  ;;  %v7278_v53 = vor.u32 %v7879_v49, %v7275_v40 }
0x19be   : > { %v7907_v10 = vld [vmem:[#allocation2 + $0xf4] sm:$0xf0]  ;;  %v7563_v26 = vld [vmem:[#allocation2 + $0x278] sm:$0xf0] }
0x19bf   : > { %6279 = vmatpush.bf16.msra.mxu1 %v7586_v1  ;;  %6307 = vmatpush.bf16.msrb.mxu3 %v7590_v3  ;;  %v7370_v1 = vor.u32 %v7907_v10, %v7369_v5  ;;  %v7374_v3 = vor.u32 %v7903_v15, %v7371_v45  ;;  %v7529_v52 = vld [vmem:[#allocation2 + $0x218] sm:$0xf]  ;;  %v7531_v23 = vld [vmem:[#allocation2 + $0x238] sm:$0xf0] }
0x19c0   : > { %6267 = vmatpush.bf16.msra.mxu0 %v7266_v14  ;;  %6295 = vmatpush.bf16.msrb.mxu2 %v7270_v34  ;;  %v7658_v14 = vor.u32 %v7979_v42, %v7657_v50  ;;  %v7662_v34 = vor.u32 %v7975_v51, %v7659_v38  ;;  %v7947_v48 = vld [vmem:[#allocation2 + $0x234] sm:$0xf0] }
0x19c3   : > { %6280 = vmatpush.bf16.msra.mxu1 %v7554_v32  ;;  %6308 = vmatpush.bf16.msrb.mxu3 %v7558_v11  ;;  %v7305_v32 = vld [vmem:[#allocation2 + $0x58] sm:$0xf] }
0x19c4   : > { %6316 = vmatpush.bf16.msrb.mxu0 %v7498_v20  ;;  %6344 = vmatpush.bf16.msra.mxu2 %v7502_v46  ;;  %v7625_v20 = vld [vmem:[#allocation2 + $0x2d8] sm:$0xf] }
0x19c5   : > { %6268 = vmatmul.bf16.vlgmr.msra.gmra.mxu0 %v10502_v61  ;;  %6296 = vmatmul.bf16.vlgmr.msrb.gmra.mxu2 %v10502_v61  ;;  %v7971_v46 = vld [vmem:[#allocation2 + $0x2f4] sm:$0xf0] }
0x19c6   : > { %v7891_v11 = vld [vmem:[#allocation2 + $0x74] sm:$0xf0]  ;;  %v7626_v44 = vor.u32 %v7971_v46, %v7625_v20 }
0x19c7   : > { %6281 = vmatpush.bf16.msra.mxu1 %v7522_v24  ;;  %6309 = vmatpush.bf16.msrb.mxu3 %v7526_v17  ;;  %v7594_v24 = vor.u32 %v7963_v12, %v7593_v16  ;;  %v7598_v17 = vor.u32 %v7959_v47, %v7595_v55 }
0x19c8   : > { %6317 = vmatpush.bf16.msrb.mxu0 %v7466_v2  ;;  %6345 = vmatpush.bf16.msra.mxu2 %v7470_v19  ;;  %v7306_v2 = vor.u32 %v7891_v11, %v7305_v32  ;;  %v7310_v19 = vor.u32 %v7887_v60, %v7307_v22 }
0x19ca   : > { %6282 = vmatmul.bf16.vlgmr.msra.gmra.mxu1 %v10506_v18  ;;  %6310 = vmatmul.bf16.vlgmr.msrb.gmra.mxu3 %v10506_v18 }
0x19cb   : > { %6330 = vmatpush.bf16.msrb.mxu1 %v7754_v30  ;;  %6358 = vmatpush.bf16.msra.mxu3 %v7758_v7  ;;  %v7561_v30 = vld [vmem:[#allocation2 + $0x258] sm:$0xf] }
0x19cc   : > { %6318 = vmatpush.bf16.msrb.mxu0 %v7434_v4  ;;  %6346 = vmatpush.bf16.msra.mxu2 %v7438_v36  ;;  %v7955_v7 = vld [vmem:[#allocation2 + $0x274] sm:$0xf0]  ;;  %v7566_v36 = vor.u32 %v7951_v39, %v7563_v26 }
0x19cd   : > { %v7562_v4 = vor.u32 %v7955_v7, %v7561_v30 }
0x19cf   : > { %6331 = vmatpush.bf16.msrb.mxu1 %v7722_v6  ;;  %6359 = vmatpush.bf16.msra.mxu3 %v7726_v8  ;;  %v7530_v6 = vor.u32 %v7947_v48, %v7529_v52  ;;  %v7534_v8 = vor.u32 %v7943_v0, %v7531_v23  ;;  %v8342_v48 = vld [vmem:[%s10618_s10 + $0x8] sm:$0xff]  ;;  %v8004_v0 = vld [vmem:[%s10617_s9] sm:$0xff] }
0x19d0   : > { %6319 = vmatpush.bf16.msrb.mxu0 %v7402_v27  ;;  %6347 = vmatpush.bf16.msra.mxu2 %v7406_v31 }
0x19d3   : > { %6332 = vmatpush.bf16.msrb.mxu1 %v7690_v58  ;;  %6360 = vmatpush.bf16.msra.mxu3 %v7694_v13 }
0x19d4   : > { %6320 = vmatpush.bf16.msrb.mxu0 %v7370_v1  ;;  %6348 = vmatpush.bf16.msra.mxu2 %v7374_v3  ;;  %v8006_v1 = vld [vmem:[%s10617_s9 + $0x10] sm:$0xff] }
0x19d7   : > { %6333 = vmatpush.bf16.msrb.mxu1 %v7658_v14  ;;  %6361 = vmatpush.bf16.msra.mxu3 %v7662_v34 }
0x19d8   : > { %6321 = vmatpush.bf16.msrb.mxu0 %v7338_v35  ;;  %6349 = vmatpush.bf16.msra.mxu2 %v7342_v41 }
0x19db   : > { %6334 = vmatpush.bf16.msrb.mxu1 %v7626_v44  ;;  %6362 = vmatpush.bf16.msra.mxu3 %v7630_v21 }
0x19dc   : > { %6322 = vmatpush.bf16.msrb.mxu0 %v7306_v2  ;;  %6350 = vmatpush.bf16.msra.mxu2 %v7310_v19  ;;  %v8010_v2 = vld [vmem:[%s10617_s9 + $0x30] sm:$0xff] }
0x19df   : > { %6335 = vmatpush.bf16.msrb.mxu1 %v7594_v24  ;;  %6363 = vmatpush.bf16.msra.mxu3 %v7598_v17 }
0x19e0   : > { %6323 = vmatpush.bf16.msrb.mxu0 %v7274_v28  ;;  %6351 = vmatpush.bf16.msra.mxu2 %v7278_v53 }
0x19e3   : > { %6336 = vmatpush.bf16.msrb.mxu1 %v7562_v4  ;;  %6364 = vmatpush.bf16.msra.mxu3 %v7566_v36 }
0x19e4   : > { %6324 = vmatmul.bf16.vlgmr.msrb.gmra.mxu0 %v10502_v61  ;;  %6352 = vmatmul.bf16.vlgmr.msra.gmra.mxu2 %v10502_v61 }
0x19e7   : > { %6337 = vmatpush.bf16.msrb.mxu1 %v7530_v6  ;;  %6365 = vmatpush.bf16.msra.mxu3 %v7534_v8  ;;  %v8005_v6 = vld [vmem:[%s10617_s9 + $0x8] sm:$0xff]  ;;  %v8014_v8 = vld [vmem:[%s10617_s9 + $0x50] sm:$0xff] }
0x19ea   : > { %6338 = vmatmul.bf16.vlgmr.msrb.gmra.mxu1 %v10506_v18  ;;  %6366 = vmatmul.bf16.vlgmr.msra.gmra.mxu3 %v10506_v18 }
0x1a1f   : > { %v6157_v62 = vpop.f32.mrf.mxu0 }
0x1a25   : > { %v6185_v33 = vpop.f32.mrf.mxu2 }
0x1a27   : > { %v6171_v29 = vpop.f32.mrf.mxu1  ;;  %v6159_v25 = vpop.f32.mrf.mxu0 }
0x1a28   : > { %v6172_v10 = vadd.f32 %v6171_v29, %v6157_v62 }
0x1a2d   : > { %v6199_v27 = vpop.f32.mrf.mxu3  ;;  %v6187_v31 = vpop.f32.mrf.mxu2 }
0x1a2e   : > { %v6200_v13 = vadd.f32 %v6199_v27, %v6185_v33  ;;  %v8007_v33 = vld [vmem:[%s10617_s9 + $0x18] sm:$0xff] }
0x1a2f   : > { %v6173_v5 = vpop.f32.mrf.mxu1  ;;  %v6213_v45 = vpop.f32.mrf.mxu0 }
0x1a30   : > { %v6174_v15 = vadd.f32 %v6173_v5, %v6159_v25  ;;  %v8008_v25 = vld [vmem:[%s10617_s9 + $0x20] sm:$0xff] }
0x1a32   : > { %v6404_v58 = vpack.c.bf16 %v6174_v15, %v6172_v10  ;;  %v8011_v10 = vld [vmem:[%s10617_s9 + $0x38] sm:$0xff]  ;;  %v8018_v15 = vld [vmem:[%s10617_s9 + $0x70] sm:$0xff] }
0x1a34   : > { %6411 = vrot.lane.b32.xlu0 %v6404_v58, %s8423_s24  ;;  %6447 = vmatpush.bf16.msra.mxu1 %v6404_v58  ;;  %v8013_v58 = vld [vmem:[%s10617_s9 + $0x48] sm:$0xff] }
0x1a35   : > { %v6201_v61 = vpop.f32.mrf.mxu3  ;;  %v6241_v18 = vpop.f32.mrf.mxu2 }
0x1a36   : > { %v6202_v50 = vadd.f32 %v6201_v61, %v6187_v31  ;;  %v8009_v31 = vld [vmem:[%s10617_s9 + $0x28] sm:$0xff] }
0x1a37   : > { %v6227_v42 = vpop.f32.mrf.mxu1  ;;  %v6215_v38 = vpop.f32.mrf.mxu0  ;;  %7768 = vmatmul.msk.bf16.vlgmr.msra.gmra.mxu1 %vm11199_vm7, %v8004_v0 }
0x1a38   : > { %v6454_v51 = vpack.c.bf16 %v6202_v50, %v6200_v13  ;;  %v6228_v63 = vadd.f32 %v6227_v42, %v6213_v45  ;;  %v8012_v45 = vld [vmem:[%s10617_s9 + $0x40] sm:$0xff]  ;;  %v8015_v13 = vld [vmem:[%s10617_s9 + $0x58] sm:$0xff] }
0x1a39   : > { %v8016_v50 = vld [vmem:[%s10617_s9 + $0x60] sm:$0xff] }
0x1a3a   : > { %6485 = vrot.lane.b32.xlu1 %v6454_v51, %s8423_s24  ;;  %6470 = vmatpush.bf16.msrb.mxu2 %v6454_v51 }
0x1a3d   : > { %v6255_v3 = vpop.f32.mrf.mxu3  ;;  %7773 = vmatmul.msk.bf16.vlgmr.msrb.gmra.mxu2 %vm11197_vm2, %v8006_v1  ;;  %v6243_v37 = vpop.f32.mrf.mxu2  ;;  %vm6835_vm2 = vcmask 523264  }
0x1a3e   : > { %v6256_v46 = vadd.f32 %v6255_v3, %v6241_v18  ;;  %v8017_v18 = vld [vmem:[%s10617_s9 + $0x68] sm:$0xff] }
0x1a3f   : > { %v6229_v54 = vpop.f32.mrf.mxu1 }
0x1a40   : > { %v6230_v9 = vadd.f32 %v6229_v54, %v6215_v38  ;;  %v8019_v38 = vld [vmem:[%s10617_s9 + $0x78] sm:$0xff] }
0x1a42   : > { %v6507_v14 = vpack.c.bf16 %v6230_v9, %v6228_v63  ;;  %v6269_v20 = vpop.f32.mrf.mxu0 }
0x1a44   : > { %6538 = vrot.lane.b32.xlu0 %v6507_v14, %s8423_s24 }
0x1a45   : > { %v6257_v34 = vpop.f32.mrf.mxu3 }
0x1a46   : > { %v6258_v59 = vadd.f32 %v6257_v34, %v6243_v37 }
0x1a47   : > { %v6283_v56 = vpop.f32.mrf.mxu1 }
0x1a48   : > { %v6560_v35 = vpack.c.bf16 %v6258_v59, %v6256_v46  ;;  %v6297_v41 = vpop.f32.mrf.mxu2  ;;  %v6284_v22 = vadd.f32 %v6283_v56, %v6269_v20 }
0x1a4a   : > { %6591 = vrot.lane.b32.xlu2 %v6560_v35, %s8423_s24  ;;  %6576 = vmatpush.bf16.msra.mxu2 %v6560_v35  ;;  %v6271_v11 = vpop.f32.mrf.mxu0 }
0x1a4d   : > { %v6311_v32 = vpop.f32.mrf.mxu3  ;;  %7793 = vmatmul.msk.bf16.vlgmr.msra.gmra.mxu2 %vm11198_vm5, %v8010_v2 }
0x1a4e   : > { %v6312_v47 = vadd.f32 %v6311_v32, %v6297_v41 }
0x1a4f   : > { %v6285_v60 = vpop.f32.mrf.mxu1 }
0x1a50   : > { %v6286_v44 = vadd.f32 %v6285_v60, %v6271_v11  ;;  %v6299_v16 = vpop.f32.mrf.mxu2 }
0x1a52   : > { %v6613_v21 = vpack.c.bf16 %v6286_v44, %v6284_v22 }
0x1a54   : > { %6644 = vrot.lane.b32.xlu2 %v6613_v21, %s8423_s24 }
0x1a55   : > { %v6313_v12 = vpop.f32.mrf.mxu3 }
0x1a56   : > { %v6314_v55 = vadd.f32 %v6313_v12, %v6299_v16 }
0x1a58   : > { %v6666_v19 = vpack.c.bf16 %v6314_v55, %v6312_v47 }
0x1a5a   : > { %6697 = vrot.lane.b32.xlu1 %v6666_v19, %s8423_s24  ;;  %6682 = vmatpush.bf16.msrb.mxu2 %v6666_v19 }
0x1a5c   : > { %6826 = vperm.xlu2 %8106, %v8341_v57  }
0x1a5d   : > { %7813 = vmatmul.msk.bf16.vlgmr.msrb.gmra.mxu2 %vm11201_vm1, %v8014_v8 }
0x1a61   : > { %v6325_v43 = vpop.f32.mrf.mxu0 }
0x1a67   : > { %v6339_v49 = vpop.f32.mrf.mxu1  ;;  %v6353_v40 = vpop.f32.mrf.mxu2 }
0x1a68   : > { %v6340_v7 = vadd.f32 %v6339_v49, %v6325_v43 }
0x1a69   : > { %v6327_v17 = vpop.f32.mrf.mxu0 }
0x1a6d   : > { %v6367_v24 = vpop.f32.mrf.mxu3 }
0x1a6e   : > { %v6368_v4 = vadd.f32 %v6367_v24, %v6353_v40 }
0x1a6f   : > { %v6341_v30 = vpop.f32.mrf.mxu1  ;;  %v6355_v28 = vpop.f32.mrf.mxu2 }
0x1a70   : > { %v6342_v39 = vadd.f32 %v6341_v30, %v6327_v17 }
0x1a72   : > { %v6719_v26 = vpack.c.bf16 %v6342_v39, %v6340_v7 }
0x1a74   : > { %6750 = vrot.lane.b32.xlu1 %v6719_v26, %s8423_s24 }
0x1a75   : > { %v6369_v53 = vpop.f32.mrf.mxu3 }
0x1a76   : > { %v6370_v36 = vadd.f32 %v6369_v53, %v6355_v28 }
0x1a78   : > { %v6772_v52 = vpack.c.bf16 %v6370_v36, %v6368_v4 }
0x1a7a   : > { %6788 = vmatpush.bf16.msra.mxu2 %v6772_v52  ;;  %6803 = vrot.lane.b32.xlu0 %v6772_v52, %s8423_s24 }
0x1a7d   : > { %7833 = vmatmul.msk.bf16.vlgmr.msra.gmra.mxu2 %vm11206_vm14, %v8018_v15 }
0x1a82   : > { %6830 = vperm.xlu0 %8107, %v8342_v48  }
0x1aa4   : > { %v6592_v29 = vpop.permute.xlu2 %6591 }
0x1aa6   : > { %v6412_v23 = vpop.permute.xlu0 %6411 }
0x1aa7   : > { %6425 = vmatpush.bf16.msra.mxu0 %v6412_v23 }
0x1aaa   : > { %7763 = vmatmul.msk.bf16.vlgmr.msra.gmra.mxu0 %vm11200_vm6, %v8005_v6 }
0x1aab   : > { %6523 = vmatpush.bf16.msrb.mxu0 %v6507_v14 }
0x1aac   : > { %v6486_v62 = vpop.permute.xlu1 %6485 }
0x1aad   : > { %6498 = vmatpush.bf16.msrb.mxu3 %v6486_v62 }
0x1aae   : > { %v6645_v5 = vpop.permute.xlu2 %6644 }
0x1aaf   : > { %6629 = vmatpush.bf16.msra.mxu0 %v6613_v21 }
0x1ab0   : > { %7778 = vmatmul.msk.bf16.vlgmr.msrb.gmra.mxu3 %vm11202_vm13, %v8007_v33 }
0x1ab1   : > { %6604 = vmatpush.bf16.msra.mxu3 %v6592_v29 }
0x1ab4   : > { %v6449_v3 = vpop.f32.mrf.mxu1 }
0x1ab6   : > { %v6539_v27 = vpop.permute.xlu0 %6538 }
0x1ab7   : > { %6551 = vmatpush.bf16.msrb.mxu1 %v6539_v27 }
0x1aba   : > { %7783 = vmatmul.msk.bf16.vlgmr.msrb.gmra.mxu0 %vm11203_vm4, %v8008_v25  ;;  %7788 = vmatmul.msk.bf16.vlgmr.msrb.gmra.mxu1 %vm11204_vm15, %v8009_v31 }
0x1abb   : > { %6657 = vmatpush.bf16.msra.mxu1 %v6645_v5  ;;  %6735 = vmatpush.bf16.msrb.mxu0 %v6719_v26 }
0x1abc   : > { %v6451_v37 = vpop.f32.mrf.mxu1 }
0x1ac0   : > { %7798 = vmatmul.msk.bf16.vlgmr.msra.gmra.mxu3 %vm11205_vm0, %v8011_v10  ;;  %v6472_v54 = vpop.f32.mrf.mxu2  ;;  %v6827_v10 = vpop.permute.xlu2 %6826 }
0x1ac8   : > { %v6474_v14 = vpop.f32.mrf.mxu2 }
0x1aca   : > { %7803 = vmatmul.msk.bf16.vlgmr.msra.gmra.mxu0 %vm11207_vm12, %v8012_v45  ;;  %7808 = vmatmul.msk.bf16.vlgmr.msra.gmra.mxu1 %vm11208_vm11, %v8013_v58 }
0x1acc   : > { %v6698_v61 = vpop.permute.xlu1 %6697 }
0x1acd   : > { %6710 = vmatpush.bf16.msrb.mxu3 %v6698_v61 }
0x1ad0   : > { %7818 = vmatmul.msk.bf16.vlgmr.msrb.gmra.mxu3 %vm11209_vm9, %v8015_v13  ;;  %v6578_v56 = vpop.f32.mrf.mxu2 }
0x1ad8   : > { %v6580_v21 = vpop.f32.mrf.mxu2 }
0x1ada   : > { %7823 = vmatmul.msk.bf16.vlgmr.msrb.gmra.mxu0 %vm11210_vm10, %v8016_v50 }
0x1ae0   : > { %v6684_v43 = vpop.f32.mrf.mxu2 }
0x1ae6   : > { %v6751_v42 = vpop.permute.xlu1 %6750 }
0x1ae7   : > { %6763 = vmatpush.bf16.msrb.mxu1 %v6751_v42 }
0x1ae8   : > { %v6686_v53 = vpop.f32.mrf.mxu2 }
0x1aea   : > { %7828 = vmatmul.msk.bf16.vlgmr.msrb.gmra.mxu1 %vm11211_vm3, %v8017_v18 }
0x1aec   : > { %v6804_v51 = vpop.permute.xlu0 %6803 }
0x1aed   : > { %6816 = vmatpush.bf16.msra.mxu3 %v6804_v51 }
0x1af0   : > { %7838 = vmatmul.msk.bf16.vlgmr.msra.gmra.mxu3 %vm11212_vm8, %v8019_v38 }
0x1af4   : > { %v6831_v38 = vpop.permute.xlu0 %6830 }
0x1b00   : > { %v6790_v33 = vpop.f32.mrf.mxu2 }
0x1b08   : > { %v6792_v42 = vpop.f32.mrf.mxu2 }
0x1b27   : > { %v6427_v1 = vpop.f32.mrf.mxu0 }
0x1b28   : > { %v6450_v59 = vadd.f32 %v6449_v3, %v6427_v1 }
0x1b2a   : > { %v6477_v35 = vadd.f32 %v6472_v54, %v6450_v59 }
0x1b2f   : > { %v6429_v63 = vpop.f32.mrf.mxu0 }
0x1b30   : > { %v6452_v22 = vadd.f32 %v6451_v37, %v6429_v63 }
0x1b32   : > { %v6478_v12 = vadd.f32 %v6474_v14, %v6452_v22 }
0x1b33   : > { %v6500_v9 = vpop.f32.mrf.mxu3 }
0x1b34   : > { %v6505_v32 = vadd.f32 %v6500_v9, %v6477_v35 }
0x1b37   : > { %v6525_v34 = vpop.f32.mrf.mxu0  ;;  %v6553_v46 = vpop.f32.mrf.mxu1 }
0x1b38   : > { %v6530_v44 = vadd.f32 %v6525_v34, %v6505_v32 }
0x1b3a   : > { %v6558_v47 = vadd.f32 %v6553_v46, %v6530_v44 }
0x1b3b   : > { %v6502_v20 = vpop.f32.mrf.mxu3 }
0x1b3c   : > { %v6506_v19 = vadd.f32 %v6502_v20, %v6478_v12  ;;  %v6583_v57 = vadd.f32 %v6578_v56, %v6558_v47 }
0x1b3f   : > { %v6527_v41 = vpop.f32.mrf.mxu0  ;;  %v6555_v60 = vpop.f32.mrf.mxu1 }
0x1b40   : > { %v6531_v40 = vadd.f32 %v6527_v41, %v6506_v19 }
0x1b42   : > { %v6559_v17 = vadd.f32 %v6555_v60, %v6531_v40 }
0x1b43   : > { %v6606_v11 = vpop.f32.mrf.mxu3 }
0x1b44   : > { %v6611_v49 = vadd.f32 %v6606_v11, %v6583_v57  ;;  %v6584_v26 = vadd.f32 %v6580_v21, %v6559_v17 }
0x1b47   : > { %v6631_v16 = vpop.f32.mrf.mxu0  ;;  %v6659_v2 = vpop.f32.mrf.mxu1 }
0x1b48   : > { %v6636_v30 = vadd.f32 %v6631_v16, %v6611_v49 }
0x1b4a   : > { %v6664_v28 = vadd.f32 %v6659_v2, %v6636_v30 }
0x1b4b   : > { %v6608_v55 = vpop.f32.mrf.mxu3 }
0x1b4c   : > { %v6612_v4 = vadd.f32 %v6608_v55, %v6584_v26  ;;  %v6689_v52 = vadd.f32 %v6684_v43, %v6664_v28 }
0x1b4f   : > { %v6633_v24 = vpop.f32.mrf.mxu0  ;;  %v6661_v39 = vpop.f32.mrf.mxu1 }
0x1b50   : > { %v6637_v48 = vadd.f32 %v6633_v24, %v6612_v4 }
0x1b52   : > { %v6665_v8 = vadd.f32 %v6661_v39, %v6637_v48 }
0x1b53   : > { %v6712_v7 = vpop.f32.mrf.mxu3 }
0x1b54   : > { %v6717_v23 = vadd.f32 %v6712_v7, %v6689_v52  ;;  %v6690_v25 = vadd.f32 %v6686_v53, %v6665_v8 }
0x1b57   : > { %v6737_v36 = vpop.f32.mrf.mxu0 }
0x1b58   : > { %v6742_v62 = vadd.f32 %v6737_v36, %v6717_v23 }
0x1b5b   : > { %v6714_v6 = vpop.f32.mrf.mxu3 }
0x1b5c   : > { %v6718_v31 = vadd.f32 %v6714_v6, %v6690_v25 }
0x1b5f   : > { %v6739_v27 = vpop.f32.mrf.mxu0 }
0x1b60   : > { %v6743_v61 = vadd.f32 %v6739_v27, %v6718_v31 }
0x1b67   : > { %v6765_v0 = vpop.f32.mrf.mxu1 }
0x1b68   : > { %v6770_v29 = vadd.f32 %v6765_v0, %v6742_v62 }
0x1b6a   : > { %v6795_v5 = vadd.f32 %v6790_v33, %v6770_v29 }
0x1b6f   : > { %v6767_v45 = vpop.f32.mrf.mxu1 }
0x1b70   : > { %v6771_v13 = vadd.f32 %v6767_v45, %v6743_v61 }
0x1b72   : > { %v6796_v18 = vadd.f32 %v6792_v42, %v6771_v13 }
0x1b73   : > { %v6818_v15 = vpop.f32.mrf.mxu3 }
0x1b74   : > { %v6823_v58 = vadd.f32 %v6818_v15, %v6795_v5 }
0x1b76   : > { %v6833_v50 = vadd.f32 %v6827_v10, %v6823_v58 }
0x1b78   : > { %6836 = vst.msk [vmem:[%s417_s29] sm:$0xff] %vm6835_vm2, %v6833_v50 }
0x1b7b   : > { %v6820_v51 = vpop.f32.mrf.mxu3 }
0x1b7c   : > { %v6824_v1 = vadd.f32 %v6820_v51, %v6796_v18 }
0x1b7e   : > { %v6834_v3 = vadd.f32 %v6831_v38, %v6824_v1 }
0x1b80   : > { %6837 = vst.msk [vmem:[%s417_s29 + $0x8] sm:$0xff] %vm6835_vm2, %v6834_v3 }
0x1b81 PF: > { %s22_s17 = sadd.s32 1, %s8383_s17  }
0x1b82   : > { %p19_p7 = scmp.ge.s32.totalorder %s22_s17, 4  }
0x1b84   :  { %21 = sbr.rel (!%p19_p7) target bundleno = 1 (0x1), region = 105 }
0x1b89   :  { %6859 = vsyncpa [#allocation3], 1 }
0x1b8a   :  { %6861 = vsyncpa [#allocation3 + $0x1], 1 }

</bundles_post_ra>
